<compile_context>
chip_gen: v7x
topology: tpu7x:2x2x1
jax: 0.10.0
libtpu: 0.0.40
codegen_flags: <defaults>
</compile_context>

<pallas_src>
import functools

import jax
import jax.numpy as jnp
from jax import lax
from jax.experimental import pallas as pl
from jax.experimental.pallas import tpu as pltpu

_PAD = 8  # zero-pad rows for the conv scratch (>= d_conv - 1, sublane aligned)


# -----------------------------------------------------------------------------
# Pallas kernel: one grid step == one batch element.
# -----------------------------------------------------------------------------
def _pvmamba_kernel(x_ref, ln_w_ref, ln_b_ref, w_in_ref, conv_wt_ref,
                    conv_b_ref, w_x_ref, b_dt_ref, a_log_t_ref, d_ref,
                    w_out_ref, proj_wt_ref, proj_b_ref, skip_ref, o_ref,
                    cv_ref, dl_ref, du_ref, bc_ref, yy_ref,
                    *, L, C, d_model, d_inner, d_state, d_conv, t_blk,
                    mm_dtype):
    f32 = jnp.float32
    L4 = 4 * L

    x = x_ref[0]                          # (L, C)
    ln_w = ln_w_ref[...]                  # (1, C)
    ln_b = ln_b_ref[...]                  # (1, C)
    conv_wt = conv_wt_ref[...]            # (d_conv, d_inner)
    conv_b = conv_b_ref[...]              # (1, d_inner)
    b_dt = b_dt_ref[...]                  # (1, d_inner)
    A_T = -jnp.exp(a_log_t_ref[...])      # (d_state, d_inner)
    Dv = d_ref[...]                       # (1, d_inner)
    proj_b = proj_b_ref[...]              # (out_dim, 1)
    skip = skip_ref[0]                    # scalar (SMEM)

    def layernorm(v):
        mu = jnp.mean(v, axis=-1, keepdims=True)
        dd = v - mu
        var = jnp.mean(dd * dd, axis=-1, keepdims=True)
        return dd * lax.rsqrt(var + 1e-5) * ln_w + ln_b

    def silu(v):
        return v * jax.nn.sigmoid(v)

    # ---- LayerNorm, then stack the 4 channel-chunks along rows: (4L, d_model).
    # TODO(synk): if d_model % 128 != 0 at production size, pad d_model (or use
    # block-diagonal in/out projections) so this stack/unstack is lane-aligned.
    xn = layernorm(x)                                             # (L, C)
    xc_all = jnp.concatenate(
        [xn[:, c * d_model:(c + 1) * d_model] for c in range(4)], axis=0)

    # ---- fused in_proj: x and z branches in a single matmul (bf16 -> f32 acc).
    xz = jnp.dot(xc_all.astype(mm_dtype), w_in_ref[...],
                 preferred_element_type=f32)                      # (4L, 2*di)
    xin = xz[:, :d_inner]
    z = xz[:, d_inner:]

    # ---- depthwise causal conv1d (per chunk) via shifted reads from a
    #      zero-padded VMEM scratch buffer (no (L,L) shift matrices).
    #      Note: the pad init is per grid step on purpose — hoisting it under
    #      program_id==0 is unsafe when the batch axis is core-parallel
    #      (scratch is per-core); the (8, d_inner) store is negligible.
    cv_ref[0:_PAD, :] = jnp.zeros((_PAD, d_inner), f32)
    cv_ref[_PAD:_PAD + L4, :] = xin
    rr = lax.broadcasted_iota(jnp.int32, (L4, 1), 0)
    u = xin * conv_wt[d_conv - 1:d_conv, :]                       # shift s = 0
    for s in range(1, d_conv):
        sh = cv_ref[_PAD - s:_PAD - s + L4, :]                    # rows shifted by s
        wk = conv_wt[d_conv - 1 - s:d_conv - s, :]                # (1, di)
        bad = rr < s                                              # per-chunk causal mask
        for c in range(1, 4):
            bad = bad | ((rr >= c * L) & (rr < c * L + s))
        u = u + jnp.where(bad, 0.0, sh * wk)
    u = silu(u + conv_b)

    # ---- fused x_proj (dt | B | C) with precomposed dt_proj, then softplus.
    xall = jnp.dot(u.astype(mm_dtype), w_x_ref[...],
                   preferred_element_type=f32)                    # (4L, di+2ds)
    delta = jax.nn.softplus(xall[:, :d_inner] + b_dt)             # (4L, di)

    dl_ref[...] = delta
    du_ref[...] = delta * u
    bc_ref[...] = xall[:, d_inner:]                               # (4L, 2*ds) [B|C]

    # Identity used to transpose each (t_blk, 2*ds) block to (2*ds, t_blk) on
    # the otherwise-idle MXU (replaces per-timestep eye-mult + XLU reductions).
    eye_t = (lax.broadcasted_iota(jnp.int32, (t_blk, t_blk), 0) ==
             lax.broadcasted_iota(jnp.int32, (t_blk, t_blk), 1)).astype(f32)
    trans_dims = (((0,), (0,)), ((), ()))

    n_blk = L // t_blk

    # ---- selective scan, blocked over time: per iteration, one (T, .) load /
    #      store slab per chunk; 4 independent chunk states carried.
    def body(blk, hs):
        new_hs = []
        for c in range(4):
            off = c * L + blk * t_blk
            d_blk = dl_ref[pl.ds(off, t_blk), :]                  # (T, di)
            u_blk = du_ref[pl.ds(off, t_blk), :]                  # (T, di)
            bc_blk = bc_ref[pl.ds(off, t_blk), :]                 # (T, 2*ds)
            bcT = lax.dot_general(bc_blk, eye_t, trans_dims,
                                  preferred_element_type=f32)     # (2*ds, T)
            bT = bcT[:d_state, :]                                 # (ds, T)
            cT = bcT[d_state:, :]                                 # (ds, T)
            h = hs[c]
            ys = []
            for t in range(t_blk):
                dA = jnp.exp(d_blk[t:t + 1, :] * A_T)             # (ds, di)
                h = dA * h + bT[:, t:t + 1] * u_blk[t:t + 1, :]   # (ds, di)
                ys.append(jnp.sum(h * cT[:, t:t + 1], axis=0,
                                  keepdims=True))                 # (1, di)
            yy_ref[pl.ds(off, t_blk), :] = jnp.concatenate(ys, axis=0)
            new_hs.append(h)
        return tuple(new_hs)

    h0 = tuple(jnp.zeros((d_state, d_inner), f32) for _ in range(4))
    _ = lax.fori_loop(0, n_blk, body, h0)

    # ---- gate, out_proj, residual skip (residual path stays f32-exact).
    y = (yy_ref[...] + u * Dv) * silu(z)                          # (4L, di)
    res = jnp.dot(y.astype(mm_dtype), w_out_ref[...],
                  preferred_element_type=f32) + skip * xc_all     # (4L, dm)

    # ---- un-stack chunks back to (L, C), second LayerNorm, final projection.
    xm = jnp.concatenate(
        [res[c * L:(c + 1) * L, :] for c in range(4)], axis=1)    # (L, C)
    xm = layernorm(xm)

    # lane-dense output: (out_dim, L) = proj_wt @ xm^T via a trans_b
    # contraction (no materialized (C, L) transpose of xm).
    out_t = lax.dot_general(proj_wt_ref[...], xm.astype(mm_dtype),
                            (((1,), (1,)), ((), ())),
                            preferred_element_type=f32) + proj_b  # (out_dim, L)
    o_ref[0] = out_t.astype(o_ref.dtype)


# -----------------------------------------------------------------------------
# Wrapper
# -----------------------------------------------------------------------------
def pvmamba_pallas(x_nchw, params, d_conv=4, mm_dtype=jnp.bfloat16):
    Bn, C, H, W = x_nchw.shape
    assert C % 4 == 0, "PVMamba requires input_dim % 4 == 0"
    L = H * W
    out_dim = params['proj_w'].shape[1]
    d_model = C // 4
    d_inner = params['w_in_x'].shape[1]
    d_state = params['w_xB'].shape[1]

    # Time-block size for the selective scan (amortizes scan loads/stores).
    t_blk = 8
    while L % t_blk:
        t_blk //= 2

    x_tok = jnp.transpose(x_nchw.reshape(Bn, C, L), (0, 2, 1)).astype(jnp.float32)

    # Host-side weight packing: fuse small projections; large matmul weights
    # are cast to bf16 (f32 accumulation inside the kernel).
    w_in_xz = jnp.concatenate([params['w_in_x'], params['w_in_z']],
                              axis=1).astype(mm_dtype)
    w_x_fused = jnp.concatenate(
        [params['w_dt_full'], params['w_xB'], params['w_xC']],
        axis=1).astype(mm_dtype)
    w_out = params['w_out'].astype(mm_dtype)
    proj_wt = jnp.transpose(params['proj_w']).astype(mm_dtype)    # (out_dim, C)
    proj_bc = params['proj_b'].reshape(out_dim, 1).astype(jnp.float32)
    skip = params['skip'].reshape(1).astype(jnp.float32)

    vmem_weights = [
        params['ln_w'], params['ln_b'], w_in_xz, params['conv_wt'],
        params['conv_b'], w_x_fused, params['b_dt'], params['a_log_t'],
        params['d_vec'], w_out, proj_wt, proj_bc,
    ]

    kernel = functools.partial(
        _pvmamba_kernel, L=L, C=C, d_model=d_model, d_inner=d_inner,
        d_state=d_state, d_conv=d_conv, t_blk=t_blk, mm_dtype=mm_dtype)

    def full_spec(a):
        zeros = (0,) * a.ndim
        return pl.BlockSpec(a.shape, lambda b, _z=zeros: _z)

    in_specs = [pl.BlockSpec((1, L, C), lambda b: (b, 0, 0))]
    in_specs += [full_spec(w) for w in vmem_weights]
    in_specs += [pl.BlockSpec(memory_space=pltpu.SMEM)]           # skip scalar
    out_specs = pl.BlockSpec((1, out_dim, L), lambda b: (b, 0, 0))

    scratch = [
        pltpu.VMEM((_PAD + 4 * L, d_inner), jnp.float32),         # conv buffer
        pltpu.VMEM((4 * L, d_inner), jnp.float32),                # delta
        pltpu.VMEM((4 * L, d_inner), jnp.float32),                # delta * u
        pltpu.VMEM((4 * L, 2 * d_state), jnp.float32),            # [B | C]
        pltpu.VMEM((4 * L, d_inner), jnp.float32),                # scan output Y
    ]

    # Explicit VMEM budget: scratch + double-buffered I/O blocks + headroom
    # for the large matmul temporaries (xz, xall, u, z, y, res, xn, xm).
    fb = 4
    est = fb * ((_PAD + 4 * L) * d_inner + 3 * (4 * L) * d_inner
                + (4 * L) * 2 * d_state                           # scratch
                + 2 * (L * C + out_dim * L)                       # I/O x2 buffers
                + 4 * L * (4 * d_inner + 2 * d_state)             # temporaries
                + 3 * L * C)
    vmem_limit = int(min(max(2 * est, 32 * 1024 * 1024), 96 * 1024 * 1024))
    # TODO(synk): grid-invariant weight inputs could use pipeline_mode=
    # pl.Buffered(1) to drop their second buffer (small VMEM headroom on v7x).

    out = pl.pallas_call(
        kernel,
        out_shape=jax.ShapeDtypeStruct((Bn, out_dim, L), jnp.float32),
        grid_spec=pltpu.PrefetchScalarGridSpec(
            num_scalar_prefetch=0,
            grid=(Bn,),
            in_specs=in_specs,
            out_specs=out_specs,
            scratch_shapes=scratch,
        ),
        compiler_params=pltpu.CompilerParams(
            dimension_semantics=("parallel",),
            vmem_limit_bytes=vmem_limit),
    )(x_tok, *vmem_weights, skip)

    # Output is already channel-major and lane-dense: just reshape to NCHW.
    return out.reshape(Bn, out_dim, H, W)


# -----------------------------------------------------------------------------
# Deterministic parameter construction (synthetic; shapes follow the module).
# -----------------------------------------------------------------------------
def init_params(key, input_dim, output_dim, d_state=16, d_conv=4, expand=2):
    d_model = input_dim // 4
    d_inner = expand * d_model
    dt_rank = max(1, -(-d_model // 16))   # ceil(d_model / 16)
    ks = jax.random.split(key, 11)

    def rnd(k, shape, scale):
        return jax.random.normal(k, shape, jnp.float32) * scale

    w_in = rnd(ks[0], (d_model, 2 * d_inner), d_model ** -0.5)
    conv_w = rnd(ks[1], (d_inner, d_conv), 0.4)
    conv_b = rnd(ks[2], (d_inner,), 0.1)
    w_xproj = rnd(ks[3], (d_inner, dt_rank + 2 * d_state), d_inner ** -0.5)
    w_dt = rnd(ks[4], (dt_rank, d_inner), dt_rank ** -0.5)
    b_dt = rnd(ks[5], (d_inner,), 0.2)
    a_log = jnp.log(jnp.tile(jnp.arange(1, d_state + 1, dtype=jnp.float32)[None, :],
                             (d_inner, 1)))
    d_vec = jnp.ones((d_inner,), jnp.float32)
    w_out = rnd(ks[6], (d_inner, d_model), d_inner ** -0.5)
    ln_w = 1.0 + 0.1 * jax.random.normal(ks[7], (input_dim,), jnp.float32)
    ln_b = 0.05 * jax.random.normal(ks[8], (input_dim,), jnp.float32)
    proj_w = rnd(ks[9], (input_dim, output_dim), input_dim ** -0.5)
    proj_b = rnd(ks[10], (output_dim,), 0.1)
    skip = jnp.ones((1, 1), jnp.float32)          # skip_scale = ones(1)

    # Decompose / pre-layout for the kernel.
    w_x_dt = w_xproj[:, :dt_rank]
    w_xB = w_xproj[:, dt_rank:dt_rank + d_state]
    w_xC = w_xproj[:, dt_rank + d_state:]
    w_dt_full = w_x_dt @ w_dt                     # exact composition of two linears

    return dict(
        ln_w=ln_w.reshape(1, input_dim), ln_b=ln_b.reshape(1, input_dim),
        w_in_x=w_in[:, :d_inner], w_in_z=w_in[:, d_inner:],
        conv_wt=conv_w.T,                          # (d_conv, d_inner)
        conv_b=conv_b.reshape(1, d_inner),
        w_xB=w_xB, w_xC=w_xC,
        w_dt_full=w_dt_full, b_dt=b_dt.reshape(1, d_inner),
        a_log_t=a_log.T,                           # (d_state, d_inner)
        d_vec=d_vec.reshape(1, d_inner),
        w_out=w_out,
        proj_w=proj_w, proj_b=proj_b.reshape(1, output_dim),
        skip=skip,
    )


# -----------------------------------------------------------------------------
# Pure-JAX reference (same math as the PyTorch module / mamba_ssm), f32.
# -----------------------------------------------------------------------------
def pvmamba_reference(x_nchw, params, d_conv=4):
    P = jax.lax.Precision.HIGHEST
    Bn, C, H, W = x_nchw.shape
    L = H * W
    x = jnp.transpose(x_nchw.reshape(Bn, C, L), (0, 2, 1)).astype(jnp.float32)
    ln_w, ln_b = params['ln_w'], params['ln_b']

    def ln(v):
        mu = jnp.mean(v, -1, keepdims=True)
        var = jnp.mean((v - mu) ** 2, -1, keepdims=True)
        return (v - mu) * jax.lax.rsqrt(var + 1e-5) * ln_w + ln_b

    d_model = C // 4
    d_inner = params['w_in_x'].shape[1]
    A = -jnp.exp(params['a_log_t'].T)              # (d_inner, d_state)

    def mamba(xc):
        xin = jnp.einsum('bld,de->ble', xc, params['w_in_x'], precision=P)
        z = jnp.einsum('bld,de->ble', xc, params['w_in_z'], precision=P)
        pad = jnp.pad(xin, ((0, 0), (d_conv - 1, 0), (0, 0)))
        u = sum(pad[:, k:k + L, :] * params['conv_wt'][k][None, None, :]
                for k in range(d_conv))
        u = jax.nn.silu(u + params['conv_b'][0])
        B_ssm = jnp.einsum('bld,ds->bls', u, params['w_xB'], precision=P)
        C_ssm = jnp.einsum('bld,ds->bls', u, params['w_xC'], precision=P)
        delta = jax.nn.softplus(
            jnp.einsum('bld,de->ble', u, params['w_dt_full'], precision=P)
            + params['b_dt'][0])
        dA = jnp.exp(delta[..., None] * A)                          # (B,L,di,ds)
        dBu = (delta * u)[..., None] * B_ssm[:, :, None, :]

        def step(h, xs):
            dA_t, dBu_t = xs
            h = dA_t * h + dBu_t
            return h, h

        h0 = jnp.zeros((xc.shape[0], d_inner, params['w_xB'].shape[1]),
                       jnp.float32)
        _, hs = jax.lax.scan(step, h0,
                             (jnp.swapaxes(dA, 0, 1), jnp.swapaxes(dBu, 0, 1)))
        hs = jnp.swapaxes(hs, 0, 1)                                 # (B,L,di,ds)
        y = jnp.sum(hs * C_ssm[:, :, None, :], -1) + u * params['d_vec'][0]
        y = y * jax.nn.silu(z)
        return jnp.einsum('bld,de->ble', y, params['w_out'], precision=P)

    xn = ln(x)
    skip = params['skip'][0, 0]
    outs = []
    for c in range(4):
        xc = xn[..., c * d_model:(c + 1) * d_model]
        outs.append(mamba(xc) + skip * xc)
    xm = ln(jnp.concatenate(outs, -1))
    out = jnp.einsum('blc,co->blo', xm, params['proj_w'], precision=P) \
        + params['proj_b'][0]
    out_dim = params['proj_w'].shape[1]
    return jnp.transpose(out, (0, 2, 1)).reshape(Bn, out_dim, H, W)


# -----------------------------------------------------------------------------
if __name__ == "__main__":
    key = jax.random.PRNGKey(0)
    k_x, k_p = jax.random.split(key)

    B, C, H, W = 2, 16, 8, 8          # input_dim = 16  -> d_model=4, d_inner=8
    output_dim = 16

    x = jax.random.normal(k_x, (B, C, H, W), jnp.float32)
    params = init_params(k_p, C, output_dim)

    out = pvmamba_pallas(x, params)
    out = jax.block_until_ready(out)
    assert out.shape == (B, output_dim, H, W), out.shape

    ref = pvmamba_reference(x, params)
    max_ref = float(jnp.max(jnp.abs(ref)))
    max_err = float(jnp.max(jnp.abs(out - ref)))
    # Kernel uses bf16 matmul operands (f32 accumulation); the reference is
    # pure f32, so use a relative tolerance on the max-magnitude scale.
    tol = 5e-2 * max(1.0, max_ref)
    if max_err > tol:
        raise AssertionError(
            f"kernel/reference mismatch, max abs err = {max_err} (tol {tol})")

    print("KERNEL_OK")
</pallas_src>

<mosaic_0001>
module attributes {stable_mosaic.version = 11 : i64} {
  func.func @_pvmamba_kernel(%arg0: i32, %arg1: memref<1x64x16xf32, #tpu.memory_space<vmem>>, %arg2: memref<1x16xf32, #tpu.memory_space<vmem>>, %arg3: memref<1x16xf32, #tpu.memory_space<vmem>>, %arg4: memref<4x16xbf16, #tpu.memory_space<vmem>>, %arg5: memref<4x8xf32, #tpu.memory_space<vmem>>, %arg6: memref<1x8xf32, #tpu.memory_space<vmem>>, %arg7: memref<8x40xbf16, #tpu.memory_space<vmem>>, %arg8: memref<1x8xf32, #tpu.memory_space<vmem>>, %arg9: memref<16x8xf32, #tpu.memory_space<vmem>>, %arg10: memref<1x8xf32, #tpu.memory_space<vmem>>, %arg11: memref<8x4xbf16, #tpu.memory_space<vmem>>, %arg12: memref<16x16xbf16, #tpu.memory_space<vmem>>, %arg13: memref<16x1xf32, #tpu.memory_space<vmem>>, %arg14: memref<1xf32, #tpu.memory_space<smem>>, %arg15: memref<1x16x64xf32, #tpu.memory_space<vmem>>, %arg16: memref<264x8xf32, #tpu.memory_space<vmem>>, %arg17: memref<256x8xf32, #tpu.memory_space<vmem>>, %arg18: memref<256x8xf32, #tpu.memory_space<vmem>>, %arg19: memref<256x32xf32, #tpu.memory_space<vmem>>, %arg20: memref<256x8xf32, #tpu.memory_space<vmem>>) attributes {dimension_semantics = [#tpu.dimension_semantics<parallel>], iteration_bounds = array<i64: 2>, scalar_prefetch = 0 : i64, scratch_operands = 5 : i64, tpu.core_type = #tpu.core_type<tc>, window_params = [{transform_indices = @transform_0, window_bounds = array<i64: 1, 64, 16>}, {pipeline_mode = #tpu.pipeline_mode<synchronous>, transform_indices = @transform_1, window_bounds = array<i64: 1, 16>}, {pipeline_mode = #tpu.pipeline_mode<synchronous>, transform_indices = @transform_2, window_bounds = array<i64: 1, 16>}, {pipeline_mode = #tpu.pipeline_mode<synchronous>, transform_indices = @transform_3, window_bounds = array<i64: 4, 16>}, {pipeline_mode = #tpu.pipeline_mode<synchronous>, transform_indices = @transform_4, window_bounds = array<i64: 4, 8>}, {pipeline_mode = #tpu.pipeline_mode<synchronous>, transform_indices = @transform_5, window_bounds = array<i64: 1, 8>}, {pipeline_mode = #tpu.pipeline_mode<synchronous>, transform_indices = @transform_6, window_bounds = array<i64: 8, 40>}, {pipeline_mode = #tpu.pipeline_mode<synchronous>, transform_indices = @transform_7, window_bounds = array<i64: 1, 8>}, {pipeline_mode = #tpu.pipeline_mode<synchronous>, transform_indices = @transform_8, window_bounds = array<i64: 16, 8>}, {pipeline_mode = #tpu.pipeline_mode<synchronous>, transform_indices = @transform_9, window_bounds = array<i64: 1, 8>}, {pipeline_mode = #tpu.pipeline_mode<synchronous>, transform_indices = @transform_10, window_bounds = array<i64: 8, 4>}, {pipeline_mode = #tpu.pipeline_mode<synchronous>, transform_indices = @transform_11, window_bounds = array<i64: 16, 16>}, {pipeline_mode = #tpu.pipeline_mode<synchronous>, transform_indices = @transform_12, window_bounds = array<i64: 16, 1>}, {transform_indices = @transform_13, window_bounds = array<i64: 1>}, {transform_indices = @transform_14, window_bounds = array<i64: 1, 16, 64>}]} {
    %c0 = arith.constant 0 : index
    %c0_0 = arith.constant 0 : index
    %c0_1 = arith.constant 0 : index
    %0 = vector.load %arg1[%c0, %c0_0, %c0_1] : memref<1x64x16xf32, #tpu.memory_space<vmem>>, vector<1x64x16xf32>
    %1 = vector.shape_cast %0 : vector<1x64x16xf32> to vector<64x16xf32>
    %c0_2 = arith.constant 0 : index
    %c0_3 = arith.constant 0 : index
    %2 = vector.load %arg2[%c0_2, %c0_3] : memref<1x16xf32, #tpu.memory_space<vmem>>, vector<1x16xf32>
    %c0_4 = arith.constant 0 : index
    %c0_5 = arith.constant 0 : index
    %3 = vector.load %arg3[%c0_4, %c0_5] : memref<1x16xf32, #tpu.memory_space<vmem>>, vector<1x16xf32>
    %c0_6 = arith.constant 0 : index
    %c0_7 = arith.constant 0 : index
    %4 = vector.load %arg5[%c0_6, %c0_7] : memref<4x8xf32, #tpu.memory_space<vmem>>, vector<4x8xf32>
    %c0_8 = arith.constant 0 : index
    %c0_9 = arith.constant 0 : index
    %5 = vector.load %arg6[%c0_8, %c0_9] : memref<1x8xf32, #tpu.memory_space<vmem>>, vector<1x8xf32>
    %c0_10 = arith.constant 0 : index
    %c0_11 = arith.constant 0 : index
    %6 = vector.load %arg8[%c0_10, %c0_11] : memref<1x8xf32, #tpu.memory_space<vmem>>, vector<1x8xf32>
    %c0_12 = arith.constant 0 : index
    %c0_13 = arith.constant 0 : index
    %7 = vector.load %arg9[%c0_12, %c0_13] : memref<16x8xf32, #tpu.memory_space<vmem>>, vector<16x8xf32>
    %8 = math.exp %7 : vector<16x8xf32>
    %cst = arith.constant 0.000000e+00 : f32
    %9 = vector.broadcast %cst : f32 to vector<16x8xf32>
    %10 = arith.subf %9, %8 : vector<16x8xf32>
    %c0_14 = arith.constant 0 : index
    %c0_15 = arith.constant 0 : index
    %11 = vector.load %arg10[%c0_14, %c0_15] : memref<1x8xf32, #tpu.memory_space<vmem>>, vector<1x8xf32>
    %c0_16 = arith.constant 0 : index
    %c0_17 = arith.constant 0 : index
    %12 = vector.load %arg13[%c0_16, %c0_17] : memref<16x1xf32, #tpu.memory_space<vmem>>, vector<16x1xf32>
    %c0_18 = arith.constant 0 : index
    %13 = memref.load %arg14[%c0_18] : memref<1xf32, #tpu.memory_space<smem>>
    %cst_19 = arith.constant dense<0.000000e+00> : vector<64xf32>
    %14 = vector.multi_reduction <add>, %1, %cst_19 [1] : vector<64x16xf32> to vector<64xf32>
    %15 = vector.shape_cast %14 : vector<64xf32> to vector<64x1xf32>
    %cst_20 = arith.constant 1.600000e+01 : f32
    %16 = vector.broadcast %cst_20 : f32 to vector<64x1xf32>
    %17 = arith.divf %15, %16 : vector<64x1xf32>
    %18 = vector.broadcast %17 : vector<64x1xf32> to vector<64x16xf32>
    %19 = arith.subf %1, %18 : vector<64x16xf32>
    %20 = arith.mulf %19, %19 : vector<64x16xf32>
    %cst_21 = arith.constant dense<0.000000e+00> : vector<64xf32>
    %21 = vector.multi_reduction <add>, %20, %cst_21 [1] : vector<64x16xf32> to vector<64xf32>
    %22 = vector.shape_cast %21 : vector<64xf32> to vector<64x1xf32>
    %cst_22 = arith.constant 1.600000e+01 : f32
    %23 = vector.broadcast %cst_22 : f32 to vector<64x1xf32>
    %24 = arith.divf %22, %23 : vector<64x1xf32>
    %cst_23 = arith.constant 9.99999974E-6 : f32
    %25 = vector.broadcast %cst_23 : f32 to vector<64x1xf32>
    %26 = arith.addf %24, %25 : vector<64x1xf32>
    %27 = math.rsqrt %26 : vector<64x1xf32>
    %28 = vector.broadcast %27 : vector<64x1xf32> to vector<64x16xf32>
    %29 = arith.mulf %19, %28 : vector<64x16xf32>
    %30 = vector.broadcast %2 : vector<1x16xf32> to vector<64x16xf32>
    %31 = arith.mulf %29, %30 : vector<64x16xf32>
    %32 = vector.broadcast %3 : vector<1x16xf32> to vector<64x16xf32>
    %33 = arith.addf %31, %32 : vector<64x16xf32>
    %34 = vector.extract_strided_slice %33 {offsets = [0, 0], sizes = [64, 4], strides = [1, 1]} : vector<64x16xf32> to vector<64x4xf32>
    %35 = vector.extract_strided_slice %33 {offsets = [0, 4], sizes = [64, 4], strides = [1, 1]} : vector<64x16xf32> to vector<64x4xf32>
    %36 = vector.extract_strided_slice %33 {offsets = [0, 8], sizes = [64, 4], strides = [1, 1]} : vector<64x16xf32> to vector<64x4xf32>
    %37 = vector.extract_strided_slice %33 {offsets = [0, 12], sizes = [64, 4], strides = [1, 1]} : vector<64x16xf32> to vector<64x4xf32>
    %38 = tpu.concatenate %34, %35, %36, %37 in 0 : vector<64x4xf32>, vector<64x4xf32>, vector<64x4xf32>, vector<64x4xf32> -> vector<256x4xf32>
    %39 = arith.truncf %38 : vector<256x4xf32> to vector<256x4xbf16>
    %c0_24 = arith.constant 0 : index
    %c0_25 = arith.constant 0 : index
    %40 = vector.load %arg4[%c0_24, %c0_25] : memref<4x16xbf16, #tpu.memory_space<vmem>>, vector<4x16xbf16>
    %cst_26 = arith.constant dense<0.000000e+00> : vector<256x16xf32>
    %41 = tpu.matmul %39, %40, %cst_26 {dimension_numbers = #tpu.dot_dimension_numbers<[1], [0], [0], [1], [0, 0, 1, 1], [], []>} : vector<256x4xbf16>, vector<4x16xbf16>, vector<256x16xf32> -> vector<256x16xf32>
    %42 = vector.extract_strided_slice %41 {offsets = [0, 0], sizes = [256, 8], strides = [1, 1]} : vector<256x16xf32> to vector<256x8xf32>
    %43 = vector.extract_strided_slice %41 {offsets = [0, 8], sizes = [256, 8], strides = [1, 1]} : vector<256x16xf32> to vector<256x8xf32>
    %cst_27 = arith.constant 0.000000e+00 : f32
    %44 = vector.broadcast %cst_27 : f32 to vector<8x8xf32>
    %c0_28 = arith.constant 0 : index
    %c0_29 = arith.constant 0 : index
    %45 = vector.load %arg16[%c0_28, %c0_29] : memref<264x8xf32, #tpu.memory_space<vmem>>, vector<8x8xf32>
    tpu.vector_store %arg16[%c0_28, %c0_29], %44 {strides = array<i32>} : memref<264x8xf32, #tpu.memory_space<vmem>>, vector<8x8xf32>,
    %c8 = arith.constant 8 : index
    %c0_30 = arith.constant 0 : index
    %46 = vector.load %arg16[%c8, %c0_30] : memref<264x8xf32, #tpu.memory_space<vmem>>, vector<256x8xf32>
    tpu.vector_store %arg16[%c8, %c0_30], %42 {strides = array<i32>} : memref<264x8xf32, #tpu.memory_space<vmem>>, vector<256x8xf32>,
    %47 = tpu.iota {dimensions = array<i32: 0>} : vector<256x1xi32>
    %48 = vector.extract_strided_slice %4 {offsets = [3, 0], sizes = [1, 8], strides = [1, 1]} : vector<4x8xf32> to vector<1x8xf32>
    %49 = vector.broadcast %48 : vector<1x8xf32> to vector<256x8xf32>
    %50 = arith.mulf %42, %49 : vector<256x8xf32>
    %c7 = arith.constant 7 : index
    %c0_31 = arith.constant 0 : index
    %51 = vector.load %arg16[%c7, %c0_31] : memref<264x8xf32, #tpu.memory_space<vmem>>, vector<256x8xf32>
    %52 = vector.extract_strided_slice %4 {offsets = [2, 0], sizes = [1, 8], strides = [1, 1]} : vector<4x8xf32> to vector<1x8xf32>
    %c1_i32 = arith.constant 1 : i32
    %53 = vector.broadcast %c1_i32 : i32 to vector<256x1xi32>
    %54 = arith.cmpi slt, %47, %53 : vector<256x1xi32>
    %c64_i32 = arith.constant 64 : i32
    %55 = vector.broadcast %c64_i32 : i32 to vector<256x1xi32>
    %56 = arith.cmpi sge, %47, %55 : vector<256x1xi32>
    %c65_i32 = arith.constant 65 : i32
    %57 = vector.broadcast %c65_i32 : i32 to vector<256x1xi32>
    %58 = arith.cmpi slt, %47, %57 : vector<256x1xi32>
    %59 = arith.andi %56, %58 : vector<256x1xi1>
    %60 = arith.ori %54, %59 : vector<256x1xi1>
    %c128_i32 = arith.constant 128 : i32
    %61 = vector.broadcast %c128_i32 : i32 to vector<256x1xi32>
    %62 = arith.cmpi sge, %47, %61 : vector<256x1xi32>
    %c129_i32 = arith.constant 129 : i32
    %63 = vector.broadcast %c129_i32 : i32 to vector<256x1xi32>
    %64 = arith.cmpi slt, %47, %63 : vector<256x1xi32>
    %65 = arith.andi %62, %64 : vector<256x1xi1>
    %66 = arith.ori %60, %65 : vector<256x1xi1>
    %c192_i32 = arith.constant 192 : i32
    %67 = vector.broadcast %c192_i32 : i32 to vector<256x1xi32>
    %68 = arith.cmpi sge, %47, %67 : vector<256x1xi32>
    %c193_i32 = arith.constant 193 : i32
    %69 = vector.broadcast %c193_i32 : i32 to vector<256x1xi32>
    %70 = arith.cmpi slt, %47, %69 : vector<256x1xi32>
    %71 = arith.andi %68, %70 : vector<256x1xi1>
    %72 = arith.ori %66, %71 : vector<256x1xi1>
    %73 = vector.broadcast %52 : vector<1x8xf32> to vector<256x8xf32>
    %74 = arith.mulf %51, %73 : vector<256x8xf32>
    %cst_32 = arith.constant 0.000000e+00 : f32
    %75 = vector.shape_cast %72 : vector<256x1xi1> to vector<256x1xi1>
    %76 = vector.broadcast %75 : vector<256x1xi1> to vector<256x8xi1>
    %77 = vector.broadcast %cst_32 : f32 to vector<256x8xf32>
    %78 = arith.select %76, %77, %74 : vector<256x8xi1>, vector<256x8xf32>
    %79 = arith.addf %50, %78 : vector<256x8xf32>
    %c6 = arith.constant 6 : index
    %c0_33 = arith.constant 0 : index
    %80 = vector.load %arg16[%c6, %c0_33] : memref<264x8xf32, #tpu.memory_space<vmem>>, vector<256x8xf32>
    %81 = vector.extract_strided_slice %4 {offsets = [1, 0], sizes = [1, 8], strides = [1, 1]} : vector<4x8xf32> to vector<1x8xf32>
    %c2_i32 = arith.constant 2 : i32
    %82 = vector.broadcast %c2_i32 : i32 to vector<256x1xi32>
    %83 = arith.cmpi slt, %47, %82 : vector<256x1xi32>
    %c64_i32_34 = arith.constant 64 : i32
    %84 = vector.broadcast %c64_i32_34 : i32 to vector<256x1xi32>
    %85 = arith.cmpi sge, %47, %84 : vector<256x1xi32>
    %c66_i32 = arith.constant 66 : i32
    %86 = vector.broadcast %c66_i32 : i32 to vector<256x1xi32>
    %87 = arith.cmpi slt, %47, %86 : vector<256x1xi32>
    %88 = arith.andi %85, %87 : vector<256x1xi1>
    %89 = arith.ori %83, %88 : vector<256x1xi1>
    %c128_i32_35 = arith.constant 128 : i32
    %90 = vector.broadcast %c128_i32_35 : i32 to vector<256x1xi32>
    %91 = arith.cmpi sge, %47, %90 : vector<256x1xi32>
    %c130_i32 = arith.constant 130 : i32
    %92 = vector.broadcast %c130_i32 : i32 to vector<256x1xi32>
    %93 = arith.cmpi slt, %47, %92 : vector<256x1xi32>
    %94 = arith.andi %91, %93 : vector<256x1xi1>
    %95 = arith.ori %89, %94 : vector<256x1xi1>
    %c192_i32_36 = arith.constant 192 : i32
    %96 = vector.broadcast %c192_i32_36 : i32 to vector<256x1xi32>
    %97 = arith.cmpi sge, %47, %96 : vector<256x1xi32>
    %c194_i32 = arith.constant 194 : i32
    %98 = vector.broadcast %c194_i32 : i32 to vector<256x1xi32>
    %99 = arith.cmpi slt, %47, %98 : vector<256x1xi32>
    %100 = arith.andi %97, %99 : vector<256x1xi1>
    %101 = arith.ori %95, %100 : vector<256x1xi1>
    %102 = vector.broadcast %81 : vector<1x8xf32> to vector<256x8xf32>
    %103 = arith.mulf %80, %102 : vector<256x8xf32>
    %cst_37 = arith.constant 0.000000e+00 : f32
    %104 = vector.shape_cast %101 : vector<256x1xi1> to vector<256x1xi1>
    %105 = vector.broadcast %104 : vector<256x1xi1> to vector<256x8xi1>
    %106 = vector.broadcast %cst_37 : f32 to vector<256x8xf32>
    %107 = arith.select %105, %106, %103 : vector<256x8xi1>, vector<256x8xf32>
    %108 = arith.addf %79, %107 : vector<256x8xf32>
    %c5 = arith.constant 5 : index
    %c0_38 = arith.constant 0 : index
    %109 = vector.load %arg16[%c5, %c0_38] : memref<264x8xf32, #tpu.memory_space<vmem>>, vector<256x8xf32>
    %110 = vector.extract_strided_slice %4 {offsets = [0, 0], sizes = [1, 8], strides = [1, 1]} : vector<4x8xf32> to vector<1x8xf32>
    %c3_i32 = arith.constant 3 : i32
    %111 = vector.broadcast %c3_i32 : i32 to vector<256x1xi32>
    %112 = arith.cmpi slt, %47, %111 : vector<256x1xi32>
    %c64_i32_39 = arith.constant 64 : i32
    %113 = vector.broadcast %c64_i32_39 : i32 to vector<256x1xi32>
    %114 = arith.cmpi sge, %47, %113 : vector<256x1xi32>
    %c67_i32 = arith.constant 67 : i32
    %115 = vector.broadcast %c67_i32 : i32 to vector<256x1xi32>
    %116 = arith.cmpi slt, %47, %115 : vector<256x1xi32>
    %117 = arith.andi %114, %116 : vector<256x1xi1>
    %118 = arith.ori %112, %117 : vector<256x1xi1>
    %c128_i32_40 = arith.constant 128 : i32
    %119 = vector.broadcast %c128_i32_40 : i32 to vector<256x1xi32>
    %120 = arith.cmpi sge, %47, %119 : vector<256x1xi32>
    %c131_i32 = arith.constant 131 : i32
    %121 = vector.broadcast %c131_i32 : i32 to vector<256x1xi32>
    %122 = arith.cmpi slt, %47, %121 : vector<256x1xi32>
    %123 = arith.andi %120, %122 : vector<256x1xi1>
    %124 = arith.ori %118, %123 : vector<256x1xi1>
    %c192_i32_41 = arith.constant 192 : i32
    %125 = vector.broadcast %c192_i32_41 : i32 to vector<256x1xi32>
    %126 = arith.cmpi sge, %47, %125 : vector<256x1xi32>
    %c195_i32 = arith.constant 195 : i32
    %127 = vector.broadcast %c195_i32 : i32 to vector<256x1xi32>
    %128 = arith.cmpi slt, %47, %127 : vector<256x1xi32>
    %129 = arith.andi %126, %128 : vector<256x1xi1>
    %130 = arith.ori %124, %129 : vector<256x1xi1>
    %131 = vector.broadcast %110 : vector<1x8xf32> to vector<256x8xf32>
    %132 = arith.mulf %109, %131 : vector<256x8xf32>
    %cst_42 = arith.constant 0.000000e+00 : f32
    %133 = vector.shape_cast %130 : vector<256x1xi1> to vector<256x1xi1>
    %134 = vector.broadcast %133 : vector<256x1xi1> to vector<256x8xi1>
    %135 = vector.broadcast %cst_42 : f32 to vector<256x8xf32>
    %136 = arith.select %134, %135, %132 : vector<256x8xi1>, vector<256x8xf32>
    %137 = arith.addf %108, %136 : vector<256x8xf32>
    %138 = vector.broadcast %5 : vector<1x8xf32> to vector<256x8xf32>
    %139 = arith.addf %137, %138 : vector<256x8xf32>
    %140 = arith.negf %139 : vector<256x8xf32>
    %141 = math.exp %140 : vector<256x8xf32>
    %cst_43 = arith.constant 1.000000e+00 : f32
    %142 = vector.broadcast %cst_43 : f32 to vector<256x8xf32>
    %143 = arith.addf %142, %141 : vector<256x8xf32>
    %144 = arith.divf %142, %143 : vector<256x8xf32>
    %145 = arith.mulf %139, %144 : vector<256x8xf32>
    %146 = arith.truncf %145 : vector<256x8xf32> to vector<256x8xbf16>
    %c0_44 = arith.constant 0 : index
    %c0_45 = arith.constant 0 : index
    %147 = vector.load %arg7[%c0_44, %c0_45] : memref<8x40xbf16, #tpu.memory_space<vmem>>, vector<8x40xbf16>
    %cst_46 = arith.constant dense<0.000000e+00> : vector<256x40xf32>
    %148 = tpu.matmul %146, %147, %cst_46 {dimension_numbers = #tpu.dot_dimension_numbers<[1], [0], [0], [1], [0, 0, 1, 1], [], []>} : vector<256x8xbf16>, vector<8x40xbf16>, vector<256x40xf32> -> vector<256x40xf32>
    %149 = vector.extract_strided_slice %148 {offsets = [0, 0], sizes = [256, 8], strides = [1, 1]} : vector<256x40xf32> to vector<256x8xf32>
    %150 = vector.broadcast %6 : vector<1x8xf32> to vector<256x8xf32>
    %151 = arith.addf %149, %150 : vector<256x8xf32>
    %cst_47 = arith.constant 0.000000e+00 : f32
    %152 = vector.broadcast %cst_47 : f32 to vector<256x8xf32>
    %153 = arith.maximumf %151, %152 : vector<256x8xf32>
    %154 = vector.broadcast %cst_47 : f32 to vector<256x8xf32>
    %155 = arith.subf %151, %154 : vector<256x8xf32>
    %156 = arith.cmpf one, %155, %155 : vector<256x8xf32>
    %157 = vector.broadcast %cst_47 : f32 to vector<256x8xf32>
    %158 = arith.addf %151, %157 : vector<256x8xf32>
    %159 = math.absf %155 : vector<256x8xf32>
    %cst_48 = arith.constant 0.000000e+00 : f32
    %160 = vector.broadcast %cst_48 : f32 to vector<256x8xf32>
    %161 = arith.subf %160, %159 : vector<256x8xf32>
    %162 = math.exp %161 : vector<256x8xf32>
    %163 = math.log1p %162 : vector<256x8xf32>
    %164 = arith.addf %153, %163 : vector<256x8xf32>
    %165 = arith.select %156, %158, %164 : vector<256x8xi1>, vector<256x8xf32>
    %c0_49 = arith.constant 0 : index
    %c0_50 = arith.constant 0 : index
    %166 = vector.load %arg17[%c0_49, %c0_50] : memref<256x8xf32, #tpu.memory_space<vmem>>, vector<256x8xf32>
    tpu.vector_store %arg17[%c0_49, %c0_50], %165 {strides = array<i32>} : memref<256x8xf32, #tpu.memory_space<vmem>>, vector<256x8xf32>,
    %167 = arith.mulf %165, %145 : vector<256x8xf32>
    %c0_51 = arith.constant 0 : index
    %c0_52 = arith.constant 0 : index
    %168 = vector.load %arg18[%c0_51, %c0_52] : memref<256x8xf32, #tpu.memory_space<vmem>>, vector<256x8xf32>
    tpu.vector_store %arg18[%c0_51, %c0_52], %167 {strides = array<i32>} : memref<256x8xf32, #tpu.memory_space<vmem>>, vector<256x8xf32>,
    %169 = vector.extract_strided_slice %148 {offsets = [0, 8], sizes = [256, 32], strides = [1, 1]} : vector<256x40xf32> to vector<256x32xf32>
    %c0_53 = arith.constant 0 : index
    %c0_54 = arith.constant 0 : index
    %170 = vector.load %arg19[%c0_53, %c0_54] : memref<256x32xf32, #tpu.memory_space<vmem>>, vector<256x32xf32>
    tpu.vector_store %arg19[%c0_53, %c0_54], %169 {strides = array<i32>} : memref<256x32xf32, #tpu.memory_space<vmem>>, vector<256x32xf32>,
    %171 = tpu.iota {dimensions = array<i32: 0>} : vector<8x8xi32>
    %172 = tpu.iota {dimensions = array<i32: 1>} : vector<8x8xi32>
    %173 = arith.cmpi eq, %171, %172 : vector<8x8xi32>
    %174 = arith.extui %173 : vector<8x8xi1> to vector<8x8xi32>
    %175 = arith.sitofp %174 : vector<8x8xi32> to vector<8x8xf32>
    %cst_55 = arith.constant 0.000000e+00 : f32
    %176 = vector.broadcast %cst_55 : f32 to vector<16x8xf32>
    %cst_56 = arith.constant 0.000000e+00 : f32
    %177 = vector.broadcast %cst_56 : f32 to vector<16x8xf32>
    %cst_57 = arith.constant 0.000000e+00 : f32
    %178 = vector.broadcast %cst_57 : f32 to vector<16x8xf32>
    %cst_58 = arith.constant 0.000000e+00 : f32
    %179 = vector.broadcast %cst_58 : f32 to vector<16x8xf32>
    %c0_i32 = arith.constant 0 : i32
    %c8_i32 = arith.constant 8 : i32
    %180 = arith.addi %c0_i32, %c8_i32 : i32
    %c1_i32_59 = arith.constant 1 : i32
    %181:4 = scf.for %arg21 = %c0_i32 to %180 step %c1_i32_59 iter_args(%arg22 = %176, %arg23 = %177, %arg24 = %178, %arg25 = %179) -> (vector<16x8xf32>, vector<16x8xf32>, vector<16x8xf32>, vector<16x8xf32>)  : i32 {
      %c8_i32_78 = arith.constant 8 : i32
      %232 = arith.muli %arg21, %c8_i32_78 : i32
      %c0_i32_79 = arith.constant 0 : i32
      %233 = arith.addi %c0_i32_79, %232 : i32
      %234 = arith.index_cast %233 : i32 to index
      %c0_80 = arith.constant 0 : index
      %235 = vector.load %arg17[%234, %c0_80] : memref<256x8xf32, #tpu.memory_space<vmem>>, vector<8x8xf32>
      %236 = arith.index_cast %233 : i32 to index
      %c0_81 = arith.constant 0 : index
      %237 = vector.load %arg18[%236, %c0_81] : memref<256x8xf32, #tpu.memory_space<vmem>>, vector<8x8xf32>
      %238 = arith.index_cast %233 : i32 to index
      %c0_82 = arith.constant 0 : index
      %239 = vector.load %arg19[%238, %c0_82] : memref<256x32xf32, #tpu.memory_space<vmem>>, vector<8x32xf32>
      %cst_83 = arith.constant dense<0.000000e+00> : vector<32x8xf32>
      %240 = tpu.matmul %239, %175, %cst_83 {dimension_numbers = #tpu.dot_dimension_numbers<[0], [0], [1], [1], [0, 1, 1, 1], [], []>} : vector<8x32xf32>, vector<8x8xf32>, vector<32x8xf32> -> vector<32x8xf32>
      %241 = vector.extract_strided_slice %240 {offsets = [0, 0], sizes = [16, 8], strides = [1, 1]} : vector<32x8xf32> to vector<16x8xf32>
      %242 = vector.extract_strided_slice %240 {offsets = [16, 0], sizes = [16, 8], strides = [1, 1]} : vector<32x8xf32> to vector<16x8xf32>
      %243 = vector.extract_strided_slice %235 {offsets = [0, 0], sizes = [1, 8], strides = [1, 1]} : vector<8x8xf32> to vector<1x8xf32>
      %244 = vector.broadcast %243 : vector<1x8xf32> to vector<16x8xf32>
      %245 = arith.mulf %244, %10 : vector<16x8xf32>
      %246 = math.exp %245 : vector<16x8xf32>
      %247 = arith.mulf %246, %arg22 : vector<16x8xf32>
      %248 = vector.extract_strided_slice %241 {offsets = [0, 0], sizes = [16, 1], strides = [1, 1]} : vector<16x8xf32> to vector<16x1xf32>
      %249 = vector.extract_strided_slice %237 {offsets = [0, 0], sizes = [1, 8], strides = [1, 1]} : vector<8x8xf32> to vector<1x8xf32>
      %250 = vector.broadcast %248 : vector<16x1xf32> to vector<16x8xf32>
      %251 = vector.broadcast %249 : vector<1x8xf32> to vector<16x8xf32>
      %252 = arith.mulf %250, %251 : vector<16x8xf32>
      %253 = arith.addf %247, %252 : vector<16x8xf32>
      %254 = vector.extract_strided_slice %242 {offsets = [0, 0], sizes = [16, 1], strides = [1, 1]} : vector<16x8xf32> to vector<16x1xf32>
      %255 = vector.broadcast %254 : vector<16x1xf32> to vector<16x8xf32>
      %256 = arith.mulf %253, %255 : vector<16x8xf32>
      %cst_84 = arith.constant dense<0.000000e+00> : vector<8xf32>
      %257 = vector.multi_reduction <add>, %256, %cst_84 [0] : vector<16x8xf32> to vector<8xf32>
      %258 = vector.shape_cast %257 : vector<8xf32> to vector<1x8xf32>
      %259 = vector.extract_strided_slice %235 {offsets = [1, 0], sizes = [1, 8], strides = [1, 1]} : vector<8x8xf32> to vector<1x8xf32>
      %260 = vector.broadcast %259 : vector<1x8xf32> to vector<16x8xf32>
      %261 = arith.mulf %260, %10 : vector<16x8xf32>
      %262 = math.exp %261 : vector<16x8xf32>
      %263 = arith.mulf %262, %253 : vector<16x8xf32>
      %264 = vector.extract_strided_slice %241 {offsets = [0, 1], sizes = [16, 1], strides = [1, 1]} : vector<16x8xf32> to vector<16x1xf32>
      %265 = vector.extract_strided_slice %237 {offsets = [1, 0], sizes = [1, 8], strides = [1, 1]} : vector<8x8xf32> to vector<1x8xf32>
      %266 = vector.broadcast %264 : vector<16x1xf32> to vector<16x8xf32>
      %267 = vector.broadcast %265 : vector<1x8xf32> to vector<16x8xf32>
      %268 = arith.mulf %266, %267 : vector<16x8xf32>
      %269 = arith.addf %263, %268 : vector<16x8xf32>
      %270 = vector.extract_strided_slice %242 {offsets = [0, 1], sizes = [16, 1], strides = [1, 1]} : vector<16x8xf32> to vector<16x1xf32>
      %271 = vector.broadcast %270 : vector<16x1xf32> to vector<16x8xf32>
      %272 = arith.mulf %269, %271 : vector<16x8xf32>
      %cst_85 = arith.constant dense<0.000000e+00> : vector<8xf32>
      %273 = vector.multi_reduction <add>, %272, %cst_85 [0] : vector<16x8xf32> to vector<8xf32>
      %274 = vector.shape_cast %273 : vector<8xf32> to vector<1x8xf32>
      %275 = vector.extract_strided_slice %235 {offsets = [2, 0], sizes = [1, 8], strides = [1, 1]} : vector<8x8xf32> to vector<1x8xf32>
      %276 = vector.broadcast %275 : vector<1x8xf32> to vector<16x8xf32>
      %277 = arith.mulf %276, %10 : vector<16x8xf32>
      %278 = math.exp %277 : vector<16x8xf32>
      %279 = arith.mulf %278, %269 : vector<16x8xf32>
      %280 = vector.extract_strided_slice %241 {offsets = [0, 2], sizes = [16, 1], strides = [1, 1]} : vector<16x8xf32> to vector<16x1xf32>
      %281 = vector.extract_strided_slice %237 {offsets = [2, 0], sizes = [1, 8], strides = [1, 1]} : vector<8x8xf32> to vector<1x8xf32>
      %282 = vector.broadcast %280 : vector<16x1xf32> to vector<16x8xf32>
      %283 = vector.broadcast %281 : vector<1x8xf32> to vector<16x8xf32>
      %284 = arith.mulf %282, %283 : vector<16x8xf32>
      %285 = arith.addf %279, %284 : vector<16x8xf32>
      %286 = vector.extract_strided_slice %242 {offsets = [0, 2], sizes = [16, 1], strides = [1, 1]} : vector<16x8xf32> to vector<16x1xf32>
      %287 = vector.broadcast %286 : vector<16x1xf32> to vector<16x8xf32>
      %288 = arith.mulf %285, %287 : vector<16x8xf32>
      %cst_86 = arith.constant dense<0.000000e+00> : vector<8xf32>
      %289 = vector.multi_reduction <add>, %288, %cst_86 [0] : vector<16x8xf32> to vector<8xf32>
      %290 = vector.shape_cast %289 : vector<8xf32> to vector<1x8xf32>
      %291 = vector.extract_strided_slice %235 {offsets = [3, 0], sizes = [1, 8], strides = [1, 1]} : vector<8x8xf32> to vector<1x8xf32>
      %292 = vector.broadcast %291 : vector<1x8xf32> to vector<16x8xf32>
      %293 = arith.mulf %292, %10 : vector<16x8xf32>
      %294 = math.exp %293 : vector<16x8xf32>
      %295 = arith.mulf %294, %285 : vector<16x8xf32>
      %296 = vector.extract_strided_slice %241 {offsets = [0, 3], sizes = [16, 1], strides = [1, 1]} : vector<16x8xf32> to vector<16x1xf32>
      %297 = vector.extract_strided_slice %237 {offsets = [3, 0], sizes = [1, 8], strides = [1, 1]} : vector<8x8xf32> to vector<1x8xf32>
      %298 = vector.broadcast %296 : vector<16x1xf32> to vector<16x8xf32>
      %299 = vector.broadcast %297 : vector<1x8xf32> to vector<16x8xf32>
      %300 = arith.mulf %298, %299 : vector<16x8xf32>
      %301 = arith.addf %295, %300 : vector<16x8xf32>
      %302 = vector.extract_strided_slice %242 {offsets = [0, 3], sizes = [16, 1], strides = [1, 1]} : vector<16x8xf32> to vector<16x1xf32>
      %303 = vector.broadcast %302 : vector<16x1xf32> to vector<16x8xf32>
      %304 = arith.mulf %301, %303 : vector<16x8xf32>
      %cst_87 = arith.constant dense<0.000000e+00> : vector<8xf32>
      %305 = vector.multi_reduction <add>, %304, %cst_87 [0] : vector<16x8xf32> to vector<8xf32>
      %306 = vector.shape_cast %305 : vector<8xf32> to vector<1x8xf32>
      %307 = vector.extract_strided_slice %235 {offsets = [4, 0], sizes = [1, 8], strides = [1, 1]} : vector<8x8xf32> to vector<1x8xf32>
      %308 = vector.broadcast %307 : vector<1x8xf32> to vector<16x8xf32>
      %309 = arith.mulf %308, %10 : vector<16x8xf32>
      %310 = math.exp %309 : vector<16x8xf32>
      %311 = arith.mulf %310, %301 : vector<16x8xf32>
      %312 = vector.extract_strided_slice %241 {offsets = [0, 4], sizes = [16, 1], strides = [1, 1]} : vector<16x8xf32> to vector<16x1xf32>
      %313 = vector.extract_strided_slice %237 {offsets = [4, 0], sizes = [1, 8], strides = [1, 1]} : vector<8x8xf32> to vector<1x8xf32>
      %314 = vector.broadcast %312 : vector<16x1xf32> to vector<16x8xf32>
      %315 = vector.broadcast %313 : vector<1x8xf32> to vector<16x8xf32>
      %316 = arith.mulf %314, %315 : vector<16x8xf32>
      %317 = arith.addf %311, %316 : vector<16x8xf32>
      %318 = vector.extract_strided_slice %242 {offsets = [0, 4], sizes = [16, 1], strides = [1, 1]} : vector<16x8xf32> to vector<16x1xf32>
      %319 = vector.broadcast %318 : vector<16x1xf32> to vector<16x8xf32>
      %320 = arith.mulf %317, %319 : vector<16x8xf32>
      %cst_88 = arith.constant dense<0.000000e+00> : vector<8xf32>
      %321 = vector.multi_reduction <add>, %320, %cst_88 [0] : vector<16x8xf32> to vector<8xf32>
      %322 = vector.shape_cast %321 : vector<8xf32> to vector<1x8xf32>
      %323 = vector.extract_strided_slice %235 {offsets = [5, 0], sizes = [1, 8], strides = [1, 1]} : vector<8x8xf32> to vector<1x8xf32>
      %324 = vector.broadcast %323 : vector<1x8xf32> to vector<16x8xf32>
      %325 = arith.mulf %324, %10 : vector<16x8xf32>
      %326 = math.exp %325 : vector<16x8xf32>
      %327 = arith.mulf %326, %317 : vector<16x8xf32>
      %328 = vector.extract_strided_slice %241 {offsets = [0, 5], sizes = [16, 1], strides = [1, 1]} : vector<16x8xf32> to vector<16x1xf32>
      %329 = vector.extract_strided_slice %237 {offsets = [5, 0], sizes = [1, 8], strides = [1, 1]} : vector<8x8xf32> to vector<1x8xf32>
      %330 = vector.broadcast %328 : vector<16x1xf32> to vector<16x8xf32>
      %331 = vector.broadcast %329 : vector<1x8xf32> to vector<16x8xf32>
      %332 = arith.mulf %330, %331 : vector<16x8xf32>
      %333 = arith.addf %327, %332 : vector<16x8xf32>
      %334 = vector.extract_strided_slice %242 {offsets = [0, 5], sizes = [16, 1], strides = [1, 1]} : vector<16x8xf32> to vector<16x1xf32>
      %335 = vector.broadcast %334 : vector<16x1xf32> to vector<16x8xf32>
      %336 = arith.mulf %333, %335 : vector<16x8xf32>
      %cst_89 = arith.constant dense<0.000000e+00> : vector<8xf32>
      %337 = vector.multi_reduction <add>, %336, %cst_89 [0] : vector<16x8xf32> to vector<8xf32>
      %338 = vector.shape_cast %337 : vector<8xf32> to vector<1x8xf32>
      %339 = vector.extract_strided_slice %235 {offsets = [6, 0], sizes = [1, 8], strides = [1, 1]} : vector<8x8xf32> to vector<1x8xf32>
      %340 = vector.broadcast %339 : vector<1x8xf32> to vector<16x8xf32>
      %341 = arith.mulf %340, %10 : vector<16x8xf32>
      %342 = math.exp %341 : vector<16x8xf32>
      %343 = arith.mulf %342, %333 : vector<16x8xf32>
      %344 = vector.extract_strided_slice %241 {offsets = [0, 6], sizes = [16, 1], strides = [1, 1]} : vector<16x8xf32> to vector<16x1xf32>
      %345 = vector.extract_strided_slice %237 {offsets = [6, 0], sizes = [1, 8], strides = [1, 1]} : vector<8x8xf32> to vector<1x8xf32>
      %346 = vector.broadcast %344 : vector<16x1xf32> to vector<16x8xf32>
      %347 = vector.broadcast %345 : vector<1x8xf32> to vector<16x8xf32>
      %348 = arith.mulf %346, %347 : vector<16x8xf32>
      %349 = arith.addf %343, %348 : vector<16x8xf32>
      %350 = vector.extract_strided_slice %242 {offsets = [0, 6], sizes = [16, 1], strides = [1, 1]} : vector<16x8xf32> to vector<16x1xf32>
      %351 = vector.broadcast %350 : vector<16x1xf32> to vector<16x8xf32>
      %352 = arith.mulf %349, %351 : vector<16x8xf32>
      %cst_90 = arith.constant dense<0.000000e+00> : vector<8xf32>
      %353 = vector.multi_reduction <add>, %352, %cst_90 [0] : vector<16x8xf32> to vector<8xf32>
      %354 = vector.shape_cast %353 : vector<8xf32> to vector<1x8xf32>
      %355 = vector.extract_strided_slice %235 {offsets = [7, 0], sizes = [1, 8], strides = [1, 1]} : vector<8x8xf32> to vector<1x8xf32>
      %356 = vector.broadcast %355 : vector<1x8xf32> to vector<16x8xf32>
      %357 = arith.mulf %356, %10 : vector<16x8xf32>
      %358 = math.exp %357 : vector<16x8xf32>
      %359 = arith.mulf %358, %349 : vector<16x8xf32>
      %360 = vector.extract_strided_slice %241 {offsets = [0, 7], sizes = [16, 1], strides = [1, 1]} : vector<16x8xf32> to vector<16x1xf32>
      %361 = vector.extract_strided_slice %237 {offsets = [7, 0], sizes = [1, 8], strides = [1, 1]} : vector<8x8xf32> to vector<1x8xf32>
      %362 = vector.broadcast %360 : vector<16x1xf32> to vector<16x8xf32>
      %363 = vector.broadcast %361 : vector<1x8xf32> to vector<16x8xf32>
      %364 = arith.mulf %362, %363 : vector<16x8xf32>
      %365 = arith.addf %359, %364 : vector<16x8xf32>
      %366 = vector.extract_strided_slice %242 {offsets = [0, 7], sizes = [16, 1], strides = [1, 1]} : vector<16x8xf32> to vector<16x1xf32>
      %367 = vector.broadcast %366 : vector<16x1xf32> to vector<16x8xf32>
      %368 = arith.mulf %365, %367 : vector<16x8xf32>
      %cst_91 = arith.constant dense<0.000000e+00> : vector<8xf32>
      %369 = vector.multi_reduction <add>, %368, %cst_91 [0] : vector<16x8xf32> to vector<8xf32>
      %370 = vector.shape_cast %369 : vector<8xf32> to vector<1x8xf32>
      %371 = tpu.concatenate %258, %274, %290, %306, %322, %338, %354, %370 in 0 : vector<1x8xf32>, vector<1x8xf32>, vector<1x8xf32>, vector<1x8xf32>, vector<1x8xf32>, vector<1x8xf32>, vector<1x8xf32>, vector<1x8xf32> -> vector<8x8xf32>
      %372 = arith.index_cast %233 : i32 to index
      %c0_92 = arith.constant 0 : index
      %373 = vector.load %arg20[%372, %c0_92] : memref<256x8xf32, #tpu.memory_space<vmem>>, vector<8x8xf32>
      tpu.vector_store %arg20[%372, %c0_92], %371 {strides = array<i32>} : memref<256x8xf32, #tpu.memory_space<vmem>>, vector<8x8xf32>,
      %c8_i32_93 = arith.constant 8 : i32
      %374 = arith.muli %arg21, %c8_i32_93 : i32
      %c64_i32_94 = arith.constant 64 : i32
      %375 = arith.addi %c64_i32_94, %374 : i32
      %376 = arith.index_cast %375 : i32 to index
      %c0_95 = arith.constant 0 : index
      %377 = vector.load %arg17[%376, %c0_95] : memref<256x8xf32, #tpu.memory_space<vmem>>, vector<8x8xf32>
      %378 = arith.index_cast %375 : i32 to index
      %c0_96 = arith.constant 0 : index
      %379 = vector.load %arg18[%378, %c0_96] : memref<256x8xf32, #tpu.memory_space<vmem>>, vector<8x8xf32>
      %380 = arith.index_cast %375 : i32 to index
      %c0_97 = arith.constant 0 : index
      %381 = vector.load %arg19[%380, %c0_97] : memref<256x32xf32, #tpu.memory_space<vmem>>, vector<8x32xf32>
      %cst_98 = arith.constant dense<0.000000e+00> : vector<32x8xf32>
      %382 = tpu.matmul %381, %175, %cst_98 {dimension_numbers = #tpu.dot_dimension_numbers<[0], [0], [1], [1], [0, 1, 1, 1], [], []>} : vector<8x32xf32>, vector<8x8xf32>, vector<32x8xf32> -> vector<32x8xf32>
      %383 = vector.extract_strided_slice %382 {offsets = [0, 0], sizes = [16, 8], strides = [1, 1]} : vector<32x8xf32> to vector<16x8xf32>
      %384 = vector.extract_strided_slice %382 {offsets = [16, 0], sizes = [16, 8], strides = [1, 1]} : vector<32x8xf32> to vector<16x8xf32>
      %385 = vector.extract_strided_slice %377 {offsets = [0, 0], sizes = [1, 8], strides = [1, 1]} : vector<8x8xf32> to vector<1x8xf32>
      %386 = vector.broadcast %385 : vector<1x8xf32> to vector<16x8xf32>
      %387 = arith.mulf %386, %10 : vector<16x8xf32>
      %388 = math.exp %387 : vector<16x8xf32>
      %389 = arith.mulf %388, %arg23 : vector<16x8xf32>
      %390 = vector.extract_strided_slice %383 {offsets = [0, 0], sizes = [16, 1], strides = [1, 1]} : vector<16x8xf32> to vector<16x1xf32>
      %391 = vector.extract_strided_slice %379 {offsets = [0, 0], sizes = [1, 8], strides = [1, 1]} : vector<8x8xf32> to vector<1x8xf32>
      %392 = vector.broadcast %390 : vector<16x1xf32> to vector<16x8xf32>
      %393 = vector.broadcast %391 : vector<1x8xf32> to vector<16x8xf32>
      %394 = arith.mulf %392, %393 : vector<16x8xf32>
      %395 = arith.addf %389, %394 : vector<16x8xf32>
      %396 = vector.extract_strided_slice %384 {offsets = [0, 0], sizes = [16, 1], strides = [1, 1]} : vector<16x8xf32> to vector<16x1xf32>
      %397 = vector.broadcast %396 : vector<16x1xf32> to vector<16x8xf32>
      %398 = arith.mulf %395, %397 : vector<16x8xf32>
      %cst_99 = arith.constant dense<0.000000e+00> : vector<8xf32>
      %399 = vector.multi_reduction <add>, %398, %cst_99 [0] : vector<16x8xf32> to vector<8xf32>
      %400 = vector.shape_cast %399 : vector<8xf32> to vector<1x8xf32>
      %401 = vector.extract_strided_slice %377 {offsets = [1, 0], sizes = [1, 8], strides = [1, 1]} : vector<8x8xf32> to vector<1x8xf32>
      %402 = vector.broadcast %401 : vector<1x8xf32> to vector<16x8xf32>
      %403 = arith.mulf %402, %10 : vector<16x8xf32>
      %404 = math.exp %403 : vector<16x8xf32>
      %405 = arith.mulf %404, %395 : vector<16x8xf32>
      %406 = vector.extract_strided_slice %383 {offsets = [0, 1], sizes = [16, 1], strides = [1, 1]} : vector<16x8xf32> to vector<16x1xf32>
      %407 = vector.extract_strided_slice %379 {offsets = [1, 0], sizes = [1, 8], strides = [1, 1]} : vector<8x8xf32> to vector<1x8xf32>
      %408 = vector.broadcast %406 : vector<16x1xf32> to vector<16x8xf32>
      %409 = vector.broadcast %407 : vector<1x8xf32> to vector<16x8xf32>
      %410 = arith.mulf %408, %409 : vector<16x8xf32>
      %411 = arith.addf %405, %410 : vector<16x8xf32>
      %412 = vector.extract_strided_slice %384 {offsets = [0, 1], sizes = [16, 1], strides = [1, 1]} : vector<16x8xf32> to vector<16x1xf32>
      %413 = vector.broadcast %412 : vector<16x1xf32> to vector<16x8xf32>
      %414 = arith.mulf %411, %413 : vector<16x8xf32>
      %cst_100 = arith.constant dense<0.000000e+00> : vector<8xf32>
      %415 = vector.multi_reduction <add>, %414, %cst_100 [0] : vector<16x8xf32> to vector<8xf32>
      %416 = vector.shape_cast %415 : vector<8xf32> to vector<1x8xf32>
      %417 = vector.extract_strided_slice %377 {offsets = [2, 0], sizes = [1, 8], strides = [1, 1]} : vector<8x8xf32> to vector<1x8xf32>
      %418 = vector.broadcast %417 : vector<1x8xf32> to vector<16x8xf32>
      %419 = arith.mulf %418, %10 : vector<16x8xf32>
      %420 = math.exp %419 : vector<16x8xf32>
      %421 = arith.mulf %420, %411 : vector<16x8xf32>
      %422 = vector.extract_strided_slice %383 {offsets = [0, 2], sizes = [16, 1], strides = [1, 1]} : vector<16x8xf32> to vector<16x1xf32>
      %423 = vector.extract_strided_slice %379 {offsets = [2, 0], sizes = [1, 8], strides = [1, 1]} : vector<8x8xf32> to vector<1x8xf32>
      %424 = vector.broadcast %422 : vector<16x1xf32> to vector<16x8xf32>
      %425 = vector.broadcast %423 : vector<1x8xf32> to vector<16x8xf32>
      %426 = arith.mulf %424, %425 : vector<16x8xf32>
      %427 = arith.addf %421, %426 : vector<16x8xf32>
      %428 = vector.extract_strided_slice %384 {offsets = [0, 2], sizes = [16, 1], strides = [1, 1]} : vector<16x8xf32> to vector<16x1xf32>
      %429 = vector.broadcast %428 : vector<16x1xf32> to vector<16x8xf32>
      %430 = arith.mulf %427, %429 : vector<16x8xf32>
      %cst_101 = arith.constant dense<0.000000e+00> : vector<8xf32>
      %431 = vector.multi_reduction <add>, %430, %cst_101 [0] : vector<16x8xf32> to vector<8xf32>
      %432 = vector.shape_cast %431 : vector<8xf32> to vector<1x8xf32>
      %433 = vector.extract_strided_slice %377 {offsets = [3, 0], sizes = [1, 8], strides = [1, 1]} : vector<8x8xf32> to vector<1x8xf32>
      %434 = vector.broadcast %433 : vector<1x8xf32> to vector<16x8xf32>
      %435 = arith.mulf %434, %10 : vector<16x8xf32>
      %436 = math.exp %435 : vector<16x8xf32>
      %437 = arith.mulf %436, %427 : vector<16x8xf32>
      %438 = vector.extract_strided_slice %383 {offsets = [0, 3], sizes = [16, 1], strides = [1, 1]} : vector<16x8xf32> to vector<16x1xf32>
      %439 = vector.extract_strided_slice %379 {offsets = [3, 0], sizes = [1, 8], strides = [1, 1]} : vector<8x8xf32> to vector<1x8xf32>
      %440 = vector.broadcast %438 : vector<16x1xf32> to vector<16x8xf32>
      %441 = vector.broadcast %439 : vector<1x8xf32> to vector<16x8xf32>
      %442 = arith.mulf %440, %441 : vector<16x8xf32>
      %443 = arith.addf %437, %442 : vector<16x8xf32>
      %444 = vector.extract_strided_slice %384 {offsets = [0, 3], sizes = [16, 1], strides = [1, 1]} : vector<16x8xf32> to vector<16x1xf32>
      %445 = vector.broadcast %444 : vector<16x1xf32> to vector<16x8xf32>
      %446 = arith.mulf %443, %445 : vector<16x8xf32>
      %cst_102 = arith.constant dense<0.000000e+00> : vector<8xf32>
      %447 = vector.multi_reduction <add>, %446, %cst_102 [0] : vector<16x8xf32> to vector<8xf32>
      %448 = vector.shape_cast %447 : vector<8xf32> to vector<1x8xf32>
      %449 = vector.extract_strided_slice %377 {offsets = [4, 0], sizes = [1, 8], strides = [1, 1]} : vector<8x8xf32> to vector<1x8xf32>
      %450 = vector.broadcast %449 : vector<1x8xf32> to vector<16x8xf32>
      %451 = arith.mulf %450, %10 : vector<16x8xf32>
      %452 = math.exp %451 : vector<16x8xf32>
      %453 = arith.mulf %452, %443 : vector<16x8xf32>
      %454 = vector.extract_strided_slice %383 {offsets = [0, 4], sizes = [16, 1], strides = [1, 1]} : vector<16x8xf32> to vector<16x1xf32>
      %455 = vector.extract_strided_slice %379 {offsets = [4, 0], sizes = [1, 8], strides = [1, 1]} : vector<8x8xf32> to vector<1x8xf32>
      %456 = vector.broadcast %454 : vector<16x1xf32> to vector<16x8xf32>
      %457 = vector.broadcast %455 : vector<1x8xf32> to vector<16x8xf32>
      %458 = arith.mulf %456, %457 : vector<16x8xf32>
      %459 = arith.addf %453, %458 : vector<16x8xf32>
      %460 = vector.extract_strided_slice %384 {offsets = [0, 4], sizes = [16, 1], strides = [1, 1]} : vector<16x8xf32> to vector<16x1xf32>
      %461 = vector.broadcast %460 : vector<16x1xf32> to vector<16x8xf32>
      %462 = arith.mulf %459, %461 : vector<16x8xf32>
      %cst_103 = arith.constant dense<0.000000e+00> : vector<8xf32>
      %463 = vector.multi_reduction <add>, %462, %cst_103 [0] : vector<16x8xf32> to vector<8xf32>
      %464 = vector.shape_cast %463 : vector<8xf32> to vector<1x8xf32>
      %465 = vector.extract_strided_slice %377 {offsets = [5, 0], sizes = [1, 8], strides = [1, 1]} : vector<8x8xf32> to vector<1x8xf32>
      %466 = vector.broadcast %465 : vector<1x8xf32> to vector<16x8xf32>
      %467 = arith.mulf %466, %10 : vector<16x8xf32>
      %468 = math.exp %467 : vector<16x8xf32>
      %469 = arith.mulf %468, %459 : vector<16x8xf32>
      %470 = vector.extract_strided_slice %383 {offsets = [0, 5], sizes = [16, 1], strides = [1, 1]} : vector<16x8xf32> to vector<16x1xf32>
      %471 = vector.extract_strided_slice %379 {offsets = [5, 0], sizes = [1, 8], strides = [1, 1]} : vector<8x8xf32> to vector<1x8xf32>
      %472 = vector.broadcast %470 : vector<16x1xf32> to vector<16x8xf32>
      %473 = vector.broadcast %471 : vector<1x8xf32> to vector<16x8xf32>
      %474 = arith.mulf %472, %473 : vector<16x8xf32>
      %475 = arith.addf %469, %474 : vector<16x8xf32>
      %476 = vector.extract_strided_slice %384 {offsets = [0, 5], sizes = [16, 1], strides = [1, 1]} : vector<16x8xf32> to vector<16x1xf32>
      %477 = vector.broadcast %476 : vector<16x1xf32> to vector<16x8xf32>
      %478 = arith.mulf %475, %477 : vector<16x8xf32>
      %cst_104 = arith.constant dense<0.000000e+00> : vector<8xf32>
      %479 = vector.multi_reduction <add>, %478, %cst_104 [0] : vector<16x8xf32> to vector<8xf32>
      %480 = vector.shape_cast %479 : vector<8xf32> to vector<1x8xf32>
      %481 = vector.extract_strided_slice %377 {offsets = [6, 0], sizes = [1, 8], strides = [1, 1]} : vector<8x8xf32> to vector<1x8xf32>
      %482 = vector.broadcast %481 : vector<1x8xf32> to vector<16x8xf32>
      %483 = arith.mulf %482, %10 : vector<16x8xf32>
      %484 = math.exp %483 : vector<16x8xf32>
      %485 = arith.mulf %484, %475 : vector<16x8xf32>
      %486 = vector.extract_strided_slice %383 {offsets = [0, 6], sizes = [16, 1], strides = [1, 1]} : vector<16x8xf32> to vector<16x1xf32>
      %487 = vector.extract_strided_slice %379 {offsets = [6, 0], sizes = [1, 8], strides = [1, 1]} : vector<8x8xf32> to vector<1x8xf32>
      %488 = vector.broadcast %486 : vector<16x1xf32> to vector<16x8xf32>
      %489 = vector.broadcast %487 : vector<1x8xf32> to vector<16x8xf32>
      %490 = arith.mulf %488, %489 : vector<16x8xf32>
      %491 = arith.addf %485, %490 : vector<16x8xf32>
      %492 = vector.extract_strided_slice %384 {offsets = [0, 6], sizes = [16, 1], strides = [1, 1]} : vector<16x8xf32> to vector<16x1xf32>
      %493 = vector.broadcast %492 : vector<16x1xf32> to vector<16x8xf32>
      %494 = arith.mulf %491, %493 : vector<16x8xf32>
      %cst_105 = arith.constant dense<0.000000e+00> : vector<8xf32>
      %495 = vector.multi_reduction <add>, %494, %cst_105 [0] : vector<16x8xf32> to vector<8xf32>
      %496 = vector.shape_cast %495 : vector<8xf32> to vector<1x8xf32>
      %497 = vector.extract_strided_slice %377 {offsets = [7, 0], sizes = [1, 8], strides = [1, 1]} : vector<8x8xf32> to vector<1x8xf32>
      %498 = vector.broadcast %497 : vector<1x8xf32> to vector<16x8xf32>
      %499 = arith.mulf %498, %10 : vector<16x8xf32>
      %500 = math.exp %499 : vector<16x8xf32>
      %501 = arith.mulf %500, %491 : vector<16x8xf32>
      %502 = vector.extract_strided_slice %383 {offsets = [0, 7], sizes = [16, 1], strides = [1, 1]} : vector<16x8xf32> to vector<16x1xf32>
      %503 = vector.extract_strided_slice %379 {offsets = [7, 0], sizes = [1, 8], strides = [1, 1]} : vector<8x8xf32> to vector<1x8xf32>
      %504 = vector.broadcast %502 : vector<16x1xf32> to vector<16x8xf32>
      %505 = vector.broadcast %503 : vector<1x8xf32> to vector<16x8xf32>
      %506 = arith.mulf %504, %505 : vector<16x8xf32>
      %507 = arith.addf %501, %506 : vector<16x8xf32>
      %508 = vector.extract_strided_slice %384 {offsets = [0, 7], sizes = [16, 1], strides = [1, 1]} : vector<16x8xf32> to vector<16x1xf32>
      %509 = vector.broadcast %508 : vector<16x1xf32> to vector<16x8xf32>
      %510 = arith.mulf %507, %509 : vector<16x8xf32>
      %cst_106 = arith.constant dense<0.000000e+00> : vector<8xf32>
      %511 = vector.multi_reduction <add>, %510, %cst_106 [0] : vector<16x8xf32> to vector<8xf32>
      %512 = vector.shape_cast %511 : vector<8xf32> to vector<1x8xf32>
      %513 = tpu.concatenate %400, %416, %432, %448, %464, %480, %496, %512 in 0 : vector<1x8xf32>, vector<1x8xf32>, vector<1x8xf32>, vector<1x8xf32>, vector<1x8xf32>, vector<1x8xf32>, vector<1x8xf32>, vector<1x8xf32> -> vector<8x8xf32>
      %514 = arith.index_cast %375 : i32 to index
      %c0_107 = arith.constant 0 : index
      %515 = vector.load %arg20[%514, %c0_107] : memref<256x8xf32, #tpu.memory_space<vmem>>, vector<8x8xf32>
      tpu.vector_store %arg20[%514, %c0_107], %513 {strides = array<i32>} : memref<256x8xf32, #tpu.memory_space<vmem>>, vector<8x8xf32>,
      %c8_i32_108 = arith.constant 8 : i32
      %516 = arith.muli %arg21, %c8_i32_108 : i32
      %c128_i32_109 = arith.constant 128 : i32
      %517 = arith.addi %c128_i32_109, %516 : i32
      %518 = arith.index_cast %517 : i32 to index
      %c0_110 = arith.constant 0 : index
      %519 = vector.load %arg17[%518, %c0_110] : memref<256x8xf32, #tpu.memory_space<vmem>>, vector<8x8xf32>
      %520 = arith.index_cast %517 : i32 to index
      %c0_111 = arith.constant 0 : index
      %521 = vector.load %arg18[%520, %c0_111] : memref<256x8xf32, #tpu.memory_space<vmem>>, vector<8x8xf32>
      %522 = arith.index_cast %517 : i32 to index
      %c0_112 = arith.constant 0 : index
      %523 = vector.load %arg19[%522, %c0_112] : memref<256x32xf32, #tpu.memory_space<vmem>>, vector<8x32xf32>
      %cst_113 = arith.constant dense<0.000000e+00> : vector<32x8xf32>
      %524 = tpu.matmul %523, %175, %cst_113 {dimension_numbers = #tpu.dot_dimension_numbers<[0], [0], [1], [1], [0, 1, 1, 1], [], []>} : vector<8x32xf32>, vector<8x8xf32>, vector<32x8xf32> -> vector<32x8xf32>
      %525 = vector.extract_strided_slice %524 {offsets = [0, 0], sizes = [16, 8], strides = [1, 1]} : vector<32x8xf32> to vector<16x8xf32>
      %526 = vector.extract_strided_slice %524 {offsets = [16, 0], sizes = [16, 8], strides = [1, 1]} : vector<32x8xf32> to vector<16x8xf32>
      %527 = vector.extract_strided_slice %519 {offsets = [0, 0], sizes = [1, 8], strides = [1, 1]} : vector<8x8xf32> to vector<1x8xf32>
      %528 = vector.broadcast %527 : vector<1x8xf32> to vector<16x8xf32>
      %529 = arith.mulf %528, %10 : vector<16x8xf32>
      %530 = math.exp %529 : vector<16x8xf32>
      %531 = arith.mulf %530, %arg24 : vector<16x8xf32>
      %532 = vector.extract_strided_slice %525 {offsets = [0, 0], sizes = [16, 1], strides = [1, 1]} : vector<16x8xf32> to vector<16x1xf32>
      %533 = vector.extract_strided_slice %521 {offsets = [0, 0], sizes = [1, 8], strides = [1, 1]} : vector<8x8xf32> to vector<1x8xf32>
      %534 = vector.broadcast %532 : vector<16x1xf32> to vector<16x8xf32>
      %535 = vector.broadcast %533 : vector<1x8xf32> to vector<16x8xf32>
      %536 = arith.mulf %534, %535 : vector<16x8xf32>
      %537 = arith.addf %531, %536 : vector<16x8xf32>
      %538 = vector.extract_strided_slice %526 {offsets = [0, 0], sizes = [16, 1], strides = [1, 1]} : vector<16x8xf32> to vector<16x1xf32>
      %539 = vector.broadcast %538 : vector<16x1xf32> to vector<16x8xf32>
      %540 = arith.mulf %537, %539 : vector<16x8xf32>
      %cst_114 = arith.constant dense<0.000000e+00> : vector<8xf32>
      %541 = vector.multi_reduction <add>, %540, %cst_114 [0] : vector<16x8xf32> to vector<8xf32>
      %542 = vector.shape_cast %541 : vector<8xf32> to vector<1x8xf32>
      %543 = vector.extract_strided_slice %519 {offsets = [1, 0], sizes = [1, 8], strides = [1, 1]} : vector<8x8xf32> to vector<1x8xf32>
      %544 = vector.broadcast %543 : vector<1x8xf32> to vector<16x8xf32>
      %545 = arith.mulf %544, %10 : vector<16x8xf32>
      %546 = math.exp %545 : vector<16x8xf32>
      %547 = arith.mulf %546, %537 : vector<16x8xf32>
      %548 = vector.extract_strided_slice %525 {offsets = [0, 1], sizes = [16, 1], strides = [1, 1]} : vector<16x8xf32> to vector<16x1xf32>
      %549 = vector.extract_strided_slice %521 {offsets = [1, 0], sizes = [1, 8], strides = [1, 1]} : vector<8x8xf32> to vector<1x8xf32>
      %550 = vector.broadcast %548 : vector<16x1xf32> to vector<16x8xf32>
      %551 = vector.broadcast %549 : vector<1x8xf32> to vector<16x8xf32>
      %552 = arith.mulf %550, %551 : vector<16x8xf32>
      %553 = arith.addf %547, %552 : vector<16x8xf32>
      %554 = vector.extract_strided_slice %526 {offsets = [0, 1], sizes = [16, 1], strides = [1, 1]} : vector<16x8xf32> to vector<16x1xf32>
      %555 = vector.broadcast %554 : vector<16x1xf32> to vector<16x8xf32>
      %556 = arith.mulf %553, %555 : vector<16x8xf32>
      %cst_115 = arith.constant dense<0.000000e+00> : vector<8xf32>
      %557 = vector.multi_reduction <add>, %556, %cst_115 [0] : vector<16x8xf32> to vector<8xf32>
      %558 = vector.shape_cast %557 : vector<8xf32> to vector<1x8xf32>
      %559 = vector.extract_strided_slice %519 {offsets = [2, 0], sizes = [1, 8], strides = [1, 1]} : vector<8x8xf32> to vector<1x8xf32>
      %560 = vector.broadcast %559 : vector<1x8xf32> to vector<16x8xf32>
      %561 = arith.mulf %560, %10 : vector<16x8xf32>
      %562 = math.exp %561 : vector<16x8xf32>
      %563 = arith.mulf %562, %553 : vector<16x8xf32>
      %564 = vector.extract_strided_slice %525 {offsets = [0, 2], sizes = [16, 1], strides = [1, 1]} : vector<16x8xf32> to vector<16x1xf32>
      %565 = vector.extract_strided_slice %521 {offsets = [2, 0], sizes = [1, 8], strides = [1, 1]} : vector<8x8xf32> to vector<1x8xf32>
      %566 = vector.broadcast %564 : vector<16x1xf32> to vector<16x8xf32>
      %567 = vector.broadcast %565 : vector<1x8xf32> to vector<16x8xf32>
      %568 = arith.mulf %566, %567 : vector<16x8xf32>
      %569 = arith.addf %563, %568 : vector<16x8xf32>
      %570 = vector.extract_strided_slice %526 {offsets = [0, 2], sizes = [16, 1], strides = [1, 1]} : vector<16x8xf32> to vector<16x1xf32>
      %571 = vector.broadcast %570 : vector<16x1xf32> to vector<16x8xf32>
      %572 = arith.mulf %569, %571 : vector<16x8xf32>
      %cst_116 = arith.constant dense<0.000000e+00> : vector<8xf32>
      %573 = vector.multi_reduction <add>, %572, %cst_116 [0] : vector<16x8xf32> to vector<8xf32>
      %574 = vector.shape_cast %573 : vector<8xf32> to vector<1x8xf32>
      %575 = vector.extract_strided_slice %519 {offsets = [3, 0], sizes = [1, 8], strides = [1, 1]} : vector<8x8xf32> to vector<1x8xf32>
      %576 = vector.broadcast %575 : vector<1x8xf32> to vector<16x8xf32>
      %577 = arith.mulf %576, %10 : vector<16x8xf32>
      %578 = math.exp %577 : vector<16x8xf32>
      %579 = arith.mulf %578, %569 : vector<16x8xf32>
      %580 = vector.extract_strided_slice %525 {offsets = [0, 3], sizes = [16, 1], strides = [1, 1]} : vector<16x8xf32> to vector<16x1xf32>
      %581 = vector.extract_strided_slice %521 {offsets = [3, 0], sizes = [1, 8], strides = [1, 1]} : vector<8x8xf32> to vector<1x8xf32>
      %582 = vector.broadcast %580 : vector<16x1xf32> to vector<16x8xf32>
      %583 = vector.broadcast %581 : vector<1x8xf32> to vector<16x8xf32>
      %584 = arith.mulf %582, %583 : vector<16x8xf32>
      %585 = arith.addf %579, %584 : vector<16x8xf32>
      %586 = vector.extract_strided_slice %526 {offsets = [0, 3], sizes = [16, 1], strides = [1, 1]} : vector<16x8xf32> to vector<16x1xf32>
      %587 = vector.broadcast %586 : vector<16x1xf32> to vector<16x8xf32>
      %588 = arith.mulf %585, %587 : vector<16x8xf32>
      %cst_117 = arith.constant dense<0.000000e+00> : vector<8xf32>
      %589 = vector.multi_reduction <add>, %588, %cst_117 [0] : vector<16x8xf32> to vector<8xf32>
      %590 = vector.shape_cast %589 : vector<8xf32> to vector<1x8xf32>
      %591 = vector.extract_strided_slice %519 {offsets = [4, 0], sizes = [1, 8], strides = [1, 1]} : vector<8x8xf32> to vector<1x8xf32>
      %592 = vector.broadcast %591 : vector<1x8xf32> to vector<16x8xf32>
      %593 = arith.mulf %592, %10 : vector<16x8xf32>
      %594 = math.exp %593 : vector<16x8xf32>
      %595 = arith.mulf %594, %585 : vector<16x8xf32>
      %596 = vector.extract_strided_slice %525 {offsets = [0, 4], sizes = [16, 1], strides = [1, 1]} : vector<16x8xf32> to vector<16x1xf32>
      %597 = vector.extract_strided_slice %521 {offsets = [4, 0], sizes = [1, 8], strides = [1, 1]} : vector<8x8xf32> to vector<1x8xf32>
      %598 = vector.broadcast %596 : vector<16x1xf32> to vector<16x8xf32>
      %599 = vector.broadcast %597 : vector<1x8xf32> to vector<16x8xf32>
      %600 = arith.mulf %598, %599 : vector<16x8xf32>
      %601 = arith.addf %595, %600 : vector<16x8xf32>
      %602 = vector.extract_strided_slice %526 {offsets = [0, 4], sizes = [16, 1], strides = [1, 1]} : vector<16x8xf32> to vector<16x1xf32>
      %603 = vector.broadcast %602 : vector<16x1xf32> to vector<16x8xf32>
      %604 = arith.mulf %601, %603 : vector<16x8xf32>
      %cst_118 = arith.constant dense<0.000000e+00> : vector<8xf32>
      %605 = vector.multi_reduction <add>, %604, %cst_118 [0] : vector<16x8xf32> to vector<8xf32>
      %606 = vector.shape_cast %605 : vector<8xf32> to vector<1x8xf32>
      %607 = vector.extract_strided_slice %519 {offsets = [5, 0], sizes = [1, 8], strides = [1, 1]} : vector<8x8xf32> to vector<1x8xf32>
      %608 = vector.broadcast %607 : vector<1x8xf32> to vector<16x8xf32>
      %609 = arith.mulf %608, %10 : vector<16x8xf32>
      %610 = math.exp %609 : vector<16x8xf32>
      %611 = arith.mulf %610, %601 : vector<16x8xf32>
      %612 = vector.extract_strided_slice %525 {offsets = [0, 5], sizes = [16, 1], strides = [1, 1]} : vector<16x8xf32> to vector<16x1xf32>
      %613 = vector.extract_strided_slice %521 {offsets = [5, 0], sizes = [1, 8], strides = [1, 1]} : vector<8x8xf32> to vector<1x8xf32>
      %614 = vector.broadcast %612 : vector<16x1xf32> to vector<16x8xf32>
      %615 = vector.broadcast %613 : vector<1x8xf32> to vector<16x8xf32>
      %616 = arith.mulf %614, %615 : vector<16x8xf32>
      %617 = arith.addf %611, %616 : vector<16x8xf32>
      %618 = vector.extract_strided_slice %526 {offsets = [0, 5], sizes = [16, 1], strides = [1, 1]} : vector<16x8xf32> to vector<16x1xf32>
      %619 = vector.broadcast %618 : vector<16x1xf32> to vector<16x8xf32>
      %620 = arith.mulf %617, %619 : vector<16x8xf32>
      %cst_119 = arith.constant dense<0.000000e+00> : vector<8xf32>
      %621 = vector.multi_reduction <add>, %620, %cst_119 [0] : vector<16x8xf32> to vector<8xf32>
      %622 = vector.shape_cast %621 : vector<8xf32> to vector<1x8xf32>
      %623 = vector.extract_strided_slice %519 {offsets = [6, 0], sizes = [1, 8], strides = [1, 1]} : vector<8x8xf32> to vector<1x8xf32>
      %624 = vector.broadcast %623 : vector<1x8xf32> to vector<16x8xf32>
      %625 = arith.mulf %624, %10 : vector<16x8xf32>
      %626 = math.exp %625 : vector<16x8xf32>
      %627 = arith.mulf %626, %617 : vector<16x8xf32>
      %628 = vector.extract_strided_slice %525 {offsets = [0, 6], sizes = [16, 1], strides = [1, 1]} : vector<16x8xf32> to vector<16x1xf32>
      %629 = vector.extract_strided_slice %521 {offsets = [6, 0], sizes = [1, 8], strides = [1, 1]} : vector<8x8xf32> to vector<1x8xf32>
      %630 = vector.broadcast %628 : vector<16x1xf32> to vector<16x8xf32>
      %631 = vector.broadcast %629 : vector<1x8xf32> to vector<16x8xf32>
      %632 = arith.mulf %630, %631 : vector<16x8xf32>
      %633 = arith.addf %627, %632 : vector<16x8xf32>
      %634 = vector.extract_strided_slice %526 {offsets = [0, 6], sizes = [16, 1], strides = [1, 1]} : vector<16x8xf32> to vector<16x1xf32>
      %635 = vector.broadcast %634 : vector<16x1xf32> to vector<16x8xf32>
      %636 = arith.mulf %633, %635 : vector<16x8xf32>
      %cst_120 = arith.constant dense<0.000000e+00> : vector<8xf32>
      %637 = vector.multi_reduction <add>, %636, %cst_120 [0] : vector<16x8xf32> to vector<8xf32>
      %638 = vector.shape_cast %637 : vector<8xf32> to vector<1x8xf32>
      %639 = vector.extract_strided_slice %519 {offsets = [7, 0], sizes = [1, 8], strides = [1, 1]} : vector<8x8xf32> to vector<1x8xf32>
      %640 = vector.broadcast %639 : vector<1x8xf32> to vector<16x8xf32>
      %641 = arith.mulf %640, %10 : vector<16x8xf32>
      %642 = math.exp %641 : vector<16x8xf32>
      %643 = arith.mulf %642, %633 : vector<16x8xf32>
      %644 = vector.extract_strided_slice %525 {offsets = [0, 7], sizes = [16, 1], strides = [1, 1]} : vector<16x8xf32> to vector<16x1xf32>
      %645 = vector.extract_strided_slice %521 {offsets = [7, 0], sizes = [1, 8], strides = [1, 1]} : vector<8x8xf32> to vector<1x8xf32>
      %646 = vector.broadcast %644 : vector<16x1xf32> to vector<16x8xf32>
      %647 = vector.broadcast %645 : vector<1x8xf32> to vector<16x8xf32>
      %648 = arith.mulf %646, %647 : vector<16x8xf32>
      %649 = arith.addf %643, %648 : vector<16x8xf32>
      %650 = vector.extract_strided_slice %526 {offsets = [0, 7], sizes = [16, 1], strides = [1, 1]} : vector<16x8xf32> to vector<16x1xf32>
      %651 = vector.broadcast %650 : vector<16x1xf32> to vector<16x8xf32>
      %652 = arith.mulf %649, %651 : vector<16x8xf32>
      %cst_121 = arith.constant dense<0.000000e+00> : vector<8xf32>
      %653 = vector.multi_reduction <add>, %652, %cst_121 [0] : vector<16x8xf32> to vector<8xf32>
      %654 = vector.shape_cast %653 : vector<8xf32> to vector<1x8xf32>
      %655 = tpu.concatenate %542, %558, %574, %590, %606, %622, %638, %654 in 0 : vector<1x8xf32>, vector<1x8xf32>, vector<1x8xf32>, vector<1x8xf32>, vector<1x8xf32>, vector<1x8xf32>, vector<1x8xf32>, vector<1x8xf32> -> vector<8x8xf32>
      %656 = arith.index_cast %517 : i32 to index
      %c0_122 = arith.constant 0 : index
      %657 = vector.load %arg20[%656, %c0_122] : memref<256x8xf32, #tpu.memory_space<vmem>>, vector<8x8xf32>
      tpu.vector_store %arg20[%656, %c0_122], %655 {strides = array<i32>} : memref<256x8xf32, #tpu.memory_space<vmem>>, vector<8x8xf32>,
      %c8_i32_123 = arith.constant 8 : i32
      %658 = arith.muli %arg21, %c8_i32_123 : i32
      %c192_i32_124 = arith.constant 192 : i32
      %659 = arith.addi %c192_i32_124, %658 : i32
      %660 = arith.index_cast %659 : i32 to index
      %c0_125 = arith.constant 0 : index
      %661 = vector.load %arg17[%660, %c0_125] : memref<256x8xf32, #tpu.memory_space<vmem>>, vector<8x8xf32>
      %662 = arith.index_cast %659 : i32 to index
      %c0_126 = arith.constant 0 : index
      %663 = vector.load %arg18[%662, %c0_126] : memref<256x8xf32, #tpu.memory_space<vmem>>, vector<8x8xf32>
      %664 = arith.index_cast %659 : i32 to index
      %c0_127 = arith.constant 0 : index
      %665 = vector.load %arg19[%664, %c0_127] : memref<256x32xf32, #tpu.memory_space<vmem>>, vector<8x32xf32>
      %cst_128 = arith.constant dense<0.000000e+00> : vector<32x8xf32>
      %666 = tpu.matmul %665, %175, %cst_128 {dimension_numbers = #tpu.dot_dimension_numbers<[0], [0], [1], [1], [0, 1, 1, 1], [], []>} : vector<8x32xf32>, vector<8x8xf32>, vector<32x8xf32> -> vector<32x8xf32>
      %667 = vector.extract_strided_slice %666 {offsets = [0, 0], sizes = [16, 8], strides = [1, 1]} : vector<32x8xf32> to vector<16x8xf32>
      %668 = vector.extract_strided_slice %666 {offsets = [16, 0], sizes = [16, 8], strides = [1, 1]} : vector<32x8xf32> to vector<16x8xf32>
      %669 = vector.extract_strided_slice %661 {offsets = [0, 0], sizes = [1, 8], strides = [1, 1]} : vector<8x8xf32> to vector<1x8xf32>
      %670 = vector.broadcast %669 : vector<1x8xf32> to vector<16x8xf32>
      %671 = arith.mulf %670, %10 : vector<16x8xf32>
      %672 = math.exp %671 : vector<16x8xf32>
      %673 = arith.mulf %672, %arg25 : vector<16x8xf32>
      %674 = vector.extract_strided_slice %667 {offsets = [0, 0], sizes = [16, 1], strides = [1, 1]} : vector<16x8xf32> to vector<16x1xf32>
      %675 = vector.extract_strided_slice %663 {offsets = [0, 0], sizes = [1, 8], strides = [1, 1]} : vector<8x8xf32> to vector<1x8xf32>
      %676 = vector.broadcast %674 : vector<16x1xf32> to vector<16x8xf32>
      %677 = vector.broadcast %675 : vector<1x8xf32> to vector<16x8xf32>
      %678 = arith.mulf %676, %677 : vector<16x8xf32>
      %679 = arith.addf %673, %678 : vector<16x8xf32>
      %680 = vector.extract_strided_slice %668 {offsets = [0, 0], sizes = [16, 1], strides = [1, 1]} : vector<16x8xf32> to vector<16x1xf32>
      %681 = vector.broadcast %680 : vector<16x1xf32> to vector<16x8xf32>
      %682 = arith.mulf %679, %681 : vector<16x8xf32>
      %cst_129 = arith.constant dense<0.000000e+00> : vector<8xf32>
      %683 = vector.multi_reduction <add>, %682, %cst_129 [0] : vector<16x8xf32> to vector<8xf32>
      %684 = vector.shape_cast %683 : vector<8xf32> to vector<1x8xf32>
      %685 = vector.extract_strided_slice %661 {offsets = [1, 0], sizes = [1, 8], strides = [1, 1]} : vector<8x8xf32> to vector<1x8xf32>
      %686 = vector.broadcast %685 : vector<1x8xf32> to vector<16x8xf32>
      %687 = arith.mulf %686, %10 : vector<16x8xf32>
      %688 = math.exp %687 : vector<16x8xf32>
      %689 = arith.mulf %688, %679 : vector<16x8xf32>
      %690 = vector.extract_strided_slice %667 {offsets = [0, 1], sizes = [16, 1], strides = [1, 1]} : vector<16x8xf32> to vector<16x1xf32>
      %691 = vector.extract_strided_slice %663 {offsets = [1, 0], sizes = [1, 8], strides = [1, 1]} : vector<8x8xf32> to vector<1x8xf32>
      %692 = vector.broadcast %690 : vector<16x1xf32> to vector<16x8xf32>
      %693 = vector.broadcast %691 : vector<1x8xf32> to vector<16x8xf32>
      %694 = arith.mulf %692, %693 : vector<16x8xf32>
      %695 = arith.addf %689, %694 : vector<16x8xf32>
      %696 = vector.extract_strided_slice %668 {offsets = [0, 1], sizes = [16, 1], strides = [1, 1]} : vector<16x8xf32> to vector<16x1xf32>
      %697 = vector.broadcast %696 : vector<16x1xf32> to vector<16x8xf32>
      %698 = arith.mulf %695, %697 : vector<16x8xf32>
      %cst_130 = arith.constant dense<0.000000e+00> : vector<8xf32>
      %699 = vector.multi_reduction <add>, %698, %cst_130 [0] : vector<16x8xf32> to vector<8xf32>
      %700 = vector.shape_cast %699 : vector<8xf32> to vector<1x8xf32>
      %701 = vector.extract_strided_slice %661 {offsets = [2, 0], sizes = [1, 8], strides = [1, 1]} : vector<8x8xf32> to vector<1x8xf32>
      %702 = vector.broadcast %701 : vector<1x8xf32> to vector<16x8xf32>
      %703 = arith.mulf %702, %10 : vector<16x8xf32>
      %704 = math.exp %703 : vector<16x8xf32>
      %705 = arith.mulf %704, %695 : vector<16x8xf32>
      %706 = vector.extract_strided_slice %667 {offsets = [0, 2], sizes = [16, 1], strides = [1, 1]} : vector<16x8xf32> to vector<16x1xf32>
      %707 = vector.extract_strided_slice %663 {offsets = [2, 0], sizes = [1, 8], strides = [1, 1]} : vector<8x8xf32> to vector<1x8xf32>
      %708 = vector.broadcast %706 : vector<16x1xf32> to vector<16x8xf32>
      %709 = vector.broadcast %707 : vector<1x8xf32> to vector<16x8xf32>
      %710 = arith.mulf %708, %709 : vector<16x8xf32>
      %711 = arith.addf %705, %710 : vector<16x8xf32>
      %712 = vector.extract_strided_slice %668 {offsets = [0, 2], sizes = [16, 1], strides = [1, 1]} : vector<16x8xf32> to vector<16x1xf32>
      %713 = vector.broadcast %712 : vector<16x1xf32> to vector<16x8xf32>
      %714 = arith.mulf %711, %713 : vector<16x8xf32>
      %cst_131 = arith.constant dense<0.000000e+00> : vector<8xf32>
      %715 = vector.multi_reduction <add>, %714, %cst_131 [0] : vector<16x8xf32> to vector<8xf32>
      %716 = vector.shape_cast %715 : vector<8xf32> to vector<1x8xf32>
      %717 = vector.extract_strided_slice %661 {offsets = [3, 0], sizes = [1, 8], strides = [1, 1]} : vector<8x8xf32> to vector<1x8xf32>
      %718 = vector.broadcast %717 : vector<1x8xf32> to vector<16x8xf32>
      %719 = arith.mulf %718, %10 : vector<16x8xf32>
      %720 = math.exp %719 : vector<16x8xf32>
      %721 = arith.mulf %720, %711 : vector<16x8xf32>
      %722 = vector.extract_strided_slice %667 {offsets = [0, 3], sizes = [16, 1], strides = [1, 1]} : vector<16x8xf32> to vector<16x1xf32>
      %723 = vector.extract_strided_slice %663 {offsets = [3, 0], sizes = [1, 8], strides = [1, 1]} : vector<8x8xf32> to vector<1x8xf32>
      %724 = vector.broadcast %722 : vector<16x1xf32> to vector<16x8xf32>
      %725 = vector.broadcast %723 : vector<1x8xf32> to vector<16x8xf32>
      %726 = arith.mulf %724, %725 : vector<16x8xf32>
      %727 = arith.addf %721, %726 : vector<16x8xf32>
      %728 = vector.extract_strided_slice %668 {offsets = [0, 3], sizes = [16, 1], strides = [1, 1]} : vector<16x8xf32> to vector<16x1xf32>
      %729 = vector.broadcast %728 : vector<16x1xf32> to vector<16x8xf32>
      %730 = arith.mulf %727, %729 : vector<16x8xf32>
      %cst_132 = arith.constant dense<0.000000e+00> : vector<8xf32>
      %731 = vector.multi_reduction <add>, %730, %cst_132 [0] : vector<16x8xf32> to vector<8xf32>
      %732 = vector.shape_cast %731 : vector<8xf32> to vector<1x8xf32>
      %733 = vector.extract_strided_slice %661 {offsets = [4, 0], sizes = [1, 8], strides = [1, 1]} : vector<8x8xf32> to vector<1x8xf32>
      %734 = vector.broadcast %733 : vector<1x8xf32> to vector<16x8xf32>
      %735 = arith.mulf %734, %10 : vector<16x8xf32>
      %736 = math.exp %735 : vector<16x8xf32>
      %737 = arith.mulf %736, %727 : vector<16x8xf32>
      %738 = vector.extract_strided_slice %667 {offsets = [0, 4], sizes = [16, 1], strides = [1, 1]} : vector<16x8xf32> to vector<16x1xf32>
      %739 = vector.extract_strided_slice %663 {offsets = [4, 0], sizes = [1, 8], strides = [1, 1]} : vector<8x8xf32> to vector<1x8xf32>
      %740 = vector.broadcast %738 : vector<16x1xf32> to vector<16x8xf32>
      %741 = vector.broadcast %739 : vector<1x8xf32> to vector<16x8xf32>
      %742 = arith.mulf %740, %741 : vector<16x8xf32>
      %743 = arith.addf %737, %742 : vector<16x8xf32>
      %744 = vector.extract_strided_slice %668 {offsets = [0, 4], sizes = [16, 1], strides = [1, 1]} : vector<16x8xf32> to vector<16x1xf32>
      %745 = vector.broadcast %744 : vector<16x1xf32> to vector<16x8xf32>
      %746 = arith.mulf %743, %745 : vector<16x8xf32>
      %cst_133 = arith.constant dense<0.000000e+00> : vector<8xf32>
      %747 = vector.multi_reduction <add>, %746, %cst_133 [0] : vector<16x8xf32> to vector<8xf32>
      %748 = vector.shape_cast %747 : vector<8xf32> to vector<1x8xf32>
      %749 = vector.extract_strided_slice %661 {offsets = [5, 0], sizes = [1, 8], strides = [1, 1]} : vector<8x8xf32> to vector<1x8xf32>
      %750 = vector.broadcast %749 : vector<1x8xf32> to vector<16x8xf32>
      %751 = arith.mulf %750, %10 : vector<16x8xf32>
      %752 = math.exp %751 : vector<16x8xf32>
      %753 = arith.mulf %752, %743 : vector<16x8xf32>
      %754 = vector.extract_strided_slice %667 {offsets = [0, 5], sizes = [16, 1], strides = [1, 1]} : vector<16x8xf32> to vector<16x1xf32>
      %755 = vector.extract_strided_slice %663 {offsets = [5, 0], sizes = [1, 8], strides = [1, 1]} : vector<8x8xf32> to vector<1x8xf32>
      %756 = vector.broadcast %754 : vector<16x1xf32> to vector<16x8xf32>
      %757 = vector.broadcast %755 : vector<1x8xf32> to vector<16x8xf32>
      %758 = arith.mulf %756, %757 : vector<16x8xf32>
      %759 = arith.addf %753, %758 : vector<16x8xf32>
      %760 = vector.extract_strided_slice %668 {offsets = [0, 5], sizes = [16, 1], strides = [1, 1]} : vector<16x8xf32> to vector<16x1xf32>
      %761 = vector.broadcast %760 : vector<16x1xf32> to vector<16x8xf32>
      %762 = arith.mulf %759, %761 : vector<16x8xf32>
      %cst_134 = arith.constant dense<0.000000e+00> : vector<8xf32>
      %763 = vector.multi_reduction <add>, %762, %cst_134 [0] : vector<16x8xf32> to vector<8xf32>
      %764 = vector.shape_cast %763 : vector<8xf32> to vector<1x8xf32>
      %765 = vector.extract_strided_slice %661 {offsets = [6, 0], sizes = [1, 8], strides = [1, 1]} : vector<8x8xf32> to vector<1x8xf32>
      %766 = vector.broadcast %765 : vector<1x8xf32> to vector<16x8xf32>
      %767 = arith.mulf %766, %10 : vector<16x8xf32>
      %768 = math.exp %767 : vector<16x8xf32>
      %769 = arith.mulf %768, %759 : vector<16x8xf32>
      %770 = vector.extract_strided_slice %667 {offsets = [0, 6], sizes = [16, 1], strides = [1, 1]} : vector<16x8xf32> to vector<16x1xf32>
      %771 = vector.extract_strided_slice %663 {offsets = [6, 0], sizes = [1, 8], strides = [1, 1]} : vector<8x8xf32> to vector<1x8xf32>
      %772 = vector.broadcast %770 : vector<16x1xf32> to vector<16x8xf32>
      %773 = vector.broadcast %771 : vector<1x8xf32> to vector<16x8xf32>
      %774 = arith.mulf %772, %773 : vector<16x8xf32>
      %775 = arith.addf %769, %774 : vector<16x8xf32>
      %776 = vector.extract_strided_slice %668 {offsets = [0, 6], sizes = [16, 1], strides = [1, 1]} : vector<16x8xf32> to vector<16x1xf32>
      %777 = vector.broadcast %776 : vector<16x1xf32> to vector<16x8xf32>
      %778 = arith.mulf %775, %777 : vector<16x8xf32>
      %cst_135 = arith.constant dense<0.000000e+00> : vector<8xf32>
      %779 = vector.multi_reduction <add>, %778, %cst_135 [0] : vector<16x8xf32> to vector<8xf32>
      %780 = vector.shape_cast %779 : vector<8xf32> to vector<1x8xf32>
      %781 = vector.extract_strided_slice %661 {offsets = [7, 0], sizes = [1, 8], strides = [1, 1]} : vector<8x8xf32> to vector<1x8xf32>
      %782 = vector.broadcast %781 : vector<1x8xf32> to vector<16x8xf32>
      %783 = arith.mulf %782, %10 : vector<16x8xf32>
      %784 = math.exp %783 : vector<16x8xf32>
      %785 = arith.mulf %784, %775 : vector<16x8xf32>
      %786 = vector.extract_strided_slice %667 {offsets = [0, 7], sizes = [16, 1], strides = [1, 1]} : vector<16x8xf32> to vector<16x1xf32>
      %787 = vector.extract_strided_slice %663 {offsets = [7, 0], sizes = [1, 8], strides = [1, 1]} : vector<8x8xf32> to vector<1x8xf32>
      %788 = vector.broadcast %786 : vector<16x1xf32> to vector<16x8xf32>
      %789 = vector.broadcast %787 : vector<1x8xf32> to vector<16x8xf32>
      %790 = arith.mulf %788, %789 : vector<16x8xf32>
      %791 = arith.addf %785, %790 : vector<16x8xf32>
      %792 = vector.extract_strided_slice %668 {offsets = [0, 7], sizes = [16, 1], strides = [1, 1]} : vector<16x8xf32> to vector<16x1xf32>
      %793 = vector.broadcast %792 : vector<16x1xf32> to vector<16x8xf32>
      %794 = arith.mulf %791, %793 : vector<16x8xf32>
      %cst_136 = arith.constant dense<0.000000e+00> : vector<8xf32>
      %795 = vector.multi_reduction <add>, %794, %cst_136 [0] : vector<16x8xf32> to vector<8xf32>
      %796 = vector.shape_cast %795 : vector<8xf32> to vector<1x8xf32>
      %797 = tpu.concatenate %684, %700, %716, %732, %748, %764, %780, %796 in 0 : vector<1x8xf32>, vector<1x8xf32>, vector<1x8xf32>, vector<1x8xf32>, vector<1x8xf32>, vector<1x8xf32>, vector<1x8xf32>, vector<1x8xf32> -> vector<8x8xf32>
      %798 = arith.index_cast %659 : i32 to index
      %c0_137 = arith.constant 0 : index
      %799 = vector.load %arg20[%798, %c0_137] : memref<256x8xf32, #tpu.memory_space<vmem>>, vector<8x8xf32>
      tpu.vector_store %arg20[%798, %c0_137], %797 {strides = array<i32>} : memref<256x8xf32, #tpu.memory_space<vmem>>, vector<8x8xf32>,
      scf.yield %365, %507, %649, %791 : vector<16x8xf32>, vector<16x8xf32>, vector<16x8xf32>, vector<16x8xf32>
    }
    %c8_i32_60 = arith.constant 8 : i32
    %c0_61 = arith.constant 0 : index
    %c0_62 = arith.constant 0 : index
    %182 = vector.load %arg20[%c0_61, %c0_62] : memref<256x8xf32, #tpu.memory_space<vmem>>, vector<256x8xf32>
    %183 = vector.broadcast %11 : vector<1x8xf32> to vector<256x8xf32>
    %184 = arith.mulf %145, %183 : vector<256x8xf32>
    %185 = arith.addf %182, %184 : vector<256x8xf32>
    %186 = arith.negf %43 : vector<256x8xf32>
    %187 = math.exp %186 : vector<256x8xf32>
    %cst_63 = arith.constant 1.000000e+00 : f32
    %188 = vector.broadcast %cst_63 : f32 to vector<256x8xf32>
    %189 = arith.addf %188, %187 : vector<256x8xf32>
    %190 = arith.divf %188, %189 : vector<256x8xf32>
    %191 = arith.mulf %43, %190 : vector<256x8xf32>
    %192 = arith.mulf %185, %191 : vector<256x8xf32>
    %193 = arith.truncf %192 : vector<256x8xf32> to vector<256x8xbf16>
    %c0_64 = arith.constant 0 : index
    %c0_65 = arith.constant 0 : index
    %194 = vector.load %arg11[%c0_64, %c0_65] : memref<8x4xbf16, #tpu.memory_space<vmem>>, vector<8x4xbf16>
    %cst_66 = arith.constant dense<0.000000e+00> : vector<256x4xf32>
    %195 = tpu.matmul %193, %194, %cst_66 {dimension_numbers = #tpu.dot_dimension_numbers<[1], [0], [0], [1], [0, 0, 1, 1], [], []>} : vector<256x8xbf16>, vector<8x4xbf16>, vector<256x4xf32> -> vector<256x4xf32>
    %196 = vector.broadcast %13 : f32 to vector<256x4xf32>
    %197 = arith.mulf %196, %38 : vector<256x4xf32>
    %198 = arith.addf %195, %197 : vector<256x4xf32>
    %199 = vector.extract_strided_slice %198 {offsets = [0, 0], sizes = [64, 4], strides = [1, 1]} : vector<256x4xf32> to vector<64x4xf32>
    %200 = vector.extract_strided_slice %198 {offsets = [64, 0], sizes = [64, 4], strides = [1, 1]} : vector<256x4xf32> to vector<64x4xf32>
    %201 = vector.extract_strided_slice %198 {offsets = [128, 0], sizes = [64, 4], strides = [1, 1]} : vector<256x4xf32> to vector<64x4xf32>
    %202 = vector.extract_strided_slice %198 {offsets = [192, 0], sizes = [64, 4], strides = [1, 1]} : vector<256x4xf32> to vector<64x4xf32>
    %203 = tpu.concatenate %199, %200, %201, %202 in 1 : vector<64x4xf32>, vector<64x4xf32>, vector<64x4xf32>, vector<64x4xf32> -> vector<64x16xf32>
    %cst_67 = arith.constant dense<0.000000e+00> : vector<64xf32>
    %204 = vector.multi_reduction <add>, %203, %cst_67 [1] : vector<64x16xf32> to vector<64xf32>
    %205 = vector.shape_cast %204 : vector<64xf32> to vector<64x1xf32>
    %cst_68 = arith.constant 1.600000e+01 : f32
    %206 = vector.broadcast %cst_68 : f32 to vector<64x1xf32>
    %207 = arith.divf %205, %206 : vector<64x1xf32>
    %208 = vector.broadcast %207 : vector<64x1xf32> to vector<64x16xf32>
    %209 = arith.subf %203, %208 : vector<64x16xf32>
    %210 = arith.mulf %209, %209 : vector<64x16xf32>
    %cst_69 = arith.constant dense<0.000000e+00> : vector<64xf32>
    %211 = vector.multi_reduction <add>, %210, %cst_69 [1] : vector<64x16xf32> to vector<64xf32>
    %212 = vector.shape_cast %211 : vector<64xf32> to vector<64x1xf32>
    %cst_70 = arith.constant 1.600000e+01 : f32
    %213 = vector.broadcast %cst_70 : f32 to vector<64x1xf32>
    %214 = arith.divf %212, %213 : vector<64x1xf32>
    %cst_71 = arith.constant 9.99999974E-6 : f32
    %215 = vector.broadcast %cst_71 : f32 to vector<64x1xf32>
    %216 = arith.addf %214, %215 : vector<64x1xf32>
    %217 = math.rsqrt %216 : vector<64x1xf32>
    %218 = vector.broadcast %217 : vector<64x1xf32> to vector<64x16xf32>
    %219 = arith.mulf %209, %218 : vector<64x16xf32>
    %220 = vector.broadcast %2 : vector<1x16xf32> to vector<64x16xf32>
    %221 = arith.mulf %219, %220 : vector<64x16xf32>
    %222 = vector.broadcast %3 : vector<1x16xf32> to vector<64x16xf32>
    %223 = arith.addf %221, %222 : vector<64x16xf32>
    %c0_72 = arith.constant 0 : index
    %c0_73 = arith.constant 0 : index
    %224 = vector.load %arg12[%c0_72, %c0_73] : memref<16x16xbf16, #tpu.memory_space<vmem>>, vector<16x16xbf16>
    %225 = arith.truncf %223 : vector<64x16xf32> to vector<64x16xbf16>
    %cst_74 = arith.constant dense<0.000000e+00> : vector<16x64xf32>
    %226 = tpu.matmul %224, %225, %cst_74 {dimension_numbers = #tpu.dot_dimension_numbers<[1], [1], [0], [0], [0, 0, 1, 0], [], []>} : vector<16x16xbf16>, vector<64x16xbf16>, vector<16x64xf32> -> vector<16x64xf32>
    %227 = vector.broadcast %12 : vector<16x1xf32> to vector<16x64xf32>
    %228 = arith.addf %226, %227 : vector<16x64xf32>
    %c0_75 = arith.constant 0 : index
    %c0_76 = arith.constant 0 : index
    %c0_77 = arith.constant 0 : index
    %229 = vector.load %arg15[%c0_75, %c0_76, %c0_77] : memref<1x16x64xf32, #tpu.memory_space<vmem>>, vector<1x16x64xf32>
    %230 = vector.shape_cast %229 : vector<1x16x64xf32> to vector<16x64xf32>
    %231 = vector.shape_cast %228 : vector<16x64xf32> to vector<1x16x64xf32>
    tpu.vector_store %arg15[%c0_75, %c0_76, %c0_77], %231 {strides = array<i32>} : memref<1x16x64xf32, #tpu.memory_space<vmem>>, vector<1x16x64xf32>,
    return
  }
  func.func @transform_0(%arg0: i32) -> (i32, i32, i32) {
    %c0_i32 = arith.constant 0 : i32
    %c0_i32_0 = arith.constant 0 : i32
    %c0_i32_1 = arith.constant 0 : i32
    return %arg0, %c0_i32, %c0_i32_0 : i32, i32, i32
  }
  func.func @transform_1(%arg0: i32) -> (i32, i32) {
    %c0_i32 = arith.constant 0 : i32
    %c0_i32_0 = arith.constant 0 : i32
    %c0_i32_1 = arith.constant 0 : i32
    return %c0_i32, %c0_i32_0 : i32, i32
  }
  func.func @transform_2(%arg0: i32) -> (i32, i32) {
    %c0_i32 = arith.constant 0 : i32
    %c0_i32_0 = arith.constant 0 : i32
    %c0_i32_1 = arith.constant 0 : i32
    return %c0_i32, %c0_i32_0 : i32, i32
  }
  func.func @transform_3(%arg0: i32) -> (i32, i32) {
    %c0_i32 = arith.constant 0 : i32
    %c0_i32_0 = arith.constant 0 : i32
    %c0_i32_1 = arith.constant 0 : i32
    return %c0_i32, %c0_i32_0 : i32, i32
  }
  func.func @transform_4(%arg0: i32) -> (i32, i32) {
    %c0_i32 = arith.constant 0 : i32
    %c0_i32_0 = arith.constant 0 : i32
    %c0_i32_1 = arith.constant 0 : i32
    return %c0_i32, %c0_i32_0 : i32, i32
  }
  func.func @transform_5(%arg0: i32) -> (i32, i32) {
    %c0_i32 = arith.constant 0 : i32
    %c0_i32_0 = arith.constant 0 : i32
    %c0_i32_1 = arith.constant 0 : i32
    return %c0_i32, %c0_i32_0 : i32, i32
  }
  func.func @transform_6(%arg0: i32) -> (i32, i32) {
    %c0_i32 = arith.constant 0 : i32
    %c0_i32_0 = arith.constant 0 : i32
    %c0_i32_1 = arith.constant 0 : i32
    return %c0_i32, %c0_i32_0 : i32, i32
  }
  func.func @transform_7(%arg0: i32) -> (i32, i32) {
    %c0_i32 = arith.constant 0 : i32
    %c0_i32_0 = arith.constant 0 : i32
    %c0_i32_1 = arith.constant 0 : i32
    return %c0_i32, %c0_i32_0 : i32, i32
  }
  func.func @transform_8(%arg0: i32) -> (i32, i32) {
    %c0_i32 = arith.constant 0 : i32
    %c0_i32_0 = arith.constant 0 : i32
    %c0_i32_1 = arith.constant 0 : i32
    return %c0_i32, %c0_i32_0 : i32, i32
  }
  func.func @transform_9(%arg0: i32) -> (i32, i32) {
    %c0_i32 = arith.constant 0 : i32
    %c0_i32_0 = arith.constant 0 : i32
    %c0_i32_1 = arith.constant 0 : i32
    return %c0_i32, %c0_i32_0 : i32, i32
  }
  func.func @transform_10(%arg0: i32) -> (i32, i32) {
    %c0_i32 = arith.constant 0 : i32
    %c0_i32_0 = arith.constant 0 : i32
    %c0_i32_1 = arith.constant 0 : i32
    return %c0_i32, %c0_i32_0 : i32, i32
  }
  func.func @transform_11(%arg0: i32) -> (i32, i32) {
    %c0_i32 = arith.constant 0 : i32
    %c0_i32_0 = arith.constant 0 : i32
    %c0_i32_1 = arith.constant 0 : i32
    return %c0_i32, %c0_i32_0 : i32, i32
  }
  func.func @transform_12(%arg0: i32) -> (i32, i32) {
    %c0_i32 = arith.constant 0 : i32
    %c0_i32_0 = arith.constant 0 : i32
    %c0_i32_1 = arith.constant 0 : i32
    return %c0_i32, %c0_i32_0 : i32, i32
  }
  func.func @transform_13(%arg0: i32) -> i32 {
    %c0_i32 = arith.constant 0 : i32
    %c0_i32_0 = arith.constant 0 : i32
    return %c0_i32 : i32
  }
  func.func @transform_14(%arg0: i32) -> (i32, i32, i32) {
    %c0_i32 = arith.constant 0 : i32
    %c0_i32_0 = arith.constant 0 : i32
    %c0_i32_1 = arith.constant 0 : i32
    return %arg0, %c0_i32, %c0_i32_0 : i32, i32, i32
  }
}

</mosaic_0001>

<bundles_post_ra>
// kernel: tpu_custom_call.1
= control target key start
LH: loop header
LB: loop body
LE: loop exit
PB: predicated region body
PF: predicated region fallthrough
CT: control target
= control target key end

     0   :  { %s12212_s0 = inlined_call_operand.vmem [shape: f32[2,64,16], index: 0, kind: input, shape index: {}]   ;;  %s12213_s1 = inlined_call_operand.vmem [shape: f32[1,16], index: 1, kind: input, shape index: {}]   ;;  %s12214_s2 = inlined_call_operand.vmem [shape: f32[1,16], index: 2, kind: input, shape index: {}]   ;;  %s12215_s3 = inlined_call_operand.vmem [shape: bf16[4,16], index: 3, kind: input, shape index: {}]   ;;  %s12216_s4 = inlined_call_operand.vmem [shape: f32[4,8], index: 4, kind: input, shape index: {}]   ;;  %s12217_s5 = inlined_call_operand.vmem [shape: f32[1,8], index: 5, kind: input, shape index: {}]   ;;  %s12218_s6 = inlined_call_operand.vmem [shape: bf16[8,40], index: 6, kind: input, shape index: {}]   ;;  %s12219_s7 = inlined_call_operand.vmem [shape: f32[1,8], index: 7, kind: input, shape index: {}]   ;;  %s12220_s8 = inlined_call_operand.vmem [shape: f32[16,8], index: 8, kind: input, shape index: {}]   ;;  %s12221_s9 = inlined_call_operand.vmem [shape: f32[1,8], index: 9, kind: input, shape index: {}]   ;;  %s12222_s10 = inlined_call_operand.vmem [shape: bf16[8,4], index: 10, kind: input, shape index: {}]   ;;  %s12223_s11 = inlined_call_operand.vmem [shape: bf16[16,16], index: 11, kind: input, shape index: {}]   ;;  %s12224_s12 = inlined_call_operand.vmem [shape: f32[16,1], index: 12, kind: input, shape index: {}]   ;;  %s12225_s13 = inlined_call_operand.<no memory space> [shape: f32[1], index: 13, kind: input, shape index: {}]   ;;  %s12226_s14 = inlined_call_operand.hbm [shape: f32[2,16,64], index: 14, kind: output, shape index: {}]  }
   0x1   :  { %12456 = sst [smem:[#allocation196_spill]] %s12212_s0 }
   0x2   :  { %12457 = sst [smem:[#allocation197_spill]] %s12215_s3 }
   0x3   :  { %19 = sst [smem:[#allocation7]] %s12225_s13 }
   0x4   :  { %20 = vsyncpa [#allocation9], 0 }
   0x5   :  { %22 = vsyncpa [#allocation9 + $0x1], 0  ;;  %s8798_s15 = smov 0   ;;  %s8800_s16 = smov 0  }
   0x6   :  { %s8802_s17 = smov 0   ;;  %s8804_s18 = smov 0  }
   0x7 LB: > { %s8819_s13 = sadd.s32 4294967295, %s8662_s18   ;;  %s7390_s19 = sadd.s32 4294967294, %s8662_s18   ;;  %s8662_s18 = sphi %s8804_s18, %s12926_s18   ;;  %s8658_s17 = sphi %s8802_s17, %s12925_s17   ;;  %s8654_s16 = sphi %s8800_s16, %s12924_s16   ;;  %s8650_s15 = sphi %s8798_s15, %s12923_s15  }
   0x8   : > { %s8823_s20 = sadd.s32 1, %s8662_s18   ;;  %s334_s21 = sadd.s32 1, %s8658_s17 }
   0x9   : > { %s331_s22 = ssub.s32 %s8662_s18, %s8823_s20  ;;  %p344_p0 = scmp.ne.s32.totalorder %s8658_s17, %s8654_s16 }
   0xa   : > { %p332_p1 = scmp.eq.s32.totalorder %s331_s22, 0  ;;  %p345_p2 = scmp.eq.s32.totalorder %s8819_s13, 1 }
   0xb   : > { %p350_p3 = scmp.ne.s32.totalorder %s8654_s16, %s8650_s15  ;;  %p351_p4 = scmp.eq.s32.totalorder %s7390_s19, 1 }
   0xc   : > { %s8834_s23 = scalar_select %p332_p1, %s8658_s17, %s334_s21  }
   0xd   : > { %p8836_p5 = por %p345_p2, %p344_p0  ;;  %p8840_p6 = por %p351_p4, %p350_p3 }
   0xe   : > { %p7393_p7 = scmp.ge.s32.totalorder %s8662_s18, 1  ;;  %p416_p8 = scmp.lt.s32.totalorder %s8662_s18, 3 }
  0x10   : > { %p417_p9 = pnand %p7393_p7, %p416_p8 }
  0x12   : > { %420 = sbr.rel (%p417_p9) target bundleno = 3200 (0xc80), region = 76 }
  0x19   : > { %p462_p10 = scmp.lt.s32.totalorder %s8819_s13, 1  ;;  %vm493_vm0 = vcmask 130048   ;;  %s12460_s0 = sld [smem:[#allocation196_spill]]  ;;  %vm773_vm1 = vcmask 1041408   ;;  %v481_v58 = vld [vmem:[%s12220_s8] sm:$0xff]  ;;  %v482_v59 = vld [vmem:[%s12220_s8 + $0x8] sm:$0xff] }
  0x1a   : > { %s12461_s3 = sld [smem:[#allocation197_spill]]  ;;  %s459_s22 = sand.u32 1, %s8654_s16   ;;  %v8914_v60 = vld [vmem:[%s12221_s9] ss:$0 sm:$0xff]  ;;  %v483_v61 = vmul.f32 1.442695, %v481_v58 }
  0x1b   : > { %s463_s26 = scalar_select %p462_p10, %s8819_s13, 1  ;;  %12462 = vst [vmem:[#allocation11_spill] sm:$0xff] %v8914_v60  ;;  %v485_v62 = vmul.f32 1.442695, %v482_v59  ;;  %v8923_v63 = vld [vmem:[%s12224_s12] sm:$0xff]  ;;  %vm724_vm2 = vcmask 31744  }
  0x1c   : > { %s8918_s19 = sshll.u32 %s459_s22, 4  ;;  %12463 = vst [vmem:[#allocation12_spill] sm:$0xff] %v8923_v63  ;;  %s8930_s28 = sld [smem:[#allocation7]]  ;;  %7925 = vpow2.f32 %v483_v61  ;;  %vm938_vm3 = vcmask 64512   ;;  %vm3012_vm5 = vcmask 1043456  }
  0x1d   : > { %s7567_s27 = sshll.u32 %s463_s26, 6  ;;  %7927 = vpow2.f32 %v485_v62  ;;  %s8700_s21 = smov 124  }
  0x1e   : > { %s8701_s26 = smov 120  }
  0x1f   : > { %s466_s30 = scalar_lea.vmem %s12460_s0, %s7567_s27  ;;  %s8702_s27 = smov 116  }
  0x20   : > { %v468_v0 = vld [vmem:[%s466_s30] sm:$0xff]  ;;  %v470_v1 = vld [vmem:[%s466_s30 + $0x10] sm:$0xff]  ;;  %v469_v2 = vld [vmem:[%s466_s30 + $0x8] sm:$0xff]  ;;  %s10564_s0 = scalar_lea.vmem [#allocation8], %s8918_s19 }
  0x21   : > { %v494_v3 = vsel %vm493_vm0, %v468_v0, 0.0  ;;  %v500_v4 = vsel %vm493_vm0, %v470_v1, 0.0  ;;  %v471_v5 = vld [vmem:[%s466_s30 + $0x18] sm:$0xff]  ;;  %v497_v6 = vsel %vm493_vm0, %v469_v2, 0.0  ;;  %v472_v8 = vld [vmem:[%s466_s30 + $0x20] sm:$0xff]  ;;  %v473_v9 = vld [vmem:[%s466_s30 + $0x28] sm:$0xff] }
  0x22   : > { %495 = vadd.xlane.f32.xlu0 %v494_v3  ;;  %501 = vadd.xlane.f32.xlu1 %v500_v4  ;;  %v503_v7 = vsel %vm493_vm0, %v471_v5, 0.0  ;;  %v506_v10 = vsel %vm493_vm0, %v472_v8, 0.0  ;;  %v509_v11 = vsel %vm493_vm0, %v473_v9, 0.0  ;;  %v474_v12 = vld [vmem:[%s466_s30 + $0x30] sm:$0xff]  ;;  %v475_v13 = vld [vmem:[%s466_s30 + $0x38] sm:$0xff] }
  0x23   : > { %v512_v14 = vsel %vm493_vm0, %v474_v12, 0.0  ;;  %v515_v15 = vsel %vm493_vm0, %v475_v13, 0.0  ;;  %v723_v56 = vld [vmem:[%s12461_s3] sm:$0x3]  ;;  %s10582_s3 = smov 0  }
  0x24   : > { %7791 = vmatprep.subr.msk.bf16.mxu0 %vm773_vm1, %v723_v56  ;;  %v775_v57 = vsel %vm773_vm1, %v723_v56, 0 }
  0x25   : > { %7646 = vmatpush3.bf16.msra.mxu0 %v775_v57 }
  0x26   : > { %498 = vadd.xlane.f32.xlu0 %v497_v6  ;;  %504 = vadd.xlane.f32.xlu1 %v503_v7 }
  0x2a   : > { %507 = vadd.xlane.f32.xlu0 %v506_v10  ;;  %510 = vadd.xlane.f32.xlu1 %v509_v11 }
  0x2e   : > { %513 = vadd.xlane.f32.xlu0 %v512_v14  ;;  %516 = vadd.xlane.f32.xlu1 %v515_v15 }
  0xaf   : > { %v496_v16 = vpop.xlane.xlu0 %495  ;;  %v502_v17 = vpop.xlane.xlu1 %501 }
  0xb0   : > { %v519_v18 = vmul.f32 0.0625, %v496_v16  ;;  %v521_v19 = vmul.f32 0.0625, %v502_v17 }
  0xb2   : > { %v8859_v20 = vsub.f32 %v468_v0, %v519_v18  ;;  %v8861_v21 = vsub.f32 %v470_v1, %v521_v19  ;;  %v8928_v0 = vld [vmem:[%s12224_s12 + $0x8] sm:$0xff]  ;;  %v7926_v1 = vpop.eup %7925 }
  0xb3   : > { %v499_v22 = vpop.xlane.xlu0 %498  ;;  %v505_v23 = vpop.xlane.xlu1 %504  ;;  %12464 = vst [vmem:[#allocation13_spill] sm:$0xff] %v8928_v0  ;;  %v8932_v3 = vsub.f32 0.0, %v7926_v1 }
  0xb4   : > { %v520_v24 = vmul.f32 0.0625, %v499_v22  ;;  %v522_v25 = vmul.f32 0.0625, %v505_v23  ;;  %v535_v26 = vmul.f32 %v8859_v20, %v8859_v20  ;;  %v537_v27 = vmul.f32 %v8861_v21, %v8861_v21 }
  0xb5   : > { %12465 = vst [vmem:[#allocation14_spill] sm:$0xff] %v8932_v3 }
  0xb6   : > { %v8867_v28 = vsub.f32 %v469_v2, %v520_v24  ;;  %v8869_v29 = vsub.f32 %v471_v5, %v522_v25  ;;  %v543_v30 = vsel %vm493_vm0, %v535_v26, 0.0  ;;  %v549_v33 = vsel %vm493_vm0, %v537_v27, 0.0  ;;  %v7928_v2 = vpop.eup %7927  ;;  %v8939_v27 = vld [vmem:[%s12213_s1] ss:$0 sm:$0xff] }
  0xb7   : > { %544 = vadd.xlane.f32.xlu0 %v543_v30  ;;  %v508_v31 = vpop.xlane.xlu0 %507  ;;  %v511_v32 = vpop.xlane.xlu1 %510  ;;  %v8934_v4 = vsub.f32 0.0, %v7928_v2  ;;  %12467 = vst [vmem:[#allocation16_spill] sm:$0xff] %v8939_v27 }
  0xb8   : > { %v523_v34 = vmul.f32 0.0625, %v508_v31  ;;  %v524_v35 = vmul.f32 0.0625, %v511_v32  ;;  %v536_v36 = vmul.f32 %v8867_v28, %v8867_v28  ;;  %v538_v37 = vmul.f32 %v8869_v29, %v8869_v29 }
  0xb9   : > { %12466 = vst [vmem:[#allocation15_spill] sm:$0xff] %v8934_v4 }
  0xba   : > { %v8877_v38 = vsub.f32 %v472_v8, %v523_v34  ;;  %v8879_v39 = vsub.f32 %v473_v9, %v524_v35  ;;  %v546_v40 = vsel %vm493_vm0, %v536_v36, 0.0  ;;  %v552_v43 = vsel %vm493_vm0, %v538_v37, 0.0  ;;  %v8945_v35 = vld [vmem:[%s12214_s2] ss:$0 sm:$0xff] }
  0xbb   : > { %550 = vadd.xlane.f32.xlu0 %v549_v33  ;;  %547 = vadd.xlane.f32.xlu1 %v546_v40  ;;  %v514_v41 = vpop.xlane.xlu0 %513  ;;  %v517_v42 = vpop.xlane.xlu1 %516  ;;  %12468 = vst [vmem:[#allocation17_spill] sm:$0xff] %v8945_v35 }
  0xbc   : > { %v525_v44 = vmul.f32 0.0625, %v514_v41  ;;  %v526_v45 = vmul.f32 0.0625, %v517_v42  ;;  %v539_v46 = vmul.f32 %v8877_v38, %v8877_v38  ;;  %v540_v47 = vmul.f32 %v8879_v39, %v8879_v39 }
  0xbe   : > { %v8887_v48 = vsub.f32 %v474_v12, %v525_v44  ;;  %v8889_v49 = vsub.f32 %v475_v13, %v526_v45  ;;  %v555_v50 = vsel %vm493_vm0, %v539_v46, 0.0  ;;  %v558_v51 = vsel %vm493_vm0, %v540_v47, 0.0 }
  0xbf   : > { %553 = vadd.xlane.f32.xlu1 %v552_v43  ;;  %556 = vadd.xlane.f32.xlu0 %v555_v50 }
  0xc0   : > { %v541_v52 = vmul.f32 %v8887_v48, %v8887_v48  ;;  %v542_v53 = vmul.f32 %v8889_v49, %v8889_v49 }
  0xc2   : > { %v561_v54 = vsel %vm493_vm0, %v541_v52, 0.0  ;;  %v564_v55 = vsel %vm493_vm0, %v542_v53, 0.0 }
  0xc3   : > { %559 = vadd.xlane.f32.xlu1 %v558_v51  ;;  %562 = vadd.xlane.f32.xlu0 %v561_v54 }
  0xc7   : > { %565 = vadd.xlane.f32.xlu1 %v564_v55 }
 0x144   : > { %v545_v5 = vpop.xlane.xlu0 %544 }
 0x145   : > { %v567_v6 = vmul.f32 0.0625, %v545_v5 }
 0x147   : > { %v575_v7 = vadd.f32 1e-05, %v567_v6 }
 0x148   : > { %v548_v8 = vpop.xlane.xlu1 %547  ;;  %v551_v9 = vpop.xlane.xlu0 %550 }
 0x149   : > { %7929 = vrsqrt.f32 %v575_v7  ;;  %v568_v10 = vmul.f32 0.0625, %v548_v8  ;;  %v569_v11 = vmul.f32 0.0625, %v551_v9  ;;  %v12227_v8 = vmov 0.0  }
 0x14a   : > { %939 = vst.msk [vmem:[#allocation2] sm:$0xff] %vm938_vm3, %v12227_v8  ;;  %v972_v9 = vlaneseq }
 0x14b   : > { %v576_v12 = vadd.f32 1e-05, %v568_v10  ;;  %v577_v13 = vadd.f32 1e-05, %v569_v11 }
 0x14c   : > { %v554_v14 = vpop.xlane.xlu1 %553  ;;  %v557_v15 = vpop.xlane.xlu0 %556  ;;  %v9040_v10 = vshrl.u32 %v972_v9, 7  ;;  %v4049_v11 = vand.u32 127, %v972_v9  ;;  %v478_v9 = vld [vmem:[%s12216_s4] sm:$0xf] }
 0x14d   : > { %7931 = vrsqrt.f32 %v576_v12  ;;  %v570_v16 = vmul.f32 0.0625, %v554_v14  ;;  %v571_v17 = vmul.f32 0.0625, %v557_v15  ;;  %v12478_v12 = vmov 0 }
 0x14e   : > { %7933 = vrsqrt.f32 %v577_v13  ;;  %12477 = vst [vmem:[#allocation26_spill] sm:$0xff] %v9040_v10  ;;  %vm9043_vm4 = vcmp.eq.s32.totalorder %v9040_v10, %v4049_v11  ;;  %vm1073_vm6 = vcmp.lt.s32.totalorder %v9040_v10, 1  ;;  %vm1685_vm7 = vcmp.lt.s32.totalorder %v9040_v10, 2 }
 0x14f   : > { %v578_v18 = vadd.f32 1e-05, %v570_v16  ;;  %v579_v19 = vadd.f32 1e-05, %v571_v17  ;;  %v12479_v12 = vsel %vm9043_vm4, 4294967295, %v12478_v12  ;;  %vm2201_vm8 = vcmp.lt.s32.totalorder %v9040_v10, 3 }
 0x150   : > { %v560_v22 = vpop.xlane.xlu1 %559  ;;  %v563_v23 = vpop.xlane.xlu0 %562  ;;  %12480 = vst [vmem:[#allocation27_spill] sm:$0xff] %v12479_v12 }
 0x151   : > { %7935 = vrsqrt.f32 %v578_v18  ;;  %v572_v24 = vmul.f32 0.0625, %v560_v22  ;;  %v573_v25 = vmul.f32 0.0625, %v563_v23 }
 0x152   : > { %7937 = vrsqrt.f32 %v579_v19 }
 0x153   : > { %v7930_v26 = vpop.eup %7929  ;;  %v580_v30 = vadd.f32 1e-05, %v572_v24  ;;  %v581_v31 = vadd.f32 1e-05, %v573_v25 }
 0x154   : > { %v566_v32 = vpop.xlane.xlu1 %565  ;;  %v591_v33 = vmul.f32 %v7930_v26, %v8859_v20 }
 0x155   : > { %7939 = vrsqrt.f32 %v580_v30  ;;  %v574_v34 = vmul.f32 0.0625, %v566_v32 }
 0x156   : > { %7941 = vrsqrt.f32 %v581_v31  ;;  %v605_v36 = vmul.f32 %v8939_v27, %v591_v33  ;;  %v2963_v33 = vld [vmem:[%s12218_s6] sm:$0xf] }
 0x157   : > { %v7932_v37 = vpop.eup %7931  ;;  %v582_v40 = vadd.f32 1e-05, %v574_v34  ;;  %7792 = vmatprep.subr.msk.bf16.mxu1 %vm3012_vm5, %v2963_v33 }
 0x158   : > { %v7934_v41 = vpop.eup %7933  ;;  %v8949_v42 = vadd.f32 %v8945_v35, %v605_v36  ;;  %v592_v43 = vmul.f32 %v7932_v37, %v8867_v28  ;;  %v3014_v37 = vsel %vm3012_vm5, %v2963_v33, 0 }
 0x159   : > { %7943 = vrsqrt.f32 %v582_v40  ;;  %v593_v20 = vmul.f32 %v7934_v41, %v8861_v21  ;;  %7680 = vmatpush3.bf16.msra.mxu1 %v3014_v37 }
 0x15a   : > { %12469 = vst [vmem:[#allocation18_spill] sm:$0xff] %v8949_v42  ;;  %635 = vrot.lane.b32.xlu0 %v8949_v42, %s8700_s21  ;;  %v606_v44 = vmul.f32 %v8939_v27, %v592_v43 }
 0x15b   : > { %v7936_v45 = vpop.eup %7935  ;;  %v607_v51 = vmul.f32 %v8939_v27, %v593_v20 }
 0x15c   : > { %v7938_v46 = vpop.eup %7937  ;;  %v594_v47 = vmul.f32 %v7936_v45, %v8869_v29  ;;  %v8958_v50 = vadd.f32 %v8945_v35, %v606_v44 }
 0x15d   : > { %v595_v28 = vmul.f32 %v7938_v46, %v8877_v38  ;;  %v8971_v56 = vadd.f32 %v8945_v35, %v607_v51 }
 0x15e   : > { %12470 = vst [vmem:[#allocation19_spill] sm:$0xff] %v8958_v50  ;;  %v608_v21 = vmul.f32 %v8939_v27, %v594_v47  ;;  %637 = vrot.lane.b32.xlu1 %v8958_v50, %s8700_s21  ;;  %v707_v52 = vpack.c.bf16 %v8958_v50, %v8949_v42 }
 0x15f   : > { %v7940_v53 = vpop.eup %7939  ;;  %v609_v54 = vmul.f32 %v8939_v27, %v595_v28  ;;  %12471 = vst [vmem:[#allocation20_spill] sm:$0xff] %v8971_v56 }
 0x160   : > { %v7942_v29 = vpop.eup %7941  ;;  %v596_v55 = vmul.f32 %v7940_v53, %v8879_v39  ;;  %7647 = vmatprep.mubr.msk.bf16.mxu0 %vm724_vm2, %v707_v52  ;;  %v8974_v38 = vadd.f32 %v8945_v35, %v608_v21 }
 0x161   : > { %v8977_v57 = vadd.f32 %v8945_v35, %v609_v54  ;;  %v597_v58 = vmul.f32 %v7942_v29, %v8887_v48 }
 0x162   : > { %12472 = vst [vmem:[#allocation21_spill] sm:$0xff] %v8974_v38  ;;  %v610_v59 = vmul.f32 %v8939_v27, %v596_v55  ;;  %639 = vrot.lane.b32.xlu1 %v8971_v56, %s8700_s21  ;;  %v708_v39 = vpack.c.bf16 %v8974_v38, %v8971_v56 }
 0x163   : > { %12473 = vst [vmem:[#allocation22_spill] sm:$0xff] %v8977_v57  ;;  %v7944_v61 = vpop.eup %7943  ;;  %643 = vrot.lane.b32.xlu0 %v8977_v57, %s8700_s21  ;;  %v611_v62 = vmul.f32 %v8939_v27, %v597_v58 }
 0x164   : > { %v598_v1 = vmul.f32 %v7944_v61, %v8889_v49  ;;  %7648 = vmatmul.mubr.msk.bf16.vlgmr.msra.gmra.mrb[0].mxu0 %vm724_vm2, %v708_v39  ;;  %v8991_v48 = vadd.f32 %v8945_v35, %v610_v59 }
 0x165   : > { %v8994_v2 = vadd.f32 %v8945_v35, %v611_v62 }
 0x166   : > { %12474 = vst [vmem:[#allocation23_spill] sm:$0xff] %v8991_v48  ;;  %v612_v5 = vmul.f32 %v8939_v27, %v598_v1  ;;  %641 = vrot.lane.b32.xlu1 %v8974_v38, %s8700_s21  ;;  %v709_v6 = vpack.c.bf16 %v8991_v48, %v8977_v57  ;;  %v9143_v1 = vsub.s32 3, %v9040_v10 }
 0x167   : > { %12475 = vst [vmem:[#allocation24_spill] sm:$0xff] %v8994_v2  ;;  %647 = vrot.lane.b32.xlu0 %v8994_v2, %s8700_s21 }
 0x168   : > { %7651 = vmatprep.mubr.msk.bf16.mxu0 %vm724_vm2, %v709_v6  ;;  %v9005_v49 = vadd.f32 %v8945_v35, %v612_v5  ;;  %12507 = vst [vmem:[#allocation54_spill] sm:$0xff] %v9143_v1  ;;  %v9148_v5 = vsub.s32 2, %v9040_v10  ;;  %v9151_v6 = vsub.s32 1, %v9040_v10 }
 0x16a   : > { %12476 = vst [vmem:[#allocation25_spill] sm:$0xff] %v9005_v49  ;;  %645 = vrot.lane.b32.xlu1 %v8991_v48, %s8700_s21  ;;  %v710_v7 = vpack.c.bf16 %v9005_v49, %v8994_v2  ;;  %12508 = vst [vmem:[#allocation55_spill] sm:$0xff] %v9148_v5 }
 0x16b   : > { %659 = vrot.lane.b32.xlu0 %v8949_v42, %s8701_s26  ;;  %12509 = vst [vmem:[#allocation56_spill] sm:$0xff] %v9151_v6 }
 0x16c   : > { %7652 = vmatmul.mubr.msk.bf16.gmra.mrb[4].mxu0 %vm724_vm2, %v710_v7 }
 0x16e   : > { %649 = vrot.lane.b32.xlu1 %v9005_v49, %s8700_s21 }
 0x16f   : > { %663 = vrot.lane.b32.xlu0 %v8971_v56, %s8701_s26 }
 0x172   : > { %661 = vrot.lane.b32.xlu1 %v8958_v50, %s8701_s26 }
 0x173   : > { %667 = vrot.lane.b32.xlu0 %v8977_v57, %s8701_s26 }
 0x176   : > { %665 = vrot.lane.b32.xlu1 %v8974_v38, %s8701_s26 }
 0x177   : > { %671 = vrot.lane.b32.xlu0 %v8994_v2, %s8701_s26 }
 0x17a   : > { %669 = vrot.lane.b32.xlu1 %v8991_v48, %s8701_s26 }
 0x17b   : > { %683 = vrot.lane.b32.xlu0 %v8949_v42, %s8702_s27 }
 0x17e   : > { %673 = vrot.lane.b32.xlu1 %v9005_v49, %s8701_s26 }
 0x17f   : > { %687 = vrot.lane.b32.xlu0 %v8971_v56, %s8702_s27 }
 0x182   : > { %685 = vrot.lane.b32.xlu1 %v8958_v50, %s8702_s27 }
 0x183   : > { %691 = vrot.lane.b32.xlu0 %v8977_v57, %s8702_s27 }
 0x186   : > { %689 = vrot.lane.b32.xlu1 %v8974_v38, %s8702_s27 }
 0x187   : > { %695 = vrot.lane.b32.xlu0 %v8994_v2, %s8702_s27 }
 0x18a   : > { %693 = vrot.lane.b32.xlu1 %v8991_v48, %s8702_s27 }
 0x18e   : > { %697 = vrot.lane.b32.xlu1 %v9005_v49, %s8702_s27 }
 0x1cc   : > { %v9047_v13 = vpop.permute.xlu0 %635 }
 0x1cd   : > { %12481 = vst [vmem:[#allocation28_spill] sm:$0xff] %v9047_v13 }
 0x1d0   : > { %v9049_v14 = vpop.permute.xlu1 %637 }
 0x1d1   : > { %12482 = vst [vmem:[#allocation29_spill] sm:$0xff] %v9049_v14  ;;  %v711_v15 = vpack.c.bf16 %v9049_v14, %v9047_v13  ;;  %v9374_v13 = vadd.s32 128, %v9040_v10 }
 0x1d3   : > { %7655 = vmatprep.mubr.msk.bf16.mxu0 %vm724_vm2, %v711_v15  ;;  %v9163_v15 = vsub.s32 0, %v9040_v10  ;;  %vm1281_vm12 = vcmp.lt.s32.totalorder %v9374_v13, 129  ;;  %vm1829_vm13 = vcmp.lt.s32.totalorder %v9374_v13, 130  ;;  %vm2345_vm14 = vcmp.lt.s32.totalorder %v9374_v13, 131 }
 0x1d4   : > { %v9054_v16 = vpop.permute.xlu1 %639 }
 0x1d5   : > { %12483 = vst [vmem:[#allocation30_spill] sm:$0xff] %v9054_v16  ;;  %v9056_v17 = vpop.permute.xlu0 %643  ;;  %12512 = vst [vmem:[#allocation59_spill] sm:$0xff] %v9163_v15  ;;  %v9178_v33 = vrot.slane %v478_v9, %v9163_v15 }
 0x1d6   : > { %12484 = vst [vmem:[#allocation31_spill] sm:$0xff] %v9056_v17 }
 0x1d8   : > { %v9058_v18 = vpop.permute.xlu1 %641 }
 0x1d9   : > { %12485 = vst [vmem:[#allocation32_spill] sm:$0xff] %v9058_v18  ;;  %v712_v19 = vpack.c.bf16 %v9058_v18, %v9054_v16  ;;  %v9062_v22 = vpop.permute.xlu0 %647 }
 0x1da   : > { %12486 = vst [vmem:[#allocation33_spill] sm:$0xff] %v9062_v22 }
 0x1db   : > { %7656 = vmatmul.mubr.msk.bf16.gmra.mrb[8].mxu0 %vm724_vm2, %v712_v19  ;;  %v9168_v19 = vrot.slane %v478_v9, %v9143_v1 }
 0x1dc   : > { %v9065_v23 = vpop.permute.xlu1 %645 }
 0x1dd   : > { %12487 = vst [vmem:[#allocation34_spill] sm:$0xff] %v9065_v23  ;;  %v713_v24 = vpack.c.bf16 %v9065_v23, %v9056_v17  ;;  %v9069_v25 = vpop.permute.xlu0 %659 }
 0x1de   : > { %12488 = vst [vmem:[#allocation35_spill] sm:$0xff] %v9069_v25 }
 0x1df   : > { %7659 = vmatprep.mubr.msk.bf16.mxu0 %vm724_vm2, %v713_v24  ;;  %v9171_v24 = vrot.slane %v478_v9, %v9148_v5 }
 0x1e0   : > { %v9072_v26 = vpop.permute.xlu1 %649 }
 0x1e1   : > { %12489 = vst [vmem:[#allocation36_spill] sm:$0xff] %v9072_v26  ;;  %v714_v30 = vpack.c.bf16 %v9072_v26, %v9062_v22  ;;  %v9076_v31 = vpop.permute.xlu0 %663 }
 0x1e2   : > { %12490 = vst [vmem:[#allocation37_spill] sm:$0xff] %v9076_v31 }
 0x1e3   : > { %7660 = vmatmul.mubr.msk.bf16.gmra.mrb[12].mxu0 %vm724_vm2, %v714_v30  ;;  %v9174_v30 = vrot.slane %v478_v9, %v9151_v6 }
 0x1e4   : > { %v9079_v32 = vpop.permute.xlu1 %661 }
 0x1e5   : > { %12491 = vst [vmem:[#allocation38_spill] sm:$0xff] %v9079_v32  ;;  %v715_v34 = vpack.c.bf16 %v9079_v32, %v9069_v25  ;;  %v9086_v36 = vpop.permute.xlu0 %667 }
 0x1e6   : > { %12492 = vst [vmem:[#allocation39_spill] sm:$0xff] %v9086_v36 }
 0x1e7   : > { %7663 = vmatprep.mubr.msk.bf16.mxu0 %vm724_vm2, %v715_v34 }
 0x1e8   : > { %v9091_v40 = vpop.permute.xlu1 %665 }
 0x1e9   : > { %12493 = vst [vmem:[#allocation40_spill] sm:$0xff] %v9091_v40  ;;  %v716_v41 = vpack.c.bf16 %v9091_v40, %v9076_v31  ;;  %v9095_v43 = vpop.permute.xlu0 %671 }
 0x1ea   : > { %12494 = vst [vmem:[#allocation41_spill] sm:$0xff] %v9095_v43 }
 0x1eb   : > { %7664 = vmatmul.mubr.msk.bf16.gmra.mrb[16].mxu0 %vm724_vm2, %v716_v41 }
 0x1ec   : > { %v9098_v20 = vpop.permute.xlu1 %669 }
 0x1ed   : > { %12495 = vst [vmem:[#allocation42_spill] sm:$0xff] %v9098_v20  ;;  %v717_v44 = vpack.c.bf16 %v9098_v20, %v9086_v36  ;;  %v9102_v45 = vpop.permute.xlu0 %683 }
 0x1ee   : > { %12496 = vst [vmem:[#allocation43_spill] sm:$0xff] %v9102_v45 }
 0x1ef   : > { %7667 = vmatprep.mubr.msk.bf16.mxu0 %vm724_vm2, %v717_v44 }
 0x1f0   : > { %v9105_v46 = vpop.permute.xlu1 %673 }
 0x1f1   : > { %12497 = vst [vmem:[#allocation44_spill] sm:$0xff] %v9105_v46  ;;  %v718_v47 = vpack.c.bf16 %v9105_v46, %v9095_v43  ;;  %v9110_v51 = vpop.permute.xlu0 %687 }
 0x1f2   : > { %12498 = vst [vmem:[#allocation45_spill] sm:$0xff] %v9110_v51 }
 0x1f3   : > { %7668 = vmatmul.mubr.msk.bf16.gmra.mrb[20].mxu0 %vm724_vm2, %v718_v47 }
 0x1f4   : > { %v9112_v28 = vpop.permute.xlu1 %685 }
 0x1f5   : > { %12499 = vst [vmem:[#allocation46_spill] sm:$0xff] %v9112_v28  ;;  %v719_v21 = vpack.c.bf16 %v9112_v28, %v9102_v45  ;;  %v9121_v54 = vpop.permute.xlu0 %691 }
 0x1f6   : > { %12501 = vst [vmem:[#allocation48_spill] sm:$0xff] %v9121_v54 }
 0x1f7   : > { %7671 = vmatprep.mubr.msk.bf16.mxu0 %vm724_vm2, %v719_v21 }
 0x1f8   : > { %v9117_v52 = vpop.permute.xlu1 %689 }
 0x1f9   : > { %12500 = vst [vmem:[#allocation47_spill] sm:$0xff] %v9117_v52  ;;  %v720_v53 = vpack.c.bf16 %v9117_v52, %v9110_v51  ;;  %v9129_v58 = vpop.permute.xlu0 %695 }
 0x1fa   : > { %12503 = vst [vmem:[#allocation50_spill] sm:$0xff] %v9129_v58 }
 0x1fb   : > { %7672 = vmatmul.mubr.msk.bf16.gmra.mrb[24].mxu0 %vm724_vm2, %v720_v53 }
 0x1fc   : > { %v9124_v29 = vpop.permute.xlu1 %693 }
 0x1fd   : > { %12502 = vst [vmem:[#allocation49_spill] sm:$0xff] %v9124_v29  ;;  %v721_v55 = vpack.c.bf16 %v9124_v29, %v9121_v54 }
 0x1ff   : > { %7675 = vmatprep.mubr.msk.bf16.mxu0 %vm724_vm2, %v721_v55 }
 0x200   : > { %v9131_v59 = vpop.permute.xlu1 %697 }
 0x201   : > { %12504 = vst [vmem:[#allocation51_spill] sm:$0xff] %v9131_v59  ;;  %v722_v39 = vpack.c.bf16 %v9131_v59, %v9129_v58 }
 0x203   : > { %7676 = vmatmul.mubr.msk.bf16.gmra.mrb[28].mxu0 %vm724_vm2, %v722_v39 }
 0x237   : > { %v9136_v61 = vpop.f32.mrb[0].mxu0 }
 0x238   : > { %12505 = vst [vmem:[#allocation52_spill] sm:$0xff] %v9136_v61  ;;  %942 = vst.msk [vmem:[#allocation2 + $0x18] sm:$0xff] %vm938_vm3, %v9136_v61  ;;  %v9140_v62 = vpop.f32.mrb[1].mxu0  ;;  %v1011_v21 = vmul.f32 %v9136_v61, %v9168_v19 }
 0x239   : > { %12506 = vst [vmem:[#allocation53_spill] sm:$0xff] %v9140_v62  ;;  %940 = vst.msk [vmem:[#allocation2 + $0x8] sm:$0xff] %vm938_vm3, %v9140_v62  ;;  %v9153_v7 = vpop.f32.mrb[2].mxu0  ;;  %v1009_v53 = vmul.f32 %v9168_v19, %v9140_v62 }
 0x23a   : > { %12510 = vst [vmem:[#allocation57_spill] sm:$0xff] %v9153_v7  ;;  %943 = vst.msk [vmem:[#allocation2 + $0x20] sm:$0xff] %vm938_vm3, %v9153_v7  ;;  %v9160_v11 = vpop.f32.mrb[3].mxu0  ;;  %v1012_v0 = vmul.f32 %v9153_v7, %v9168_v19 }
 0x23b   : > { %12511 = vst [vmem:[#allocation58_spill] sm:$0xff] %v9160_v11  ;;  %941 = vst.msk [vmem:[#allocation2 + $0x10] sm:$0xff] %vm938_vm3, %v9160_v11  ;;  %v1010_v49 = vmul.f32 %v9168_v19, %v9160_v11 }
 0x23f   : > { %v9180_v34 = vpop.f32.mrb[4].mxu0 }
 0x240   : > { %12513 = vst [vmem:[#allocation60_spill] sm:$0xff] %v9180_v34  ;;  %v1041_v37 = vld [vmem:[#allocation2 + $0x7] sm:$0xff]  ;;  %946 = vst.msk [vmem:[#allocation2 + $0x38] sm:$0xff] %vm938_vm3, %v9180_v34  ;;  %v9185_v44 = vpop.f32.mrb[5].mxu0 }
 0x241   : > { %v1653_v41 = vld [vmem:[#allocation2 + $0x6] sm:$0xff]  ;;  %12514 = vst [vmem:[#allocation61_spill] sm:$0xff] %v9185_v44  ;;  %v1493_v55 = vmul.f32 %v9171_v24, %v1041_v37  ;;  %v1656_v8 = vld [vmem:[#allocation2 + $0x1e] sm:$0xff]  ;;  %944 = vst.msk [vmem:[#allocation2 + $0x28] sm:$0xff] %vm938_vm3, %v9185_v44  ;;  %v9196_v27 = vpop.f32.mrb[6].mxu0 }
 0x242   : > { %v2169_v47 = vld [vmem:[#allocation2 + $0x5] sm:$0xff]  ;;  %v2009_v39 = vmul.f32 %v9174_v30, %v1653_v41  ;;  %v2172_v35 = vld [vmem:[#allocation2 + $0x1d] sm:$0xff]  ;;  %12515 = vst [vmem:[#allocation62_spill] sm:$0xff] %v9196_v27  ;;  %v1042_v2 = vld [vmem:[#allocation2 + $0xf] sm:$0xff]  ;;  %v9205_v41 = vmul.f32 %v9180_v34, %v9168_v19  ;;  %v9209_v48 = vpop.f32.mrb[7].mxu0  ;;  %v2012_v58 = vmul.f32 %v9174_v30, %v1656_v8 }
 0x243   : > { %v1044_v9 = vld [vmem:[#allocation2 + $0x1f] sm:$0xff]  ;;  %v1654_v37 = vld [vmem:[#allocation2 + $0xe] sm:$0xff]  ;;  %947 = vst.msk [vmem:[#allocation2 + $0x40] sm:$0xff] %vm938_vm3, %v9196_v27  ;;  %12516 = vst [vmem:[#allocation63_spill] sm:$0xff] %v9209_v48  ;;  %v1589_v57 = vsel %vm1073_vm6, 0.0, %v1493_v55  ;;  %v1494_v38 = vmul.f32 %v9171_v24, %v1042_v2  ;;  %v2525_v50 = vmul.f32 %v9178_v33, %v2169_v47  ;;  %v2528_v46 = vmul.f32 %v9178_v33, %v2172_v35 }
 0x244   : > { %v1496_v63 = vmul.f32 %v9171_v24, %v1044_v9  ;;  %v1013_v9 = vmul.f32 %v9168_v19, %v9185_v44  ;;  %945 = vst.msk [vmem:[#allocation2 + $0x30] sm:$0xff] %vm938_vm3, %v9209_v48  ;;  %v1043_v56 = vld [vmem:[#allocation2 + $0x17] sm:$0xff]  ;;  %v1621_v42 = vadd.f32 %v1589_v57, %v1009_v53  ;;  %v2170_v43 = vld [vmem:[#allocation2 + $0xd] sm:$0xff]  ;;  %v2105_v2 = vsel %vm1685_vm7, 0.0, %v2009_v39  ;;  %v9232_v35 = vld [vmem:[%s12217_s5] ss:$0 sm:$0xff] }
 0x245   : > { %v1655_v29 = vld [vmem:[#allocation2 + $0x16] sm:$0xff]  ;;  %v1622_v55 = vadd.f32 %v1494_v38, %v1010_v49  ;;  %v2010_v54 = vmul.f32 %v9174_v30, %v1654_v37  ;;  %v1495_v26 = vmul.f32 %v9171_v24, %v1043_v56  ;;  %v2526_v38 = vmul.f32 %v9178_v33, %v2170_v43 }
 0x246   : > { %v1624_v59 = vadd.f32 %v1496_v63, %v1012_v0  ;;  %v2171_v22 = vld [vmem:[#allocation2 + $0x15] sm:$0xff]  ;;  %v2137_v20 = vadd.f32 %v2105_v2, %v1621_v42  ;;  %v1016_v63 = vmul.f32 %v9196_v27, %v9168_v19  ;;  %v1014_v0 = vmul.f32 %v9168_v19, %v9209_v48 }
 0x247   : > { %v2138_v57 = vadd.f32 %v2010_v54, %v1622_v55  ;;  %v2621_v56 = vsel %vm2201_vm8, 0.0, %v2525_v50  ;;  %v2011_v42 = vmul.f32 %v9174_v30, %v1655_v29  ;;  %v1623_v39 = vadd.f32 %v1495_v26, %v1011_v21 }
 0x248   : > { %v2140_v47 = vadd.f32 %v2012_v58, %v1624_v59  ;;  %v1045_v8 = vld [vmem:[#allocation2 + $0x27] sm:$0xff]  ;;  %v2653_v53 = vadd.f32 %v2621_v56, %v2137_v20  ;;  %v2527_v37 = vmul.f32 %v9178_v33, %v2171_v22 }
 0x249   : > { %v1657_v58 = vld [vmem:[#allocation2 + $0x26] sm:$0xff]  ;;  %v1497_v2 = vmul.f32 %v9171_v24, %v1045_v8  ;;  %v2654_v50 = vadd.f32 %v2526_v38, %v2138_v57  ;;  %v2139_v28 = vadd.f32 %v2011_v42, %v1623_v39 }
 0x24a   : > { %v2656_v49 = vadd.f32 %v2528_v46, %v2140_v47  ;;  %v2173_v59 = vld [vmem:[#allocation2 + $0x25] sm:$0xff]  ;;  %v2013_v36 = vmul.f32 %v9174_v30, %v1657_v58  ;;  %v2176_v23 = vld [vmem:[#allocation2 + $0x3d] sm:$0xff] }
 0x24b   : > { %v2529_v54 = vmul.f32 %v9178_v33, %v2173_v59  ;;  %v1048_v43 = vld [vmem:[#allocation2 + $0x3f] sm:$0xff]  ;;  %v2532_v26 = vmul.f32 %v9178_v33, %v2176_v23  ;;  %v1046_v22 = vld [vmem:[#allocation2 + $0x2f] sm:$0xff]  ;;  %v1625_v56 = vadd.f32 %v1497_v2, %v1013_v9  ;;  %v1047_v57 = vld [vmem:[#allocation2 + $0x37] sm:$0xff] }
 0x24c   : > { %v1660_v55 = vld [vmem:[#allocation2 + $0x3e] sm:$0xff]  ;;  %v9243_v29 = vadd.f32 %v9232_v35, %v2656_v49  ;;  %v1500_v46 = vmul.f32 %v9171_v24, %v1048_v43  ;;  %v1658_v21 = vld [vmem:[#allocation2 + $0x2e] sm:$0xff]  ;;  %v1498_v8 = vmul.f32 %v9171_v24, %v1046_v22  ;;  %v9253_v43 = vadd.f32 %v9232_v35, %v2653_v53  ;;  %v1659_v2 = vld [vmem:[#allocation2 + $0x36] sm:$0xff] }
 0x24d   : > { %v2016_v20 = vmul.f32 %v9174_v30, %v1660_v55  ;;  %v2174_v47 = vld [vmem:[#allocation2 + $0x2d] sm:$0xff]  ;;  %v2014_v58 = vmul.f32 %v9174_v30, %v1658_v21  ;;  %v9256_v55 = vadd.f32 %v9232_v35, %v2654_v50  ;;  %v2141_v23 = vadd.f32 %v2013_v36, %v1625_v56  ;;  %v2175_v52 = vld [vmem:[#allocation2 + $0x35] sm:$0xff] }
 0x24e   : > { %v2530_v59 = vmul.f32 %v9178_v33, %v2174_v47  ;;  %v7419_v38 = vmul.f32 -1.442695, %v9243_v29  ;;  %v1628_v49 = vadd.f32 %v1500_v46, %v1016_v63  ;;  %v1626_v17 = vadd.f32 %v1498_v8, %v1014_v0 }
 0x24f   : > { %v1499_v9 = vmul.f32 %v9171_v24, %v1047_v57  ;;  %v7416_v21 = vmul.f32 -1.442695, %v9253_v43  ;;  %v7417_v47 = vmul.f32 -1.442695, %v9256_v55  ;;  %v2657_v45 = vadd.f32 %v2529_v54, %v2141_v23 }
 0x250   : > { %7945 = vpow2.f32 %v7419_v38  ;;  %v2144_v22 = vadd.f32 %v2016_v20, %v1628_v49  ;;  %v2142_v63 = vadd.f32 %v2014_v58, %v1626_v17  ;;  %v2655_v46 = vadd.f32 %v2527_v37, %v2139_v28 }
 0x251   : > { %v1627_v53 = vadd.f32 %v1499_v9, %v9205_v41  ;;  %7947 = vpow2.f32 %v7416_v21  ;;  %v2015_v36 = vmul.f32 %v9174_v30, %v1659_v2  ;;  %v2695_v0 = vadd.f32 %v9232_v35, %v2657_v45 }
 0x252   : > { %v2660_v50 = vadd.f32 %v2532_v26, %v2144_v22  ;;  %v2658_v42 = vadd.f32 %v2530_v59, %v2142_v63  ;;  %7949 = vpow2.f32 %v7417_v47  ;;  %v2693_v39 = vadd.f32 %v9232_v35, %v2655_v46 }
 0x253   : > { %v2143_v56 = vadd.f32 %v2015_v36, %v1627_v53  ;;  %v2531_v54 = vmul.f32 %v9178_v33, %v2175_v52  ;;  %v7420_v17 = vmul.f32 -1.442695, %v2695_v0 }
 0x254   : > { %v2698_v20 = vadd.f32 %v9232_v35, %v2660_v50  ;;  %v2696_v28 = vadd.f32 %v9232_v35, %v2658_v42  ;;  %v7418_v37 = vmul.f32 -1.442695, %v2693_v39 }
 0x255   : > { %v2659_v26 = vadd.f32 %v2531_v54, %v2143_v56  ;;  %7951 = vpow2.f32 %v7420_v17 }
 0x256   : > { %v7423_v41 = vmul.f32 -1.442695, %v2698_v20  ;;  %v7421_v8 = vmul.f32 -1.442695, %v2696_v28 }
 0x257   : > { %v2697_v45 = vadd.f32 %v9232_v35, %v2659_v26 }
 0x258   : > { %7953 = vpow2.f32 %v7423_v41 }
 0x259   : > { %7955 = vpow2.f32 %v7421_v8  ;;  %v7422_v59 = vmul.f32 -1.442695, %v2697_v45 }
 0x25a   : > { %v7946_v58 = vpop.eup %7945  ;;  %7957 = vpow2.f32 %v7418_v37 }
 0x25b   : > { %v7948_v57 = vpop.eup %7947  ;;  %7959 = vpow2.f32 %v7422_v59  ;;  %v2822_v23 = vadd.f32 1.0, %v7946_v58 }
 0x25c   : > { %v7950_v38 = vpop.eup %7949  ;;  %v2819_v49 = vadd.f32 1.0, %v7948_v57 }
 0x25d   : > { %v2820_v52 = vadd.f32 1.0, %v7950_v38 }
 0x25e   : > { %7961 = vrcp.f32 %v2819_v49 }
 0x25f   : > { %7963 = vrcp.f32 %v2820_v52  ;;  %v7952_v9 = vpop.eup %7951 }
 0x260   : > { %v2823_v22 = vadd.f32 1.0, %v7952_v9  ;;  %7965 = vrcp.f32 %v2822_v23 }
 0x262   : > { %v7954_v2 = vpop.eup %7953  ;;  %7967 = vrcp.f32 %v2823_v22 }
 0x263   : > { %v7956_v21 = vpop.eup %7955  ;;  %v2826_v63 = vadd.f32 1.0, %v7954_v2  ;;  %v981_v2 = vadd.s32 64, %v9040_v10 }
 0x264   : > { %v7958_v47 = vpop.eup %7957  ;;  %v2824_v46 = vadd.f32 1.0, %v7956_v21 }
 0x265   : > { %v2821_v53 = vadd.f32 1.0, %v7958_v47  ;;  %v7960_v50 = vpop.eup %7959  ;;  %vm1145_vm9 = vcmp.lt.s32.totalorder %v981_v2, 65  ;;  %vm1725_vm10 = vcmp.lt.s32.totalorder %v981_v2, 66  ;;  %vm2241_vm11 = vcmp.lt.s32.totalorder %v981_v2, 67 }
 0x266   : > { %7969 = vrcp.f32 %v2824_v46  ;;  %v2825_v36 = vadd.f32 1.0, %v7960_v50 }
 0x267   : > { %7971 = vrcp.f32 %v2821_v53 }
 0x268   : > { %7973 = vrcp.f32 %v2826_v63  ;;  %v7962_v42 = vpop.eup %7961 }
 0x269   : > { %7975 = vrcp.f32 %v2825_v36  ;;  %v7964_v56 = vpop.eup %7963  ;;  %v9270_v54 = vmul.f32 %v7962_v42, %v9253_v43 }
 0x26a   : > { %v9273_v17 = vmul.f32 %v7964_v56, %v9256_v55  ;;  %v7966_v41 = vpop.eup %7965 }
 0x26b   : > { %12517 = vst [vmem:[#allocation64_spill] sm:$0xff] %v9270_v54  ;;  %v9279_v58 = vmul.f32 %v7966_v41, %v9243_v29 }
 0x26c   : > { %12518 = vst [vmem:[#allocation65_spill] sm:$0xff] %v9273_v17  ;;  %v2947_v37 = vpack.c.bf16 %v9273_v17, %v9270_v54  ;;  %v7968_v26 = vpop.eup %7967 }
 0x26d   : > { %12519 = vst [vmem:[#allocation66_spill] sm:$0xff] %v9279_v58  ;;  %v9281_v57 = vmul.f32 %v7968_v26, %v2695_v0 }
 0x26e   : > { %7681 = vmatprep.mubr.msk.bf16.mxu1 %vm938_vm3, %v2947_v37 }
 0x26f   : > { %12520 = vst [vmem:[#allocation67_spill] sm:$0xff] %v9281_v57 }
 0x270   : > { %v7970_v8 = vpop.eup %7969 }
 0x271   : > { %v7972_v59 = vpop.eup %7971  ;;  %v9283_v38 = vmul.f32 %v7970_v8, %v2696_v28 }
 0x272   : > { %v7974_v43 = vpop.eup %7973  ;;  %v9285_v49 = vmul.f32 %v7972_v59, %v2693_v39 }
 0x273   : > { %12521 = vst [vmem:[#allocation68_spill] sm:$0xff] %v9283_v38  ;;  %v7976_v55 = vpop.eup %7975  ;;  %v2949_v52 = vpack.c.bf16 %v9283_v38, %v9281_v57  ;;  %v9294_v29 = vmul.f32 %v7974_v43, %v2698_v20 }
 0x274   : > { %12522 = vst [vmem:[#allocation69_spill] sm:$0xff] %v9285_v49  ;;  %v2948_v23 = vpack.c.bf16 %v9279_v58, %v9285_v49  ;;  %v9292_v9 = vmul.f32 %v7976_v55, %v2697_v45 }
 0x275   : > { %12524 = vst [vmem:[#allocation71_spill] sm:$0xff] %v9294_v29 }
 0x276   : > { %7682 = vmatmul.mubr.msk.bf16.vlgmr.msra.gmra.mrb[0].mxu1 %vm938_vm3, %v2948_v23  ;;  %12523 = vst [vmem:[#allocation70_spill] sm:$0xff] %v9292_v9  ;;  %v2950_v0 = vpack.c.bf16 %v9294_v29, %v9292_v9 }
 0x277   : > { %7685 = vmatprep.mubr.msk.bf16.mxu1 %vm938_vm3, %v2949_v52 }
 0x27e   : > { %7686 = vmatmul.mubr.msk.bf16.gmra.mrb[4].mxu1 %vm938_vm3, %v2950_v0 }
 0x2ae   : > { %v9300_v39 = vpop.f32.mrb[8].mxu0 }
 0x2af   : > { %12525 = vst [vmem:[#allocation72_spill] sm:$0xff] %v9300_v39  ;;  %950 = vst.msk [vmem:[#allocation2 + $0x58] sm:$0xff] %vm938_vm3, %v9300_v39  ;;  %v9304_v28 = vpop.f32.mrb[9].mxu0 }
 0x2b0   : > { %12526 = vst [vmem:[#allocation73_spill] sm:$0xff] %v9304_v28  ;;  %948 = vst.msk [vmem:[#allocation2 + $0x48] sm:$0xff] %vm938_vm3, %v9304_v28  ;;  %v9308_v45 = vpop.f32.mrb[10].mxu0  ;;  %v1017_v42 = vmul.f32 %v9168_v19, %v9304_v28 }
 0x2b1   : > { %12527 = vst [vmem:[#allocation74_spill] sm:$0xff] %v9308_v45  ;;  %951 = vst.msk [vmem:[#allocation2 + $0x60] sm:$0xff] %vm938_vm3, %v9308_v45  ;;  %v9312_v20 = vpop.f32.mrb[11].mxu0  ;;  %v1020_v32 = vmul.f32 %v9308_v45, %v9168_v19 }
 0x2b2   : > { %12528 = vst [vmem:[#allocation75_spill] sm:$0xff] %v9312_v20  ;;  %949 = vst.msk [vmem:[#allocation2 + $0x50] sm:$0xff] %vm938_vm3, %v9312_v20  ;;  %v1018_v59 = vmul.f32 %v9168_v19, %v9312_v20 }
 0x2b6   : > { %v9317_v22 = vpop.f32.mrb[12].mxu0 }
 0x2b7   : > { %12529 = vst [vmem:[#allocation76_spill] sm:$0xff] %v9317_v22  ;;  %v1049_v21 = vld [vmem:[#allocation2 + $0x47] sm:$0xff]  ;;  %954 = vst.msk [vmem:[#allocation2 + $0x78] sm:$0xff] %vm938_vm3, %v9317_v22  ;;  %v9321_v63 = vpop.f32.mrb[13].mxu0 }
 0x2b8   : > { %v1661_v47 = vld [vmem:[#allocation2 + $0x46] sm:$0xff]  ;;  %12530 = vst [vmem:[#allocation77_spill] sm:$0xff] %v9321_v63  ;;  %v1501_v46 = vmul.f32 %v9171_v24, %v1049_v21  ;;  %952 = vst.msk [vmem:[#allocation2 + $0x68] sm:$0xff] %vm938_vm3, %v9321_v63  ;;  %v9327_v36 = vpop.f32.mrb[14].mxu0  ;;  %v1664_v31 = vld [vmem:[#allocation2 + $0x5e] sm:$0xff]  ;;  %v1021_v2 = vmul.f32 %v9168_v19, %v9321_v63 }
 0x2b9   : > { %v2017_v53 = vmul.f32 %v9174_v30, %v1661_v47  ;;  %v2177_v50 = vld [vmem:[#allocation2 + $0x45] sm:$0xff]  ;;  %12531 = vst [vmem:[#allocation78_spill] sm:$0xff] %v9327_v36  ;;  %v1050_v41 = vld [vmem:[#allocation2 + $0x4f] sm:$0xff]  ;;  %955 = vst.msk [vmem:[#allocation2 + $0x80] sm:$0xff] %vm938_vm3, %v9327_v36  ;;  %v9333_v26 = vpop.f32.mrb[15].mxu0 }
 0x2ba   : > { %v1052_v56 = vld [vmem:[#allocation2 + $0x5f] sm:$0xff]  ;;  %v1662_v37 = vld [vmem:[#allocation2 + $0x4e] sm:$0xff]  ;;  %12532 = vst [vmem:[#allocation79_spill] sm:$0xff] %v9333_v26  ;;  %v1597_v8 = vsel %vm1145_vm9, 0.0, %v1501_v46  ;;  %v1502_v43 = vmul.f32 %v9171_v24, %v1050_v41  ;;  %953 = vst.msk [vmem:[#allocation2 + $0x70] sm:$0xff] %vm938_vm3, %v9333_v26  ;;  %v2533_v52 = vmul.f32 %v9178_v33, %v2177_v50 }
 0x2bb   : > { %v1629_v55 = vadd.f32 %v1597_v8, %v1017_v42  ;;  %v2113_v23 = vsel %vm1725_vm10, 0.0, %v2017_v53  ;;  %v1504_v0 = vmul.f32 %v9171_v24, %v1052_v56  ;;  %v2018_v47 = vmul.f32 %v9174_v30, %v1662_v37  ;;  %v2178_v46 = vld [vmem:[#allocation2 + $0x4d] sm:$0xff] }
 0x2bc   : > { %v1630_v21 = vadd.f32 %v1502_v43, %v1018_v59  ;;  %v2629_v40 = vsel %vm2241_vm11, 0.0, %v2533_v52  ;;  %v2534_v37 = vmul.f32 %v9178_v33, %v2178_v46  ;;  %v1024_v52 = vmul.f32 %v9327_v36, %v9168_v19 }
 0x2bd   : > { %v2145_v51 = vadd.f32 %v2113_v23, %v1629_v55  ;;  %v1632_v56 = vadd.f32 %v1504_v0, %v1020_v32 }
 0x2be   : > { %v2146_v25 = vadd.f32 %v2018_v47, %v1630_v21  ;;  %v9346_v41 = vpop.f32.mrb[16].mxu0 }
 0x2bf   : > { %12533 = vst [vmem:[#allocation80_spill] sm:$0xff] %v9346_v41  ;;  %v1053_v50 = vld [vmem:[#allocation2 + $0x67] sm:$0xff]  ;;  %958 = vst.msk [vmem:[#allocation2 + $0x98] sm:$0xff] %vm938_vm3, %v9346_v41  ;;  %v9352_v53 = vpop.f32.mrb[17].mxu0  ;;  %v2661_v42 = vadd.f32 %v2629_v40, %v2145_v51  ;;  %v2020_v40 = vmul.f32 %v9174_v30, %v1664_v31 }
 0x2c0   : > { %12534 = vst [vmem:[#allocation81_spill] sm:$0xff] %v9352_v53  ;;  %v1505_v8 = vmul.f32 %v9171_v24, %v1053_v50  ;;  %v1056_v59 = vld [vmem:[#allocation2 + $0x7f] sm:$0xff]  ;;  %956 = vst.msk [vmem:[#allocation2 + $0x88] sm:$0xff] %vm938_vm3, %v9352_v53  ;;  %v9358_v43 = vpop.f32.mrb[18].mxu0  ;;  %v2662_v51 = vadd.f32 %v2534_v37, %v2146_v25 }
 0x2c1   : > { %12535 = vst [vmem:[#allocation82_spill] sm:$0xff] %v9358_v43  ;;  %v1665_v55 = vld [vmem:[#allocation2 + $0x66] sm:$0xff]  ;;  %v1508_v23 = vmul.f32 %v9171_v24, %v1056_v59  ;;  %v1054_v21 = vld [vmem:[#allocation2 + $0x6f] sm:$0xff]  ;;  %959 = vst.msk [vmem:[#allocation2 + $0xa0] sm:$0xff] %vm938_vm3, %v9358_v43  ;;  %v9365_v32 = vpop.f32.mrb[19].mxu0  ;;  %v1022_v59 = vmul.f32 %v9168_v19, %v9333_v26  ;;  %v9377_v18 = vadd.f32 %v9232_v35, %v2661_v42 }
 0x2c2   : > { %12536 = vst [vmem:[#allocation83_spill] sm:$0xff] %v9365_v32  ;;  %v1633_v0 = vadd.f32 %v1505_v8, %v1021_v2  ;;  %v1668_v47 = vld [vmem:[#allocation2 + $0x7e] sm:$0xff]  ;;  %v1506_v46 = vmul.f32 %v9171_v24, %v1054_v21  ;;  %957 = vst.msk [vmem:[#allocation2 + $0x90] sm:$0xff] %vm938_vm3, %v9365_v32  ;;  %v2148_v31 = vadd.f32 %v2020_v40, %v1632_v56  ;;  %v1666_v2 = vld [vmem:[#allocation2 + $0x6e] sm:$0xff] }
 0x2c3   : > { %v2180_v50 = vld [vmem:[#allocation2 + $0x5d] sm:$0xff]  ;;  %v1636_v14 = vadd.f32 %v1508_v23, %v1024_v52  ;;  %v2021_v25 = vmul.f32 %v9174_v30, %v1665_v55  ;;  %v2181_v37 = vld [vmem:[#allocation2 + $0x65] sm:$0xff]  ;;  %v2024_v8 = vmul.f32 %v9174_v30, %v1668_v47  ;;  %v9383_v52 = vadd.f32 %v9232_v35, %v2662_v51 }
 0x2c4   : > { %v1634_v21 = vadd.f32 %v1506_v46, %v1022_v59  ;;  %v2536_v16 = vmul.f32 %v9178_v33, %v2180_v50  ;;  %v2184_v60 = vld [vmem:[#allocation2 + $0x7d] sm:$0xff]  ;;  %v2022_v42 = vmul.f32 %v9174_v30, %v1666_v2  ;;  %v7424_v40 = vmul.f32 -1.442695, %v9377_v18 }
 0x2c5   : > { %v2149_v23 = vadd.f32 %v2021_v25, %v1633_v0  ;;  %v2152_v63 = vadd.f32 %v2024_v8, %v1636_v14  ;;  %v2537_v51 = vmul.f32 %v9178_v33, %v2181_v37  ;;  %v2182_v0 = vld [vmem:[#allocation2 + $0x6d] sm:$0xff]  ;;  %v2540_v50 = vmul.f32 %v9178_v33, %v2184_v60 }
 0x2c6   : > { %v9385_v36 = vpop.f32.mrb[20].mxu0  ;;  %v2664_v47 = vadd.f32 %v2536_v16, %v2148_v31  ;;  %v2150_v59 = vadd.f32 %v2022_v42, %v1634_v21  ;;  %v7425_v16 = vmul.f32 -1.442695, %v9383_v52  ;;  %v1025_v60 = vmul.f32 %v9168_v19, %v9352_v53 }
 0x2c7   : > { %12537 = vst [vmem:[#allocation84_spill] sm:$0xff] %v9385_v36  ;;  %v1057_v56 = vld [vmem:[#allocation2 + $0x87] sm:$0xff]  ;;  %962 = vst.msk [vmem:[#allocation2 + $0xb8] sm:$0xff] %vm938_vm3, %v9385_v36  ;;  %v9391_v55 = vpop.f32.mrb[21].mxu0  ;;  %v2665_v31 = vadd.f32 %v2537_v51, %v2149_v23  ;;  %v2668_v8 = vadd.f32 %v2540_v50, %v2152_v63  ;;  %7977 = vpow2.f32 %v7424_v40 }
 0x2c8   : > { %12538 = vst [vmem:[#allocation85_spill] sm:$0xff] %v9391_v55  ;;  %v1509_v46 = vmul.f32 %v9171_v24, %v1057_v56  ;;  %960 = vst.msk [vmem:[#allocation2 + $0xa8] sm:$0xff] %vm938_vm3, %v9391_v55  ;;  %v9398_v14 = vpop.f32.mrb[22].mxu0  ;;  %v1669_v25 = vld [vmem:[#allocation2 + $0x86] sm:$0xff]  ;;  %v2538_v56 = vmul.f32 %v9178_v33, %v2182_v0  ;;  %v9414_v42 = vadd.f32 %v9232_v35, %v2664_v47  ;;  %7979 = vpow2.f32 %v7425_v16  ;;  %v1672_v53 = vld [vmem:[#allocation2 + $0x9e] sm:$0xff] }
 0x2c9   : > { %12539 = vst [vmem:[#allocation86_spill] sm:$0xff] %v9398_v14  ;;  %963 = vst.msk [vmem:[#allocation2 + $0xc0] sm:$0xff] %vm938_vm3, %v9398_v14  ;;  %v9403_v2 = vpop.f32.mrb[23].mxu0  ;;  %v1058_v21 = vld [vmem:[#allocation2 + $0x8f] sm:$0xff]  ;;  %v2025_v26 = vmul.f32 %v9174_v30, %v1669_v25  ;;  %v1060_v23 = vld [vmem:[#allocation2 + $0x9f] sm:$0xff]  ;;  %v9419_v63 = vadd.f32 %v9232_v35, %v2665_v31  ;;  %v9425_v40 = vadd.f32 %v9232_v35, %v2668_v8 }
 0x2ca   : > { %12540 = vst [vmem:[#allocation87_spill] sm:$0xff] %v9403_v2  ;;  %v1605_v37 = vsel %vm1281_vm12, 0.0, %v1509_v46  ;;  %961 = vst.msk [vmem:[#allocation2 + $0xb0] sm:$0xff] %vm938_vm3, %v9403_v2  ;;  %v2666_v51 = vadd.f32 %v2538_v56, %v2150_v59  ;;  %v2185_v46 = vld [vmem:[#allocation2 + $0x85] sm:$0xff]  ;;  %v1510_v0 = vmul.f32 %v9171_v24, %v1058_v21  ;;  %v1512_v47 = vmul.f32 %v9171_v24, %v1060_v23  ;;  %v2186_v27 = vld [vmem:[#allocation2 + $0x8d] sm:$0xff] }
 0x2cb   : > { %v1637_v45 = vadd.f32 %v1605_v37, %v1025_v60  ;;  %v7427_v25 = vmul.f32 -1.442695, %v9414_v42  ;;  %v2121_v16 = vsel %vm1829_vm13, 0.0, %v2025_v26  ;;  %v2541_v31 = vmul.f32 %v9178_v33, %v2185_v46  ;;  %v1670_v26 = vld [vmem:[#allocation2 + $0x8e] sm:$0xff]  ;;  %v1059_v3 = vld [vmem:[#allocation2 + $0x97] sm:$0xff] }
 0x2cc   : > { %v1026_v37 = vmul.f32 %v9168_v19, %v9365_v32  ;;  %v9441_v56 = vadd.f32 %v9232_v35, %v2666_v51  ;;  %v1028_v21 = vmul.f32 %v9358_v43, %v9168_v19  ;;  %v7428_v46 = vmul.f32 -1.442695, %v9419_v63 }
 0x2cd   : > { %v2153_v60 = vadd.f32 %v2121_v16, %v1637_v45  ;;  %v7431_v45 = vmul.f32 -1.442695, %v9425_v40  ;;  %7981 = vpow2.f32 %v7427_v25  ;;  %v2637_v16 = vsel %vm2345_vm14, 0.0, %v2541_v31 }
 0x2ce   : > { %v9422_v50 = vpop.f32.mrb[24].mxu0  ;;  %v1638_v32 = vadd.f32 %v1510_v0, %v1026_v37  ;;  %v1640_v51 = vadd.f32 %v1512_v47, %v1028_v21  ;;  %v2026_v43 = vmul.f32 %v9174_v30, %v1670_v26  ;;  %v7429_v28 = vmul.f32 -1.442695, %v9441_v56  ;;  %v2188_v37 = vld [vmem:[#allocation2 + $0x9d] sm:$0xff] }
 0x2cf   : > { %12541 = vst [vmem:[#allocation88_spill] sm:$0xff] %v9422_v50  ;;  %966 = vst.msk [vmem:[#allocation2 + $0xd8] sm:$0xff] %vm938_vm3, %v9422_v50  ;;  %v9430_v59 = vpop.f32.mrb[25].mxu0  ;;  %v1061_v13 = vld [vmem:[#allocation2 + $0xa7] sm:$0xff]  ;;  %v2669_v20 = vadd.f32 %v2637_v16, %v2153_v60  ;;  %v2028_v34 = vmul.f32 %v9174_v30, %v1672_v53  ;;  %7983 = vpow2.f32 %v7428_v46  ;;  %v2542_v53 = vmul.f32 %v9178_v33, %v2186_v27 }
 0x2d0   : > { %12542 = vst [vmem:[#allocation89_spill] sm:$0xff] %v9430_v59  ;;  %964 = vst.msk [vmem:[#allocation2 + $0xc8] sm:$0xff] %vm938_vm3, %v9430_v59  ;;  %v9438_v8 = vpop.f32.mrb[26].mxu0  ;;  %v1064_v44 = vld [vmem:[#allocation2 + $0xbf] sm:$0xff]  ;;  %v2154_v11 = vadd.f32 %v2026_v43, %v1638_v32  ;;  %v1513_v7 = vmul.f32 %v9171_v24, %v1061_v13  ;;  %7985 = vpow2.f32 %v7431_v45  ;;  %v1029_v21 = vmul.f32 %v9168_v19, %v9391_v55 }
 0x2d1   : > { %12543 = vst [vmem:[#allocation90_spill] sm:$0xff] %v9438_v8  ;;  %967 = vst.msk [vmem:[#allocation2 + $0xe0] sm:$0xff] %vm938_vm3, %v9438_v8  ;;  %v9448_v23 = vpop.f32.mrb[27].mxu0  ;;  %v1062_v48 = vld [vmem:[#allocation2 + $0xaf] sm:$0xff]  ;;  %v7978_v0 = vpop.eup %7977  ;;  %v2156_v25 = vadd.f32 %v2028_v34, %v1640_v51  ;;  %v1516_v26 = vmul.f32 %v9171_v24, %v1064_v44  ;;  %7987 = vpow2.f32 %v7429_v28  ;;  %v9474_v46 = vadd.f32 %v9232_v35, %v2669_v20  ;;  %v1673_v27 = vld [vmem:[#allocation2 + $0xa6] sm:$0xff] }
 0x2d2   : > { %12544 = vst [vmem:[#allocation91_spill] sm:$0xff] %v9448_v23  ;;  %965 = vst.msk [vmem:[#allocation2 + $0xd0] sm:$0xff] %vm938_vm3, %v9448_v23  ;;  %v7980_v60 = vpop.eup %7979  ;;  %v1514_v43 = vmul.f32 %v9171_v24, %v1062_v48  ;;  %v2827_v34 = vadd.f32 1.0, %v7978_v0  ;;  %v2544_v45 = vmul.f32 %v9178_v33, %v2188_v37  ;;  %v2670_v44 = vadd.f32 %v2542_v53, %v2154_v11  ;;  %v1676_v0 = vld [vmem:[#allocation2 + $0xbe] sm:$0xff]  ;;  %v1674_v37 = vld [vmem:[#allocation2 + $0xae] sm:$0xff] }
 0x2d3   : > { %v1641_v48 = vadd.f32 %v1513_v7, %v1029_v21  ;;  %v1032_v13 = vmul.f32 %v9398_v14, %v9168_v19  ;;  %v1030_v16 = vmul.f32 %v9168_v19, %v9403_v2  ;;  %v2828_v28 = vadd.f32 1.0, %v7980_v60  ;;  %v2189_v11 = vld [vmem:[#allocation2 + $0xa5] sm:$0xff]  ;;  %v2192_v1 = vld [vmem:[#allocation2 + $0xbd] sm:$0xff] }
 0x2d4   : > { %v2672_v20 = vadd.f32 %v2544_v45, %v2156_v25  ;;  %v2029_v55 = vmul.f32 %v9174_v30, %v1673_v27  ;;  %7989 = vrcp.f32 %v2827_v34  ;;  %v7432_v7 = vmul.f32 -1.442695, %v9474_v46  ;;  %v1051_v60 = vld [vmem:[#allocation2 + $0x57] sm:$0xff] }
 0x2d5   : > { %v1644_v62 = vadd.f32 %v1516_v26, %v1032_v13  ;;  %v1642_v61 = vadd.f32 %v1514_v43, %v1030_v16  ;;  %v9490_v21 = vadd.f32 %v9232_v35, %v2670_v44  ;;  %v2032_v2 = vmul.f32 %v9174_v30, %v1676_v0  ;;  %v2190_v26 = vld [vmem:[#allocation2 + $0xad] sm:$0xff] }
 0x2d6   : > { %v9458_v47 = vpop.f32.mrb[28].mxu0  ;;  %v2157_v14 = vadd.f32 %v2029_v55, %v1641_v48  ;;  %v2030_v25 = vmul.f32 %v9174_v30, %v1674_v37  ;;  %7991 = vrcp.f32 %v2828_v28  ;;  %v9495_v45 = vadd.f32 %v9232_v35, %v2672_v20 }
 0x2d7   : > { %12545 = vst [vmem:[#allocation92_spill] sm:$0xff] %v9458_v47  ;;  %970 = vst.msk [vmem:[#allocation2 + $0xf8] sm:$0xff] %vm938_vm3, %v9458_v47  ;;  %v9462_v31 = vpop.f32.mrb[29].mxu0  ;;  %v7982_v53 = vpop.eup %7981  ;;  %v9498_v43 = vadd.s32 192, %v9040_v10  ;;  %v1065_v34 = vld [vmem:[#allocation2 + $0xc7] sm:$0xff]  ;;  %v2545_v44 = vmul.f32 %v9178_v33, %v2189_v11  ;;  %v2160_v13 = vadd.f32 %v2032_v2, %v1644_v62  ;;  %7993 = vpow2.f32 %v7432_v7  ;;  %v1663_v7 = vld [vmem:[#allocation2 + $0x56] sm:$0xff] }
 0x2d8   : > { %12546 = vst [vmem:[#allocation93_spill] sm:$0xff] %v9462_v31  ;;  %968 = vst.msk [vmem:[#allocation2 + $0xe8] sm:$0xff] %vm938_vm3, %v9462_v31  ;;  %v9471_v32 = vpop.f32.mrb[30].mxu0  ;;  %v2158_v55 = vadd.f32 %v2030_v25, %v1642_v61  ;;  %v2830_v16 = vadd.f32 1.0, %v7982_v53  ;;  %v2548_v0 = vmul.f32 %v9178_v33, %v2192_v1  ;;  %v1503_v28 = vmul.f32 %v9171_v24, %v1051_v60  ;;  %v1677_v53 = vld [vmem:[#allocation2 + $0xc6] sm:$0xff] }
 0x2d9   : > { %12547 = vst [vmem:[#allocation94_spill] sm:$0xff] %v9471_v32  ;;  %971 = vst.msk [vmem:[#allocation2 + $0x100] sm:$0xff] %vm938_vm3, %v9471_v32  ;;  %v9479_v51 = vpop.f32.mrb[31].mxu0  ;;  %v7984_v27 = vpop.eup %7983  ;;  %v7433_v20 = vmul.f32 -1.442695, %v9490_v21  ;;  %v2673_v37 = vadd.f32 %v2545_v44, %v2157_v14  ;;  %v2546_v5 = vmul.f32 %v9178_v33, %v2190_v26  ;;  %v1517_v6 = vmul.f32 %v9171_v24, %v1065_v34  ;;  %v1068_v44 = vld [vmem:[#allocation2 + $0xdf] sm:$0xff] }
 0x2da   : > { %12548 = vst [vmem:[#allocation95_spill] sm:$0xff] %v9479_v51  ;;  %969 = vst.msk [vmem:[#allocation2 + $0xf0] sm:$0xff] %vm938_vm3, %v9479_v51  ;;  %v7986_v48 = vpop.eup %7985  ;;  %v1019_v11 = vmul.f32 %v9300_v39, %v9168_v19  ;;  %v7435_v61 = vmul.f32 -1.442695, %v9495_v45  ;;  %vm1417_vm15 = vcmp.lt.s32.totalorder %v9498_v43, 193  ;;  %v2831_v62 = vadd.f32 1.0, %v7984_v27 }
 0x2db   : > { %v7988_v4 = vpop.eup %7987  ;;  %v2676_v2 = vadd.f32 %v2548_v0, %v2160_v13  ;;  %v2674_v1 = vadd.f32 %v2546_v5, %v2158_v55  ;;  %vm1933_vm6 = vcmp.lt.s32.totalorder %v9498_v43, 194  ;;  %7995 = vrcp.f32 %v2830_v16  ;;  %v2179_v55 = vld [vmem:[#allocation2 + $0x55] sm:$0xff]  ;;  %v2193_v16 = vld [vmem:[#allocation2 + $0xc5] sm:$0xff] }
 0x2dc   : > { %v2834_v14 = vadd.f32 1.0, %v7986_v48  ;;  %vm2449_vm7 = vcmp.lt.s32.totalorder %v9498_v43, 195  ;;  %v1631_v25 = vadd.f32 %v1503_v28, %v1019_v11  ;;  %v2832_v60 = vadd.f32 1.0, %v7988_v4  ;;  %v1066_v0 = vld [vmem:[#allocation2 + $0xcf] sm:$0xff] }
 0x2dd   : > { %7997 = vpow2.f32 %v7433_v20  ;;  %v9513_v26 = vadd.f32 %v9232_v35, %v2673_v37  ;;  %v1613_v34 = vsel %vm1417_vm15, 0.0, %v1517_v6  ;;  %v9517_v5 = vmul.f32 %v9317_v22, %v9168_v19  ;;  %v2183_v22 = vld [vmem:[#allocation2 + $0x75] sm:$0xff] }
 0x2de   : > { %v7990_v39 = vpop.eup %7989  ;;  %7999 = vpow2.f32 %v7435_v61  ;;  %v1033_v27 = vmul.f32 %v9168_v19, %v9430_v59  ;;  %v2019_v13 = vmul.f32 %v9174_v30, %v1663_v7  ;;  %v9523_v4 = vadd.f32 %v9232_v35, %v2676_v2  ;;  %v2196_v59 = vld [vmem:[#allocation2 + $0xdd] sm:$0xff] }
 0x2df   : > { %8001 = vrcp.f32 %v2831_v62  ;;  %v9526_v48 = vadd.f32 %v9232_v35, %v2674_v1  ;;  %v2033_v6 = vmul.f32 %v9174_v30, %v1677_v53  ;;  %v1520_v37 = vmul.f32 %v9171_v24, %v1068_v44 }
 0x2e0   : > { %v7992_v28 = vpop.eup %7991  ;;  %8003 = vrcp.f32 %v2834_v14  ;;  %v1645_v20 = vadd.f32 %v1613_v34, %v1033_v27  ;;  %v2147_v11 = vadd.f32 %v2019_v13, %v1631_v25  ;;  %v9532_v61 = vmul.f32 %v9346_v41, %v9168_v19  ;;  %v1680_v27 = vld [vmem:[#allocation2 + $0xde] sm:$0xff]  ;;  %v1678_v41 = vld [vmem:[#allocation2 + $0xce] sm:$0xff] }
 0x2e1   : > { %8005 = vrcp.f32 %v2832_v60  ;;  %v7436_v62 = vmul.f32 -1.442695, %v9513_v26  ;;  %v2535_v2 = vmul.f32 %v9178_v33, %v2179_v55  ;;  %v7994_v1 = vpop.eup %7993  ;;  %v2549_v7 = vmul.f32 %v9178_v33, %v2193_v16 }
 0x2e2   : > { %v1036_v53 = vmul.f32 %v9438_v8, %v9168_v19  ;;  %v1518_v14 = vmul.f32 %v9171_v24, %v1066_v0  ;;  %v9541_v34 = vmul.f32 %v7990_v39, %v9377_v18  ;;  %v7439_v25 = vmul.f32 -1.442695, %v9523_v4  ;;  %v1055_v18 = vld [vmem:[#allocation2 + $0x77] sm:$0xff] }
 0x2e3   : > { %v7437_v60 = vmul.f32 -1.442695, %v9526_v48  ;;  %v2129_v44 = vsel %vm1933_vm6, 0.0, %v2033_v6  ;;  %v9548_v13 = vmul.f32 %v7992_v28, %v9383_v52  ;;  %v1034_v0 = vmul.f32 %v9168_v19, %v9448_v23 }
 0x2e4   : > { %12549 = vst [vmem:[#allocation96_spill] sm:$0xff] %v9541_v34  ;;  %v2161_v55 = vadd.f32 %v2129_v44, %v1645_v20  ;;  %v1648_v16 = vadd.f32 %v1520_v37, %v1036_v53  ;;  %v2663_v8 = vadd.f32 %v2535_v2, %v2147_v11  ;;  %v9554_v39 = vmul.f32 %v9385_v36, %v9168_v19  ;;  %v2194_v2 = vld [vmem:[#allocation2 + $0xcd] sm:$0xff]  ;;  %v1667_v44 = vld [vmem:[#allocation2 + $0x76] sm:$0xff] }
 0x2e5   : > { %12550 = vst [vmem:[#allocation97_spill] sm:$0xff] %v9548_v13  ;;  %8007 = vpow2.f32 %v7436_v62  ;;  %v9558_v6 = vmul.f32 %v9422_v50, %v9168_v19  ;;  %v2951_v52 = vpack.c.bf16 %v9548_v13, %v9541_v34  ;;  %v9562_v28 = vpop.eup %7995  ;;  %v2835_v20 = vadd.f32 1.0, %v7994_v1  ;;  %v1681_v13 = vld [vmem:[#allocation2 + $0xe6] sm:$0xff] }
 0x2e6   : > { %v2036_v37 = vmul.f32 %v9174_v30, %v1680_v27  ;;  %v1646_v11 = vadd.f32 %v1518_v14, %v1034_v0  ;;  %v9566_v53 = vadd.f32 %v9232_v35, %v2663_v8  ;;  %8009 = vpow2.f32 %v7439_v25  ;;  %v1069_v0 = vld [vmem:[#allocation2 + $0xe7] sm:$0xff] }
 0x2e7   : > { %v7998_v62 = vpop.eup %7997  ;;  %v2645_v50 = vsel %vm2449_vm7, 0.0, %v2549_v7  ;;  %v2552_v23 = vmul.f32 %v9178_v33, %v2196_v59  ;;  %7689 = vmatprep.mubr.msk.bf16.mxu1 %vm938_vm3, %v2951_v52  ;;  %v1507_v36 = vmul.f32 %v9171_v24, %v1055_v18  ;;  %8011 = vpow2.f32 %v7437_v60  ;;  %v1070_v7 = vld [vmem:[#allocation2 + $0xef] sm:$0xff] }
 0x2e8   : > { %v9573_v1 = vpop.eup %7999  ;;  %v2677_v14 = vadd.f32 %v2645_v50, %v2161_v55  ;;  %v2164_v27 = vadd.f32 %v2036_v37, %v1648_v16  ;;  %v2034_v8 = vmul.f32 %v9174_v30, %v1678_v41  ;;  %v2550_v43 = vmul.f32 %v9178_v33, %v2194_v2  ;;  %v1671_v55 = vld [vmem:[#allocation2 + $0x96] sm:$0xff]  ;;  %v2198_v34 = vld [vmem:[#allocation2 + $0xed] sm:$0xff] }
 0x2e9   : > { %v9576_v25 = vpop.eup %8001  ;;  %v7426_v59 = vmul.f32 -1.442695, %v9566_v53  ;;  %v1635_v52 = vadd.f32 %v1507_v36, %v9517_v5  ;;  %v2023_v18 = vmul.f32 %v9174_v30, %v1667_v44  ;;  %8013 = vrcp.f32 %v2835_v20  ;;  %v1063_v44 = vld [vmem:[#allocation2 + $0xb7] sm:$0xff] }
 0x2ea   : > { %v9582_v15 = vpop.eup %8003  ;;  %v9584_v50 = vadd.f32 1.0, %v7998_v62  ;;  %v2162_v41 = vadd.f32 %v2034_v8, %v1646_v11  ;;  %v9588_v60 = vmul.f32 %v9458_v47, %v9168_v19  ;;  %v1521_v37 = vmul.f32 %v9171_v24, %v1069_v0  ;;  %v2187_v47 = vld [vmem:[#allocation2 + $0x95] sm:$0xff] }
 0x2eb   : > { %v9590_v16 = vpop.eup %8005  ;;  %v2151_v2 = vadd.f32 %v2023_v18, %v1635_v52  ;;  %v2539_v36 = vmul.f32 %v9178_v33, %v2183_v22  ;;  %v1511_v5 = vmul.f32 %v9171_v24, %v1059_v3  ;;  %v9596_v20 = vadd.f32 %v9232_v35, %v2677_v14  ;;  %v1675_v52 = vld [vmem:[#allocation2 + $0xb6] sm:$0xff] }
 0x2ec   : > { %v9598_v62 = vadd.f32 %v2552_v23, %v2164_v27  ;;  %v1037_v11 = vmul.f32 %v9168_v19, %v9462_v31  ;;  %v1522_v8 = vmul.f32 %v9171_v24, %v1070_v7  ;;  %8015 = vpow2.f32 %v7426_v59  ;;  %v1067_v3 = vld [vmem:[#allocation2 + $0xd7] sm:$0xff]  ;;  %v1072_v23 = vld [vmem:[#allocation2 + $0xff] sm:$0xff]  ;;  %v1682_v31 = vld [vmem:[#allocation2 + $0xee] sm:$0xff] }
 0x2ed   : > { %v2667_v10 = vadd.f32 %v2539_v36, %v2151_v2  ;;  %v1639_v0 = vadd.f32 %v1511_v5, %v9532_v61  ;;  %v2027_v22 = vmul.f32 %v9174_v30, %v1671_v55  ;;  %v2678_v18 = vadd.f32 %v2550_v43, %v2162_v41  ;;  %v2191_v43 = vld [vmem:[#allocation2 + $0xb5] sm:$0xff] }
 0x2ee   : > { %v1040_v14 = vmul.f32 %v9471_v32, %v9168_v19  ;;  %v1038_v27 = vmul.f32 %v9168_v19, %v9479_v51  ;;  %v1515_v7 = vmul.f32 %v9171_v24, %v1063_v44  ;;  %v1649_v59 = vadd.f32 %v1521_v37, %v1037_v11  ;;  %v1679_v41 = vld [vmem:[#allocation2 + $0xd6] sm:$0xff] }
 0x2ef   : > { %v9610_v12 = vpop.eup %8007  ;;  %v9613_v61 = vadd.f32 %v9232_v35, %v2667_v10  ;;  %v2155_v55 = vadd.f32 %v2027_v22, %v1639_v0  ;;  %v2543_v2 = vmul.f32 %v9178_v33, %v2187_v47  ;;  %v2031_v32 = vmul.f32 %v9174_v30, %v1675_v52  ;;  %v1071_v51 = vld [vmem:[#allocation2 + $0xf7] sm:$0xff] }
 0x2f0   : > { %v1650_v36 = vadd.f32 %v1522_v8, %v1038_v27  ;;  %v1643_v5 = vadd.f32 %v1515_v7, %v9554_v39  ;;  %v1519_v19 = vmul.f32 %v9171_v24, %v1067_v3  ;;  %v9619_v44 = vpop.eup %8009  ;;  %v1524_v37 = vmul.f32 %v9171_v24, %v1072_v23  ;;  %v2195_v3 = vld [vmem:[#allocation2 + $0xd5] sm:$0xff]  ;;  %v2197_v7 = vld [vmem:[#allocation2 + $0xe5] sm:$0xff] }
 0x2f1   : > { %v2038_v10 = vmul.f32 %v9174_v30, %v1682_v31  ;;  %v7430_v11 = vmul.f32 -1.442695, %v9613_v61  ;;  %v2671_v47 = vadd.f32 %v2543_v2, %v2155_v55  ;;  %v8012_v0 = vpop.eup %8011  ;;  %v2547_v8 = vmul.f32 %v9178_v33, %v2191_v43  ;;  %v1684_v2 = vld [vmem:[#allocation2 + $0xfe] sm:$0xff] }
 0x2f2   : > { %v2159_v22 = vadd.f32 %v2031_v32, %v1643_v5  ;;  %v1647_v39 = vadd.f32 %v1519_v19, %v9558_v6  ;;  %v2035_v52 = vmul.f32 %v9174_v30, %v1679_v41  ;;  %v9628_v27 = vadd.f32 %v9232_v35, %v2678_v18 }
 0x2f3   : > { %8017 = vpow2.f32 %v7430_v11  ;;  %v9631_v31 = vadd.f32 %v9232_v35, %v2671_v47  ;;  %v1523_v23 = vmul.f32 %v9171_v24, %v1071_v51  ;;  %v9634_v55 = vpop.eup %8013  ;;  %v2037_v32 = vmul.f32 %v9174_v30, %v1681_v13  ;;  %v1683_v13 = vld [vmem:[#allocation2 + $0xf6] sm:$0xff] }
 0x2f4   : > { %v2166_v6 = vadd.f32 %v2038_v10, %v1650_v36  ;;  %v2675_v43 = vadd.f32 %v2547_v8, %v2159_v22  ;;  %v2163_v41 = vadd.f32 %v2035_v52, %v1647_v39  ;;  %v7440_v5 = vmul.f32 -1.442695, %v9596_v20 }
 0x2f5   : > { %v1652_v18 = vadd.f32 %v1524_v37, %v1040_v14  ;;  %v7434_v19 = vmul.f32 -1.442695, %v9631_v31  ;;  %v2551_v11 = vmul.f32 %v9178_v33, %v2195_v3  ;;  %v2165_v38 = vadd.f32 %v2037_v32, %v1649_v59  ;;  %v2200_v37 = vld [vmem:[#allocation2 + $0xfd] sm:$0xff] }
 0x2f6   : > { %v2553_v47 = vmul.f32 %v9178_v33, %v2197_v7  ;;  %v2554_v24 = vmul.f32 %v9178_v33, %v2198_v34  ;;  %v9643_v51 = vadd.f32 %v9232_v35, %v2675_v43  ;;  %v8016_v29 = vpop.eup %8015  ;;  %v7441_v36 = vmul.f32 -1.442695, %v9628_v27  ;;  %v8201_v35 = vld [vmem:[%s12217_s5] ss:$0 sm:$0xff] }
 0x2f7   : > { %v2040_v10 = vmul.f32 %v9174_v30, %v1684_v2  ;;  %v2679_v22 = vadd.f32 %v2551_v11, %v2163_v41  ;;  %v1651_v14 = vadd.f32 %v1523_v23, %v9588_v60  ;;  %v2829_v39 = vadd.f32 1.0, %v8016_v29  ;;  %v2199_v23 = vld [vmem:[#allocation2 + $0xf5] sm:$0xff] }
 0x2f8   : > { %v2682_v8 = vadd.f32 %v2554_v24, %v2166_v6  ;;  %8019 = vpow2.f32 %v7434_v19  ;;  %v7438_v59 = vmul.f32 -1.442695, %v9643_v51  ;;  %v9653_v34 = vadd.f32 %v8201_v35, %v9598_v62 }
 0x2f9   : > { %8021 = vpow2.f32 %v7440_v5  ;;  %v2168_v52 = vadd.f32 %v2040_v10, %v1652_v18  ;;  %v2039_v3 = vmul.f32 %v9174_v30, %v1683_v13  ;;  %v2838_v7 = vadd.f32 1.0, %v9573_v1 }
 0x2fa   : > { %v2681_v60 = vadd.f32 %v2553_v47, %v2165_v38  ;;  %8023 = vrcp.f32 %v2829_v39  ;;  %v2556_v29 = vmul.f32 %v9178_v33, %v2200_v37  ;;  %v9658_v32 = vadd.f32 %v8201_v35, %v2679_v22 }
 0x2fb   : > { %8025 = vpow2.f32 %v7438_v59  ;;  %v2167_v2 = vadd.f32 %v2039_v3, %v1651_v14  ;;  %v9660_v6 = vadd.f32 %v8201_v35, %v2682_v8  ;;  %v7443_v62 = vmul.f32 -1.442695, %v9653_v34 }
 0x2fc   : > { %8027 = vpow2.f32 %v7441_v36  ;;  %v2684_v30 = vadd.f32 %v2556_v29, %v2168_v52  ;;  %v2555_v1 = vmul.f32 %v9178_v33, %v2199_v23  ;;  %v2840_v38 = vadd.f32 1.0, %v8012_v0 }
 0x2fd   : > { %v8018_v43 = vpop.eup %8017  ;;  %8029 = vrcp.f32 %v9584_v50  ;;  %v9665_v41 = vadd.f32 %v8201_v35, %v2681_v60  ;;  %v7442_v18 = vmul.f32 -1.442695, %v9658_v32  ;;  %v7445_v11 = vmul.f32 -1.442695, %v9660_v6 }
 0x2fe   : > { %v2833_v5 = vadd.f32 1.0, %v8018_v43  ;;  %8031 = vrcp.f32 %v2838_v7  ;;  %v2683_v19 = vadd.f32 %v2555_v1, %v2167_v2  ;;  %v9669_v47 = vadd.f32 %v8201_v35, %v2684_v30 }
 0x2ff   : > { %v2839_v24 = vadd.f32 1.0, %v9610_v12  ;;  %v7444_v33 = vmul.f32 -1.442695, %v9665_v41  ;;  %v9675_v0 = vmul.f32 %v9590_v16, %v9441_v56  ;;  %v9679_v36 = vmul.f32 %v9562_v28, %v9414_v42 }
 0x300   : > { %8033 = vrcp.f32 %v2833_v5  ;;  %v9681_v22 = vadd.f32 %v8201_v35, %v2683_v19  ;;  %v2842_v37 = vadd.f32 1.0, %v9619_v44  ;;  %v9686_v12 = vmul.f32 %v9576_v25, %v9419_v63 }
 0x301   : > { %8035 = vpow2.f32 %v7443_v62  ;;  %12551 = vst [vmem:[#allocation98_spill] sm:$0xff] %v9675_v0  ;;  %12552 = vst [vmem:[#allocation99_spill] sm:$0xff] %v9679_v36  ;;  %v7447_v56 = vmul.f32 -1.442695, %v9669_v47  ;;  %v9705_v7 = vmul.f32 %v9634_v55, %v9474_v46 }
 0x302   : > { %v8020_v50 = vpop.eup %8019  ;;  %8037 = vrcp.f32 %v2840_v38  ;;  %12553 = vst [vmem:[#allocation100_spill] sm:$0xff] %v9686_v12  ;;  %v2953_v39 = vpack.c.bf16 %v9675_v0, %v9686_v12  ;;  %v7446_v63 = vmul.f32 -1.442695, %v9681_v22 }
 0x303   : > { %v8022_v13 = vpop.eup %8021  ;;  %v2837_v10 = vadd.f32 1.0, %v8020_v50  ;;  %8039 = vpow2.f32 %v7442_v18  ;;  %12556 = vst [vmem:[#allocation103_spill] sm:$0xff] %v9705_v7 }
 0x304   : > { %v8024_v14 = vpop.eup %8023  ;;  %8041 = vpow2.f32 %v7445_v11  ;;  %v2843_v28 = vadd.f32 1.0, %v8022_v13 }
 0x305   : > { %v8026_v8 = vpop.eup %8025  ;;  %v9690_v16 = vmul.f32 %v8024_v14, %v9566_v53  ;;  %8043 = vrcp.f32 %v2837_v10  ;;  %v9700_v53 = vmul.f32 %v9582_v15, %v9425_v40 }
 0x306   : > { %v8028_v42 = vpop.eup %8027  ;;  %8045 = vpow2.f32 %v7444_v33  ;;  %v2841_v25 = vadd.f32 1.0, %v8026_v8 }
 0x307   : > { %12554 = vst [vmem:[#allocation101_spill] sm:$0xff] %v9690_v16  ;;  %v8030_v59 = vpop.eup %8029  ;;  %8047 = vrcp.f32 %v2839_v24  ;;  %v2952_v44 = vpack.c.bf16 %v9679_v36, %v9690_v16  ;;  %v2844_v52 = vadd.f32 1.0, %v8028_v42  ;;  %12555 = vst [vmem:[#allocation102_spill] sm:$0xff] %v9700_v53 }
 0x308   : > { %8049 = vrcp.f32 %v2842_v37  ;;  %v8032_v35 = vpop.eup %8031  ;;  %v9708_v60 = vmul.f32 %v8030_v59, %v9490_v21 }
 0x309   : > { %8051 = vpow2.f32 %v7447_v56  ;;  %7690 = vmatmul.mubr.msk.bf16.gmra.mrb[8].mxu1 %vm938_vm3, %v2952_v44  ;;  %v9722_v5 = vmul.f32 %v8032_v35, %v9495_v45 }
 0x30a   : > { %v8034_v3 = vpop.eup %8033  ;;  %8053 = vrcp.f32 %v2843_v28  ;;  %7693 = vmatprep.mubr.msk.bf16.mxu1 %vm938_vm3, %v2953_v39  ;;  %12557 = vst [vmem:[#allocation104_spill] sm:$0xff] %v9708_v60  ;;  %v2955_v46 = vpack.c.bf16 %v9708_v60, %v9705_v7 }
 0x30b   : > { %v8036_v23 = vpop.eup %8035  ;;  %v9711_v29 = vmul.f32 %v8034_v3, %v9613_v61  ;;  %8055 = vpow2.f32 %v7446_v63  ;;  %12560 = vst [vmem:[#allocation107_spill] sm:$0xff] %v9722_v5 }
 0x30c   : > { %v8038_v2 = vpop.eup %8037  ;;  %8057 = vrcp.f32 %v2841_v25  ;;  %v2846_v62 = vadd.f32 1.0, %v8036_v23 }
 0x30d   : > { %12558 = vst [vmem:[#allocation105_spill] sm:$0xff] %v9711_v29  ;;  %v8040_v15 = vpop.eup %8039  ;;  %8059 = vrcp.f32 %v2844_v52  ;;  %v2954_v40 = vpack.c.bf16 %v9700_v53, %v9711_v29  ;;  %v9726_v19 = vmul.f32 %v8038_v2, %v9526_v48 }
 0x30e   : > { %v8042_v43 = vpop.eup %8041  ;;  %v2845_v30 = vadd.f32 1.0, %v8040_v15  ;;  %8061 = vrcp.f32 %v2846_v62 }
 0x30f   : > { %v8044_v55 = vpop.eup %8043  ;;  %v2848_v38 = vadd.f32 1.0, %v8042_v43  ;;  %12561 = vst [vmem:[#allocation108_spill] sm:$0xff] %v9726_v19 }
 0x310   : > { %v8046_v21 = vpop.eup %8045  ;;  %v9719_v61 = vmul.f32 %v8044_v55, %v9631_v31  ;;  %8063 = vrcp.f32 %v2845_v30 }
 0x311   : > { %v8048_v1 = vpop.eup %8047  ;;  %7694 = vmatmul.mubr.msk.bf16.gmra.mrb[12].mxu1 %vm938_vm3, %v2954_v40  ;;  %v2847_v50 = vadd.f32 1.0, %v8046_v21  ;;  %8065 = vrcp.f32 %v2848_v38 }
 0x312   : > { %12559 = vst [vmem:[#allocation106_spill] sm:$0xff] %v9719_v61  ;;  %v8050_v18 = vpop.eup %8049  ;;  %7697 = vmatprep.mubr.msk.bf16.mxu1 %vm938_vm3, %v2955_v46  ;;  %v9729_v33 = vmul.f32 %v8048_v1, %v9513_v26  ;;  %v2956_v45 = vpack.c.bf16 %v9722_v5, %v9719_v61 }
 0x313   : > { %v8052_v11 = vpop.eup %8051  ;;  %8067 = vrcp.f32 %v2847_v50  ;;  %v9740_v26 = vmul.f32 %v8050_v18, %v9523_v4 }
 0x314   : > { %v8054_v24 = vpop.eup %8053  ;;  %12562 = vst [vmem:[#allocation109_spill] sm:$0xff] %v9729_v33  ;;  %v2957_v10 = vpack.c.bf16 %v9726_v19, %v9729_v33  ;;  %v2850_v48 = vadd.f32 1.0, %v8052_v11 }
 0x315   : > { %v8056_v13 = vpop.eup %8055  ;;  %12564 = vst [vmem:[#allocation111_spill] sm:$0xff] %v9740_v26  ;;  %v9744_v56 = vmul.f32 %v8054_v24, %v9596_v20 }
 0x316   : > { %v8058_v31 = vpop.eup %8057  ;;  %v2849_v37 = vadd.f32 1.0, %v8056_v13  ;;  %8069 = vrcp.f32 %v2850_v48 }
 0x317   : > { %v8060_v14 = vpop.eup %8059  ;;  %v9737_v8 = vmul.f32 %v8058_v31, %v9643_v51  ;;  %12565 = vst [vmem:[#allocation112_spill] sm:$0xff] %v9744_v56 }
 0x318   : > { %v9747_v42 = vmul.f32 %v8060_v14, %v9628_v27  ;;  %8071 = vrcp.f32 %v2849_v37  ;;  %v8062_v28 = vpop.eup %8061 }
 0x319   : > { %7698 = vmatmul.mubr.msk.bf16.gmra.mrb[16].mxu1 %vm938_vm3, %v2956_v45  ;;  %12563 = vst [vmem:[#allocation110_spill] sm:$0xff] %v9737_v8  ;;  %v2958_v39 = vpack.c.bf16 %v9740_v26, %v9737_v8  ;;  %v9758_v27 = vmul.f32 %v8062_v28, %v9653_v34 }
 0x31a   : > { %7701 = vmatprep.mubr.msk.bf16.mxu1 %vm938_vm3, %v2957_v10  ;;  %12566 = vst [vmem:[#allocation113_spill] sm:$0xff] %v9747_v42  ;;  %v8064_v59 = vpop.eup %8063  ;;  %v2959_v51 = vpack.c.bf16 %v9747_v42, %v9744_v56 }
 0x31b   : > { %v8066_v4 = vpop.eup %8065  ;;  %v9755_v20 = vmul.f32 %v8064_v59, %v9658_v32  ;;  %12568 = vst [vmem:[#allocation115_spill] sm:$0xff] %v9758_v27 }
 0x31c   : > { %v9762_v63 = vmul.f32 %v8066_v4, %v9660_v6 }
 0x31d   : > { %v8068_v44 = vpop.eup %8067  ;;  %12567 = vst [vmem:[#allocation114_spill] sm:$0xff] %v9755_v20  ;;  %v2960_v52 = vpack.c.bf16 %v9758_v27, %v9755_v20 }
 0x31e   : > { %12569 = vst [vmem:[#allocation116_spill] sm:$0xff] %v9762_v63  ;;  %v9765_v25 = vmul.f32 %v8068_v44, %v9665_v41  ;;  %v9785_v41 = vld [vmem:[%s12219_s7] ss:$0 sm:$0xff] }
 0x320   : > { %12570 = vst [vmem:[#allocation117_spill] sm:$0xff] %v9765_v25  ;;  %v8070_v35 = vpop.eup %8069  ;;  %v2961_v32 = vpack.c.bf16 %v9762_v63, %v9765_v25 }
 0x321   : > { %7702 = vmatmul.mubr.msk.bf16.gmra.mrb[20].mxu1 %vm938_vm3, %v2958_v39  ;;  %v9776_v23 = vmul.f32 %v8070_v35, %v9669_v47 }
 0x322   : > { %7705 = vmatprep.mubr.msk.bf16.mxu1 %vm938_vm3, %v2959_v51  ;;  %v8072_v3 = vpop.eup %8071 }
 0x323   : > { %v9773_v34 = vmul.f32 %v8072_v3, %v9681_v22  ;;  %12572 = vst [vmem:[#allocation119_spill] sm:$0xff] %v9776_v23 }
 0x325   : > { %12571 = vst [vmem:[#allocation118_spill] sm:$0xff] %v9773_v34  ;;  %v2962_v6 = vpack.c.bf16 %v9776_v23, %v9773_v34 }
 0x329   : > { %7706 = vmatmul.mubr.msk.bf16.gmra.mrb[24].mxu1 %vm938_vm3, %v2960_v52 }
 0x32a   : > { %7709 = vmatprep.mubr.msk.bf16.mxu1 %vm938_vm3, %v2961_v32 }
 0x331   : > { %7710 = vmatmul.mubr.msk.bf16.gmra.mrb[28].mxu1 %vm938_vm3, %v2962_v6 }
 0x349   : > { %v7683_v2 = vpop.f32.mrb[0].mxu1 }
 0x34a   : > { %v9788_v15 = vadd.f32 %v7683_v2, %v9785_v41  ;;  %v3050_v22 = vpop.f32.mrb[1].mxu1  ;;  %3923 = vrot.lane.b32.xlu0 %v7683_v2, %s8701_s26 }
 0x34b   : > { %v9792_v47 = vadd.f32 %v9785_v41, %v3050_v22  ;;  %v7684_v40 = vpop.f32.mrb[2].mxu1 }
 0x34c   : > { %v3313_v43 = vand.u32 2147483647, %v9788_v15  ;;  %v9796_v46 = vadd.f32 %v7684_v40, %v9785_v41  ;;  %3925 = vrot.lane.b32.xlu1 %v7684_v40, %s8701_s26  ;;  %v3053_v55 = vpop.f32.mrb[3].mxu1  ;;  %vm3249_vm8 = vcmp.ne.f32.partialorder %v9788_v15, %v9788_v15 }
 0x34d   : > { %v3311_v62 = vand.u32 2147483647, %v9792_v47  ;;  %v9801_v21 = vadd.f32 %v9785_v41, %v3053_v55  ;;  %vm3247_vm9 = vcmp.ne.f32.partialorder %v9792_v47, %v9792_v47 }
 0x34e   : > { %v3345_v30 = vsub.f32 0.0, %v3313_v43  ;;  %v3314_v1 = vand.u32 2147483647, %v9796_v46  ;;  %3919 = vrot.lane.b32.xlu0 %v3050_v22, %s8701_s26  ;;  %vm3250_vm11 = vcmp.ne.f32.partialorder %v9796_v46, %v9796_v46 }
 0x34f   : > { %v3343_v38 = vsub.f32 0.0, %v3311_v62  ;;  %v3312_v18 = vand.u32 2147483647, %v9801_v21  ;;  %vm3248_vm14 = vcmp.ne.f32.partialorder %v9801_v21, %v9801_v21 }
 0x350   : > { %v3379_v11 = vmul.f32 1.442695, %v3345_v30  ;;  %v3346_v50 = vsub.f32 0.0, %v3314_v1  ;;  %3921 = vrot.lane.b32.xlu1 %v3053_v55, %s8701_s26 }
 0x351   : > { %v3375_v24 = vmul.f32 1.442695, %v3343_v38  ;;  %v3344_v13 = vsub.f32 0.0, %v3312_v18  ;;  %v7687_v45 = vpop.f32.mrb[4].mxu1 }
 0x352   : > { %8073 = vpow2.f32 %v3379_v11  ;;  %v3381_v31 = vmul.f32 1.442695, %v3346_v50  ;;  %v9808_v10 = vadd.f32 %v7687_v45, %v9785_v41  ;;  %3931 = vrot.lane.b32.xlu0 %v7687_v45, %s8701_s26  ;;  %v3066_v14 = vpop.f32.mrb[5].mxu1 }
 0x353   : > { %8075 = vpow2.f32 %v3375_v24  ;;  %v3377_v48 = vmul.f32 1.442695, %v3344_v13  ;;  %v9812_v37 = vadd.f32 %v9785_v41, %v3066_v14  ;;  %v7688_v28 = vpop.f32.mrb[6].mxu1 }
 0x354   : > { %8077 = vpow2.f32 %v3381_v31  ;;  %v3317_v39 = vand.u32 2147483647, %v9808_v10  ;;  %3933 = vrot.lane.b32.xlu1 %v7688_v28, %s8701_s26  ;;  %v3069_v59 = vpop.f32.mrb[7].mxu1  ;;  %v9818_v44 = vadd.f32 %v7688_v28, %v9785_v41 }
 0x355   : > { %8079 = vpow2.f32 %v3377_v48  ;;  %v3315_v51 = vand.u32 2147483647, %v9812_v37  ;;  %v9821_v35 = vadd.f32 %v9785_v41, %v3069_v59 }
 0x356   : > { %v3349_v4 = vsub.f32 0.0, %v3317_v39  ;;  %3927 = vrot.lane.b32.xlu0 %v3066_v14, %s8701_s26  ;;  %v3318_v32 = vand.u32 2147483647, %v9818_v44  ;;  %v3217_v14 = vmax.f32 %v9788_v15, 0.0  ;;  %v3215_v39 = vmax.f32 %v9792_v47, 0.0 }
 0x357   : > { %v3347_v52 = vsub.f32 0.0, %v3315_v51  ;;  %v3316_v2 = vand.u32 2147483647, %v9821_v35 }
 0x358   : > { %v3387_v3 = vmul.f32 1.442695, %v3349_v4  ;;  %3929 = vrot.lane.b32.xlu1 %v3069_v59, %s8701_s26  ;;  %v3350_v22 = vsub.f32 0.0, %v3318_v32 }
 0x359   : > { %v3383_v6 = vmul.f32 1.442695, %v3347_v52  ;;  %v3348_v55 = vsub.f32 0.0, %v3316_v2 }
 0x35a   : > { %8081 = vpow2.f32 %v3387_v3  ;;  %v3389_v43 = vmul.f32 1.442695, %v3350_v22  ;;  %v3218_v3 = vmax.f32 %v9796_v46, 0.0 }
 0x35b   : > { %8083 = vpow2.f32 %v3383_v6  ;;  %v3385_v50 = vmul.f32 1.442695, %v3348_v55  ;;  %v3216_v55 = vmax.f32 %v9801_v21, 0.0 }
 0x35c   : > { %v8074_v40 = vpop.eup %8073  ;;  %8085 = vpow2.f32 %v3389_v43 }
 0x35d   : > { %v8076_v62 = vpop.eup %8075  ;;  %v3457_v30 = vadd.f32 1.0, %v8074_v40  ;;  %v3460_v24 = vmul.f32 -0.5, %v8074_v40  ;;  %v3463_v28 = vand.u32 2147483647, %v8074_v40 }
 0x35e   : > { %v8078_v1 = vpop.eup %8077  ;;  %v3439_v38 = vadd.f32 1.0, %v8076_v62  ;;  %v3442_v45 = vmul.f32 -0.5, %v8076_v62  ;;  %v3445_v52 = vand.u32 2147483647, %v8076_v62 }
 0x35f   : > { %v8080_v18 = vpop.eup %8079  ;;  %8087 = vlog2.f32 %v3457_v30  ;;  %v3466_v11 = vadd.f32 1.0, %v8078_v1  ;;  %v3469_v31 = vmul.f32 -0.5, %v8078_v1  ;;  %v3461_v4 = vadd.f32 1.0, %v3460_v24 }
 0x360   : > { %8089 = vlog2.f32 %v3439_v38  ;;  %v3448_v13 = vadd.f32 1.0, %v8080_v18  ;;  %v3451_v59 = vmul.f32 -0.5, %v8080_v18  ;;  %v3443_v6 = vadd.f32 1.0, %v3442_v45 }
 0x361   : > { %8091 = vlog2.f32 %v3466_v11  ;;  %v3470_v2 = vadd.f32 1.0, %v3469_v31  ;;  %v3472_v22 = vand.u32 2147483647, %v8078_v1  ;;  %v3454_v30 = vand.u32 2147483647, %v8080_v18 }
 0x362   : > { %8093 = vlog2.f32 %v3448_v13  ;;  %vm9844_vm10 = vcmp.lt.f32.partialorder %v3463_v28, 0.0004427343  ;;  %v3452_v24 = vadd.f32 1.0, %v3451_v59  ;;  %v3462_v31 = vmul.f32 %v8074_v40, %v3461_v4 }
 0x363   : > { %8095 = vpow2.f32 %v3385_v50  ;;  %vm9851_vm12 = vcmp.lt.f32.partialorder %v3445_v52, 0.0004427343  ;;  %v3444_v25 = vmul.f32 %v8076_v62, %v3443_v6  ;;  %v3471_v34 = vmul.f32 %v8078_v1, %v3470_v2 }
 0x364   : > { %v9828_v48 = vpop.eup %8081  ;;  %vm9857_vm13 = vcmp.lt.f32.partialorder %v3472_v22, 0.0004427343  ;;  %vm9863_vm15 = vcmp.lt.f32.partialorder %v3454_v30, 0.0004427343  ;;  %v3453_v6 = vmul.f32 %v8080_v18, %v3452_v24 }
 0x365   : > { %v9831_v51 = vpop.eup %8083  ;;  %v3493_v32 = vadd.f32 1.0, %v9828_v48  ;;  %v3499_v2 = vand.u32 2147483647, %v9828_v48 }
 0x366   : > { %v3475_v43 = vadd.f32 1.0, %v9831_v51  ;;  %v9842_v11 = vpop.eup %8085  ;;  %v3478_v52 = vmul.f32 -0.5, %v9831_v51  ;;  %v3481_v30 = vand.u32 2147483647, %v9831_v51 }
 0x367   : > { %8097 = vlog2.f32 %v3493_v32  ;;  %v3496_v32 = vmul.f32 -0.5, %v9828_v48  ;;  %v3502_v28 = vadd.f32 1.0, %v9842_v11  ;;  %vm9892_vm6 = vcmp.lt.f32.partialorder %v3499_v2, 0.0004427343 }
 0x368   : > { %8099 = vlog2.f32 %v3475_v43  ;;  %v3479_v63 = vadd.f32 1.0, %v3478_v52  ;;  %vm3482_vm7 = vcmp.lt.f32.partialorder %v3481_v30, 0.0004427343 }
 0x369   : > { %v8088_v45 = vpop.eup %8087  ;;  %8101 = vlog2.f32 %v3502_v28 }
 0x36a   : > { %v8090_v38 = vpop.eup %8089  ;;  %v3459_v23 = vmul.f32 0.6931472, %v8088_v45  ;;  %v3480_v52 = vmul.f32 %v9831_v51, %v3479_v63  ;;  %v12584_v51 = vmax.f32 %v9812_v37, 0.0 }
 0x36b   : > { %v8092_v40 = vpop.eup %8091  ;;  %v3441_v59 = vmul.f32 0.6931472, %v8090_v38  ;;  %v3497_v38 = vadd.f32 1.0, %v3496_v32 }
 0x36c   : > { %v3465_v62 = vsel %vm9844_vm10, %v3462_v31, %v3459_v23  ;;  %v3468_v1 = vmul.f32 0.6931472, %v8092_v40  ;;  %v8094_v22 = vpop.eup %8093  ;;  %v3505_v23 = vmul.f32 -0.5, %v9842_v11 }
 0x36d   : > { %v3729_v43 = vadd.f32 %v3465_v62, %v3217_v14  ;;  %v3447_v45 = vsel %vm9851_vm12, %v3444_v25, %v3441_v59  ;;  %v9874_v13 = vpop.eup %8095  ;;  %v3450_v50 = vmul.f32 0.6931472, %v8094_v22  ;;  %v3498_v59 = vmul.f32 %v9828_v48, %v3497_v38 }
 0x36e   : > { %v3727_v27 = vadd.f32 %v3447_v45, %v3215_v39  ;;  %v3474_v28 = vsel %vm9857_vm13, %v3471_v34, %v3468_v1  ;;  %v3484_v25 = vadd.f32 1.0, %v9874_v13  ;;  %v3506_v4 = vadd.f32 1.0, %v3505_v23 }
 0x36f   : > { %v3761_v18 = vsel %vm3249_vm8, %v9788_v15, %v3729_v43  ;;  %v3730_v14 = vadd.f32 %v3474_v28, %v3218_v3  ;;  %v3456_v34 = vsel %vm9863_vm15, %v3453_v6, %v3450_v50  ;;  %v3508_v62 = vand.u32 2147483647, %v9842_v11 }
 0x370   : > { %3793 = vst.msk [vmem:[#allocation3 + $0x10] sm:$0xff] %vm938_vm3, %v3761_v18  ;;  %v3825_v24 = vmul.f32 %v3761_v18, %v9285_v49  ;;  %v3759_v42 = vsel %vm3247_vm9, %v9792_v47, %v3727_v27  ;;  %v3728_v32 = vadd.f32 %v3456_v34, %v3216_v55  ;;  %8103 = vlog2.f32 %v3484_v25 }
 0x371   : > { %v8098_v15 = vpop.eup %8097  ;;  %3791 = vst.msk [vmem:[#allocation3] sm:$0xff] %vm938_vm3, %v3759_v42  ;;  %v3823_v3 = vmul.f32 %v3759_v42, %v9270_v54  ;;  %v3762_v31 = vsel %vm3250_vm11, %v9796_v46, %v3730_v14  ;;  %v3487_v6 = vmul.f32 -0.5, %v9874_v13  ;;  %vm3253_vm8 = vcmp.ne.f32.partialorder %v9808_v10, %v9808_v10 }
 0x372   : > { %v8100_v27 = vpop.eup %8099  ;;  %3857 = vst.msk [vmem:[#allocation4 + $0x10] sm:$0xff] %vm938_vm3, %v3825_v24  ;;  %3794 = vst.msk [vmem:[#allocation3 + $0x18] sm:$0xff] %vm938_vm3, %v3762_v31  ;;  %v3826_v47 = vmul.f32 %v3762_v31, %v9279_v58  ;;  %v3495_v40 = vmul.f32 0.6931472, %v8098_v15  ;;  %v3760_v46 = vsel %vm3248_vm14, %v9801_v21, %v3728_v32  ;;  %v12583_v21 = vmax.f32 %v9808_v10, 0.0 }
 0x373   : > { %3855 = vst.msk [vmem:[#allocation4] sm:$0xff] %vm938_vm3, %v3823_v3  ;;  %v3477_v55 = vmul.f32 0.6931472, %v8100_v27  ;;  %3792 = vst.msk [vmem:[#allocation3 + $0x8] sm:$0xff] %vm938_vm3, %v3760_v46  ;;  %v3824_v1 = vmul.f32 %v3760_v46, %v9273_v17  ;;  %v8102_v2 = vpop.eup %8101  ;;  %v3507_v28 = vmul.f32 %v9842_v11, %v3506_v4  ;;  %vm3251_vm9 = vcmp.ne.f32.partialorder %v9812_v37, %v9812_v37 }
 0x374   : > { %3858 = vst.msk [vmem:[#allocation4 + $0x18] sm:$0xff] %vm938_vm3, %v3826_v47  ;;  %v3501_v48 = vsel %vm9892_vm6, %v3498_v59, %v3495_v40  ;;  %v3504_v38 = vmul.f32 0.6931472, %v8102_v2  ;;  %v3222_v50 = vmax.f32 %v9818_v44, 0.0  ;;  %vm3509_vm10 = vcmp.lt.f32.partialorder %v3508_v62, 0.0004427343 }
 0x375   : > { %v3733_v22 = vadd.f32 %v3501_v48, %v12583_v21  ;;  %v3483_v43 = vsel %vm3482_vm7, %v3480_v52, %v3477_v55  ;;  %3856 = vst.msk [vmem:[#allocation4 + $0x8] sm:$0xff] %vm938_vm3, %v3824_v1  ;;  %v3488_v63 = vadd.f32 1.0, %v3487_v6  ;;  %vm3254_vm11 = vcmp.ne.f32.partialorder %v9818_v44, %v9818_v44 }
 0x376   : > { %v3731_v45 = vadd.f32 %v3483_v43, %v12584_v51  ;;  %v3510_v14 = vsel %vm3509_vm10, %v3507_v28, %v3504_v38  ;;  %v3220_v3 = vmax.f32 %v9821_v35, 0.0  ;;  %vm3252_vm13 = vcmp.ne.f32.partialorder %v9821_v35, %v9821_v35 }
 0x377   : > { %v3765_v30 = vsel %vm3253_vm8, %v9808_v10, %v3733_v22  ;;  %v3734_v25 = vadd.f32 %v3510_v14, %v3222_v50  ;;  %v3490_v10 = vand.u32 2147483647, %v9874_v13  ;;  %v3489_v15 = vmul.f32 %v9874_v13, %v3488_v63 }
 0x378   : > { %3797 = vst.msk [vmem:[#allocation3 + $0x30] sm:$0xff] %vm938_vm3, %v3765_v30  ;;  %v3829_v23 = vmul.f32 %v3765_v30, %v9292_v9  ;;  %v3763_v18 = vsel %vm3251_vm9, %v9812_v37, %v3731_v45  ;;  %v12585_v37 = vld [vmem:[#allocation71_spill] sm:$0xff]  ;;  %vm4015_vm14 = vcmask 261120  }
 0x379   : > { %3795 = vst.msk [vmem:[#allocation3 + $0x20] sm:$0xff] %vm938_vm3, %v3763_v18  ;;  %v3827_v11 = vmul.f32 %v3763_v18, %v9281_v57  ;;  %v3766_v42 = vsel %vm3254_vm11, %v9818_v44, %v3734_v25  ;;  %vm3491_vm12 = vcmp.lt.f32.partialorder %v3490_v10, 0.0004427343  ;;  %v12586_v44 = vld [vmem:[#allocation68_spill] sm:$0xff] }
 0x37a   : > { %3861 = vst.msk [vmem:[#allocation4 + $0x30] sm:$0xff] %vm938_vm3, %v3829_v23  ;;  %v8104_v24 = vpop.eup %8103  ;;  %3798 = vst.msk [vmem:[#allocation3 + $0x38] sm:$0xff] %vm938_vm3, %v3766_v42  ;;  %v3830_v34 = vmul.f32 %v3766_v42, %v12585_v37 }
 0x37b   : > { %3859 = vst.msk [vmem:[#allocation4 + $0x20] sm:$0xff] %vm938_vm3, %v3827_v11  ;;  %v3486_v39 = vmul.f32 0.6931472, %v8104_v24 }
 0x37c   : > { %3862 = vst.msk [vmem:[#allocation4 + $0x38] sm:$0xff] %vm938_vm3, %v3830_v34 }
 0x37d   : > { %v3492_v31 = vsel %vm3491_vm12, %v3489_v15, %v3486_v39 }
 0x37e   : > { %v3732_v32 = vadd.f32 %v3492_v31, %v3220_v3 }
 0x380   : > { %v3764_v27 = vsel %vm3252_vm13, %v9821_v35, %v3732_v32 }
 0x381   : > { %3796 = vst.msk [vmem:[#allocation3 + $0x28] sm:$0xff] %vm938_vm3, %v3764_v27  ;;  %v3828_v47 = vmul.f32 %v3764_v27, %v12586_v44 }
 0x383   : > { %3860 = vst.msk [vmem:[#allocation4 + $0x28] sm:$0xff] %vm938_vm3, %v3828_v47 }
 0x3bc   : > { %v3924_v13 = vpop.permute.xlu0 %3923 }
 0x3bd   : > { %4018 = vst.msk [vmem:[#allocation5 + $0x10] sm:$0xff] %vm4015_vm14, %v3924_v13 }
 0x3be   : > { %v3926_v40 = vpop.permute.xlu1 %3925 }
 0x3bf   : > { %4019 = vst.msk [vmem:[#allocation5 + $0x18] sm:$0xff] %vm4015_vm14, %v3926_v40 }
 0x3c0   : > { %v3920_v59 = vpop.permute.xlu0 %3919 }
 0x3c1   : > { %4016 = vst.msk [vmem:[#allocation5] sm:$0xff] %vm4015_vm14, %v3920_v59 }
 0x3c2   : > { %v3922_v4 = vpop.permute.xlu1 %3921 }
 0x3c3   : > { %4017 = vst.msk [vmem:[#allocation5 + $0x8] sm:$0xff] %vm4015_vm14, %v3922_v4 }
 0x3c4   : > { %v3932_v35 = vpop.permute.xlu0 %3931 }
 0x3c5   : > { %4022 = vst.msk [vmem:[#allocation5 + $0x30] sm:$0xff] %vm4015_vm14, %v3932_v35 }
 0x3c6   : > { %v3934_v46 = vpop.permute.xlu1 %3933 }
 0x3c7   : > { %4023 = vst.msk [vmem:[#allocation5 + $0x38] sm:$0xff] %vm4015_vm14, %v3934_v46 }
 0x3c8   : > { %v3928_v55 = vpop.permute.xlu0 %3927 }
 0x3c9   : > { %4020 = vst.msk [vmem:[#allocation5 + $0x20] sm:$0xff] %vm4015_vm14, %v3928_v55 }
 0x3ca   : > { %v3930_v52 = vpop.permute.xlu1 %3929 }
 0x3cb   : > { %4021 = vst.msk [vmem:[#allocation5 + $0x28] sm:$0xff] %vm4015_vm14, %v3930_v52 }
 0x3dc   : > { %v7691_v62 = vpop.f32.mrb[8].mxu1 }
 0x3dd   : > { %v9962_v1 = vadd.f32 %v7691_v62, %v9785_v41  ;;  %3939 = vrot.lane.b32.xlu0 %v7691_v62, %s8701_s26  ;;  %v3082_v48 = vpop.f32.mrb[9].mxu1 }
 0x3de   : > { %v9966_v6 = vadd.f32 %v9785_v41, %v3082_v48  ;;  %v7692_v2 = vpop.f32.mrb[10].mxu1 }
 0x3df   : > { %v3321_v21 = vand.u32 2147483647, %v9962_v1  ;;  %v9970_v22 = vadd.f32 %v7692_v2, %v9785_v41  ;;  %3941 = vrot.lane.b32.xlu1 %v7692_v2, %s8701_s26  ;;  %v3085_v43 = vpop.f32.mrb[11].mxu1  ;;  %vm3257_vm6 = vcmp.ne.f32.partialorder %v9962_v1, %v9962_v1 }
 0x3e0   : > { %v3319_v51 = vand.u32 2147483647, %v9966_v6  ;;  %v9975_v45 = vadd.f32 %v9785_v41, %v3085_v43  ;;  %vm3255_vm8 = vcmp.ne.f32.partialorder %v9966_v6, %v9966_v6 }
 0x3e1   : > { %v3353_v38 = vsub.f32 0.0, %v3321_v21  ;;  %v3322_v28 = vand.u32 2147483647, %v9970_v22  ;;  %3935 = vrot.lane.b32.xlu0 %v3082_v48, %s8701_s26  ;;  %vm3258_vm9 = vcmp.ne.f32.partialorder %v9970_v22, %v9970_v22 }
 0x3e2   : > { %v3351_v30 = vsub.f32 0.0, %v3319_v51  ;;  %v3320_v50 = vand.u32 2147483647, %v9975_v45  ;;  %vm3256_vm12 = vcmp.ne.f32.partialorder %v9975_v45, %v9975_v45 }
 0x3e3   : > { %v3395_v23 = vmul.f32 1.442695, %v3353_v38  ;;  %v3354_v18 = vsub.f32 0.0, %v3322_v28  ;;  %3937 = vrot.lane.b32.xlu1 %v3085_v43, %s8701_s26 }
 0x3e4   : > { %v3391_v14 = vmul.f32 1.442695, %v3351_v30  ;;  %v3352_v63 = vsub.f32 0.0, %v3320_v50  ;;  %v7695_v11 = vpop.f32.mrb[12].mxu1 }
 0x3e5   : > { %8105 = vpow2.f32 %v3395_v23  ;;  %v3397_v25 = vmul.f32 1.442695, %v3354_v18  ;;  %v9982_v10 = vadd.f32 %v7695_v11, %v9785_v41  ;;  %3947 = vrot.lane.b32.xlu0 %v7695_v11, %s8701_s26  ;;  %v3098_v24 = vpop.f32.mrb[13].mxu1 }
 0x3e6   : > { %8107 = vpow2.f32 %v3391_v14  ;;  %v3393_v42 = vmul.f32 1.442695, %v3352_v63  ;;  %v9986_v37 = vadd.f32 %v9785_v41, %v3098_v24  ;;  %v7696_v34 = vpop.f32.mrb[14].mxu1 }
 0x3e7   : > { %8109 = vpow2.f32 %v3397_v25  ;;  %v3325_v39 = vand.u32 2147483647, %v9982_v10  ;;  %3949 = vrot.lane.b32.xlu1 %v7696_v34, %s8701_s26  ;;  %v3101_v15 = vpop.f32.mrb[15].mxu1  ;;  %v9992_v32 = vadd.f32 %v7696_v34, %v9785_v41 }
 0x3e8   : > { %8111 = vpow2.f32 %v3393_v42  ;;  %v3323_v3 = vand.u32 2147483647, %v9986_v37  ;;  %v9995_v27 = vadd.f32 %v9785_v41, %v3101_v15  ;;  %v12607_v54 = vmax.f32 %v9986_v37, 0.0 }
 0x3e9   : > { %v3357_v31 = vsub.f32 0.0, %v3325_v39  ;;  %3943 = vrot.lane.b32.xlu0 %v3098_v24, %s8701_s26  ;;  %v3326_v13 = vand.u32 2147483647, %v9992_v32 }
 0x3ea   : > { %v3355_v44 = vsub.f32 0.0, %v3323_v3  ;;  %v3324_v59 = vand.u32 2147483647, %v9995_v27 }
 0x3eb   : > { %v3403_v47 = vmul.f32 1.442695, %v3357_v31  ;;  %3945 = vrot.lane.b32.xlu1 %v3101_v15, %s8701_s26  ;;  %v3358_v35 = vsub.f32 0.0, %v3326_v13 }
 0x3ec   : > { %v3399_v40 = vmul.f32 1.442695, %v3355_v44  ;;  %v7699_v4 = vpop.f32.mrb[16].mxu1  ;;  %v3356_v2 = vsub.f32 0.0, %v3324_v59 }
 0x3ed   : > { %8113 = vpow2.f32 %v3403_v47  ;;  %3955 = vrot.lane.b32.xlu0 %v7699_v4, %s8701_s26  ;;  %v3114_v46 = vpop.f32.mrb[17].mxu1  ;;  %v10003_v55 = vadd.f32 %v7699_v4, %v9785_v41  ;;  %v3405_v48 = vmul.f32 1.442695, %v3358_v35 }
 0x3ee   : > { %8115 = vpow2.f32 %v3399_v40  ;;  %v10005_v52 = vpop.f32.mrb[18].mxu1  ;;  %v3401_v42 = vmul.f32 1.442695, %v3356_v2 }
 0x3ef   : > { %v8106_v62 = vpop.eup %8105  ;;  %3957 = vrot.lane.b32.xlu1 %v10005_v52, %s8701_s26  ;;  %v10009_v21 = vpop.f32.mrb[19].mxu1  ;;  %8117 = vpow2.f32 %v3405_v48  ;;  %v3329_v11 = vand.u32 2147483647, %v10003_v55 }
 0x3f0   : > { %v8108_v43 = vpop.eup %8107  ;;  %v3529_v38 = vadd.f32 1.0, %v8106_v62  ;;  %v3532_v30 = vmul.f32 -0.5, %v8106_v62  ;;  %v3535_v34 = vand.u32 2147483647, %v8106_v62 }
 0x3f1   : > { %v10012_v28 = vpop.eup %8109  ;;  %v3511_v23 = vadd.f32 1.0, %v8108_v43  ;;  %3951 = vrot.lane.b32.xlu0 %v3114_v46, %s8701_s26  ;;  %v3514_v14 = vmul.f32 -0.5, %v8108_v43  ;;  %v3517_v44 = vand.u32 2147483647, %v8108_v43  ;;  %v3361_v35 = vsub.f32 0.0, %v3329_v11 }
 0x3f2   : > { %v10016_v18 = vpop.eup %8111  ;;  %8119 = vlog2.f32 %v3529_v38  ;;  %v3538_v63 = vadd.f32 1.0, %v10012_v28  ;;  %v3541_v39 = vmul.f32 -0.5, %v10012_v28  ;;  %v3533_v31 = vadd.f32 1.0, %v3532_v30 }
 0x3f3   : > { %8121 = vlog2.f32 %v3511_v23  ;;  %3953 = vrot.lane.b32.xlu1 %v10009_v21, %s8701_s26  ;;  %v3520_v15 = vadd.f32 1.0, %v10016_v18  ;;  %v3515_v59 = vadd.f32 1.0, %v3514_v14  ;;  %v3523_v4 = vmul.f32 -0.5, %v10016_v18 }
 0x3f4   : > { %8123 = vlog2.f32 %v3538_v63  ;;  %v10026_v3 = vpop.f32.mrb[20].mxu1  ;;  %v3544_v38 = vand.u32 2147483647, %v10012_v28  ;;  %v10042_v23 = vadd.f32 %v9785_v41, %v3114_v46  ;;  %vm10050_vm15 = vcmp.lt.f32.partialorder %v3535_v34, 0.0004427343 }
 0x3f5   : > { %3963 = vrot.lane.b32.xlu0 %v10026_v3, %s8701_s26  ;;  %v10032_v40 = vpop.f32.mrb[21].mxu1  ;;  %8125 = vlog2.f32 %v3520_v15  ;;  %v3542_v15 = vadd.f32 1.0, %v3541_v39  ;;  %v3526_v13 = vand.u32 2147483647, %v10016_v18  ;;  %v3534_v46 = vmul.f32 %v8106_v62, %v3533_v31 }
 0x3f6   : > { %v10035_v48 = vpop.f32.mrb[22].mxu1  ;;  %8127 = vpow2.f32 %v3401_v42  ;;  %vm10058_vm7 = vcmp.lt.f32.partialorder %v3517_v44, 0.0004427343  ;;  %v3411_v24 = vmul.f32 1.442695, %v3361_v35  ;;  %v3516_v34 = vmul.f32 %v8108_v43, %v3515_v59 }
 0x3f7   : > { %v10037_v2 = vpop.eup %8113  ;;  %3965 = vrot.lane.b32.xlu1 %v10035_v48, %s8701_s26  ;;  %v10046_v14 = vpop.f32.mrb[23].mxu1  ;;  %v3524_v39 = vadd.f32 1.0, %v3523_v4  ;;  %vm10072_vm10 = vcmp.lt.f32.partialorder %v3544_v38, 0.0004427343  ;;  %v3327_v44 = vand.u32 2147483647, %v10042_v23  ;;  %v3543_v59 = vmul.f32 %v10012_v28, %v3542_v15 }
 0x3f8   : > { %v10048_v63 = vpop.eup %8115  ;;  %v3565_v30 = vadd.f32 1.0, %v10037_v2  ;;  %v3571_v25 = vand.u32 2147483647, %v10037_v2  ;;  %v3568_v31 = vmul.f32 -0.5, %v10037_v2  ;;  %vm10081_vm11 = vcmp.lt.f32.partialorder %v3526_v13, 0.0004427343 }
 0x3f9   : > { %v3547_v47 = vadd.f32 1.0, %v10048_v63  ;;  %3959 = vrot.lane.b32.xlu0 %v10032_v40, %s8701_s26  ;;  %v10068_v50 = vpop.eup %8117  ;;  %v3550_v35 = vmul.f32 -0.5, %v10048_v63  ;;  %v3359_v57 = vsub.f32 0.0, %v3327_v44  ;;  %v3525_v17 = vmul.f32 %v10016_v18, %v3524_v39 }
 0x3fa   : > { %8129 = vlog2.f32 %v3565_v30  ;;  %v3574_v38 = vadd.f32 1.0, %v10068_v50  ;;  %vm10097_vm13 = vcmp.lt.f32.partialorder %v3571_v25, 0.0004427343  ;;  %v3569_v9 = vadd.f32 1.0, %v3568_v31 }
 0x3fb   : > { %8131 = vlog2.f32 %v3547_v47  ;;  %3961 = vrot.lane.b32.xlu1 %v10046_v14, %s8701_s26  ;;  %v3407_v58 = vmul.f32 1.442695, %v3359_v57  ;;  %v12597_v18 = vmax.f32 %v9962_v1, 0.0  ;;  %v3577_v56 = vmul.f32 -0.5, %v10068_v50 }
 0x3fc   : > { %v8120_v43 = vpop.eup %8119  ;;  %v10087_v30 = vpop.f32.mrb[24].mxu1  ;;  %8133 = vpow2.f32 %v3411_v24  ;;  %v3580_v62 = vand.u32 2147483647, %v10068_v50  ;;  %v12601_v4 = vmax.f32 %v9975_v45, 0.0 }
 0x3fd   : > { %v8122_v51 = vpop.eup %8121  ;;  %v3531_v47 = vmul.f32 0.6931472, %v8120_v43  ;;  %3971 = vrot.lane.b32.xlu0 %v10087_v30, %s8701_s26  ;;  %v10094_v28 = vpop.f32.mrb[25].mxu1  ;;  %8135 = vlog2.f32 %v3574_v38  ;;  %v3551_v38 = vadd.f32 1.0, %v3550_v35 }
 0x3fe   : > { %v8124_v13 = vpop.eup %8123  ;;  %v3513_v15 = vmul.f32 0.6931472, %v8122_v51  ;;  %v10101_v43 = vpop.f32.mrb[26].mxu1  ;;  %8137 = vpow2.f32 %v3407_v58 }
 0x3ff   : > { %v3537_v24 = vsel %vm10050_vm15, %v3534_v46, %v3531_v47  ;;  %v3540_v44 = vmul.f32 0.6931472, %v8124_v13  ;;  %3973 = vrot.lane.b32.xlu1 %v10101_v43, %s8701_s26  ;;  %v10107_v49 = vpop.f32.mrb[27].mxu1  ;;  %v8126_v51 = vpop.eup %8125  ;;  %v12598_v46 = vmax.f32 %v9966_v6, 0.0  ;;  %vm3261_vm15 = vcmp.ne.f32.partialorder %v9982_v10, %v9982_v10 }
 0x400   : > { %v3737_v25 = vadd.f32 %v3537_v24, %v12597_v18  ;;  %v3519_v39 = vsel %vm10058_vm7, %v3516_v34, %v3513_v15  ;;  %v10114_v11 = vpop.eup %8127  ;;  %v3522_v47 = vmul.f32 0.6931472, %v8126_v51  ;;  %v12599_v34 = vmax.f32 %v9970_v22, 0.0 }
 0x401   : > { %v3735_v57 = vadd.f32 %v3519_v39, %v12598_v46  ;;  %v3546_v31 = vsel %vm10072_vm10, %v3543_v59, %v3540_v44  ;;  %3967 = vrot.lane.b32.xlu0 %v10094_v28, %s8701_s26  ;;  %vm3259_vm7 = vcmp.ne.f32.partialorder %v9986_v37, %v9986_v37  ;;  %v3556_v59 = vadd.f32 1.0, %v10114_v11  ;;  %v12600_v44 = vld [vmem:[#allocation96_spill] sm:$0xff] }
 0x402   : > { %v3769_v42 = vsel %vm3257_vm6, %v9962_v1, %v3737_v25  ;;  %v3738_v35 = vadd.f32 %v3546_v31, %v12599_v34  ;;  %v3528_v1 = vsel %vm10081_vm11, %v3525_v17, %v3522_v47  ;;  %v10144_v15 = vadd.f32 %v10005_v52, %v9785_v41 }
 0x403   : > { %3801 = vst.msk [vmem:[#allocation3 + $0x50] sm:$0xff] %vm938_vm3, %v3769_v42  ;;  %v3833_v58 = vmul.f32 %v3769_v42, %v9690_v16  ;;  %v3767_v13 = vsel %vm3255_vm8, %v9966_v6, %v3735_v57  ;;  %3969 = vrot.lane.b32.xlu1 %v10107_v49, %s8701_s26  ;;  %v3736_v17 = vadd.f32 %v3528_v1, %v12601_v4  ;;  %8139 = vlog2.f32 %v3556_v59 }
 0x404   : > { %v8130_v24 = vpop.eup %8129  ;;  %3799 = vst.msk [vmem:[#allocation3 + $0x40] sm:$0xff] %vm938_vm3, %v3767_v13  ;;  %v3831_v51 = vmul.f32 %v3767_v13, %v12600_v44  ;;  %v3770_v6 = vsel %vm3258_vm9, %v9970_v22, %v3738_v35  ;;  %v10156_v18 = vpop.f32.mrb[28].mxu1  ;;  %v3570_v46 = vmul.f32 %v10037_v2, %v3569_v9  ;;  %v3578_v57 = vadd.f32 1.0, %v3577_v56  ;;  %v12602_v56 = vld [vmem:[#allocation97_spill] sm:$0xff] }
 0x405   : > { %v8132_v52 = vpop.eup %8131  ;;  %3865 = vst.msk [vmem:[#allocation4 + $0x50] sm:$0xff] %vm938_vm3, %v3833_v58  ;;  %3802 = vst.msk [vmem:[#allocation3 + $0x58] sm:$0xff] %vm938_vm3, %v3770_v6  ;;  %v3834_v25 = vmul.f32 %v3770_v6, %v9679_v36  ;;  %v3567_v39 = vmul.f32 0.6931472, %v8130_v24  ;;  %v10162_v31 = vpop.f32.mrb[29].mxu1  ;;  %v3768_v22 = vsel %vm3256_vm12, %v9975_v45, %v3736_v17  ;;  %v3552_v42 = vmul.f32 %v10048_v63, %v3551_v38 }
 0x406   : > { %3863 = vst.msk [vmem:[#allocation4 + $0x40] sm:$0xff] %vm938_vm3, %v3831_v51  ;;  %v3549_v47 = vmul.f32 0.6931472, %v8132_v52  ;;  %v3559_v34 = vmul.f32 -0.5, %v10114_v11  ;;  %3975 = vrot.lane.b32.xlu0 %v10162_v31, %s8701_s26  ;;  %v10173_v35 = vpop.f32.mrb[30].mxu1  ;;  %v10175_v9 = vpop.eup %8133  ;;  %3800 = vst.msk [vmem:[#allocation3 + $0x48] sm:$0xff] %vm938_vm3, %v3768_v22  ;;  %v3832_v2 = vmul.f32 %v3768_v22, %v12602_v56  ;;  %v3579_v17 = vmul.f32 %v10068_v50, %v3578_v57 }
 0x407   : > { %3866 = vst.msk [vmem:[#allocation4 + $0x58] sm:$0xff] %vm938_vm3, %v3834_v25  ;;  %v3573_v45 = vsel %vm10097_vm13, %v3570_v46, %v3567_v39  ;;  %v12603_v38 = vand.u32 2147483647, %v10048_v63  ;;  %v3330_v59 = vand.u32 2147483647, %v10144_v15  ;;  %v10185_v58 = vpop.f32.mrb[31].mxu1  ;;  %v8136_v13 = vpop.eup %8135  ;;  %v10206_v39 = vadd.f32 %v9785_v41, %v10009_v21 }
 0x408   : > { %v12604_v1 = vmax.f32 %v9982_v10, 0.0  ;;  %vm10189_vm8 = vcmp.lt.f32.partialorder %v3580_v62, 0.0004427343  ;;  %v3601_v6 = vadd.f32 1.0, %v10175_v9  ;;  %3977 = vrot.lane.b32.xlu1 %v10185_v58, %s8701_s26  ;;  %3864 = vst.msk [vmem:[#allocation4 + $0x48] sm:$0xff] %vm938_vm3, %v3832_v2  ;;  %v3560_v25 = vadd.f32 1.0, %v3559_v34  ;;  %v10210_v46 = vpop.eup %8137 }
 0x409   : > { %vm3554_vm6 = vcmp.lt.f32.partialorder %v12603_v38, 0.0004427343  ;;  %v3576_v4 = vmul.f32 0.6931472, %v8136_v13  ;;  %v3362_v52 = vsub.f32 0.0, %v3330_v59  ;;  %v3604_v21 = vmul.f32 -0.5, %v10175_v9 }
 0x40a   : > { %v3741_v24 = vadd.f32 %v3573_v45, %v12604_v1  ;;  %v3555_v44 = vsel %vm3554_vm6, %v3552_v42, %v3549_v47  ;;  %8141 = vlog2.f32 %v3601_v6  ;;  %3979 = vrot.lane.b32.xlu0 %v10156_v18, %s8701_s26  ;;  %v12608_v47 = vmax.f32 %v9992_v32, 0.0 }
 0x40b   : > { %v3739_v63 = vadd.f32 %v3555_v44, %v12607_v54  ;;  %v3582_v57 = vsel %vm10189_vm8, %v3579_v17, %v3576_v4  ;;  %v3562_v34 = vand.u32 2147483647, %v10114_v11  ;;  %v3583_v56 = vadd.f32 1.0, %v10210_v46 }
 0x40c   : > { %v3773_v62 = vsel %vm3261_vm15, %v9982_v10, %v3741_v24  ;;  %v3742_v42 = vadd.f32 %v3582_v57, %v12608_v47  ;;  %3981 = vrot.lane.b32.xlu1 %v10173_v35, %s8701_s26  ;;  %vm3262_vm9 = vcmp.ne.f32.partialorder %v9992_v32, %v9992_v32  ;;  %vm3260_vm10 = vcmp.ne.f32.partialorder %v9995_v27, %v9995_v27 }
 0x40d   : > { %3805 = vst.msk [vmem:[#allocation3 + $0x70] sm:$0xff] %vm938_vm3, %v3773_v62  ;;  %v3837_v50 = vmul.f32 %v3773_v62, %v9711_v29  ;;  %v3771_v10 = vsel %vm3259_vm7, %v9986_v37, %v3739_v63  ;;  %v3228_v37 = vmax.f32 %v9995_v27, 0.0  ;;  %v3413_v2 = vmul.f32 1.442695, %v3362_v52  ;;  %v8140_v45 = vpop.eup %8139 }
 0x40e   : > { %3803 = vst.msk [vmem:[#allocation3 + $0x60] sm:$0xff] %vm938_vm3, %v3771_v10  ;;  %v3835_v22 = vmul.f32 %v3771_v10, %v9686_v12  ;;  %v3774_v38 = vsel %vm3262_vm9, %v9992_v32, %v3742_v42  ;;  %8143 = vlog2.f32 %v3583_v56  ;;  %v3328_v59 = vand.u32 2147483647, %v10206_v39 }
 0x40f   : > { %3869 = vst.msk [vmem:[#allocation4 + $0x70] sm:$0xff] %vm938_vm3, %v3837_v50  ;;  %v10240_v13 = vadd.f32 %v10026_v3, %v9785_v41  ;;  %3806 = vst.msk [vmem:[#allocation3 + $0x78] sm:$0xff] %vm938_vm3, %v3774_v38  ;;  %v3838_v1 = vmul.f32 %v3774_v38, %v9700_v53  ;;  %v3558_v24 = vmul.f32 0.6931472, %v8140_v45  ;;  %v3561_v44 = vmul.f32 %v10114_v11, %v3560_v25 }
 0x410   : > { %3867 = vst.msk [vmem:[#allocation4 + $0x60] sm:$0xff] %vm938_vm3, %v3835_v22  ;;  %v3605_v51 = vadd.f32 1.0, %v3604_v21  ;;  %vm3563_vm11 = vcmp.lt.f32.partialorder %v3562_v34, 0.0004427343  ;;  %v3586_v6 = vmul.f32 -0.5, %v10210_v46  ;;  %8145 = vpow2.f32 %v3413_v2 }
 0x411   : > { %v3360_v32 = vsub.f32 0.0, %v3328_v59  ;;  %3870 = vst.msk [vmem:[#allocation4 + $0x78] sm:$0xff] %vm938_vm3, %v3838_v1  ;;  %v3564_v54 = vsel %vm3563_vm11, %v3561_v44, %v3558_v24  ;;  %v3607_v63 = vand.u32 2147483647, %v10175_v9  ;;  %v3333_v3 = vand.u32 2147483647, %v10240_v13 }
 0x412   : > { %v10251_v4 = vadd.f32 %v9785_v41, %v10032_v40  ;;  %v3740_v17 = vadd.f32 %v3564_v54, %v3228_v37  ;;  %v10255_v11 = vadd.f32 %v10035_v48, %v9785_v41  ;;  %v10259_v62 = vadd.f32 %v9785_v41, %v10046_v14 }
 0x413   : > { %v3409_v52 = vmul.f32 1.442695, %v3360_v32  ;;  %v3233_v25 = vmax.f32 %v10003_v55, 0.0  ;;  %v3606_v50 = vmul.f32 %v10175_v9, %v3605_v51  ;;  %v3365_v10 = vsub.f32 0.0, %v3333_v3 }
 0x414   : > { %v3331_v57 = vand.u32 2147483647, %v10251_v4  ;;  %v8142_v21 = vpop.eup %8141  ;;  %v3772_v40 = vsel %vm3260_vm10, %v9995_v27, %v3740_v17  ;;  %v3587_v22 = vadd.f32 1.0, %v3586_v6  ;;  %v3589_v48 = vand.u32 2147483647, %v10210_v46 }
 0x415   : > { %8147 = vpow2.f32 %v3409_v52  ;;  %3804 = vst.msk [vmem:[#allocation3 + $0x68] sm:$0xff] %vm938_vm3, %v3772_v40  ;;  %v3836_v14 = vmul.f32 %v3772_v40, %v9675_v0  ;;  %v3603_v47 = vmul.f32 0.6931472, %v8142_v21  ;;  %v3419_v42 = vmul.f32 1.442695, %v3365_v10 }
 0x416   : > { %v3363_v9 = vsub.f32 0.0, %v3331_v57  ;;  %vm3265_vm12 = vcmp.ne.f32.partialorder %v10003_v55, %v10003_v55  ;;  %vm3608_vm13 = vcmp.lt.f32.partialorder %v3607_v63, 0.0004427343  ;;  %v3334_v34 = vand.u32 2147483647, %v10255_v11 }
 0x417   : > { %v3332_v56 = vand.u32 2147483647, %v10259_v62  ;;  %3868 = vst.msk [vmem:[#allocation4 + $0x68] sm:$0xff] %vm938_vm3, %v3836_v14  ;;  %v3609_v27 = vsel %vm3608_vm13, %v3606_v50, %v3603_v47  ;;  %8149 = vpow2.f32 %v3419_v42  ;;  %v10278_v2 = vadd.f32 %v10087_v30, %v9785_v41 }
 0x418   : > { %v3415_v37 = vmul.f32 1.442695, %v3363_v9  ;;  %v8144_v45 = vpop.eup %8143  ;;  %v3745_v38 = vadd.f32 %v3609_v27, %v3233_v25  ;;  %v3231_v59 = vmax.f32 %v10042_v23, 0.0  ;;  %v3366_v1 = vsub.f32 0.0, %v3334_v34  ;;  %v10292_v25 = vld [vmem:[%s12219_s7] ss:$0 sm:$0xff] }
 0x419   : > { %v3364_v24 = vsub.f32 0.0, %v3332_v56  ;;  %v3585_v44 = vmul.f32 0.6931472, %v8144_v45  ;;  %v3588_v51 = vmul.f32 %v10210_v46, %v3587_v22  ;;  %vm3590_vm15 = vcmp.lt.f32.partialorder %v3589_v48, 0.0004427343 }
 0x41a   : > { %8151 = vpow2.f32 %v3415_v37  ;;  %v8146_v6 = vpop.eup %8145  ;;  %v3777_v32 = vsel %vm3265_vm12, %v10003_v55, %v3745_v38  ;;  %v3421_v54 = vmul.f32 1.442695, %v3366_v1  ;;  %v3337_v30 = vand.u32 2147483647, %v10278_v2 }
 0x41b   : > { %v3417_v41 = vmul.f32 1.442695, %v3364_v24  ;;  %3809 = vst.msk [vmem:[#allocation3 + $0x90] sm:$0xff] %vm938_vm3, %v3777_v32  ;;  %v3841_v63 = vmul.f32 %v3777_v32, %v9719_v61  ;;  %v3591_v3 = vsel %vm3590_vm15, %v3588_v51, %v3585_v44  ;;  %v3610_v17 = vadd.f32 1.0, %v8146_v6 }
 0x41c   : > { %v3743_v52 = vadd.f32 %v3591_v3, %v3231_v59  ;;  %8153 = vpow2.f32 %v3421_v54  ;;  %v3369_v46 = vsub.f32 0.0, %v3337_v30  ;;  %v10296_v55 = vadd.f32 %v10292_v25, %v10094_v28 }
 0x41d   : > { %3873 = vst.msk [vmem:[#allocation4 + $0x90] sm:$0xff] %vm938_vm3, %v3841_v63  ;;  %vm3263_vm7 = vcmp.ne.f32.partialorder %v10042_v23, %v10042_v23  ;;  %8155 = vlog2.f32 %v3610_v17  ;;  %v3613_v50 = vmul.f32 -0.5, %v8146_v6  ;;  %v3234_v28 = vmax.f32 %v10144_v15, 0.0 }
 0x41e   : > { %v3775_v57 = vsel %vm3263_vm7, %v10042_v23, %v3743_v52  ;;  %8157 = vpow2.f32 %v3417_v41  ;;  %v3427_v21 = vmul.f32 1.442695, %v3369_v46  ;;  %v3232_v48 = vmax.f32 %v10206_v39, 0.0 }
 0x41f   : > { %v8148_v10 = vpop.eup %8147  ;;  %3807 = vst.msk [vmem:[#allocation3 + $0x80] sm:$0xff] %vm938_vm3, %v3775_v57  ;;  %v3839_v40 = vmul.f32 %v3775_v57, %v9705_v7  ;;  %v3335_v14 = vand.u32 2147483647, %v10296_v55  ;;  %v3614_v42 = vadd.f32 1.0, %v3613_v50  ;;  %v3616_v9 = vand.u32 2147483647, %v8146_v6 }
 0x420   : > { %v3592_v22 = vadd.f32 1.0, %v8148_v10  ;;  %8159 = vpow2.f32 %v3427_v21  ;;  %v3595_v23 = vmul.f32 -0.5, %v8148_v10  ;;  %v3237_v34 = vmax.f32 %v10240_v13, 0.0 }
 0x421   : > { %v8150_v47 = vpop.eup %8149  ;;  %3871 = vst.msk [vmem:[#allocation4 + $0x80] sm:$0xff] %vm938_vm3, %v3839_v40  ;;  %v3235_v27 = vmax.f32 %v10251_v4, 0.0  ;;  %v10312_v37 = vadd.f32 %v10292_v25, %v10101_v43  ;;  %v3238_v59 = vmax.f32 %v10255_v11, 0.0  ;;  %v3236_v1 = vmax.f32 %v10259_v62, 0.0 }
 0x422   : > { %8161 = vlog2.f32 %v3592_v22  ;;  %v3637_v56 = vadd.f32 1.0, %v8150_v47  ;;  %v3640_v38 = vmul.f32 -0.5, %v8150_v47  ;;  %v3367_v24 = vsub.f32 0.0, %v3335_v14 }
 0x423   : > { %vm3266_vm6 = vcmp.ne.f32.partialorder %v10144_v15, %v10144_v15  ;;  %v3598_v44 = vand.u32 2147483647, %v8148_v10  ;;  %v3241_v32 = vmax.f32 %v10278_v2, 0.0  ;;  %v3615_v54 = vmul.f32 %v8146_v6, %v3614_v42 }
 0x424   : > { %v8152_v45 = vpop.eup %8151  ;;  %8163 = vlog2.f32 %v3637_v56  ;;  %vm10319_vm8 = vcmp.lt.f32.partialorder %v3616_v9, 0.0004427343  ;;  %v3596_v43 = vadd.f32 1.0, %v3595_v23  ;;  %v3423_v30 = vmul.f32 1.442695, %v3367_v24 }
 0x425   : > { %v3619_v51 = vadd.f32 1.0, %v8152_v45  ;;  %v3643_v3 = vand.u32 2147483647, %v8150_v47  ;;  %v3622_v17 = vmul.f32 -0.5, %v8152_v45  ;;  %v3338_v52 = vand.u32 2147483647, %v10312_v37 }
 0x426   : > { %v8154_v63 = vpop.eup %8153  ;;  %v3641_v50 = vadd.f32 1.0, %v3640_v38  ;;  %v10326_v21 = vadd.f32 %v10292_v25, %v10107_v49  ;;  %v10330_v6 = vadd.f32 %v10292_v25, %v10156_v18  ;;  %vm3264_vm9 = vcmp.ne.f32.partialorder %v10206_v39, %v10206_v39 }
 0x427   : > { %8165 = vlog2.f32 %v3619_v51  ;;  %v8156_v46 = vpop.eup %8155  ;;  %v3646_v57 = vadd.f32 1.0, %v8154_v63  ;;  %vm10336_vm10 = vcmp.lt.f32.partialorder %v3598_v44, 0.0004427343  ;;  %v3649_v42 = vmul.f32 -0.5, %v8154_v63 }
 0x428   : > { %v10332_v40 = vpop.eup %8157  ;;  %v3612_v22 = vmul.f32 0.6931472, %v8156_v46  ;;  %8167 = vpow2.f32 %v3423_v30  ;;  %v3597_v9 = vmul.f32 %v8148_v10, %v3596_v43  ;;  %v3370_v23 = vsub.f32 0.0, %v3338_v52 }
 0x429   : > { %8169 = vlog2.f32 %v3646_v57  ;;  %v3628_v49 = vadd.f32 1.0, %v10332_v40  ;;  %vm10345_vm11 = vcmp.lt.f32.partialorder %v3643_v3, 0.0004427343  ;;  %v3623_v24 = vadd.f32 1.0, %v3622_v17 }
 0x42a   : > { %v10341_v56 = vpop.eup %8159  ;;  %v3618_v18 = vsel %vm10319_vm8, %v3615_v54, %v3612_v22  ;;  %v3625_v44 = vand.u32 2147483647, %v8152_v45  ;;  %vm3269_vm12 = vcmp.ne.f32.partialorder %v10240_v13, %v10240_v13  ;;  %v3642_v10 = vmul.f32 %v8150_v47, %v3641_v50 }
 0x42b   : > { %v3746_v46 = vadd.f32 %v3618_v18, %v3234_v28  ;;  %8171 = vlog2.f32 %v3628_v49  ;;  %v3673_v43 = vadd.f32 1.0, %v10341_v56  ;;  %v3650_v52 = vadd.f32 1.0, %v3649_v42 }
 0x42c   : > { %v8162_v51 = vpop.eup %8161  ;;  %v3652_v57 = vand.u32 2147483647, %v8154_v63  ;;  %v3631_v54 = vmul.f32 -0.5, %v10332_v40  ;;  %vm3267_vm13 = vcmp.ne.f32.partialorder %v10251_v4, %v10251_v4  ;;  %v3634_v28 = vand.u32 2147483647, %v10332_v40 }
 0x42d   : > { %v3594_v30 = vmul.f32 0.6931472, %v8162_v51  ;;  %v3778_v41 = vsel %vm3266_vm6, %v10144_v15, %v3746_v46  ;;  %8173 = vlog2.f32 %v3673_v43  ;;  %v3429_v47 = vmul.f32 1.442695, %v3370_v23 }
 0x42e   : > { %v8164_v3 = vpop.eup %8163  ;;  %3810 = vst.msk [vmem:[#allocation3 + $0x98] sm:$0xff] %vm938_vm3, %v3778_v41  ;;  %v3842_v17 = vmul.f32 %v3778_v41, %v9722_v5  ;;  %v3624_v22 = vmul.f32 %v8152_v45, %v3623_v24  ;;  %vm10364_vm15 = vcmp.lt.f32.partialorder %v3625_v44, 0.0004427343  ;;  %v3676_v18 = vmul.f32 -0.5, %v10341_v56 }
 0x42f   : > { %v3600_v50 = vsel %vm10336_vm10, %v3597_v9, %v3594_v30  ;;  %v3639_v49 = vmul.f32 0.6931472, %v8164_v3  ;;  %8175 = vpow2.f32 %v3429_v47  ;;  %vm3270_vm7 = vcmp.ne.f32.partialorder %v10255_v11, %v10255_v11 }
 0x430   : > { %v3744_v15 = vadd.f32 %v3600_v50, %v3232_v48  ;;  %3874 = vst.msk [vmem:[#allocation4 + $0x98] sm:$0xff] %vm938_vm3, %v3842_v17  ;;  %v3651_v14 = vmul.f32 %v8154_v63, %v3650_v52  ;;  %vm10374_vm6 = vcmp.lt.f32.partialorder %v3652_v57, 0.0004427343  ;;  %v3632_v9 = vadd.f32 1.0, %v3631_v54 }
 0x431   : > { %v8166_v23 = vpop.eup %8165  ;;  %v3336_v24 = vand.u32 2147483647, %v10326_v21  ;;  %v3645_v44 = vsel %vm10345_vm11, %v3642_v10, %v3639_v49  ;;  %vm10385_vm8 = vcmp.lt.f32.partialorder %v3634_v28, 0.0004427343  ;;  %v3679_v52 = vand.u32 2147483647, %v10341_v56 }
 0x432   : > { %v3776_v48 = vsel %vm3264_vm9, %v10206_v39, %v3744_v15  ;;  %v3621_v51 = vmul.f32 0.6931472, %v8166_v23  ;;  %v10389_v63 = vpop.eup %8167  ;;  %v3749_v30 = vadd.f32 %v3645_v44, %v3237_v34  ;;  %v3677_v10 = vadd.f32 1.0, %v3676_v18 }
 0x433   : > { %3808 = vst.msk [vmem:[#allocation3 + $0x88] sm:$0xff] %vm938_vm3, %v3776_v48  ;;  %v3840_v43 = vmul.f32 %v3776_v48, %v9708_v60  ;;  %v3368_v39 = vsub.f32 0.0, %v3336_v24  ;;  %v8170_v57 = vpop.eup %8169  ;;  %v3655_v54 = vadd.f32 1.0, %v10389_v63  ;;  %v3341_v41 = vand.u32 2147483647, %v10330_v6 }
 0x434   : > { %v3627_v38 = vsel %vm10364_vm15, %v3624_v22, %v3621_v51  ;;  %v3781_v28 = vsel %vm3269_vm12, %v10240_v13, %v3749_v30  ;;  %v3648_v47 = vmul.f32 0.6931472, %v8170_v57  ;;  %v3633_v22 = vmul.f32 %v10332_v40, %v3632_v9 }
 0x435   : > { %3872 = vst.msk [vmem:[#allocation4 + $0x88] sm:$0xff] %vm938_vm3, %v3840_v43  ;;  %v3747_v34 = vadd.f32 %v3627_v38, %v3235_v27  ;;  %v3425_v3 = vmul.f32 1.442695, %v3368_v39  ;;  %v8172_v17 = vpop.eup %8171  ;;  %3813 = vst.msk [vmem:[#allocation3 + $0xb0] sm:$0xff] %vm938_vm3, %v3781_v28  ;;  %v3845_v50 = vmul.f32 %v3781_v28, %v9737_v8  ;;  %8177 = vlog2.f32 %v3655_v54 }
 0x436   : > { %v10412_v42 = vadd.f32 %v10292_v25, %v10162_v31  ;;  %v3654_v27 = vsel %vm10374_vm6, %v3651_v14, %v3648_v47  ;;  %v3630_v15 = vmul.f32 0.6931472, %v8172_v17  ;;  %vm10425_vm9 = vcmp.lt.f32.partialorder %v3679_v52, 0.0004427343 }
 0x437   : > { %v3779_v13 = vsel %vm3267_vm13, %v10251_v4, %v3747_v34  ;;  %8179 = vpow2.f32 %v3425_v3  ;;  %v8174_v49 = vpop.eup %8173  ;;  %3877 = vst.msk [vmem:[#allocation4 + $0xb0] sm:$0xff] %vm938_vm3, %v3845_v50  ;;  %v3750_v31 = vadd.f32 %v3654_v27, %v3238_v59  ;;  %v3373_v4 = vsub.f32 0.0, %v3341_v41 }
 0x438   : > { %3811 = vst.msk [vmem:[#allocation3 + $0xa0] sm:$0xff] %vm938_vm3, %v3779_v13  ;;  %v3843_v40 = vmul.f32 %v3779_v13, %v9729_v33  ;;  %v3636_v23 = vsel %vm10385_vm8, %v3633_v22, %v3630_v15  ;;  %v3675_v14 = vmul.f32 0.6931472, %v8174_v49  ;;  %v3678_v45 = vmul.f32 %v10341_v56, %v3677_v10 }
 0x439   : > { %v3658_v9 = vmul.f32 -0.5, %v10389_v63  ;;  %v10433_v24 = vpop.eup %8175  ;;  %v3782_v59 = vsel %vm3270_vm7, %v10255_v11, %v3750_v31  ;;  %v3748_v48 = vadd.f32 %v3636_v23, %v3236_v1  ;;  %v3435_v44 = vmul.f32 1.442695, %v3373_v4  ;;  %v12623_v4 = vld [vmem:[#allocation112_spill] sm:$0xff] }
 0x43a   : > { %3875 = vst.msk [vmem:[#allocation4 + $0xa0] sm:$0xff] %vm938_vm3, %v3843_v40  ;;  %v3339_v51 = vand.u32 2147483647, %v10412_v42  ;;  %3814 = vst.msk [vmem:[#allocation3 + $0xb8] sm:$0xff] %vm938_vm3, %v3782_v59  ;;  %v3846_v56 = vmul.f32 %v3782_v59, %v9740_v26  ;;  %vm3268_vm10 = vcmp.ne.f32.partialorder %v10259_v62, %v10259_v62  ;;  %v3681_v46 = vsel %vm10425_vm9, %v3678_v45, %v3675_v14 }
 0x43b   : > { %v3682_v43 = vadd.f32 1.0, %v10433_v24  ;;  %v3780_v11 = vsel %vm3268_vm10, %v10259_v62, %v3748_v48  ;;  %vm3273_vm11 = vcmp.ne.f32.partialorder %v10278_v2, %v10278_v2  ;;  %v3753_v1 = vadd.f32 %v3681_v46, %v3241_v32 }
 0x43c   : > { %8181 = vpow2.f32 %v3435_v44  ;;  %3878 = vst.msk [vmem:[#allocation4 + $0xb8] sm:$0xff] %vm938_vm3, %v3846_v56  ;;  %3812 = vst.msk [vmem:[#allocation3 + $0xa8] sm:$0xff] %vm938_vm3, %v3780_v11  ;;  %v3844_v30 = vmul.f32 %v3780_v11, %v9726_v19  ;;  %v3659_v52 = vadd.f32 1.0, %v3658_v9  ;;  %v3371_v39 = vsub.f32 0.0, %v3339_v51 }
 0x43d   : > { %8183 = vlog2.f32 %v3682_v43  ;;  %v3785_v57 = vsel %vm3273_vm11, %v10278_v2, %v3753_v1  ;;  %v3661_v62 = vand.u32 2147483647, %v10389_v63  ;;  %v10462_v38 = vadd.f32 %v10292_v25, %v10173_v35 }
 0x43e   : > { %v10466_v32 = vadd.f32 %v10292_v25, %v10185_v58  ;;  %3876 = vst.msk [vmem:[#allocation4 + $0xa8] sm:$0xff] %vm938_vm3, %v3844_v30  ;;  %3817 = vst.msk [vmem:[#allocation3 + $0xd0] sm:$0xff] %vm938_vm3, %v3785_v57  ;;  %v3849_v10 = vmul.f32 %v3785_v57, %v9755_v20  ;;  %v3431_v54 = vmul.f32 1.442695, %v3371_v39  ;;  %v3685_v2 = vmul.f32 -0.5, %v10433_v24  ;;  %v12624_v30 = vld [vmem:[#allocation115_spill] sm:$0xff] }
 0x43f   : > { %v8178_v41 = vpop.eup %8177  ;;  %v3342_v28 = vand.u32 2147483647, %v10462_v38  ;;  %v3660_v47 = vmul.f32 %v10389_v63, %v3659_v52  ;;  %v3239_v25 = vmax.f32 %v10296_v55, 0.0  ;;  %vm3662_vm12 = vcmp.lt.f32.partialorder %v3661_v62, 0.0004427343 }
 0x440   : > { %3881 = vst.msk [vmem:[#allocation4 + $0xd0] sm:$0xff] %vm938_vm3, %v3849_v10  ;;  %v3657_v35 = vmul.f32 0.6931472, %v8178_v41  ;;  %8185 = vpow2.f32 %v3431_v54  ;;  %v3340_v58 = vand.u32 2147483647, %v10466_v32  ;;  %v3686_v27 = vadd.f32 1.0, %v3685_v2 }
 0x441   : > { %v8180_v34 = vpop.eup %8179  ;;  %v3374_v17 = vsub.f32 0.0, %v3342_v28  ;;  %vm3271_vm13 = vcmp.ne.f32.partialorder %v10296_v55, %v10296_v55  ;;  %v3688_v15 = vand.u32 2147483647, %v10433_v24  ;;  %v3242_v48 = vmax.f32 %v10312_v37, 0.0 }
 0x442   : > { %v3664_v3 = vadd.f32 1.0, %v8180_v34  ;;  %v3663_v50 = vsel %vm3662_vm12, %v3660_v47, %v3657_v35  ;;  %v3372_v22 = vsub.f32 0.0, %v3340_v58  ;;  %v3667_v14 = vmul.f32 -0.5, %v8180_v34 }
 0x443   : > { %v3751_v13 = vadd.f32 %v3663_v50, %v3239_v25  ;;  %v3437_v49 = vmul.f32 1.442695, %v3374_v17  ;;  %v3687_v59 = vmul.f32 %v10433_v24, %v3686_v27  ;;  %vm3689_vm15 = vcmp.lt.f32.partialorder %v3688_v15, 0.0004427343  ;;  %v12625_v27 = vld [vmem:[#allocation113_spill] sm:$0xff] }
 0x444   : > { %8187 = vlog2.f32 %v3664_v3  ;;  %v3433_v31 = vmul.f32 1.442695, %v3372_v22  ;;  %v3668_v56 = vadd.f32 1.0, %v3667_v14  ;;  %vm3274_vm7 = vcmp.ne.f32.partialorder %v10312_v37, %v10312_v37 }
 0x445   : > { %v3783_v40 = vsel %vm3271_vm13, %v10296_v55, %v3751_v13  ;;  %8189 = vpow2.f32 %v3437_v49  ;;  %v3670_v46 = vand.u32 2147483647, %v8180_v34  ;;  %v3240_v62 = vmax.f32 %v10326_v21, 0.0 }
 0x446   : > { %v8182_v63 = vpop.eup %8181  ;;  %3815 = vst.msk [vmem:[#allocation3 + $0xc0] sm:$0xff] %vm938_vm3, %v3783_v40  ;;  %v3847_v23 = vmul.f32 %v3783_v40, %v12623_v4  ;;  %v3669_v57 = vmul.f32 %v8180_v34, %v3668_v56  ;;  %vm3272_vm8 = vcmp.ne.f32.partialorder %v10326_v21, %v10326_v21  ;;  %v3245_v17 = vmax.f32 %v10330_v6, 0.0 }
 0x447   : > { %v8184_v18 = vpop.eup %8183  ;;  %v3709_v45 = vadd.f32 1.0, %v8182_v63  ;;  %v3712_v43 = vmul.f32 -0.5, %v8182_v63  ;;  %vm3671_vm6 = vcmp.lt.f32.partialorder %v3670_v46, 0.0004427343  ;;  %v3715_v2 = vand.u32 2147483647, %v8182_v63 }
 0x448   : > { %v3684_v9 = vmul.f32 0.6931472, %v8184_v18  ;;  %3879 = vst.msk [vmem:[#allocation4 + $0xc0] sm:$0xff] %vm938_vm3, %v3847_v23  ;;  %vm3277_vm10 = vcmp.ne.f32.partialorder %v10330_v6, %v10330_v6  ;;  %vm3275_vm12 = vcmp.ne.f32.partialorder %v10412_v42, %v10412_v42 }
 0x449   : > { %8191 = vlog2.f32 %v3709_v45  ;;  %v3713_v10 = vadd.f32 1.0, %v3712_v43  ;;  %vm3716_vm9 = vcmp.lt.f32.partialorder %v3715_v2, 0.0004427343 }
 0x44a   : > { %v3690_v44 = vsel %vm3689_vm15, %v3687_v59, %v3684_v9  ;;  %8193 = vpow2.f32 %v3433_v31  ;;  %v8186_v55 = vpop.eup %8185  ;;  %vm3278_vm15 = vcmp.ne.f32.partialorder %v10462_v38, %v10462_v38 }
 0x44b   : > { %v3754_v51 = vadd.f32 %v3690_v44, %v3242_v48  ;;  %v3691_v11 = vadd.f32 1.0, %v8186_v55  ;;  %v3694_v28 = vmul.f32 -0.5, %v8186_v55  ;;  %v3714_v22 = vmul.f32 %v8182_v63, %v3713_v10  ;;  %v12626_v48 = vld [vmem:[#allocation118_spill] sm:$0xff] }
 0x44c   : > { %v3697_v31 = vand.u32 2147483647, %v8186_v55 }
 0x44d   : > { %v3786_v24 = vsel %vm3274_vm7, %v10312_v37, %v3754_v51  ;;  %8195 = vlog2.f32 %v3691_v11  ;;  %v3695_v49 = vadd.f32 1.0, %v3694_v28  ;;  %v3243_v51 = vmax.f32 %v10412_v42, 0.0 }
 0x44e   : > { %v8188_v1 = vpop.eup %8187  ;;  %3818 = vst.msk [vmem:[#allocation3 + $0xd8] sm:$0xff] %vm938_vm3, %v3786_v24  ;;  %v3850_v52 = vmul.f32 %v3786_v24, %v12624_v30  ;;  %vm3698_vm11 = vcmp.lt.f32.partialorder %v3697_v31, 0.0004427343  ;;  %v3246_v28 = vmax.f32 %v10462_v38, 0.0 }
 0x44f   : > { %v3666_v39 = vmul.f32 0.6931472, %v8188_v1  ;;  %v3940_v54 = vpop.permute.xlu0 %3939  ;;  %v10494_v37 = vpop.eup %8189  ;;  %v3696_v59 = vmul.f32 %v8186_v55, %v3695_v49 }
 0x450   : > { %3882 = vst.msk [vmem:[#allocation4 + $0xd8] sm:$0xff] %vm938_vm3, %v3850_v52  ;;  %v3718_v34 = vadd.f32 1.0, %v10494_v37  ;;  %v3721_v23 = vmul.f32 -0.5, %v10494_v37  ;;  %v3724_v24 = vand.u32 2147483647, %v10494_v37 }
 0x451   : > { %v3672_v41 = vsel %vm3671_vm6, %v3669_v57, %v3666_v39  ;;  %4026 = vst.msk [vmem:[#allocation5 + $0x50] sm:$0xff] %vm4015_vm14, %v3940_v54  ;;  %v3942_v47 = vpop.permute.xlu1 %3941  ;;  %v12627_v39 = vld [vmem:[#allocation117_spill] sm:$0xff]  ;;  %vm3276_vm6 = vcmp.ne.f32.partialorder %v10466_v32, %v10466_v32 }
 0x452   : > { %v3752_v35 = vadd.f32 %v3672_v41, %v3240_v62  ;;  %4027 = vst.msk [vmem:[#allocation5 + $0x58] sm:$0xff] %vm4015_vm14, %v3942_v47  ;;  %8197 = vlog2.f32 %v3718_v34  ;;  %v3722_v11 = vadd.f32 1.0, %v3721_v23  ;;  %vm3725_vm13 = vcmp.lt.f32.partialorder %v3724_v24, 0.0004427343 }
 0x453   : > { %v8192_v58 = vpop.eup %8191  ;;  %v3936_v13 = vpop.permute.xlu0 %3935 }
 0x454   : > { %v10500_v25 = vpop.eup %8193  ;;  %v3784_v3 = vsel %vm3272_vm8, %v10326_v21, %v3752_v35  ;;  %v3711_v50 = vmul.f32 0.6931472, %v8192_v58  ;;  %4024 = vst.msk [vmem:[#allocation5 + $0x40] sm:$0xff] %vm4015_vm14, %v3936_v13  ;;  %v3723_v54 = vmul.f32 %v10494_v37, %v3722_v11  ;;  %v3244_v37 = vmax.f32 %v10466_v32, 0.0  ;;  %v12628_v13 = vld [vmem:[#allocation119_spill] sm:$0xff] }
 0x455   : > { %3816 = vst.msk [vmem:[#allocation3 + $0xc8] sm:$0xff] %vm938_vm3, %v3784_v3  ;;  %v3848_v15 = vmul.f32 %v3784_v3, %v12625_v27  ;;  %v3700_v18 = vadd.f32 1.0, %v10500_v25  ;;  %v3938_v4 = vpop.permute.xlu1 %3937  ;;  %v3703_v43 = vmul.f32 -0.5, %v10500_v25  ;;  %v3706_v41 = vand.u32 2147483647, %v10500_v25 }
 0x456   : > { %v3717_v40 = vsel %vm3716_vm9, %v3714_v22, %v3711_v50  ;;  %4025 = vst.msk [vmem:[#allocation5 + $0x48] sm:$0xff] %vm4015_vm14, %v3938_v4  ;;  %v10578_v11 = vmov 0.0  }
 0x457   : > { %3880 = vst.msk [vmem:[#allocation4 + $0xc8] sm:$0xff] %vm938_vm3, %v3848_v15  ;;  %v3757_v21 = vadd.f32 %v3717_v40, %v3245_v17  ;;  %v8196_v63 = vpop.eup %8195  ;;  %8199 = vlog2.f32 %v3700_v18  ;;  %v3948_v14 = vpop.permute.xlu0 %3947  ;;  %v3704_v62 = vadd.f32 1.0, %v3703_v43  ;;  %vm3707_vm7 = vcmp.lt.f32.partialorder %v3706_v41, 0.0004427343 }
 0x458   : > { %v3693_v9 = vmul.f32 0.6931472, %v8196_v63  ;;  %4030 = vst.msk [vmem:[#allocation5 + $0x70] sm:$0xff] %vm4015_vm14, %v3948_v14  ;;  %v10574_v43 = vmov 0.0  }
 0x459   : > { %v3789_v45 = vsel %vm3277_vm10, %v10330_v6, %v3757_v21  ;;  %v3950_v56 = vpop.permute.xlu1 %3949  ;;  %v3705_v3 = vmul.f32 %v10500_v25, %v3704_v62 }
 0x45a   : > { %3821 = vst.msk [vmem:[#allocation3 + $0xf0] sm:$0xff] %vm938_vm3, %v3789_v45  ;;  %v3853_v44 = vmul.f32 %v3789_v45, %v12626_v48  ;;  %v3699_v46 = vsel %vm3698_vm11, %v3696_v59, %v3693_v9 }
 0x45b   : > { %4031 = vst.msk [vmem:[#allocation5 + $0x78] sm:$0xff] %vm4015_vm14, %v3950_v56  ;;  %v3755_v6 = vadd.f32 %v3699_v46, %v3243_v51  ;;  %v3944_v55 = vpop.permute.xlu0 %3943  ;;  %v10568_v51 = vmov 0.0   ;;  %v10570_v56 = vmov 0.0   ;;  %v10572_v46 = vmov 0.0  }
 0x45c   : > { %3885 = vst.msk [vmem:[#allocation4 + $0xf0] sm:$0xff] %vm938_vm3, %v3853_v44  ;;  %v8198_v52 = vpop.eup %8197  ;;  %v10566_v44 = vmov 0.0  }
 0x45d   : > { %4028 = vst.msk [vmem:[#allocation5 + $0x60] sm:$0xff] %vm4015_vm14, %v3944_v55  ;;  %v3787_v1 = vsel %vm3275_vm12, %v10412_v42, %v3755_v6  ;;  %v3946_v30 = vpop.permute.xlu1 %3945  ;;  %v3720_v10 = vmul.f32 0.6931472, %v8198_v52  ;;  %v10576_v6 = vmov 0.0   ;;  %v10580_v55 = vmov 0.0  }
 0x45e   : > { %3819 = vst.msk [vmem:[#allocation3 + $0xe0] sm:$0xff] %vm938_vm3, %v3787_v1  ;;  %v3851_v57 = vmul.f32 %v3787_v1, %v12627_v39 }
 0x45f   : > { %4029 = vst.msk [vmem:[#allocation5 + $0x68] sm:$0xff] %vm4015_vm14, %v3946_v30  ;;  %v3956_v2 = vpop.permute.xlu0 %3955  ;;  %v3726_v35 = vsel %vm3725_vm13, %v3723_v54, %v3720_v10 }
 0x460   : > { %3883 = vst.msk [vmem:[#allocation4 + $0xe0] sm:$0xff] %vm938_vm3, %v3851_v57  ;;  %v3758_v58 = vadd.f32 %v3726_v35, %v3246_v28 }
 0x461   : > { %4034 = vst.msk [vmem:[#allocation5 + $0x90] sm:$0xff] %vm4015_vm14, %v3956_v2  ;;  %v8200_v42 = vpop.eup %8199  ;;  %v3958_v47 = vpop.permute.xlu1 %3957 }
 0x462   : > { %v3702_v34 = vmul.f32 0.6931472, %v8200_v42  ;;  %4035 = vst.msk [vmem:[#allocation5 + $0x98] sm:$0xff] %vm4015_vm14, %v3958_v47  ;;  %v3790_v50 = vsel %vm3278_vm15, %v10462_v38, %v3758_v58  ;;  %v12629_v38 = vld [vmem:[#allocation116_spill] sm:$0xff] }
 0x463   : > { %v3952_v17 = vpop.permute.xlu0 %3951  ;;  %3822 = vst.msk [vmem:[#allocation3 + $0xf8] sm:$0xff] %vm938_vm3, %v3790_v50  ;;  %v3854_v27 = vmul.f32 %v3790_v50, %v12628_v13 }
 0x464   : > { %v3708_v22 = vsel %vm3707_vm7, %v3705_v3, %v3702_v34  ;;  %4032 = vst.msk [vmem:[#allocation5 + $0x80] sm:$0xff] %vm4015_vm14, %v3952_v17 }
 0x465   : > { %v3756_v15 = vadd.f32 %v3708_v22, %v3244_v37  ;;  %v3954_v25 = vpop.permute.xlu1 %3953  ;;  %3886 = vst.msk [vmem:[#allocation4 + $0xf8] sm:$0xff] %vm938_vm3, %v3854_v27 }
 0x466   : > { %4033 = vst.msk [vmem:[#allocation5 + $0x88] sm:$0xff] %vm4015_vm14, %v3954_v25 }
 0x467   : > { %v3788_v49 = vsel %vm3276_vm6, %v10466_v32, %v3756_v15  ;;  %v3964_v40 = vpop.permute.xlu0 %3963 }
 0x468   : > { %3820 = vst.msk [vmem:[#allocation3 + $0xe8] sm:$0xff] %vm938_vm3, %v3788_v49  ;;  %v3852_v31 = vmul.f32 %v3788_v49, %v12629_v38 }
 0x469   : > { %4038 = vst.msk [vmem:[#allocation5 + $0xb0] sm:$0xff] %vm4015_vm14, %v3964_v40  ;;  %v3966_v18 = vpop.permute.xlu1 %3965 }
 0x46a   : > { %3884 = vst.msk [vmem:[#allocation4 + $0xe8] sm:$0xff] %vm938_vm3, %v3852_v31 }
 0x46b   : > { %4039 = vst.msk [vmem:[#allocation5 + $0xb8] sm:$0xff] %vm4015_vm14, %v3966_v18  ;;  %v3960_v4 = vpop.permute.xlu0 %3959 }
 0x46c   : > { %4036 = vst.msk [vmem:[#allocation5 + $0xa0] sm:$0xff] %vm4015_vm14, %v3960_v4 }
 0x46d   : > { %v3962_v21 = vpop.permute.xlu1 %3961 }
 0x46e   : > { %4037 = vst.msk [vmem:[#allocation5 + $0xa8] sm:$0xff] %vm4015_vm14, %v3962_v21 }
 0x46f   : > { %v3972_v63 = vpop.permute.xlu0 %3971 }
 0x470   : > { %4042 = vst.msk [vmem:[#allocation5 + $0xd0] sm:$0xff] %vm4015_vm14, %v3972_v63 }
 0x471   : > { %v3974_v32 = vpop.permute.xlu1 %3973 }
 0x472   : > { %4043 = vst.msk [vmem:[#allocation5 + $0xd8] sm:$0xff] %vm4015_vm14, %v3974_v32 }
 0x473   : > { %v3968_v23 = vpop.permute.xlu0 %3967 }
 0x474   : > { %4040 = vst.msk [vmem:[#allocation5 + $0xc0] sm:$0xff] %vm4015_vm14, %v3968_v23 }
 0x475   : > { %v3970_v14 = vpop.permute.xlu1 %3969 }
 0x476   : > { %4041 = vst.msk [vmem:[#allocation5 + $0xc8] sm:$0xff] %vm4015_vm14, %v3970_v14 }
 0x478   : > { %v3976_v45 = vpop.permute.xlu0 %3975 }
 0x479   : > { %4044 = vst.msk [vmem:[#allocation5 + $0xe0] sm:$0xff] %vm4015_vm14, %v3976_v45 }
 0x47a   : > { %v3978_v9 = vpop.permute.xlu1 %3977 }
 0x47b   : > { %4045 = vst.msk [vmem:[#allocation5 + $0xe8] sm:$0xff] %vm4015_vm14, %v3978_v9 }
 0x47c   : > { %v3980_v59 = vpop.permute.xlu0 %3979 }
 0x47d   : > { %4046 = vst.msk [vmem:[#allocation5 + $0xf0] sm:$0xff] %vm4015_vm14, %v3980_v59 }
 0x47e   : > { %v3982_v48 = vpop.permute.xlu1 %3981 }
 0x47f   : > { %4047 = vst.msk [vmem:[#allocation5 + $0xf8] sm:$0xff] %vm4015_vm14, %v3982_v48 }
 0x480 LB: >> { %12630 = vst [vmem:[#allocation120_spill] sm:$0xff] %v8666_v44  ;;  %12631 = vst [vmem:[#allocation121_spill] sm:$0xff] %v8670_v51  ;;  %s10612_s19 = sshll.u32 %s8698_s3, 3  ;;  %v8704_v30 = vmov 1.0   ;;  %v12373_v62 = vmov 0   ;;  %v12363_v27 = vmov 6   ;;  %s8698_s3 = sphi %s10582_s3, %s4058_s3   ;;  %v8694_v55 = vphi %v10580_v55, %v12819_v55   ;;  %v8690_v11 = vphi %v10578_v11, %v12818_v11   ;;  %v8686_v6 = vphi %v10576_v6, %v12817_v6   ;;  %v8682_v43 = vphi %v10574_v43, %v12816_v43   ;;  %v8678_v46 = vphi %v10572_v46, %v12815_v46   ;;  %v8674_v56 = vphi %v10570_v56, %v12814_v56   ;;  %v8670_v51 = vphi %v10568_v51, %v6142_v51   ;;  %v8666_v44 = vphi %v10566_v44, %v6143_v44  }
 0x481   : >> { %12632 = vst [vmem:[#allocation122_spill] sm:$0xff] %v8678_v46  ;;  %s4072_s29 = scalar_lea.vmem [#allocation5], %s10612_s19  ;;  %7713 = vmatprep.subr.msk.mxu0 %vm9043_vm4, %v8704_v30  ;;  %7721 = vmatprep.subr.msk.mxu1 %vm9043_vm4, %v8704_v30  ;;  %v12361_v49 = vmov 1   ;;  %v12371_v31 = vmov 2   ;;  %v12369_v18 = vmov 3   ;;  %v12367_v63 = vmov 4  }
 0x482   : >> { %7714 = vmatpush3.msk.msra.mxu0 %vm9043_vm4, %v8704_v30  ;;  %7722 = vmatpush3.msk.msra.mxu1 %vm9043_vm4, %v8704_v30  ;;  %s10763_s30 = scalar_lea.vmem [#allocation4], %s10612_s19  ;;  %s10790_s21 = scalar_lea.vmem [#allocation3], %s10612_s19  ;;  %v12655_v5 = vmov 2   ;;  %v12657_v60 = vmov 3   ;;  %v12660_v51 = vmov 4   ;;  %vm4583_vm14 = vcmask 1040384  }
 0x483   : >> { %7729 = vmatprep.subr.msk.mxu0 %vm9043_vm4, %v8704_v30  ;;  %7737 = vmatprep.subr.msk.mxu1 %vm9043_vm4, %v8704_v30  ;;  %v10868_v7 = vld [vmem:[%s10763_s30 + $0x80] sm:$0xff]  ;;  %vm4586_vm8 = vcmask 1042432   ;;  %vm4589_vm9 = vcmask 1044480   ;;  %vm4591_vm10 = vcmask 1045504   ;;  %vm4593_vm11 = vcmask 1046528   ;;  %s11488_s27 = scalar_lea.vmem [#allocation6], %s10612_s19 }
 0x484   : >> { %s4058_s3 = sadd.s32 1, %s8698_s3  }
 0x485   : >> { %p4055_p11 = scmp.ge.s32.totalorder %s4058_s3, 8  }
 0x486   : >> { %v4073_v24 = vld [vmem:[%s4072_s29] sm:$0xff]  ;;  %s7255_s3 = sshll.u32 (%p4055_p11), %s10564_s0, 4  ;;  %s12165_s3 = int_to_ptr.vmem [resolvable:$true] %s7255_s3 }
 0x487   : >> { %4074 = vxpose.xlu0.b32.start.end [1/1] (short) (narrow) %v4073_v24, 32  ;;  %v7503_v1 = vld [vmem:[%s4072_s29 + $0xc0] sm:$0xff] }
 0x488   : >> { %5654 = vxpose.xlu1.b32.start.end [1/1] (short) (narrow) %v7503_v1, 32  ;;  %v7477_v39 = vld [vmem:[%s4072_s29 + $0x40] sm:$0xff] }
 0x489   : >> { %v7490_v57 = vld [vmem:[%s4072_s29 + $0x80] sm:$0xff]  ;;  %s8715_s29 = smov (%p4055_p11), 12  }
 0x494   : >> { %4604 = vxpose.xlu0.b32.start.end [1/1] (short) (narrow) %v7477_v39, 32  ;;  %v12365_v39 = vmov 5  }
 0x4a1   : >> { %5129 = vxpose.xlu0.b32.start.end [1/1] (short) (narrow) %v7490_v57, 32  ;;  %v12638_v57 = vld [vmem:[#allocation26_spill] sm:$0xff] }
 0x4a6   : >> { %8203 = vset.pattern.permute.xlu1 %v12373_v62 }
 0x4ca   : >> { %8220 = vset.pattern.permute.xlu0 %v12363_v27 }
 0x507   : >> { %v4090_v10 = vpop.trf.xlu0 }
 0x508   : >> { %7715 = vmatprep.mubr.msk.f32.mxu0 %vm938_vm3, %v4090_v10  ;;  %v5670_v42 = vpop.trf.xlu1  ;;  %v10760_v10 = vsub.s32 6, %v12638_v57 }
 0x50a   : >> { %12639 = vst [vmem:[#allocation127_spill] sm:$0xff] %v10760_v10 }
 0x50b   : >> { %v4091_v54 = vpop.trf.xlu0 }
 0x50c   : >> { %7716 = vmatmul.mubr.msk.f32.vlgmr.msra.gmra.mrb[0].mxu0 %vm938_vm3, %v4091_v54  ;;  %v5671_v58 = vpop.trf.xlu1  ;;  %v10766_v54 = vld [vmem:[%s10763_s30] sm:$0xff] }
 0x50d   : >> { %7730 = vmatpush3.msk.msra.mxu0 %vm9043_vm4, %v8704_v30 }
 0x50f   : >> { %v4092_v41 = vpop.trf.xlu0 }
 0x510   : >> { %7718 = vmatprep.mubr.msk.f32.mxu0 %vm938_vm3, %v4092_v41  ;;  %v5672_v3 = vpop.trf.xlu1  ;;  %v10773_v41 = vrot.slane %v10766_v54, %v10760_v10 }
 0x512   : >> { %12640 = vst [vmem:[#allocation128_spill] sm:$0xff] %v10773_v41 }
 0x513   : >> { %v4093_v2 = vpop.trf.xlu0 }
 0x514   : >> { %7719 = vmatmul.mubr.msk.f32.gmra.mrb[2].mxu0 %vm938_vm3, %v4093_v2  ;;  %v5673_v17 = vpop.trf.xlu1 }
 0x517   : >> { %v4620_v28 = vpop.trf.xlu0 }
 0x518   : >> { %7723 = vmatprep.mubr.msk.f32.mxu1 %vm938_vm3, %v4620_v28 }
 0x51b   : >> { %v4621_v35 = vpop.trf.xlu0 }
 0x51c   : >> { %7724 = vmatmul.mubr.msk.f32.vlgmr.msra.gmra.mrb[0].mxu1 %vm938_vm3, %v4621_v35 }
 0x51d   : >> { %7738 = vmatpush3.msk.msra.mxu1 %vm9043_vm4, %v8704_v30  ;;  %v12379_v30 = vmov 7  }
 0x51f   : >> { %v4622_v47 = vpop.trf.xlu0 }
 0x520   : >> { %7726 = vmatprep.mubr.msk.f32.mxu1 %vm938_vm3, %v4622_v47  ;;  %v10793_v47 = vld [vmem:[%s10790_s21 + $0x40] sm:$0xff] }
 0x523   : >> { %v4623_v34 = vpop.trf.xlu0 }
 0x524   : >> { %7727 = vmatmul.mubr.msk.f32.gmra.mrb[2].mxu1 %vm938_vm3, %v4623_v34 }
 0x525   : >> { %7739 = vmatprep.mubr.msk.f32.mxu1 %vm938_vm3, %v5670_v42 }
 0x527   : >> { %v5145_v37 = vpop.trf.xlu0 }
 0x528   : >> { %7731 = vmatprep.mubr.msk.f32.mxu0 %vm938_vm3, %v5145_v37  ;;  %7740 = vmatmul.mubr.msk.f32.vlgmr.msra.gmra.mrb[4].mxu1 %vm938_vm3, %v5671_v58  ;;  %v10796_v58 = vld [vmem:[%s10790_s21] sm:$0xff] }
 0x529   : >> { %7742 = vmatprep.mubr.msk.f32.mxu1 %vm938_vm3, %v5672_v3  ;;  %v10801_v3 = vld [vmem:[%s10763_s30 + $0x40] sm:$0xff] }
 0x52a   : >> { %v10805_v37 = vld [vmem:[%s10790_s21 + $0x80] sm:$0xff] }
 0x52b   : >> { %v5146_v50 = vpop.trf.xlu0 }
 0x52c   : >> { %7732 = vmatmul.mubr.msk.f32.vlgmr.msra.gmra.mrb[4].mxu0 %vm938_vm3, %v5146_v50  ;;  %7743 = vmatmul.mubr.msk.f32.gmra.mrb[6].mxu1 %vm938_vm3, %v5673_v17  ;;  %v12643_v17 = vld [vmem:[#allocation59_spill] sm:$0xff] }
 0x52d   : >> { %v10810_v50 = vrot.slane %v10793_v47, %v12643_v17  ;;  %v10880_v29 = vrot.slane %v10801_v3, %v12643_v17  ;;  %v10888_v12 = vrot.slane %v10766_v54, %v12643_v17 }
 0x52f   : >> { %v5147_v22 = vpop.trf.xlu0  ;;  %12659 = vst [vmem:[#allocation140_spill] sm:$0xff] %v10888_v12 }
 0x530   : >> { %7734 = vmatprep.mubr.msk.f32.mxu0 %vm938_vm3, %v5147_v22  ;;  %v10814_v22 = vrot.slane %v10796_v58, %v12643_v17 }
 0x533   : >> { %v5148_v13 = vpop.trf.xlu0 }
 0x534   : >> { %7735 = vmatmul.mubr.msk.f32.gmra.mrb[6].mxu0 %vm938_vm3, %v5148_v13  ;;  %v10819_v13 = vrot.slane %v10801_v3, %v10760_v10 }
 0x536   : >> { %12644 = vst [vmem:[#allocation131_spill] sm:$0xff] %v10819_v13 }
 0x5df   : >> { %v10649_v15 = vpop.f32.mrb[0].mxu0 }
 0x5e0   : >> { %4222 = vperm.xlu1 %8203, %v10649_v15   ;;  %v10652_v25 = vpop.f32.mrb[1].mxu0 }
 0x5e1   : >> { %4502 = vperm.xlu0 %8220, %v10652_v25  }
 0x5e4   : >> { %8204 = vset.pattern.permute.xlu1 %v12361_v49 }
 0x5e5   : >> { %4271 = vperm.xlu1 %8204, %v10649_v15  }
 0x5e7   : >> { %v10657_v40 = vpop.f32.mrb[2].mxu0 }
 0x5e8   : >> { %v10659_v38 = vpop.f32.mrb[3].mxu0 }
 0x5e9   : >> { %8205 = vset.pattern.permute.xlu1 %v12371_v31 }
 0x5ea   : >> { %4318 = vperm.xlu1 %8205, %v10649_v15  }
 0x5ee   : >> { %8206 = vset.pattern.permute.xlu1 %v12369_v18 }
 0x5ef   : >> { %4365 = vperm.xlu1 %8206, %v10649_v15   ;;  %v10665_v4 = vpop.f32.mrb[0].mxu1 }
 0x5f0   : >> { %v10667_v21 = vpop.f32.mrb[1].mxu1 }
 0x5f1   : >> { %5032 = vperm.xlu0 %8220, %v10667_v21  }
 0x5f3   : >> { %8207 = vset.pattern.permute.xlu1 %v12367_v63 }
 0x5f4   : >> { %4412 = vperm.xlu1 %8207, %v10649_v15  }
 0x5f5   : >> { %4522 = vperm.xlu0 %8220, %v10657_v40  }
 0x5f7   : >> { %v10673_v32 = vpop.f32.mrb[2].mxu1 }
 0x5f8   : >> { %8208 = vset.pattern.permute.xlu1 %v12363_v27  ;;  %v10676_v23 = vpop.f32.mrb[3].mxu1 }
 0x5f9   : >> { %4506 = vperm.xlu1 %8208, %v10649_v15   ;;  %5048 = vperm.xlu0 %8220, %v10676_v23  }
 0x5fb   : >> { %v10680_v14 = vpop.f32.mrb[4].mxu1 }
 0x5fc   : >> { %12634 = vst [vmem:[#allocation123_spill] sm:$0xff] %v10680_v14  ;;  %v10682_v45 = vpop.f32.mrb[5].mxu1 }
 0x5fd   : >> { %12635 = vst [vmem:[#allocation124_spill] sm:$0xff] %v10682_v45  ;;  %8209 = vset.pattern.permute.xlu1 %v12373_v62 }
 0x5fe   : >> { %4752 = vperm.xlu1 %8209, %v10665_v4  }
 0x5ff   : >> { %v10686_v9 = vpop.f32.mrb[4].mxu0  ;;  %v10688_v59 = vpop.f32.mrb[6].mxu1 }
 0x600   : >> { %12636 = vst [vmem:[#allocation125_spill] sm:$0xff] %v10688_v59  ;;  %5561 = vperm.xlu0 %8220, %v10686_v9   ;;  %v10691_v48 = vpop.f32.mrb[5].mxu0  ;;  %v10693_v24 = vpop.f32.mrb[7].mxu1 }
 0x601   : >> { %12637 = vst [vmem:[#allocation126_spill] sm:$0xff] %v10693_v24 }
 0x602   : >> { %8210 = vset.pattern.permute.xlu1 %v12361_v49 }
 0x603   : >> { %4801 = vperm.xlu1 %8210, %v10665_v4  }
 0x604   : >> { %8265 = vset.pattern.permute.xlu0 %v12373_v62 }
 0x605   : >> { %4217 = vperm.xlu0 %8265, %v10652_v25  }
 0x607   : >> { %8211 = vset.pattern.permute.xlu1 %v12371_v31  ;;  %v10700_v1 = vpop.f32.mrb[6].mxu0 }
 0x608   : >> { %4848 = vperm.xlu1 %8211, %v10665_v4  }
 0x609   : >> { %5277 = vperm.xlu0 %8265, %v10686_v9  }
 0x60c   : >> { %8212 = vset.pattern.permute.xlu1 %v12369_v18 }
 0x60d   : >> { %4895 = vperm.xlu1 %8212, %v10665_v4   ;;  %5802 = vperm.xlu0 %8265, %v10680_v14  }
 0x611   : >> { %8213 = vset.pattern.permute.xlu1 %v12367_v63  ;;  %8268 = vset.pattern.permute.xlu0 %v12361_v49 }
 0x612   : >> { %4942 = vperm.xlu1 %8213, %v10665_v4   ;;  %4817 = vperm.xlu0 %8268, %v10673_v32  }
 0x616   : >> { %8214 = vset.pattern.permute.xlu1 %v12363_v27  ;;  %5322 = vperm.xlu0 %8268, %v10691_v48   ;;  %v10830_v27 = vrot.slane %v10805_v37, %v12643_v17 }
 0x617   : >> { %5036 = vperm.xlu1 %8214, %v10665_v4  }
 0x618   : >> { %12647 = vst [vmem:[#allocation133_spill] sm:$0xff] %v10830_v27 }
 0x61a   : >> { %5342 = vperm.xlu0 %8268, %v10700_v1  }
 0x61b   : >> { %8215 = vset.pattern.permute.xlu1 %v12379_v30 }
 0x61c   : >> { %5083 = vperm.xlu1 %8215, %v10665_v4  }
 0x61e   : >> { %5847 = vperm.xlu0 %8268, %v10682_v45  }
 0x620   : >> { %8216 = vset.pattern.permute.xlu1 %v12361_v49 }
 0x621   : >> { %4267 = vperm.xlu1 %8216, %v10652_v25  }
 0x622   : >> { %5867 = vperm.xlu0 %8268, %v10688_v59  }
 0x625   : >> { %8217 = vset.pattern.permute.xlu1 %v12371_v31 }
 0x626   : >> { %4314 = vperm.xlu1 %8217, %v10652_v25   ;;  %8270 = vset.pattern.permute.xlu0 %v12371_v31 }
 0x627   : >> { %5373 = vperm.xlu0 %8270, %v10686_v9  }
 0x62a   : >> { %8218 = vset.pattern.permute.xlu1 %v12369_v18 }
 0x62b   : >> { %4361 = vperm.xlu1 %8218, %v10652_v25   ;;  %5898 = vperm.xlu0 %8270, %v10680_v14  }
 0x62f   : >> { %8219 = vset.pattern.permute.xlu1 %v12365_v39  ;;  %8272 = vset.pattern.permute.xlu0 %v12369_v18 }
 0x630   : >> { %4455 = vperm.xlu1 %8219, %v10652_v25   ;;  %5416 = vperm.xlu0 %8272, %v10691_v48  }
 0x634   : >> { %8221 = vset.pattern.permute.xlu1 %v12379_v30  ;;  %5436 = vperm.xlu0 %8272, %v10700_v1  }
 0x635   : >> { %4549 = vperm.xlu1 %8221, %v10652_v25  }
 0x638   : >> { %5941 = vperm.xlu0 %8272, %v10682_v45  }
 0x639   : >> { %8222 = vset.pattern.permute.xlu1 %v12373_v62 }
 0x63a   : >> { %4747 = vperm.xlu1 %8222, %v10667_v21  }
 0x63c   : >> { %5961 = vperm.xlu0 %8272, %v10688_v59  }
 0x63e   : >> { %8223 = vset.pattern.permute.xlu1 %v12361_v49 }
 0x63f   : >> { %4797 = vperm.xlu1 %8223, %v10667_v21  }
 0x640   : >> { %8277 = vset.pattern.permute.xlu0 %v12367_v63 }
 0x641   : >> { %4408 = vperm.xlu0 %8277, %v10652_v25   ;;  %v10821_v25 = vpop.f32.mrb[7].mxu0 }
 0x643   : >> { %8224 = vset.pattern.permute.xlu1 %v12371_v31 }
 0x644   : >> { %4844 = vperm.xlu1 %8224, %v10667_v21  }
 0x645   : >> { %4428 = vperm.xlu0 %8277, %v10657_v40  }
 0x648   : >> { %8225 = vset.pattern.permute.xlu1 %v12369_v18 }
 0x649   : >> { %4891 = vperm.xlu1 %8225, %v10667_v21   ;;  %5467 = vperm.xlu0 %8277, %v10686_v9  }
 0x64d   : >> { %8226 = vset.pattern.permute.xlu1 %v12367_v63  ;;  %5988 = vperm.xlu0 %8277, %v10682_v45  }
 0x64e   : >> { %4938 = vperm.xlu1 %8226, %v10667_v21  }
 0x651   : >> { %6004 = vperm.xlu0 %8277, %v10693_v24  }
 0x652   : >> { %8227 = vset.pattern.permute.xlu1 %v12365_v39 }
 0x653   : >> { %4985 = vperm.xlu1 %8227, %v10667_v21  }
 0x655   : >> { %8279 = vset.pattern.permute.xlu0 %v12365_v39 }
 0x656   : >> { %4459 = vperm.xlu0 %8279, %v10649_v15  }
 0x657   : >> { %8228 = vset.pattern.permute.xlu1 %v12373_v62  ;;  %v12649_v62 = vld [vmem:[#allocation56_spill] sm:$0xff] }
 0x658   : >> { %4240 = vperm.xlu1 %8228, %v10657_v40   ;;  %v10842_v52 = vrot.slane %v10796_v58, %v12649_v62 }
 0x65a   : >> { %4989 = vperm.xlu0 %8279, %v10665_v4  }
 0x65c   : >> { %8229 = vset.pattern.permute.xlu1 %v12361_v49 }
 0x65d   : >> { %4287 = vperm.xlu1 %8229, %v10657_v40  }
 0x65e   : >> { %5510 = vperm.xlu0 %8279, %v10691_v48  }
 0x65f   : >> { %v10776_v2 = vpop.permute.xlu1 %4222 }
 0x660   : >> { %v4503_v28 = vpop.permute.xlu0 %4502 }
 0x661   : >> { %v10779_v42 = vmul.f32 %v10773_v41, %v4503_v28  ;;  %8230 = vset.pattern.permute.xlu1 %v12371_v31  ;;  %v12646_v28 = vld [vmem:[#allocation14_spill] sm:$0xff] }
 0x662   : >> { %4334 = vperm.xlu1 %8230, %v10657_v40   ;;  %5530 = vperm.xlu0 %8279, %v10700_v1   ;;  %v4207_v49 = vmul.f32 %v10814_v22, %v12646_v28 }
 0x664   : >> { %v10784_v35 = vpop.permute.xlu1 %4271  ;;  %v4209_v20 = vmul.f32 1.442695, %v4207_v49 }
 0x665   : >> { %12641 = vst [vmem:[#allocation129_spill] sm:$0xff] %v10784_v35 }
 0x666   : >> { %8231 = vset.pattern.permute.xlu1 %v12369_v18  ;;  %6039 = vperm.xlu0 %8279, %v10680_v14   ;;  %8285 = vpow2.f32 %v4209_v20 }
 0x667   : >> { %4381 = vperm.xlu1 %8231, %v10657_v40  }
 0x669   : >> { %v10798_v34 = vpop.permute.xlu1 %4318 }
 0x66a   : >> { %12642 = vst [vmem:[#allocation130_spill] sm:$0xff] %v10798_v34  ;;  %6055 = vperm.xlu0 %8279, %v10688_v59  }
 0x66b   : >> { %8232 = vset.pattern.permute.xlu1 %v12365_v39  ;;  %v12648_v39 = vld [vmem:[#allocation15_spill] sm:$0xff] }
 0x66c   : >> { %4475 = vperm.xlu1 %8232, %v10657_v40   ;;  %v4738_v63 = vmul.f32 %v10810_v50, %v12648_v39  ;;  %v5263_v8 = vmul.f32 %v10830_v27, %v12648_v39 }
 0x66e   : >> { %v10823_v4 = vpop.permute.xlu1 %4365  ;;  %8282 = vset.pattern.permute.xlu0 %v12379_v30  ;;  %v4741_v26 = vmul.f32 1.442695, %v4738_v63  ;;  %v5266_v49 = vmul.f32 1.442695, %v5263_v8  ;;  %v10874_v8 = vrot.slane %v10868_v7, %v10760_v10 }
 0x66f   : >> { %12645 = vst [vmem:[#allocation132_spill] sm:$0xff] %v10823_v4  ;;  %4553 = vperm.xlu0 %8282, %v10649_v15  }
 0x670   : >> { %8233 = vset.pattern.permute.xlu1 %v12379_v30  ;;  %v5033_v18 = vpop.permute.xlu0 %5032  ;;  %v12651_v30 = vmov 0   ;;  %8287 = vpow2.f32 %v4741_v26  ;;  %12656 = vst [vmem:[#allocation138_spill] sm:$0xff] %v10874_v8 }
 0x671   : >> { %4569 = vperm.xlu1 %8233, %v10657_v40   ;;  %v10838_v31 = vmul.f32 %v10819_v13, %v5033_v18  ;;  %v10851_v40 = vrot.slane %v10793_v47, %v12649_v62  ;;  %v4258_v18 = vmul.f32 %v10842_v52, %v12646_v28  ;;  %8289 = vpow2.f32 %v5266_v49  ;;  %v8286_v49 = vpop.eup %8285 }
 0x673   : >> { %v10846_v15 = vpop.permute.xlu1 %4412  ;;  %5079 = vperm.xlu0 %8282, %v10667_v21   ;;  %v4789_v21 = vmul.f32 %v10851_v40, %v12648_v39  ;;  %v4260_v19 = vmul.f32 1.442695, %v4258_v18 }
 0x674   : >> { %12650 = vst [vmem:[#allocation134_spill] sm:$0xff] %v10846_v15  ;;  %v10856_v33 = vpop.permute.xlu0 %4522 }
 0x675   : >> { %8234 = vset.pattern.permute.xlu1 %v12651_v30  ;;  %12652 = vst [vmem:[#allocation135_spill] sm:$0xff] %v10856_v33  ;;  %v4792_v20 = vmul.f32 1.442695, %v4789_v21  ;;  %8291 = vpow2.f32 %v4260_v19  ;;  %v12668_v33 = vld [vmem:[#allocation55_spill] sm:$0xff] }
 0x676   : >> { %4770 = vperm.xlu1 %8234, %v10673_v32  }
 0x677   : >> { %5099 = vperm.xlu0 %8282, %v10673_v32   ;;  %8293 = vpow2.f32 %v4792_v20  ;;  %v4213_v20 = vmul.f32 %v8694_v55, %v8286_v49  ;;  %v10902_v55 = vld [vmem:[%s10763_s30 + $0xc0] sm:$0xff] }
 0x678   : >> { %v10862_v63 = vpop.permute.xlu1 %4506  ;;  %v10864_v61 = vpop.permute.xlu0 %5048 }
 0x679   : >> { %12653 = vst [vmem:[#allocation136_spill] sm:$0xff] %v10862_v63  ;;  %12654 = vst [vmem:[#allocation137_spill] sm:$0xff] %v10864_v61 }
 0x67a   : >> { %8235 = vset.pattern.permute.xlu1 %v12655_v5  ;;  %v8288_v53 = vpop.eup %8287 }
 0x67b   : >> { %4864 = vperm.xlu1 %8235, %v10673_v32   ;;  %5604 = vperm.xlu0 %8282, %v10691_v48   ;;  %v8290_v0 = vpop.eup %8289  ;;  %v4744_v16 = vmul.f32 %v8682_v43, %v8288_v53 }
 0x67c   : >> { %v5269_v53 = vmul.f32 %v8674_v56, %v8290_v0 }
 0x67d   : >> { %v4753_v26 = vpop.permute.xlu1 %4752 }
 0x67e   : >> { %v4760_v36 = vmul.f32 %v10880_v29, %v4753_v26 }
 0x67f   : >> { %8236 = vset.pattern.permute.xlu1 %v12657_v60  ;;  %v5562_v18 = vpop.permute.xlu0 %5561  ;;  %5624 = vperm.xlu0 %8282, %v10700_v1  }
 0x680   : >> { %4911 = vperm.xlu1 %8236, %v10673_v32   ;;  %v10884_v21 = vmul.f32 %v10874_v8, %v5562_v18  ;;  %v10899_v8 = vrot.slane %v10868_v7, %v12643_v17  ;;  %v10909_v43 = vadd.f32 %v4760_v36, %v4744_v16 }
 0x682   : >> { %12658 = vst [vmem:[#allocation139_spill] sm:$0xff] %v10884_v21  ;;  %v4802_v19 = vpop.permute.xlu1 %4801  ;;  %12661 = vst [vmem:[#allocation141_spill] sm:$0xff] %v10899_v8  ;;  %v8292_v21 = vpop.eup %8291 }
 0x683   : >> { %6145 = vperm.xlu0 %8282, %v10693_v24   ;;  %12663 = vst [vmem:[#allocation143_spill] sm:$0xff] %v10909_v43  ;;  %v8294_v14 = vpop.eup %8293  ;;  %v12664_v24 = vmov 5  }
 0x684   : >> { %8237 = vset.pattern.permute.xlu1 %v12660_v51  ;;  %v4218_v46 = vpop.permute.xlu0 %4217 }
 0x685   : >> { %v4229_v18 = vmul.f32 %v10888_v12, %v4218_v46  ;;  %4958 = vperm.xlu1 %8237, %v10673_v32   ;;  %v10913_v46 = vrot.slane %v10801_v3, %v12649_v62 }
 0x687   : >> { %v10904_v49 = vadd.f32 %v4229_v18, %v4213_v20  ;;  %v10906_v27 = vpop.permute.xlu1 %4848  ;;  %v10920_v20 = vrot.slane %v10902_v55, %v12643_v17  ;;  %v4809_v36 = vmul.f32 %v10913_v46, %v4802_v19  ;;  %v4795_v18 = vmul.f32 %v8294_v14, %v10909_v43 }
 0x688   : >> { %v5278_v26 = vpop.permute.xlu0 %5277 }
 0x689   : >> { %12662 = vst [vmem:[#allocation142_spill] sm:$0xff] %v10904_v49  ;;  %v4264_v59 = vmul.f32 %v8292_v21, %v10904_v49  ;;  %8238 = vset.pattern.permute.xlu1 %v12664_v24  ;;  %v5285_v45 = vmul.f32 %v10899_v8, %v5278_v26  ;;  %12665 = vst [vmem:[#allocation144_spill] sm:$0xff] %v10920_v20  ;;  %v10934_v26 = vrot.slane %v10796_v58, %v12668_v33  ;;  %v12669_v8 = vmov 6  }
 0x68a   : >> { %5005 = vperm.xlu1 %8238, %v10673_v32   ;;  %v10977_v49 = vrot.slane %v10902_v55, %v12649_v62 }
 0x68b   : >> { %v10923_v0 = vadd.f32 %v5285_v45, %v5269_v53  ;;  %v10938_v45 = vadd.f32 %v4809_v36, %v4795_v18  ;;  %v4305_v19 = vmul.f32 %v10934_v26, %v12646_v28 }
 0x68c   : >> { %v10926_v16 = vpop.permute.xlu1 %4895  ;;  %v5803_v56 = vpop.permute.xlu0 %5802  ;;  %12681 = vst [vmem:[#allocation156_spill] sm:$0xff] %v10977_v49 }
 0x68d   : >> { %12666 = vst [vmem:[#allocation145_spill] sm:$0xff] %v10923_v0  ;;  %v10930_v21 = vmul.f32 %v10920_v20, %v5803_v56  ;;  %v10949_v56 = vrot.slane %v10868_v7, %v12649_v62  ;;  %v12673_v20 = vld [vmem:[#allocation54_spill] sm:$0xff]  ;;  %v4307_v36 = vmul.f32 1.442695, %v4305_v19 }
 0x68e   : >> { %8239 = vset.pattern.permute.xlu1 %v12669_v8  ;;  %v10953_v43 = vrot.slane %v10796_v58, %v12673_v20 }
 0x68f   : >> { %12667 = vst [vmem:[#allocation146_spill] sm:$0xff] %v10930_v21  ;;  %5052 = vperm.xlu1 %8239, %v10673_v32   ;;  %12672 = vst [vmem:[#allocation149_spill] sm:$0xff] %v10949_v56  ;;  %v10957_v32 = vsub.s32 4, %v12638_v57  ;;  %v12678_v21 = vmov 1   ;;  %8295 = vpow2.f32 %v4307_v36 }
 0x690   : >> { %12674 = vst [vmem:[#allocation150_spill] sm:$0xff] %v10953_v43 }
 0x691   : >> { %v10942_v53 = vpop.permute.xlu1 %4942  ;;  %v4818_v41 = vpop.permute.xlu0 %4817  ;;  %12675 = vst [vmem:[#allocation151_spill] sm:$0xff] %v10957_v32  ;;  %v10970_v44 = vrot.slane %v10796_v58, %v10957_v32 }
 0x692   : >> { %12670 = vst [vmem:[#allocation147_spill] sm:$0xff] %v10942_v53  ;;  %v10945_v14 = vmul.f32 %v4818_v41, %v10938_v45  ;;  %v4352_v41 = vmul.f32 %v10953_v43, %v12646_v28 }
 0x693   : >> { %8240 = vset.pattern.permute.xlu1 %v12651_v30  ;;  %12679 = vst [vmem:[#allocation154_spill] sm:$0xff] %v10970_v44 }
 0x694   : >> { %12671 = vst [vmem:[#allocation148_spill] sm:$0xff] %v10945_v14  ;;  %4235 = vperm.xlu1 %8240, %v10659_v38   ;;  %v4354_v19 = vmul.f32 1.442695, %v4352_v41  ;;  %v10990_v41 = vrot.slane %v10766_v54, %v12649_v62 }
 0x695   : >> { %v5323_v18 = vpop.permute.xlu0 %5322 }
 0x696   : >> { %v10962_v14 = vpop.permute.xlu1 %5036  ;;  %v10965_v63 = vmul.f32 %v10949_v56, %v5323_v18  ;;  %v4399_v18 = vmul.f32 %v10970_v44, %v12646_v28  ;;  %8297 = vpow2.f32 %v4354_v19  ;;  %12684 = vst [vmem:[#allocation159_spill] sm:$0xff] %v10990_v41 }
 0x697   : >> { %12676 = vst [vmem:[#allocation152_spill] sm:$0xff] %v10962_v14  ;;  %v11017_v14 = vrot.slane %v10902_v55, %v12668_v33 }
 0x698   : >> { %12677 = vst [vmem:[#allocation153_spill] sm:$0xff] %v10965_v63  ;;  %8241 = vset.pattern.permute.xlu1 %v12678_v21 }
 0x699   : >> { %4283 = vperm.xlu1 %8241, %v10659_v38   ;;  %v10973_v15 = vpop.permute.xlu0 %5342  ;;  %12690 = vst [vmem:[#allocation165_spill] sm:$0xff] %v11017_v14 }
 0x69a   : >> { %12680 = vst [vmem:[#allocation155_spill] sm:$0xff] %v10973_v15  ;;  %v4401_v15 = vmul.f32 1.442695, %v4399_v18  ;;  %v11001_v18 = vrot.slane %v10868_v7, %v12668_v33 }
 0x69b   : >> { %v10981_v63 = vpop.permute.xlu1 %5083 }
 0x69c   : >> { %12682 = vst [vmem:[#allocation157_spill] sm:$0xff] %v10981_v63  ;;  %v8296_v63 = vpop.eup %8295  ;;  %8299 = vpow2.f32 %v4401_v15  ;;  %12687 = vst [vmem:[#allocation162_spill] sm:$0xff] %v11001_v18 }
 0x69d   : >> { %8242 = vset.pattern.permute.xlu1 %v12655_v5  ;;  %v5848_v36 = vpop.permute.xlu0 %5847 }
 0x69e   : >> { %4330 = vperm.xlu1 %8242, %v10659_v38   ;;  %v10986_v56 = vmul.f32 %v10977_v49, %v5848_v36  ;;  %v4737_v36 = vmul.f32 %v10810_v50, %v12646_v28 }
 0x6a0   : >> { %12683 = vst [vmem:[#allocation158_spill] sm:$0xff] %v10986_v56  ;;  %v4268_v61 = vpop.permute.xlu1 %4267  ;;  %v4739_v50 = vmul.f32 1.442695, %v4737_v36 }
 0x6a1   : >> { %v4278_v4 = vmul.f32 %v10990_v41, %v4268_v61  ;;  %v10993_v13 = vpop.permute.xlu0 %5867  ;;  %v11007_v61 = vrot.slane %v10766_v54, %v12668_v33 }
 0x6a2   : >> { %12685 = vst [vmem:[#allocation160_spill] sm:$0xff] %v10993_v13  ;;  %8243 = vset.pattern.permute.xlu1 %v12657_v60  ;;  %8301 = vpow2.f32 %v4739_v50 }
 0x6a3   : >> { %v10996_v19 = vadd.f32 %v4278_v4, %v4264_v59  ;;  %4377 = vperm.xlu1 %8243, %v10659_v38   ;;  %12688 = vst [vmem:[#allocation163_spill] sm:$0xff] %v11007_v61  ;;  %v8298_v4 = vpop.eup %8297 }
 0x6a5   : >> { %12686 = vst [vmem:[#allocation161_spill] sm:$0xff] %v10996_v19  ;;  %v4315_v13 = vpop.permute.xlu1 %4314  ;;  %v4311_v49 = vmul.f32 %v8296_v63, %v10996_v19  ;;  %v11024_v63 = vrot.slane %v10766_v54, %v12673_v20 }
 0x6a6   : >> { %v4325_v15 = vmul.f32 %v11007_v61, %v4315_v13  ;;  %v5374_v59 = vpop.permute.xlu0 %5373  ;;  %v11027_v13 = vsub.s32 5, %v12638_v57  ;;  %v11038_v61 = vrot.slane %v10793_v47, %v12668_v33 }
 0x6a7   : >> { %8244 = vset.pattern.permute.xlu1 %v12660_v51  ;;  %v11013_v56 = vmul.f32 %v11001_v18, %v5374_v59  ;;  %12692 = vst [vmem:[#allocation167_spill] sm:$0xff] %v11024_v63  ;;  %v4788_v59 = vmul.f32 %v10851_v40, %v12646_v28  ;;  %v11043_v40 = vrot.slane %v10868_v7, %v12673_v20 }
 0x6a8   : >> { %v11019_v17 = vadd.f32 %v4325_v15, %v4311_v49  ;;  %4424 = vperm.xlu1 %8244, %v10659_v38   ;;  %12693 = vst [vmem:[#allocation168_spill] sm:$0xff] %v11027_v13  ;;  %v8300_v15 = vpop.eup %8299 }
 0x6a9   : >> { %12689 = vst [vmem:[#allocation164_spill] sm:$0xff] %v11013_v56  ;;  %12695 = vst [vmem:[#allocation170_spill] sm:$0xff] %v11043_v40 }
 0x6aa   : >> { %12691 = vst [vmem:[#allocation166_spill] sm:$0xff] %v11019_v17  ;;  %v4362_v18 = vpop.permute.xlu1 %4361  ;;  %v4358_v56 = vmul.f32 %v8298_v4, %v11019_v17  ;;  %v5899_v19 = vpop.permute.xlu0 %5898  ;;  %v4835_v4 = vmul.f32 %v11038_v61, %v12646_v28 }
 0x6ab   : >> { %v4372_v36 = vmul.f32 %v11024_v63, %v4362_v18  ;;  %v11034_v49 = vmul.f32 %v11017_v14, %v5899_v19  ;;  %v11050_v19 = vrot.slane %v10796_v58, %v11027_v13  ;;  %v4790_v18 = vmul.f32 1.442695, %v4788_v59 }
 0x6ac   : >> { %8245 = vset.pattern.permute.xlu1 %v12664_v24  ;;  %v11068_v59 = vrot.slane %v10793_v47, %v12673_v20  ;;  %v11071_v63 = vsub.s32 7, %v12638_v57  ;;  %v11087_v57 = vrot.slane %v10902_v55, %v12673_v20 }
 0x6ad   : >> { %12694 = vst [vmem:[#allocation169_spill] sm:$0xff] %v11034_v49  ;;  %v11045_v34 = vadd.f32 %v4372_v36, %v4358_v56  ;;  %4471 = vperm.xlu1 %8245, %v10659_v38   ;;  %12697 = vst [vmem:[#allocation172_spill] sm:$0xff] %v11050_v19  ;;  %v4446_v17 = vmul.f32 %v11050_v19, %v12646_v28  ;;  %v11064_v36 = vrot.slane %v10796_v58, %v10760_v10 }
 0x6ae   : >> { %12700 = vst [vmem:[#allocation175_spill] sm:$0xff] %v11071_v63  ;;  %8303 = vpow2.f32 %v4790_v18  ;;  %12702 = vst [vmem:[#allocation177_spill] sm:$0xff] %v11087_v57 }
 0x6af   : >> { %12696 = vst [vmem:[#allocation171_spill] sm:$0xff] %v11045_v34  ;;  %v11054_v50 = vpop.permute.xlu1 %4455  ;;  %v5417_v14 = vpop.permute.xlu0 %5416  ;;  %v4405_v49 = vmul.f32 %v8300_v15, %v11045_v34  ;;  %12699 = vst [vmem:[#allocation174_spill] sm:$0xff] %v11064_v36  ;;  %v4837_v15 = vmul.f32 1.442695, %v4835_v4  ;;  %v4493_v18 = vmul.f32 %v11064_v36, %v12646_v28 }
 0x6b0   : >> { %v11060_v56 = vmul.f32 %v11043_v40, %v5417_v14  ;;  %v4448_v14 = vmul.f32 1.442695, %v4446_v17  ;;  %v11079_v40 = vrot.slane %v10796_v58, %v11071_v63  ;;  %v8302_v4 = vpop.eup %8301  ;;  %v11094_v17 = vrot.slane %v10793_v47, %v10957_v32 }
 0x6b1   : >> { %8246 = vset.pattern.permute.xlu1 %v12669_v8  ;;  %v12703_v8 = vmov 7   ;;  %8305 = vpow2.f32 %v4837_v15  ;;  %v4495_v36 = vmul.f32 1.442695, %v4493_v18  ;;  %v4743_v35 = vmul.f32 %v8686_v6, %v8302_v4 }
 0x6b2   : >> { %12698 = vst [vmem:[#allocation173_spill] sm:$0xff] %v11060_v56  ;;  %4518 = vperm.xlu1 %8246, %v10659_v38   ;;  %v4882_v56 = vmul.f32 %v11068_v59, %v12646_v28  ;;  %8307 = vpow2.f32 %v4448_v14  ;;  %v4929_v53 = vmul.f32 %v11094_v17, %v12646_v28  ;;  %v11120_v4 = vrot.slane %v10793_v47, %v10760_v10 }
 0x6b3   : >> { %v11075_v34 = vpop.permute.xlu0 %5436 }
 0x6b4   : >> { %12701 = vst [vmem:[#allocation176_spill] sm:$0xff] %v11075_v34  ;;  %v11083_v19 = vpop.permute.xlu1 %4549  ;;  %v4540_v34 = vmul.f32 %v11079_v40, %v12646_v28  ;;  %v4884_v44 = vmul.f32 1.442695, %v4882_v56  ;;  %v11111_v56 = vrot.slane %v10793_v47, %v11027_v13  ;;  %v4931_v18 = vmul.f32 1.442695, %v4929_v53 }
 0x6b6   : >> { %8247 = vset.pattern.permute.xlu1 %v12703_v8  ;;  %v4542_v14 = vmul.f32 1.442695, %v4540_v34  ;;  %8309 = vpow2.f32 %v4884_v44  ;;  %v11125_v34 = vrot.slane %v10766_v54, %v10957_v32 }
 0x6b7   : >> { %4565 = vperm.xlu1 %8247, %v10659_v38   ;;  %v5942_v58 = vpop.permute.xlu0 %5941  ;;  %8311 = vpow2.f32 %v4495_v36 }
 0x6b8   : >> { %v11100_v41 = vmul.f32 %v11087_v57, %v5942_v58  ;;  %v8304_v12 = vpop.eup %8303  ;;  %8313 = vpow2.f32 %v4542_v14  ;;  %v11143_v14 = vrot.slane %v10793_v47, %v11071_v63  ;;  %v11159_v47 = vrot.slane %v10868_v7, %v10957_v32 }
 0x6b9   : >> { %v4748_v43 = vpop.permute.xlu1 %4747  ;;  %8315 = vpow2.f32 %v4931_v18  ;;  %v5023_v18 = vmul.f32 %v11120_v4, %v12646_v28 }
 0x6ba   : >> { %12704 = vst [vmem:[#allocation178_spill] sm:$0xff] %v11100_v41  ;;  %v4759_v15 = vmul.f32 %v10880_v29, %v4748_v43  ;;  %v4976_v29 = vmul.f32 %v11111_v56, %v12646_v28  ;;  %12709 = vst [vmem:[#allocation183_spill] sm:$0xff] %v11159_v47 }
 0x6bb   : >> { %8248 = vset.pattern.permute.xlu1 %v12651_v30  ;;  %v11107_v38 = vpop.permute.xlu0 %5961 }
 0x6bc   : >> { %12705 = vst [vmem:[#allocation179_spill] sm:$0xff] %v11107_v38  ;;  %4765 = vperm.xlu1 %8248, %v10676_v23   ;;  %v11114_v6 = vadd.f32 %v4759_v15, %v4743_v35  ;;  %v8306_v35 = vpop.eup %8305  ;;  %v11131_v15 = vrot.slane %v10766_v54, %v11027_v13  ;;  %v4978_v57 = vmul.f32 1.442695, %v4976_v29 }
 0x6bd   : >> { %v8308_v36 = vpop.eup %8307 }
 0x6be   : >> { %12706 = vst [vmem:[#allocation180_spill] sm:$0xff] %v11114_v6  ;;  %v4798_v43 = vpop.permute.xlu1 %4797  ;;  %v4794_v58 = vmul.f32 %v8304_v12, %v11114_v6  ;;  %v4466_v10 = vmul.f32 %v11131_v15, %v11054_v50  ;;  %8317 = vpow2.f32 %v4978_v57  ;;  %v11168_v50 = vrot.slane %v10801_v3, %v12673_v20 }
 0x6bf   : >> { %v4808_v44 = vmul.f32 %v10913_v46, %v4798_v43  ;;  %v11139_v46 = vrot.slane %v10801_v3, %v12668_v33  ;;  %v11183_v20 = vrot.slane %v10902_v55, %v10957_v32 }
 0x6c0   : >> { %8249 = vset.pattern.permute.xlu1 %v12678_v21  ;;  %v4409_v53 = vpop.permute.xlu0 %4408  ;;  %v8310_v29 = vpop.eup %8309 }
 0x6c1   : >> { %v4419_v38 = vmul.f32 %v11125_v34, %v4409_v53  ;;  %4813 = vperm.xlu1 %8249, %v10676_v23   ;;  %v11135_v12 = vadd.f32 %v4808_v44, %v4794_v58  ;;  %12711 = vst [vmem:[#allocation185_spill] sm:$0xff] %v11183_v20 }
 0x6c3   : >> { %12707 = vst [vmem:[#allocation181_spill] sm:$0xff] %v11135_v12  ;;  %v11147_v43 = vadd.f32 %v4419_v38, %v4405_v49  ;;  %v4845_v41 = vpop.permute.xlu1 %4844  ;;  %v4841_v53 = vmul.f32 %v8306_v35, %v11135_v12  ;;  %v8312_v49 = vpop.eup %8311  ;;  %v5070_v35 = vmul.f32 %v11143_v14, %v12646_v28  ;;  %v11174_v12 = vrot.slane %v10766_v54, %v11071_v63 }
 0x6c4   : >> { %v4855_v58 = vmul.f32 %v11139_v46, %v4845_v41  ;;  %v11151_v44 = vpop.permute.xlu0 %4428  ;;  %v5025_v41 = vmul.f32 1.442695, %v5023_v18 }
 0x6c5   : >> { %12708 = vst [vmem:[#allocation182_spill] sm:$0xff] %v11147_v43  ;;  %v4452_v33 = vmul.f32 %v8308_v36, %v11147_v43  ;;  %8250 = vset.pattern.permute.xlu1 %v12655_v5  ;;  %v5072_v54 = vmul.f32 1.442695, %v5070_v35 }
 0x6c6   : >> { %4860 = vperm.xlu1 %8250, %v10676_v23   ;;  %v11162_v38 = vadd.f32 %v4855_v58, %v4841_v53  ;;  %v8314_v53 = vpop.eup %8313  ;;  %8319 = vpow2.f32 %v5025_v41 }
 0x6c7   : >> { %v11170_v36 = vadd.f32 %v4466_v10, %v4452_v33  ;;  %v8316_v10 = vpop.eup %8315  ;;  %8321 = vpow2.f32 %v5072_v54 }
 0x6c8   : >> { %v4892_v57 = vpop.permute.xlu1 %4891  ;;  %v5468_v6 = vpop.permute.xlu0 %5467  ;;  %v4888_v43 = vmul.f32 %v8310_v29, %v11162_v38 }
 0x6c9   : >> { %v4902_v18 = vmul.f32 %v11168_v50, %v4892_v57  ;;  %v11179_v58 = vmul.f32 %v11159_v47, %v5468_v6  ;;  %v4499_v33 = vmul.f32 %v8312_v49, %v11170_v36  ;;  %v11195_v6 = vrot.slane %v10801_v3, %v10957_v32 }
 0x6ca   : >> { %8251 = vset.pattern.permute.xlu1 %v12657_v60  ;;  %v4560_v49 = vmul.f32 %v11174_v12, %v11083_v19  ;;  %v11212_v19 = vrot.slane %v10801_v3, %v11027_v13 }
 0x6cb   : >> { %12710 = vst [vmem:[#allocation184_spill] sm:$0xff] %v11179_v58  ;;  %4907 = vperm.xlu1 %8251, %v10676_v23   ;;  %v11189_v29 = vadd.f32 %v10779_v42, %v4499_v33  ;;  %v11191_v57 = vadd.f32 %v4902_v18, %v4888_v43  ;;  %v11207_v43 = vrot.slane %v10805_v37, %v12649_v62  ;;  %v8318_v18 = vpop.eup %8317 }
 0x6cc   : >> { %v5989_v47 = vpop.permute.xlu0 %5988 }
 0x6cd   : >> { %v4939_v58 = vpop.permute.xlu1 %4938  ;;  %v11200_v28 = vmul.f32 %v11183_v20, %v5989_v47  ;;  %v4546_v41 = vmul.f32 %v8314_v53, %v11189_v29  ;;  %v4935_v35 = vmul.f32 %v8316_v10, %v11191_v57 }
 0x6ce   : >> { %v4949_v42 = vmul.f32 %v11195_v6, %v4939_v58  ;;  %v5314_v58 = vmul.f32 %v11207_v43, %v12648_v39 }
 0x6cf   : >> { %12712 = vst [vmem:[#allocation186_spill] sm:$0xff] %v11200_v28  ;;  %8252 = vset.pattern.permute.xlu1 %v12660_v51  ;;  %v11214_v47 = vadd.f32 %v4560_v49, %v4546_v41  }
 0x6d0   : >> { %4954 = vperm.xlu1 %8252, %v10676_v23   ;;  %v11217_v53 = vpop.permute.xlu0 %6004  ;;  %v11219_v33 = vadd.f32 %v4949_v42, %v4935_v35  ;;  %v5317_v54 = vmul.f32 1.442695, %v5314_v58  ;;  %v8320_v28 = vpop.eup %8319  ;;  %v4836_v35 = vmul.f32 %v11038_v61, %v12648_v39 }
 0x6d1   : >> { %12713 = vst [vmem:[#allocation187_spill] sm:$0xff] %v11217_v53  ;;  %v8322_v58 = vpop.eup %8321 }
 0x6d2   : >> { %v4986_v37 = vpop.permute.xlu1 %4985  ;;  %v4982_v10 = vmul.f32 %v8318_v18, %v11219_v33  ;;  %8323 = vpow2.f32 %v5317_v54  ;;  %v4839_v53 = vmul.f32 1.442695, %v4836_v35 }
 0x6d3   : >> { %v4996_v20 = vmul.f32 %v11212_v19, %v4986_v37 }
 0x6d4   : >> { %8253 = vset.pattern.permute.xlu1 %v12664_v24  ;;  %8325 = vpow2.f32 %v4839_v53 }
 0x6d5   : >> { %5001 = vperm.xlu1 %8253, %v10676_v23   ;;  %v11227_v49 = vpop.permute.xlu0 %4459  ;;  %v11229_v41 = vadd.f32 %v4996_v20, %v4982_v10  ;;  %v11245_v20 = vrot.slane %v10868_v7, %v11027_v13 }
 0x6d7   : >> { %12714 = vst [vmem:[#allocation188_spill] sm:$0xff] %v11229_v41  ;;  %v11233_v42 = vpop.permute.xlu1 %4240  ;;  %v5029_v18 = vmul.f32 %v8320_v28, %v11229_v41  ;;  %12715 = vst [vmem:[#allocation189_spill] sm:$0xff] %v11245_v20  ;;  %v4883_v41 = vmul.f32 %v11068_v59, %v12648_v39  ;;  %v11268_v59 = vrot.slane %v10902_v55, %v11027_v13 }
 0x6d8   : >> { %v4259_v55 = vmul.f32 %v10842_v52, %v12648_v39  ;;  %v4977_v52 = vmul.f32 %v11111_v56, %v12648_v39 }
 0x6d9   : >> { %8254 = vset.pattern.permute.xlu1 %v12703_v8  ;;  %v11237_v37 = vpop.permute.xlu0 %4989  ;;  %v11240_v54 = vadd.f32 %v10838_v31, %v5029_v18  ;;  %v4886_v53 = vmul.f32 1.442695, %v4883_v41  ;;  %12719 = vst [vmem:[#allocation193_spill] sm:$0xff] %v11268_v59 }
 0x6da   : >> { %5095 = vperm.xlu1 %8254, %v10676_v23   ;;  %v4208_v23 = vmul.f32 %v10814_v22, %v12648_v39 }
 0x6db   : >> { %v5076_v61 = vmul.f32 %v8322_v58, %v11240_v54  ;;  %8327 = vpow2.f32 %v4886_v53 }
 0x6dc   : >> { %v11248_v10 = vpop.permute.xlu1 %4287  ;;  %v8324_v32 = vpop.eup %8323  ;;  %v4211_v58 = vmul.f32 1.442695, %v4208_v23 }
 0x6dd   : >> { %v5511_v28 = vpop.permute.xlu0 %5510  ;;  %v11258_v7 = vmul.f32 %v8324_v32, %v10923_v0  ;;  %v4930_v32 = vmul.f32 %v11094_v17, %v12648_v39  ;;  %v4856_v17 = vmul.f32 %v11139_v46, %v10906_v27  ;;  %v4306_v27 = vmul.f32 %v10934_v26, %v12648_v39 }
 0x6de   : >> { %8255 = vset.pattern.permute.xlu1 %v12678_v21  ;;  %v11254_v31 = vmul.f32 %v11245_v20, %v5511_v28  ;;  %v8326_v41 = vpop.eup %8325  ;;  %8329 = vpow2.f32 %v4211_v58  ;;  %v11304_v46 = vrot.slane %v10801_v3, %v11071_v63  ;;  %v5024_v26 = vmul.f32 %v11120_v4, %v12648_v39  ;;  %v12722_v3 = vld [vmem:[#allocation140_spill] sm:$0xff]  ;;  %v12724_v4 = vld [vmem:[#allocation150_spill] sm:$0xff] }
 0x6df   : >> { %5326 = vperm.xlu1 %8255, %v10686_v9   ;;  %12717 = vst [vmem:[#allocation191_spill] sm:$0xff] %v11258_v7  ;;  %v4933_v53 = vmul.f32 1.442695, %v4930_v32 }
 0x6e0   : >> { %12716 = vst [vmem:[#allocation190_spill] sm:$0xff] %v11254_v31 }
 0x6e1   : >> { %v11262_v35 = vpop.permute.xlu1 %4334  ;;  %v11264_v18 = vpop.permute.xlu0 %5530  ;;  %8331 = vpow2.f32 %v4933_v53 }
 0x6e2   : >> { %12718 = vst [vmem:[#allocation192_spill] sm:$0xff] %v11264_v18  ;;  %v4842_v18 = vmul.f32 %v8326_v41, %v10938_v45 }
 0x6e3   : >> { %8256 = vset.pattern.permute.xlu1 %v12651_v30 }
 0x6e4   : >> { %5272 = vperm.xlu1 %8256, %v10691_v48  }
 0x6e5   : >> { %v6040_v28 = vpop.permute.xlu0 %6039  ;;  %v8328_v32 = vpop.eup %8327 }
 0x6e6   : >> { %v11274_v22 = vpop.permute.xlu1 %4381  ;;  %v11277_v20 = vmul.f32 %v11268_v59, %v6040_v28  ;;  %v4262_v28 = vmul.f32 1.442695, %v4259_v55  ;;  %v4980_v55 = vmul.f32 1.442695, %v4977_v52  ;;  %v4230_v59 = vmul.f32 %v12722_v3, %v10776_v2 }
 0x6e8   : >> { %12720 = vst [vmem:[#allocation194_spill] sm:$0xff] %v11277_v20  ;;  %8257 = vset.pattern.permute.xlu1 %v12655_v5  ;;  %8333 = vpow2.f32 %v4262_v28  ;;  %v8330_v41 = vpop.eup %8329  ;;  %v4309_v28 = vmul.f32 1.442695, %v4306_v27 }
 0x6e9   : >> { %5369 = vperm.xlu1 %8257, %v10691_v48   ;;  %v11283_v23 = vpop.permute.xlu0 %6055  ;;  %v4214_v20 = vmul.f32 %v8690_v11, %v8330_v41  ;;  %8335 = vpow2.f32 %v4980_v55  ;;  %v5027_v11 = vmul.f32 1.442695, %v5024_v26 }
 0x6ea   : >> { %12721 = vst [vmem:[#allocation195_spill] sm:$0xff] %v11283_v23  ;;  %v11296_v23 = vadd.f32 %v4856_v17, %v4842_v18  ;;  %v4903_v18 = vmul.f32 %v11168_v50, %v10926_v16  ;;  %8337 = vpow2.f32 %v4309_v28  ;;  %v12727_v28 = vld [vmem:[#allocation159_spill] sm:$0xff] }
 0x6eb   : >> { %v11288_v31 = vpop.permute.xlu1 %4475  ;;  %v8332_v50 = vpop.eup %8331  ;;  %v4232_v27 = vadd.f32 %v4230_v59, %v4214_v20  ;;  %8339 = vpow2.f32 %v5027_v11 }
 0x6ec   : >> { %v4889_v53 = vmul.f32 %v8328_v32, %v11296_v23  ;;  %v4353_v32 = vmul.f32 %v12724_v4, %v12648_v39 }
 0x6ed   : >> { %8258 = vset.pattern.permute.xlu1 %v12651_v30 }
 0x6ee   : >> { %5295 = vperm.xlu1 %8258, %v10700_v1   ;;  %v11294_v58 = vpop.permute.xlu0 %4553  ;;  %v11321_v16 = vadd.f32 %v4903_v18, %v4889_v53  ;;  %v4356_v18 = vmul.f32 1.442695, %v4353_v32  ;;  %v4997_v32 = vmul.f32 %v11212_v19, %v11237_v37 }
 0x6f0   : >> { %v11300_v45 = vpop.permute.xlu1 %4569  ;;  %v4936_v55 = vmul.f32 %v8332_v50, %v11321_v16  ;;  %8341 = vpow2.f32 %v4356_v18  ;;  %v12729_v18 = vld [vmem:[#allocation130_spill] sm:$0xff] }
 0x6f2   : >> { %5290 = vperm.xlu1 %8258, %v10821_v25   ;;  %v5080_v56 = vpop.permute.xlu0 %5079  ;;  %v8334_v41 = vpop.eup %8333 }
 0x6f3   : >> { %v5090_v17 = vmul.f32 %v11304_v46, %v5080_v56  ;;  %v12725_v56 = vld [vmem:[#allocation147_spill] sm:$0xff]  ;;  %v4265_v53 = vmul.f32 %v8334_v41, %v4232_v27  ;;  %v8336_v3 = vpop.eup %8335  ;;  %v7499_v41 = vld [vmem:[%s10790_s21 + $0xc0] sm:$0xff] }
 0x6f4   : >> { %v8338_v11 = vpop.eup %8337 }
 0x6f5   : >> { %v11316_v52 = vpop.permute.xlu1 %4770  ;;  %v11318_v63 = vadd.f32 %v5090_v17, %v5076_v61   ;;  %v4950_v61 = vmul.f32 %v11195_v6, %v12725_v56  ;;  %v12726_v17 = vld [vmem:[#allocation129_spill] sm:$0xff]  ;;  %v12728_v6 = vld [vmem:[#allocation154_spill] sm:$0xff] }
 0x6f6   : >> { %8259 = vset.pattern.permute.xlu1 %v12678_v21  ;;  %v4279_v26 = vmul.f32 %v12727_v28, %v12726_v17  ;;  %v4400_v50 = vmul.f32 %v12728_v6, %v12648_v39  ;;  %v12730_v28 = vld [vmem:[#allocation163_spill] sm:$0xff] }
 0x6f7   : >> { %12723 = vst [vmem:[#allocation140_spill] sm:$0xff] %v11318_v63  ;;  %5338 = vperm.xlu1 %8259, %v10821_v25   ;;  %v11335_v20 = vadd.f32 %v4950_v61, %v4936_v55  ;;  %v4326_v13 = vmul.f32 %v12730_v28, %v12729_v18  ;;  %v11366_v28 = vrot.slane %v7499_v41, %v12649_v62 }
 0x6f8   : >> { %v4281_v4 = vadd.f32 %v4279_v26, %v4265_v53  ;;  %v4403_v17 = vmul.f32 1.442695, %v4400_v50  ;;  %v8340_v53 = vpop.eup %8339  ;;  %v12731_v26 = vld [vmem:[#allocation59_spill] sm:$0xff] }
 0x6f9   : >> { %v4983_v56 = vmul.f32 %v8336_v3, %v11335_v20  ;;  %v11355_v19 = vrot.slane %v7499_v41, %v12731_v26  ;;  %12734 = vst [vmem:[#allocation147_spill] sm:$0xff] %v11366_v28  ;;  %v12735_v26 = vld [vmem:[#allocation152_spill] sm:$0xff] }
 0x6fa   : >> { %v11326_v2 = vpop.permute.xlu1 %4864  ;;  %v4312_v55 = vmul.f32 %v8338_v11, %v4281_v4  ;;  %8343 = vpow2.f32 %v4403_v17  ;;  %v8342_v11 = vpop.eup %8341  ;;  %v12736_v17 = vld [vmem:[#allocation131_spill] sm:$0xff] }
 0x6fb   : >> { %8260 = vset.pattern.permute.xlu1 %v12655_v5  ;;  %v11351_v6 = vadd.f32 %v4997_v32, %v4983_v56  ;;  %12732 = vst [vmem:[#allocation150_spill] sm:$0xff] %v11355_v19  ;;  %v5788_v37 = vmul.f32 %v11355_v19, %v12648_v39  ;;  %v12733_v32 = vld [vmem:[#allocation172_spill] sm:$0xff]  ;;  %v5044_v7 = vmul.f32 %v12736_v17, %v12735_v26  ;;  %v12738_v19 = vld [vmem:[#allocation167_spill] sm:$0xff]  ;;  %v12740_v17 = vld [vmem:[#allocation174_spill] sm:$0xff] }
 0x6fc   : >> { %5385 = vperm.xlu1 %8260, %v10821_v25   ;;  %v4328_v3 = vadd.f32 %v4326_v13, %v4312_v55  ;;  %v4447_v56 = vmul.f32 %v12733_v32, %v12648_v39  ;;  %v5839_v13 = vmul.f32 %v11366_v28, %v12648_v39 }
 0x6fd   : >> { %v5030_v50 = vmul.f32 %v8340_v53, %v11351_v6  ;;  %v5791_v18 = vmul.f32 1.442695, %v5788_v37  ;;  %v12737_v53 = vld [vmem:[#allocation132_spill] sm:$0xff]  ;;  %v12739_v37 = vld [vmem:[#allocation137_spill] sm:$0xff] }
 0x6fe   : >> { %v4359_v55 = vmul.f32 %v8342_v11, %v4328_v3  ;;  %v5055_v32 = vmul.f32 %v12739_v37, %v11240_v54  ;;  %v4450_v41 = vmul.f32 1.442695, %v4447_v56  ;;  %v5842_v26 = vmul.f32 1.442695, %v5839_v13 }
 0x6ff   : >> { %v11337_v59 = vpop.permute.xlu1 %4911  ;;  %8345 = vpow2.f32 %v5791_v18  ;;  %v11374_v63 = vadd.f32 %v5044_v7, %v5030_v50  ;;  %v4494_v11 = vmul.f32 %v12740_v17, %v12648_v39  ;;  %v4244_v54 = vmul.f32 %v11233_v42, %v4232_v27 }
 0x700   : >> { %5389 = vperm.xlu1 %8260, %v10700_v1   ;;  %8347 = vpow2.f32 %v5842_v26  ;;  %v12742_v26 = vld [vmem:[#allocation134_spill] sm:$0xff]  ;;  %v4291_v42 = vmul.f32 %v11248_v10, %v4281_v4 }
 0x701   : >> { %8349 = vpow2.f32 %v4450_v41  ;;  %v12743_v41 = vld [vmem:[#allocation120_spill] sm:$0xff] }
 0x702   : >> { %v4293_v10 = vsel %vm938_vm3, %v4291_v42, 0.0  ;;  %v12747_v42 = vld [vmem:[#allocation166_spill] sm:$0xff] }
 0x704   : >> { %v11346_v61 = vpop.permute.xlu1 %4958  ;;  %8261 = vset.pattern.permute.xlu1 %v12657_v60  ;;  %v4373_v60 = vmul.f32 %v12738_v19, %v12737_v53  ;;  %v5057_v19 = vsel %vm938_vm3, %v5055_v32, 0.0  ;;  %v8344_v50 = vpop.eup %8343  ;;  %v4497_v53 = vmul.f32 1.442695, %v4494_v11 }
 0x705   : >> { %5420 = vperm.xlu1 %8261, %v10686_v9  }
 0x706   : >> { %v4375_v28 = vadd.f32 %v4373_v60, %v4359_v55  ;;  %v4420_v60 = vmul.f32 %v11125_v34, %v12742_v26  ;;  %v4246_v55 = vsel %vm938_vm3, %v4244_v54, 0.0  ;;  %8351 = vpow2.f32 %v4497_v53  ;;  %v12745_v34 = vld [vmem:[#allocation146_spill] sm:$0xff] }
 0x707   : >> { %v4338_v26 = vmul.f32 %v11262_v35, %v4328_v3 }
 0x708   : >> { %v4385_v35 = vmul.f32 %v11274_v22, %v4375_v28 }
 0x709   : >> { %v11360_v0 = vpop.permute.xlu1 %5005  ;;  %5432 = vperm.xlu1 %8261, %v10821_v25   ;;  %v8346_v17 = vpop.eup %8345 }
 0x70a   : >> { %v8348_v54 = vpop.eup %8347 }
 0x70d   : >> { %8262 = vset.pattern.permute.xlu1 %v12660_v51  ;;  %v4406_v51 = vmul.f32 %v8344_v50, %v4375_v28  ;;  %v12744_v50 = vld [vmem:[#allocation161_spill] sm:$0xff] }
 0x70e   : >> { %v5053_v62 = vpop.permute.xlu1 %5052  ;;  %5463 = vperm.xlu1 %8262, %v10691_v48  }
 0x70f   : >> { %v5056_v18 = vmul.f32 %v5053_v62, %v11374_v63  ;;  %v12741_v62 = vld [vmem:[#allocation142_spill] sm:$0xff] }
 0x711   : >> { %v5058_v7 = vsel %vm938_vm3, %v5056_v18, 0.0  ;;  %v5794_v18 = vmul.f32 %v12743_v41, %v8346_v17 }
 0x712   : >> { %5479 = vperm.xlu1 %8262, %v10821_v25   ;;  %v11387_v56 = vadd.f32 %v5058_v7, %v5057_v19  ;;  %v4541_v7 = vmul.f32 %v11079_v40, %v12648_v39  ;;  %v8350_v40 = vpop.eup %8349 }
 0x713   : >> { %v4236_v13 = vpop.permute.xlu1 %4235 }
 0x714   : >> { %v4243_v37 = vmul.f32 %v4236_v13, %v12741_v62  ;;  %v11401_v62 = vadd.f32 %v12745_v34, %v5794_v18 }
 0x716   : >> { %v4245_v32 = vsel %vm938_vm3, %v4243_v37, 0.0  ;;  %5483 = vperm.xlu1 %8262, %v10700_v1   ;;  %v4422_v37 = vadd.f32 %v4420_v60, %v4406_v51  ;;  %v11408_v53 = vmul.f32 %v8348_v54, %v11401_v62  ;;  %v4467_v51 = vmul.f32 %v11131_v15, %v11227_v49 }
 0x717   : >> { %v4247_v27 = vadd.f32 %v4246_v55, %v4245_v32  ;;  %v4544_v32 = vmul.f32 1.442695, %v4541_v7  ;;  %v8352_v7 = vpop.eup %8351 }
 0x718   : >> { %v4284_v11 = vpop.permute.xlu1 %4283  ;;  %12746 = vst [vmem:[#allocation129_spill] sm:$0xff] %v11408_v53 }
 0x719   : >> { %v4248_v19 = vrot.slane %v4247_v27, 4  ;;  %v4290_v13 = vmul.f32 %v4284_v11, %v12744_v50  ;;  %v4453_v11 = vmul.f32 %v8350_v40, %v4422_v37  ;;  %8353 = vpow2.f32 %v4544_v32 }
 0x71a   : >> { %8263 = vset.pattern.permute.xlu1 %v12664_v24  ;;  %v12749_v40 = vmov 6  }
 0x71b   : >> { %v4249_v4 = vadd.f32 %v4248_v19, %v4247_v27  ;;  %v4292_v17 = vsel %vm938_vm3, %v4290_v13, 0.0  ;;  %5514 = vperm.xlu1 %8263, %v10686_v9   ;;  %v4340_v19 = vsel %vm938_vm3, %v4338_v26, 0.0  ;;  %v4469_v54 = vadd.f32 %v4467_v51, %v4453_v11  ;;  %v12750_v51 = vld [vmem:[#allocation136_spill] sm:$0xff] }
 0x71c   : >> { %v4294_v55 = vadd.f32 %v4293_v10, %v4292_v17  ;;  %v12748_v17 = vld [vmem:[#allocation171_spill] sm:$0xff]  ;;  %v4387_v26 = vsel %vm938_vm3, %v4385_v35, 0.0 }
 0x71d   : >> { %v4250_v41 = vrot.slane %v4249_v4, 2  ;;  %v4331_v18 = vpop.permute.xlu1 %4330 }
 0x71e   : >> { %v4295_v60 = vrot.slane %v4294_v55, 4  ;;  %v4337_v27 = vmul.f32 %v4331_v18, %v12747_v42 }
 0x71f   : >> { %5526 = vperm.xlu1 %8263, %v10821_v25   ;;  %v4251_v50 = vadd.f32 %v4250_v41, %v4249_v4  ;;  %v4432_v4 = vmul.f32 %v11151_v44, %v4422_v37 }
 0x720   : >> { %v4296_v13 = vadd.f32 %v4295_v60, %v4294_v55  ;;  %v4339_v34 = vsel %vm938_vm3, %v4337_v27, 0.0  ;;  %v4500_v55 = vmul.f32 %v8352_v7, %v4469_v54  ;;  %v12751_v60 = vld [vmem:[#allocation128_spill] sm:$0xff] }
 0x721   : >> { %v4341_v3 = vadd.f32 %v4340_v19, %v4339_v34  ;;  %v4252_v42 = vrot.slane %v4251_v50, 1  ;;  %v4514_v27 = vmul.f32 %v12751_v60, %v12750_v51  ;;  %v4434_v44 = vsel %vm938_vm3, %v4432_v4, 0.0 }
 0x722   : >> { %v4297_v10 = vrot.slane %v4296_v13, 2  ;;  %v4378_v15 = vpop.permute.xlu1 %4377 }
 0x723   : >> { %v4342_v49 = vrot.slane %v4341_v3, 4  ;;  %v4384_v18 = vmul.f32 %v4378_v15, %v12748_v17  ;;  %8264 = vset.pattern.permute.xlu1 %v12749_v40  ;;  %v4253_v34 = vadd.f32 %v4252_v42, %v4251_v50  ;;  %v4516_v35 = vadd.f32 %v4514_v27, %v4500_v55  ;;  %v8354_v17 = vpop.eup %8353 }
 0x724   : >> { %v4298_v53 = vadd.f32 %v4297_v10, %v4296_v13  ;;  %5557 = vperm.xlu1 %8264, %v10691_v48   ;;  %v12752_v48 = vld [vmem:[#allocation182_spill] sm:$0xff] }
 0x725   : >> { %v4343_v22 = vadd.f32 %v4342_v49, %v4341_v3  ;;  %v4386_v28 = vsel %vm938_vm3, %v4384_v18, 0.0  ;;  %v4479_v18 = vmul.f32 %v11288_v31, %v4469_v54 }
 0x726   : >> { %v4299_v32 = vrot.slane %v4298_v53, 1  ;;  %v4388_v41 = vadd.f32 %v4387_v26, %v4386_v28  ;;  %v4561_v28 = vmul.f32 %v11174_v12, %v11294_v58 }
 0x727   : >> { %v4344_v11 = vrot.slane %v4343_v22, 2  ;;  %v4425_v19 = vpop.permute.xlu1 %4424  ;;  %v4481_v51 = vsel %vm938_vm3, %v4479_v18, 0.0 }
 0x728   : >> { %v4300_v13 = vadd.f32 %v4299_v32, %v4298_v53  ;;  %v4389_v10 = vrot.slane %v4388_v41, 4  ;;  %v4431_v15 = vmul.f32 %v4425_v19, %v12752_v48  ;;  %5573 = vperm.xlu1 %8264, %v10821_v25   ;;  %v4547_v32 = vmul.f32 %v8354_v17, %v4516_v35 }
 0x729   : >> { %v4345_v37 = vadd.f32 %v4344_v11, %v4343_v22 }
 0x72a   : >> { %v4584_v3 = vsel %vm4583_vm14, %v4253_v34, %v4300_v13  ;;  %v4390_v7 = vadd.f32 %v4389_v10, %v4388_v41  ;;  %v4433_v49 = vsel %vm938_vm3, %v4431_v15, 0.0  ;;  %v11441_v12 = vadd.f32 %v4561_v28, %v4547_v32   ;;  %v12755_v32 = vld [vmem:[#allocation124_spill] sm:$0xff] }
 0x72b   : >> { %v4346_v26 = vrot.slane %v4345_v37, 1  ;;  %v4435_v50 = vadd.f32 %v4434_v44, %v4433_v49 }
 0x72c   : >> { %v4391_v53 = vrot.slane %v4390_v7, 2  ;;  %v4472_v42 = vpop.permute.xlu1 %4471  ;;  %5577 = vperm.xlu1 %8264, %v10700_v1   ;;  %v12753_v1 = vld [vmem:[#allocation135_spill] sm:$0xff] }
 0x72d   : >> { %v4347_v4 = vadd.f32 %v4346_v26, %v4345_v37  ;;  %v4436_v22 = vrot.slane %v4435_v50, 4  ;;  %v4478_v55 = vmul.f32 %v4472_v42, %v11170_v36  ;;  %v4526_v19 = vmul.f32 %v12753_v1, %v4516_v35 }
 0x72e   : >> { %v4392_v41 = vadd.f32 %v4391_v53, %v4390_v7  ;;  %v4573_v35 = vmul.f32 %v11300_v45, %v11441_v12  ;;  %v12754_v45 = vld [vmem:[#allocation143_spill] sm:$0xff] }
 0x72f   : >> { %v4585_v60 = vsel %vm773_vm1, %v4584_v3, %v4347_v4  ;;  %v4437_v31 = vadd.f32 %v4436_v22, %v4435_v50  ;;  %v4480_v54 = vsel %vm938_vm3, %v4478_v55, 0.0  ;;  %v4528_v3 = vsel %vm938_vm3, %v4526_v19, 0.0 }
 0x730   : >> { %v4393_v27 = vrot.slane %v4392_v41, 1  ;;  %v4482_v11 = vadd.f32 %v4481_v51, %v4480_v54  ;;  %8266 = vset.pattern.permute.xlu1 %v12703_v8  ;;  %v4575_v53 = vsel %vm938_vm3, %v4573_v35, 0.0  ;;  %v4774_v22 = vmul.f32 %v11316_v52, %v12754_v45  ;;  %v12759_v35 = vld [vmem:[#allocation148_spill] sm:$0xff] }
 0x731   : >> { %v4438_v58 = vrot.slane %v4437_v31, 2  ;;  %v4519_v36 = vpop.permute.xlu1 %4518  ;;  %5608 = vperm.xlu1 %8266, %v10686_v9  }
 0x732   : >> { %v4394_v34 = vadd.f32 %v4393_v27, %v4392_v41  ;;  %v4483_v13 = vrot.slane %v4482_v11, 4  ;;  %v4525_v10 = vmul.f32 %v4519_v36, %v11189_v29  ;;  %v12756_v27 = vld [vmem:[#allocation180_spill] sm:$0xff]  ;;  %v12757_v36 = vld [vmem:[#allocation126_spill] sm:$0xff] }
 0x733   : >> { %v4439_v48 = vadd.f32 %v4438_v58, %v4437_v31 }
 0x734   : >> { %v4587_v15 = vsel %vm4586_vm8, %v4585_v60, %v4394_v34  ;;  %v4484_v44 = vadd.f32 %v4483_v13, %v4482_v11  ;;  %v4527_v37 = vsel %vm938_vm3, %v4525_v10, 0.0  ;;  %v5071_v60 = vmul.f32 %v11143_v14, %v12648_v39 }
 0x735   : >> { %v4440_v7 = vrot.slane %v4439_v48, 1  ;;  %v4529_v49 = vadd.f32 %v4528_v3, %v4527_v37  ;;  %5620 = vperm.xlu1 %8266, %v10821_v25   ;;  %v12758_v37 = vld [vmem:[#allocation181_spill] sm:$0xff] }
 0x736   : >> { %v4485_v9 = vrot.slane %v4484_v44, 2  ;;  %v4566_v17 = vpop.permute.xlu1 %4565  ;;  %v5074_v10 = vmul.f32 1.442695, %v5071_v60 }
 0x737   : >> { %v4441_v18 = vadd.f32 %v4440_v7, %v4439_v48  ;;  %v4530_v26 = vrot.slane %v4529_v49, 4  ;;  %v4572_v29 = vmul.f32 %v4566_v17, %v11214_v47  ;;  %v4823_v7 = vsel %vm938_vm3, %v12759_v35, 0.0 }
 0x738   : >> { %v4486_v50 = vadd.f32 %v4485_v9, %v4484_v44  ;;  %v12760_v9 = vld [vmem:[#allocation125_spill] sm:$0xff]  ;;  %v4868_v17 = vmul.f32 %v11326_v2, %v11296_v23  ;;  %8355 = vpow2.f32 %v5074_v10  ;;  %v12761_v23 = vld [vmem:[#allocation55_spill] sm:$0xff] }
 0x739   : >> { %v4588_v42 = vsel %vm3012_vm5, %v4587_v15, %v4441_v18  ;;  %v4531_v28 = vadd.f32 %v4530_v26, %v4529_v49  ;;  %v4574_v4 = vsel %vm938_vm3, %v4572_v29, 0.0  ;;  %8267 = vset.pattern.permute.xlu1 %v12651_v30  ;;  %v4776_v30 = vsel %vm938_vm3, %v4774_v22, 0.0 }
 0x73a   : >> { %v4487_v25 = vrot.slane %v4486_v50, 1  ;;  %v4576_v55 = vadd.f32 %v4575_v53, %v4574_v4  ;;  %5797 = vperm.xlu1 %8267, %v12755_v32  }
 0x73b   : >> { %v4532_v41 = vrot.slane %v4531_v28, 2  ;;  %v4766_v51 = vpop.permute.xlu1 %4765 }
 0x73c   : >> { %v4488_v31 = vadd.f32 %v4487_v25, %v4486_v50  ;;  %v4577_v54 = vrot.slane %v4576_v55, 4  ;;  %v4773_v11 = vmul.f32 %v4766_v51, %v12756_v27  ;;  %v11477_v25 = vld [vmem:[%s10790_s21 + $0x80] sm:$0xff] }
 0x73d   : >> { %v4533_v1 = vadd.f32 %v4532_v41, %v4531_v28  ;;  %v5359_v2 = vrot.slane %v11477_v25, %v12761_v23  ;;  %v12762_v41 = vld [vmem:[#allocation123_spill] sm:$0xff] }
 0x73e   : >> { %v4590_v19 = vsel %vm4589_vm9, %v4588_v42, %v4488_v31  ;;  %v4578_v52 = vadd.f32 %v4577_v54, %v4576_v55  ;;  %v4775_v58 = vsel %vm938_vm3, %v4773_v11, 0.0  ;;  %5815 = vperm.xlu1 %8267, %v12757_v36   ;;  %v4870_v55 = vsel %vm938_vm3, %v4868_v17, 0.0 }
 0x73f   : >> { %v4534_v34 = vrot.slane %v4533_v1, 1  ;;  %v4777_v13 = vadd.f32 %v4776_v30, %v4775_v58  ;;  %v12764_v58 = vld [vmem:[#allocation133_spill] sm:$0xff] }
 0x740   : >> { %v4579_v48 = vrot.slane %v4578_v52, 2  ;;  %v4814_v14 = vpop.permute.xlu1 %4813 }
 0x741   : >> { %v4535_v15 = vadd.f32 %v4534_v34, %v4533_v1  ;;  %v4778_v44 = vrot.slane %v4777_v13, 4  ;;  %v4820_v3 = vmul.f32 %v4814_v14, %v12758_v37  ;;  %v5361_v1 = vmul.f32 %v5359_v2, %v12648_v39 }
 0x742   : >> { %v4580_v49 = vadd.f32 %v4579_v48, %v4578_v52  ;;  %5820 = vperm.xlu1 %8267, %v12760_v9   ;;  %v12763_v52 = vld [vmem:[#allocation14_spill] sm:$0xff] }
 0x743   : >> { %v4592_v18 = vsel %vm4591_vm10, %v4590_v19, %v4535_v15  ;;  %v4779_v26 = vadd.f32 %v4778_v44, %v4777_v13  ;;  %v4822_v29 = vsel %vm938_vm3, %v4820_v3, 0.0  ;;  %v5262_v34 = vmul.f32 %v12764_v58, %v12763_v52  ;;  %v12765_v13 = vld [vmem:[#allocation54_spill] sm:$0xff]  ;;  %v8356_v44 = vpop.eup %8355 }
 0x744   : >> { %v4581_v50 = vrot.slane %v4580_v49, 1  ;;  %v4824_v53 = vadd.f32 %v4823_v7, %v4822_v29  ;;  %v5364_v17 = vmul.f32 1.442695, %v5361_v1  ;;  %v12767_v1 = vld [vmem:[#allocation188_spill] sm:$0xff] }
 0x745   : >> { %v4780_v42 = vrot.slane %v4779_v26, 2  ;;  %v4861_v28 = vpop.permute.xlu1 %4860 }
 0x746   : >> { %v4582_v4 = vadd.f32 %v4581_v50, %v4580_v49  ;;  %v4825_v45 = vrot.slane %v4824_v53, 4  ;;  %v4867_v22 = vmul.f32 %v4861_v28, %v11162_v38  ;;  %8269 = vset.pattern.permute.xlu1 %v12678_v21  ;;  %v4915_v38 = vmul.f32 %v11337_v59, %v11321_v16 }
 0x747   : >> { %5851 = vperm.xlu1 %8269, %v12762_v41   ;;  %v4781_v60 = vadd.f32 %v4780_v42, %v4779_v26  ;;  %v11499_v16 = vrot.slane %v11477_v25, %v12765_v13  ;;  %v5264_v49 = vmul.f32 1.442695, %v5262_v34  ;;  %v5060_v42 = vrot.slane %v11387_v56, 4 }
 0x748   : >> { %v4594_v51 = vsel %vm4593_vm11, %v4592_v18, %v4582_v4  ;;  %v4826_v31 = vadd.f32 %v4825_v45, %v4824_v53  ;;  %v4869_v54 = vsel %vm938_vm3, %v4867_v22, 0.0  ;;  %v4917_v48 = vsel %vm938_vm3, %v4915_v38, 0.0 }
 0x749   : >> { %4596 = vst.msk [vmem:[%s11488_s27] sm:$0xff] %vm938_vm3, %v4594_v51  ;;  %v4871_v21 = vadd.f32 %v4870_v55, %v4869_v54  ;;  %v4782_v59 = vrot.slane %v4781_v60, 1  ;;  %v5408_v18 = vmul.f32 %v11499_v16, %v12648_v39  ;;  %v12766_v55 = vld [vmem:[#allocation157_spill] sm:$0xff]  ;;  %v5009_v51 = vmul.f32 %v11360_v0, %v11351_v6 }
 0x74a   : >> { %v4827_v27 = vrot.slane %v4826_v31, 2  ;;  %v4908_v11 = vpop.permute.xlu1 %4907  ;;  %8357 = vpow2.f32 %v5264_v49  ;;  %v5407_v49 = vmul.f32 %v11499_v16, %v12763_v52 }
 0x74b   : >> { %v4872_v30 = vrot.slane %v4871_v21, 4  ;;  %v4914_v19 = vmul.f32 %v4908_v11, %v11191_v57  ;;  %5863 = vperm.xlu1 %8269, %v12757_v36   ;;  %v4962_v57 = vmul.f32 %v11346_v61, %v11335_v20  ;;  %v4783_v26 = vadd.f32 %v4782_v59, %v4781_v60 }
 0x74c   : >> { %v4828_v10 = vadd.f32 %v4827_v27, %v4826_v31  ;;  %v5077_v20 = vmul.f32 %v8356_v44, %v11374_v63  ;;  %v5411_v38 = vmul.f32 1.442695, %v5408_v18  ;;  %8359 = vpow2.f32 %v5364_v17  ;;  %v12769_v18 = vld [vmem:[#allocation151_spill] sm:$0xff] }
 0x74d   : >> { %v4873_v14 = vadd.f32 %v4872_v30, %v4871_v21  ;;  %v4916_v15 = vsel %vm938_vm3, %v4914_v19, 0.0  ;;  %v4964_v28 = vsel %vm938_vm3, %v4962_v57, 0.0  ;;  %v5100_v21 = vpop.permute.xlu0 %5099  ;;  %v5011_v58 = vsel %vm938_vm3, %v5009_v51, 0.0  ;;  %v12771_v51 = vld [vmem:[#allocation149_spill] sm:$0xff] }
 0x74e   : >> { %v4829_v37 = vrot.slane %v4828_v10, 1  ;;  %v4918_v3 = vadd.f32 %v4917_v48, %v4916_v15  ;;  %8361 = vpow2.f32 %v5411_v38 }
 0x74f   : >> { %v4874_v35 = vrot.slane %v4873_v14, 2  ;;  %v4955_v7 = vpop.permute.xlu1 %4954  ;;  %8271 = vset.pattern.permute.xlu1 %v12655_v5  ;;  %v5313_v5 = vmul.f32 %v11207_v43, %v12763_v52  ;;  %v5360_v43 = vmul.f32 %v5359_v2, %v12763_v52 }
 0x750   : >> { %v4830_v29 = vadd.f32 %v4829_v37, %v4828_v10  ;;  %v4919_v50 = vrot.slane %v4918_v3, 4  ;;  %v4961_v53 = vmul.f32 %v4955_v7, %v11219_v33  ;;  %5894 = vperm.xlu1 %8271, %v12755_v32   ;;  %v5091_v33 = vmul.f32 %v11304_v46, %v12766_v55 }
 0x751   : >> { %v4875_v61 = vadd.f32 %v4874_v35, %v4873_v14  ;;  %v5061_v46 = vadd.f32 %v5060_v42, %v11387_v56  ;;  %v5315_v6 = vmul.f32 1.442695, %v5313_v5  ;;  %v5362_v57 = vmul.f32 1.442695, %v5360_v43  ;;  %v12768_v35 = vld [vmem:[#allocation140_spill] sm:$0xff] }
 0x752   : >> { %v5113_v4 = vsel %vm4583_vm14, %v4783_v26, %v4830_v29  ;;  %v4920_v45 = vadd.f32 %v4919_v50, %v4918_v3  ;;  %v4963_v22 = vsel %vm938_vm3, %v4961_v53, 0.0  ;;  %v11525_v19 = vadd.f32 %v5091_v33, %v5077_v20  }
 0x753   : >> { %v4876_v63 = vrot.slane %v4875_v61, 1  ;;  %v4965_v60 = vadd.f32 %v4964_v28, %v4963_v22  ;;  %v5062_v56 = vrot.slane %v5061_v46, 2  ;;  %8363 = vpow2.f32 %v5315_v6 }
 0x754   : >> { %v4921_v31 = vrot.slane %v4920_v45, 2  ;;  %v5002_v54 = vpop.permute.xlu1 %5001  ;;  %5910 = vperm.xlu1 %8271, %v12757_v36   ;;  %v5103_v10 = vmul.f32 %v5100_v21, %v11525_v19  ;;  %v11537_v26 = vrot.slane %v11477_v25, %v12769_v18  ;;  %v8358_v16 = vpop.eup %8357  ;;  %8365 = vpow2.f32 %v5362_v57  ;;  %v12776_v57 = vld [vmem:[#allocation164_spill] sm:$0xff] }
 0x755   : >> { %v4877_v27 = vadd.f32 %v4876_v63, %v4875_v61  ;;  %v4966_v11 = vrot.slane %v4965_v60, 4  ;;  %v5008_v30 = vmul.f32 %v5002_v54, %v12767_v1  ;;  %v12770_v61 = vmov 3  }
 0x756   : >> { %v4922_v0 = vadd.f32 %v4921_v31, %v4920_v45  ;;  %v5105_v29 = vsel %vm938_vm3, %v5103_v10, 0.0  ;;  %v5063_v5 = vadd.f32 %v5062_v56, %v5061_v46  ;;  %v5409_v22 = vmul.f32 1.442695, %v5407_v49  ;;  %v8360_v31 = vpop.eup %8359  ;;  %v12774_v10 = vld [vmem:[#allocation141_spill] sm:$0xff] }
 0x757   : >> { %v5114_v34 = vsel %vm773_vm1, %v5113_v4, %v4877_v27  ;;  %v4967_v59 = vadd.f32 %v4966_v11, %v4965_v60  ;;  %v5010_v2 = vsel %vm938_vm3, %v5008_v30, 0.0  ;;  %v5454_v60 = vmul.f32 %v11537_v26, %v12763_v52  ;;  %v12772_v27 = vld [vmem:[#allocation191_spill] sm:$0xff]  ;;  %v12773_v30 = vld [vmem:[#allocation122_spill] sm:$0xff] }
 0x758   : >> { %v4923_v48 = vrot.slane %v4922_v0, 1  ;;  %v5012_v14 = vadd.f32 %v5011_v58, %v5010_v2  ;;  %5914 = vperm.xlu1 %8271, %v12760_v9   ;;  %v5064_v38 = vrot.slane %v5063_v5, 1  ;;  %v5268_v46 = vmul.f32 %v12773_v30, %v8358_v16  ;;  %v12778_v16 = vld [vmem:[#allocation162_spill] sm:$0xff] }
 0x759   : >> { %v4968_v15 = vrot.slane %v4967_v59, 2  ;;  %v5096_v44 = vpop.permute.xlu1 %5095  ;;  %8367 = vpow2.f32 %v5409_v22 }
 0x75a   : >> { %v4924_v37 = vadd.f32 %v4923_v48, %v4922_v0  ;;  %v5013_v3 = vrot.slane %v5012_v14, 4  ;;  %v5102_v7 = vmul.f32 %v5096_v44, %v12768_v35  ;;  %v8362_v0 = vpop.eup %8361  ;;  %v12775_v44 = vmov 4  }
 0x75b   : >> { %v4969_v17 = vadd.f32 %v4968_v15, %v4967_v59  ;;  %v5456_v59 = vmul.f32 1.442695, %v5454_v60  ;;  %v5065_v15 = vadd.f32 %v5064_v38, %v5063_v5  ;;  %v12780_v38 = vld [vmem:[#allocation173_spill] sm:$0xff] }
 0x75c   : >> { %v5115_v50 = vsel %vm4586_vm8, %v5114_v34, %v4924_v37  ;;  %v5014_v53 = vadd.f32 %v5013_v3, %v5012_v14  ;;  %v5104_v20 = vsel %vm938_vm3, %v5102_v7, 0.0  ;;  %8273 = vset.pattern.permute.xlu1 %v12770_v61 }
 0x75d   : >> { %v4970_v42 = vrot.slane %v4969_v17, 1  ;;  %v5106_v28 = vadd.f32 %v5105_v29, %v5104_v20  ;;  %5945 = vperm.xlu1 %8273, %v12762_v41   ;;  %v8364_v14 = vpop.eup %8363  ;;  %8369 = vpow2.f32 %v5456_v59 }
 0x75e   : >> { %v5015_v4 = vrot.slane %v5014_v53, 2  ;;  %v5327_v45 = vpop.permute.xlu1 %5326 }
 0x75f   : >> { %v4971_v55 = vadd.f32 %v4970_v42, %v4969_v17  ;;  %v5107_v33 = vrot.slane %v5106_v28, 4  ;;  %v5334_v63 = vmul.f32 %v12771_v51, %v5327_v45  ;;  %v12777_v42 = vld [vmem:[#allocation153_spill] sm:$0xff] }
 0x760   : >> { %v5016_v54 = vadd.f32 %v5015_v4, %v5014_v53  ;;  %v12779_v51 = vld [vmem:[#allocation145_spill] sm:$0xff] }
 0x761   : >> { %v5116_v43 = vsel %vm3012_vm5, %v5115_v50, %v4971_v55  ;;  %v5108_v21 = vadd.f32 %v5107_v33, %v5106_v28  ;;  %v5336_v11 = vadd.f32 %v5334_v63, %v12772_v27  ;;  %5957 = vperm.xlu1 %8273, %v12757_v36   ;;  %v8366_v50 = vpop.eup %8365  ;;  %v5455_v27 = vmul.f32 %v11537_v26, %v12648_v39 }
 0x762   : >> { %v5017_v1 = vrot.slane %v5016_v54, 1 }
 0x763   : >> { %v5109_v6 = vrot.slane %v5108_v21, 2  ;;  %v5273_v58 = vpop.permute.xlu1 %5272  ;;  %v5367_v34 = vmul.f32 %v8360_v31, %v5336_v11  ;;  %v8368_v22 = vpop.eup %8367  ;;  %v5458_v26 = vmul.f32 1.442695, %v5455_v27 }
 0x764   : >> { %v5018_v2 = vadd.f32 %v5017_v1, %v5016_v54  ;;  %v5284_v48 = vmul.f32 %v12774_v10, %v5273_v58 }
 0x765   : >> { %v5110_v56 = vadd.f32 %v5109_v6, %v5108_v21  ;;  %8274 = vset.pattern.permute.xlu1 %v12775_v44  ;;  %v5383_v37 = vadd.f32 %v12776_v57, %v5367_v34  ;;  %v12782_v34 = vld [vmem:[#allocation155_spill] sm:$0xff]  ;;  %8371 = vpow2.f32 %v5458_v26 }
 0x766   : >> { %v5117_v3 = vsel %vm4589_vm9, %v5116_v43, %v5018_v2  ;;  %5992 = vperm.xlu1 %8274, %v12762_v41   ;;  %v5286_v7 = vadd.f32 %v5284_v48, %v5268_v46  ;;  %v5346_v59 = vmul.f32 %v12782_v34, %v5336_v11 }
 0x767   : >> { %v5111_v49 = vrot.slane %v5110_v56, 1  ;;  %v5118_v17 = vsel %vm4591_vm10, %v5117_v3, %v5065_v15  ;;  %v11557_v29 = vmul.f32 %v8362_v0, %v5383_v37  ;;  %v8370_v31 = vpop.eup %8369  ;;  %v12781_v0 = vld [vmem:[#allocation168_spill] sm:$0xff] }
 0x768   : >> { %v5370_v53 = vpop.permute.xlu1 %5369  ;;  %v5319_v20 = vmul.f32 %v8364_v14, %v5286_v7  ;;  %v5500_v6 = vrot.slane %v11477_v25, %v12781_v0  ;;  %v5348_v57 = vsel %vm938_vm3, %v5346_v59, 0.0 }
 0x769   : >> { %v5112_v61 = vadd.f32 %v5111_v49, %v5110_v56  ;;  %v5380_v4 = vmul.f32 %v12778_v16, %v5370_v53 }
 0x76a   : >> { %8275 = vset.pattern.permute.xlu1 %v12664_v24  ;;  %v5335_v5 = vadd.f32 %v12777_v42, %v5319_v20  ;;  %v5502_v14 = vmul.f32 %v5500_v6, %v12648_v39  ;;  %v5501_v20 = vmul.f32 %v5500_v6, %v12763_v52 }
 0x76b   : >> { %v5119_v28 = vsel %vm4593_vm11, %v5118_v17, %v5112_v61  ;;  %6035 = vperm.xlu1 %8275, %v12755_v32  }
 0x76c   : >> { %7484 = vst.msk [vmem:[%s11488_s27 + $0x40] sm:$0xff] %vm938_vm3, %v5119_v28  ;;  %v5366_v45 = vmul.f32 %v8366_v50, %v5335_v5  ;;  %v5505_v11 = vmul.f32 1.442695, %v5502_v14  ;;  %v12783_v50 = vld [vmem:[#allocation127_spill] sm:$0xff] }
 0x76d   : >> { %v5296_v55 = vpop.permute.xlu1 %5295  ;;  %v5547_v53 = vrot.slane %v11477_v25, %v12783_v50 }
 0x76e   : >> { %v5382_v33 = vadd.f32 %v5380_v4, %v5366_v45  ;;  %v5299_v63 = vmul.f32 %v5296_v55, %v12779_v51  ;;  %8373 = vpow2.f32 %v5505_v11  ;;  %v5503_v45 = vmul.f32 1.442695, %v5501_v20 }
 0x76f   : >> { %8276 = vset.pattern.permute.xlu1 %v12749_v40  ;;  %v5549_v14 = vmul.f32 %v5547_v53, %v12648_v39 }
 0x770   : >> { %6082 = vperm.xlu1 %8276, %v12755_v32   ;;  %v5413_v60 = vmul.f32 %v8368_v22, %v5382_v33  ;;  %v5301_v1 = vsel %vm938_vm3, %v5299_v63, 0.0  ;;  %8375 = vpow2.f32 %v5503_v45 }
 0x771   : >> { %v5291_v54 = vpop.permute.xlu1 %5290 }
 0x772   : >> { %v5298_v43 = vmul.f32 %v5291_v54, %v5286_v7  ;;  %v5429_v21 = vadd.f32 %v12780_v38, %v5413_v60  ;;  %v8372_v38 = vpop.eup %8371 }
 0x774   : >> { %v5300_v30 = vsel %vm938_vm3, %v5298_v43, 0.0  ;;  %6086 = vperm.xlu1 %8276, %v12762_v41   ;;  %v11575_v46 = vmul.f32 %v8370_v31, %v5429_v21 }
 0x775   : >> { %v5302_v58 = vadd.f32 %v5301_v1, %v5300_v30 }
 0x776   : >> { %v5339_v2 = vpop.permute.xlu1 %5338 }
 0x777   : >> { %v5303_v10 = vrot.slane %v5302_v58, 4  ;;  %v5345_v48 = vmul.f32 %v5339_v2, %v5335_v5  ;;  %v12785_v2 = vld [vmem:[#allocation176_spill] sm:$0xff] }
 0x778   : >> { %8278 = vset.pattern.permute.xlu1 %v12703_v8  ;;  %v8374_v26 = vpop.eup %8373 }
 0x779   : >> { %v5304_v15 = vadd.f32 %v5303_v10, %v5302_v58  ;;  %v5347_v56 = vsel %vm938_vm3, %v5345_v48, 0.0  ;;  %6129 = vperm.xlu1 %8278, %v12755_v32   ;;  %v5548_v32 = vmul.f32 %v5547_v53, %v12763_v52  ;;  %v12788_v53 = vld [vmem:[#allocation183_spill] sm:$0xff] }
 0x77a   : >> { %v5349_v3 = vadd.f32 %v5348_v57, %v5347_v56 }
 0x77b   : >> { %v5305_v7 = vrot.slane %v5304_v15, 2  ;;  %v5386_v49 = vpop.permute.xlu1 %5385  ;;  %v5550_v31 = vmul.f32 1.442695, %v5548_v32 }
 0x77c   : >> { %v5350_v17 = vrot.slane %v5349_v3, 4  ;;  %v5392_v5 = vmul.f32 %v5386_v49, %v5382_v33 }
 0x77d   : >> { %6133 = vperm.xlu1 %8278, %v12762_v41   ;;  %v5306_v61 = vadd.f32 %v5305_v7, %v5304_v15  ;;  %8377 = vpow2.f32 %v5550_v31  ;;  %v12786_v15 = vld [vmem:[#allocation175_spill] sm:$0xff] }
 0x77e   : >> { %v5351_v42 = vadd.f32 %v5350_v17, %v5349_v3  ;;  %v5394_v51 = vsel %vm938_vm3, %v5392_v5, 0.0  ;;  %v12787_v3 = vld [vmem:[#allocation184_spill] sm:$0xff]  ;;  %v8376_v5 = vpop.eup %8375 }
 0x77f   : >> { %v5390_v28 = vpop.permute.xlu1 %5389  ;;  %v5307_v22 = vrot.slane %v5306_v61, 1 }
 0x780   : >> { %v5352_v16 = vrot.slane %v5351_v42, 2  ;;  %v5393_v4 = vmul.f32 %v5390_v28, %v5383_v37  ;;  %v12784_v37 = vld [vmem:[#allocation170_spill] sm:$0xff] }
 0x781   : >> { %8280 = vset.pattern.permute.xlu1 %v12775_v44  ;;  %v5308_v27 = vadd.f32 %v5307_v22, %v5306_v61 }
 0x782   : >> { %v5353_v55 = vadd.f32 %v5352_v16, %v5351_v42  ;;  %v5395_v41 = vsel %vm938_vm3, %v5393_v4, 0.0  ;;  %6008 = vperm.xlu1 %8280, %v12760_v9   ;;  %v5552_v42 = vmul.f32 1.442695, %v5549_v14  ;;  %v12791_v14 = vld [vmem:[#allocation192_spill] sm:$0xff] }
 0x783   : >> { %v5396_v63 = vadd.f32 %v5395_v41, %v5394_v51 }
 0x784   : >> { %v5354_v60 = vrot.slane %v5353_v55, 1  ;;  %v5421_v33 = vpop.permute.xlu1 %5420  ;;  %8379 = vpow2.f32 %v5552_v42 }
 0x785   : >> { %v5397_v54 = vrot.slane %v5396_v63, 4  ;;  %v5428_v43 = vmul.f32 %v12784_v37, %v5421_v33 }
 0x786   : >> { %v5355_v44 = vadd.f32 %v5354_v60, %v5353_v55  ;;  %8281 = vset.pattern.permute.xlu1 %v12664_v24  ;;  %v5594_v24 = vrot.slane %v11477_v25, %v12786_v15  ;;  %v12789_v60 = vld [vmem:[#allocation190_spill] sm:$0xff] }
 0x787   : >> { %v5398_v1 = vadd.f32 %v5397_v54, %v5396_v63  ;;  %v5430_v30 = vadd.f32 %v5428_v43, %v11557_v29  ;;  %6051 = vperm.xlu1 %8281, %v12757_v36  }
 0x788   : >> { %v5638_v6 = vsel %vm4583_vm14, %v5308_v27, %v5355_v44  ;;  %v5433_v58 = vpop.permute.xlu1 %5432  ;;  %v5596_v25 = vmul.f32 %v5594_v24, %v12648_v39  ;;  %v5595_v51 = vmul.f32 %v5594_v24, %v12763_v52 }
 0x789   : >> { %v5399_v34 = vrot.slane %v5398_v1, 2  ;;  %v5439_v59 = vmul.f32 %v5433_v58, %v5429_v21  ;;  %v5440_v10 = vmul.f32 %v12785_v2, %v5430_v30  ;;  %v5461_v48 = vmul.f32 %v8372_v38, %v5430_v30  ;;  %v12790_v58 = vld [vmem:[#allocation189_spill] sm:$0xff] }
 0x78a   : >> { %v5599_v55 = vmul.f32 1.442695, %v5596_v25  ;;  %v5597_v43 = vmul.f32 1.442695, %v5595_v51  ;;  %v8414_v25 = vld [vmem:[%s10763_s30 + $0x80] sm:$0xff] }
 0x78b   : >> { %v5400_v56 = vadd.f32 %v5399_v34, %v5398_v1  ;;  %v5441_v29 = vsel %vm938_vm3, %v5439_v59, 0.0  ;;  %v5442_v57 = vsel %vm938_vm3, %v5440_v10, 0.0  ;;  %8283 = vset.pattern.permute.xlu1 %v12749_v40  ;;  %v5477_v7 = vadd.f32 %v12787_v3, %v5461_v48 }
 0x78c   : >> { %v5443_v49 = vadd.f32 %v5442_v57, %v5441_v29  ;;  %6098 = vperm.xlu1 %8283, %v12757_v36   ;;  %v8378_v36 = vpop.eup %8377  ;;  %8381 = vpow2.f32 %v5599_v55 }
 0x78d   : >> { %v5401_v21 = vrot.slane %v5400_v56, 1  ;;  %v5464_v17 = vpop.permute.xlu1 %5463  ;;  %v5508_v11 = vmul.f32 %v8374_v26, %v5477_v7  ;;  %8383 = vpow2.f32 %v5597_v43 }
 0x78e   : >> { %v5444_v20 = vrot.slane %v5443_v49, 4  ;;  %v5474_v61 = vmul.f32 %v12788_v53, %v5464_v17 }
 0x78f   : >> { %v5402_v28 = vadd.f32 %v5401_v21, %v5400_v56 }
 0x790   : >> { %v5445_v16 = vadd.f32 %v5444_v20, %v5443_v49  ;;  %6102 = vperm.xlu1 %8283, %v12760_v9   ;;  %v5476_v40 = vadd.f32 %v5474_v61, %v11575_v46  ;;  %v12792_v49 = vld [vmem:[#allocation139_spill] sm:$0xff] }
 0x791   : >> { %v5639_v4 = vsel %vm773_vm1, %v5638_v6, %v5402_v28  ;;  %v5480_v32 = vpop.permute.xlu1 %5479 }
 0x792   : >> { %v5446_v45 = vrot.slane %v5445_v16, 2  ;;  %v5507_v22 = vmul.f32 %v8376_v5, %v5476_v40  ;;  %v5486_v63 = vmul.f32 %v5480_v32, %v5476_v40  ;;  %v5614_v5 = vrot.slane %v8414_v25, %v12786_v15  ;;  %v5605_v32 = vpop.permute.xlu0 %5604 }
 0x794   : >> { %v5447_v41 = vadd.f32 %v5446_v45, %v5445_v16  ;;  %8284 = vset.pattern.permute.xlu1 %v12703_v8  ;;  %v5523_v33 = vadd.f32 %v12789_v60, %v5507_v22  ;;  %v5488_v27 = vsel %vm938_vm3, %v5486_v63, 0.0  ;;  %v12794_v16 = vld [vmem:[#allocation138_spill] sm:$0xff]  ;;  %v5615_v63 = vmul.f32 %v5614_v5, %v5605_v32 }
 0x795   : >> { %6149 = vperm.xlu1 %8284, %v12760_v9   ;;  %v5484_v31 = vpop.permute.xlu1 %5483  ;;  %v8380_v9 = vpop.eup %8379 }
 0x796   : >> { %v5448_v46 = vrot.slane %v5447_v41, 1  ;;  %v5487_v54 = vmul.f32 %v5484_v31, %v5477_v7  ;;  %v5554_v37 = vmul.f32 %v8378_v36, %v5523_v33  ;;  %v8382_v29 = vpop.eup %8381  ;;  %v11632_v31 = vld [vmem:[%s10790_s21 + $0xc0] sm:$0xff]  ;;  %s8718_s21 = smov (%p4055_p11), [#allocation8]  }
 0x798   : >> { %v5449_v38 = vadd.f32 %v5448_v46, %v5447_v41  ;;  %v5489_v44 = vsel %vm938_vm3, %v5487_v54, 0.0  ;;  %v5884_v46 = vrot.slane %v11632_v31, %v12761_v23  ;;  %v12795_v54 = vld [vmem:[#allocation147_spill] sm:$0xff] }
 0x799   : >> { %v5490_v1 = vadd.f32 %v5489_v44, %v5488_v27  ;;  %v5838_v43 = vmul.f32 %v12795_v54, %v12763_v52 }
 0x79a   : >> { %v5640_v30 = vsel %vm4586_vm8, %v5639_v4, %v5449_v38  ;;  %v5515_v6 = vpop.permute.xlu1 %5514  ;;  %v8384_v4 = vpop.eup %8383 }
 0x79b   : >> { %v5491_v8 = vrot.slane %v5490_v1, 4  ;;  %v5522_v34 = vmul.f32 %v12790_v58, %v5515_v6  ;;  %v5840_v58 = vmul.f32 1.442695, %v5838_v43 }
 0x79d   : >> { %v5492_v59 = vadd.f32 %v5491_v8, %v5490_v1  ;;  %v5524_v2 = vadd.f32 %v5522_v34, %v5508_v11  ;;  %v12793_v11 = vld [vmem:[#allocation150_spill] sm:$0xff]  ;;  %v5885_v8 = vmul.f32 %v5884_v46, %v12763_v52 }
 0x79e   : >> { %v5527_v10 = vpop.permute.xlu1 %5526  ;;  %v5787_v42 = vmul.f32 %v12793_v11, %v12763_v52 }
 0x79f   : >> { %v5493_v48 = vrot.slane %v5492_v59, 2  ;;  %v5533_v26 = vmul.f32 %v5527_v10, %v5523_v33  ;;  %v5534_v24 = vmul.f32 %v12791_v14, %v5524_v2  ;;  %v5555_v56 = vmul.f32 %v8380_v9, %v5524_v2 }
 0x7a0   : >> { %v5789_v41 = vmul.f32 1.442695, %v5787_v42 }
 0x7a1   : >> { %v5494_v57 = vadd.f32 %v5493_v48, %v5492_v59  ;;  %v5535_v3 = vsel %vm938_vm3, %v5533_v26, 0.0  ;;  %v5536_v7 = vsel %vm938_vm3, %v5534_v24, 0.0  ;;  %v5571_v21 = vadd.f32 %v12792_v49, %v5555_v56 }
 0x7a2   : >> { %v5537_v17 = vadd.f32 %v5536_v7, %v5535_v3  ;;  %8385 = vpow2.f32 %v5789_v41  ;;  %v5887_v26 = vmul.f32 1.442695, %v5885_v8  ;;  %v5886_v7 = vmul.f32 %v5884_v46, %v12648_v39 }
 0x7a3   : >> { %v5495_v20 = vrot.slane %v5494_v57, 1  ;;  %v5558_v53 = vpop.permute.xlu1 %5557  ;;  %v5602_v61 = vmul.f32 %v8382_v29, %v5571_v21  ;;  %8387 = vpow2.f32 %v5840_v58 }
 0x7a4   : >> { %v5538_v28 = vrot.slane %v5537_v17, 4  ;;  %v5568_v40 = vmul.f32 %v12794_v16, %v5558_v53  ;;  %8389 = vpow2.f32 %v5887_v26  ;;  %v5931_v53 = vrot.slane %v11632_v31, %v12765_v13 }
 0x7a5   : >> { %v5496_v36 = vadd.f32 %v5495_v20, %v5494_v57  ;;  %v5625_v57 = vpop.permute.xlu0 %5624 }
 0x7a6   : >> { %v5539_v45 = vadd.f32 %v5538_v28, %v5537_v17  ;;  %v5570_v22 = vadd.f32 %v5568_v40, %v5554_v37  ;;  %v5933_v32 = vmul.f32 %v5931_v53, %v12648_v39 }
 0x7a7   : >> { %v5641_v55 = vsel %vm3012_vm5, %v5640_v30, %v5496_v36  ;;  %v5574_v51 = vpop.permute.xlu1 %5573 }
 0x7a8   : >> { %v5540_v60 = vrot.slane %v5539_v45, 2  ;;  %v5601_v33 = vmul.f32 %v8384_v4, %v5570_v22  ;;  %v5580_v27 = vmul.f32 %v5574_v51, %v5570_v22  ;;  %v5889_v4 = vmul.f32 1.442695, %v5886_v7 }
 0x7a9   : >> { %v5936_v46 = vmul.f32 1.442695, %v5933_v32 }
 0x7aa   : >> { %v5541_v38 = vadd.f32 %v5540_v60, %v5539_v45  ;;  %v11638_v44 = vadd.f32 %v5615_v63, %v5601_v33   ;;  %v5582_v9 = vsel %vm938_vm3, %v5580_v27, 0.0  ;;  %v12798_v45 = vld [vmem:[#allocation144_spill] sm:$0xff]  ;;  %8391 = vpow2.f32 %v5889_v4 }
 0x7ab   : >> { %v5578_v37 = vpop.permute.xlu1 %5577  ;;  %8393 = vpow2.f32 %v5936_v46 }
 0x7ac   : >> { %v12796_v1 = vmov %v11638_v44  ;;  %v5542_v30 = vrot.slane %v5541_v38, 1  ;;  %v5581_v6 = vmul.f32 %v5578_v37, %v5571_v21  ;;  %v8386_v49 = vpop.eup %8385  ;;  %v5978_v44 = vrot.slane %v11632_v31, %v12769_v18 }
 0x7ad   : >> { %v5932_v37 = vmul.f32 %v5931_v53, %v12763_v52 }
 0x7ae   : >> { %v5543_v34 = vadd.f32 %v5542_v30, %v5541_v38  ;;  %v5583_v59 = vsel %vm938_vm3, %v5581_v6, 0.0  ;;  %v12799_v6 = vld [vmem:[#allocation158_spill] sm:$0xff] }
 0x7af   : >> { %v5584_v2 = vadd.f32 %v5583_v59, %v5582_v9 }
 0x7b0   : >> { %v5642_v10 = vsel %vm4589_vm9, %v5641_v55, %v5543_v34  ;;  %v5609_v48 = vpop.permute.xlu1 %5608  ;;  %v8388_v55 = vpop.eup %8387 }
 0x7b1   : >> { %v5585_v14 = vrot.slane %v5584_v2, 4  ;;  %v5616_v24 = vmul.f32 %v5614_v5, %v5609_v48  ;;  %v12797_v5 = vld [vmem:[#allocation121_spill] sm:$0xff]  ;;  %v8390_v54 = vpop.eup %8389  ;;  %v6025_v48 = vrot.slane %v11632_v31, %v12781_v0 }
 0x7b2   : >> { %v5793_v28 = vmul.f32 %v12797_v5, %v8386_v49  ;;  %v12800_v49 = vld [vmem:[#allocation156_spill] sm:$0xff] }
 0x7b3   : >> { %v5586_v56 = vadd.f32 %v5585_v14, %v5584_v2  ;;  %v11644_v29 = vadd.f32 %v5616_v24, %v5602_v61   ;;  %v5979_v2 = vmul.f32 %v5978_v44, %v12763_v52 }
 0x7b4   : >> { %v5621_v3 = vpop.permute.xlu1 %5620  ;;  %v8392_v7 = vpop.eup %8391 }
 0x7b5   : >> { %v5587_v21 = vrot.slane %v5586_v56, 2  ;;  %v5627_v17 = vmul.f32 %v5621_v3, %v12796_v1  ;;  %v5628_v20 = vmul.f32 %v5625_v57, %v11644_v29  ;;  %v5981_v3 = vmul.f32 1.442695, %v5979_v2 }
 0x7b7   : >> { %v5588_v11 = vadd.f32 %v5587_v21, %v5586_v56  ;;  %v5629_v42 = vsel %vm938_vm3, %v5627_v17, 0.0  ;;  %v5630_v61 = vsel %vm938_vm3, %v5628_v20, 0.0  ;;  %v6026_v17 = vmul.f32 %v6025_v48, %v12763_v52  ;;  %v12801_v20 = vld [vmem:[#allocation129_spill] sm:$0xff] }
 0x7b8   : >> { %v5631_v25 = vadd.f32 %v5630_v61, %v5629_v42  ;;  %v8394_v42 = vpop.eup %8393 }
 0x7b9   : >> { %v5589_v16 = vrot.slane %v5588_v11, 1  ;;  %v5798_v40 = vpop.permute.xlu1 %5797 }
 0x7ba   : >> { %v5632_v36 = vrot.slane %v5631_v25, 4  ;;  %v5809_v22 = vmul.f32 %v12798_v45, %v5798_v40  ;;  %v5980_v40 = vmul.f32 %v5978_v44, %v12648_v39  ;;  %v12803_v45 = vld [vmem:[#allocation169_spill] sm:$0xff] }
 0x7bb   : >> { %v5590_v51 = vadd.f32 %v5589_v16, %v5588_v11  ;;  %v6028_v16 = vmul.f32 1.442695, %v6026_v17 }
 0x7bc   : >> { %v5633_v41 = vadd.f32 %v5632_v36, %v5631_v25  ;;  %v5811_v63 = vadd.f32 %v5809_v22, %v5793_v28  ;;  %v12802_v25 = vld [vmem:[#allocation160_spill] sm:$0xff]  ;;  %v5983_v46 = vmul.f32 1.442695, %v5980_v40 }
 0x7bd   : >> { %v5643_v60 = vsel %vm4591_vm10, %v5642_v10, %v5590_v51  ;;  %v5816_v33 = vpop.permute.xlu1 %5815  ;;  %v5934_v10 = vmul.f32 1.442695, %v5932_v37 }
 0x7be   : >> { %v5634_v43 = vrot.slane %v5633_v41, 2  ;;  %v5823_v38 = vmul.f32 %v5816_v33, %v5811_v63  ;;  %v5844_v27 = vmul.f32 %v8388_v55, %v5811_v63 }
 0x7bf   : >> { %8395 = vpow2.f32 %v5934_v10  ;;  %v12805_v10 = vld [vmem:[#allocation178_spill] sm:$0xff] }
 0x7c0   : >> { %v5635_v30 = vadd.f32 %v5634_v43, %v5633_v41  ;;  %v5860_v8 = vadd.f32 %v12799_v6, %v5844_v27  ;;  %v5825_v18 = vsel %vm938_vm3, %v5823_v38, 0.0  ;;  %8397 = vpow2.f32 %v5981_v3 }
 0x7c1   : >> { %v5821_v58 = vpop.permute.xlu1 %5820  ;;  %8399 = vpow2.f32 %v6028_v16 }
 0x7c2   : >> { %v5636_v34 = vrot.slane %v5635_v30, 1  ;;  %v5824_v9 = vmul.f32 %v5821_v58, %v11401_v62  ;;  %v5891_v59 = vmul.f32 %v8390_v54, %v5860_v8  ;;  %8401 = vpow2.f32 %v5983_v46 }
 0x7c4   : >> { %v5637_v26 = vadd.f32 %v5636_v34, %v5635_v30  ;;  %v5826_v14 = vsel %vm938_vm3, %v5824_v9, 0.0  ;;  %v6027_v34 = vmul.f32 %v6025_v48, %v12648_v39 }
 0x7c5   : >> { %v5827_v24 = vadd.f32 %v5826_v14, %v5825_v18 }
 0x7c6   : >> { %v5644_v56 = vsel %vm4593_vm11, %v5643_v60, %v5637_v26  ;;  %v5852_v57 = vpop.permute.xlu1 %5851  ;;  %v12804_v60 = vld [vmem:[#allocation165_spill] sm:$0xff] }
 0x7c7   : >> { %7497 = vst.msk [vmem:[%s11488_s27 + $0x80] sm:$0xff] %vm938_vm3, %v5644_v56  ;;  %v5828_v62 = vrot.slane %v5827_v24, 4  ;;  %v5859_v21 = vmul.f32 %v12800_v49, %v5852_v57  ;;  %v6030_v49 = vmul.f32 1.442695, %v6027_v34 }
 0x7c9   : >> { %v5829_v0 = vadd.f32 %v5828_v62, %v5827_v24  ;;  %v5861_v53 = vadd.f32 %v5859_v21, %v12801_v20  ;;  %v8396_v54 = vpop.eup %8395  ;;  %v6119_v62 = vrot.slane %v11632_v31, %v12786_v15  ;;  %8403 = vpow2.f32 %v6030_v49  ;;  %v12811_v49 = vld [vmem:[#allocation194_spill] sm:$0xff] }
 0x7ca   : >> { %v5864_v11 = vpop.permute.xlu1 %5863  ;;  %v8398_v37 = vpop.eup %8397 }
 0x7cb   : >> { %v5870_v61 = vmul.f32 %v5864_v11, %v5860_v8  ;;  %v5871_v5 = vmul.f32 %v12802_v25, %v5861_v53  ;;  %v5892_v28 = vmul.f32 %v8392_v7, %v5861_v53  ;;  %v5830_v4 = vrot.slane %v5829_v0, 2  ;;  %v8400_v57 = vpop.eup %8399 }
 0x7cc   : >> { %v6072_v8 = vrot.slane %v11632_v31, %v12783_v50  ;;  %v8402_v31 = vpop.eup %8401 }
 0x7cd   : >> { %v5872_v32 = vsel %vm938_vm3, %v5870_v61, 0.0  ;;  %v5873_v36 = vsel %vm938_vm3, %v5871_v5, 0.0  ;;  %v5908_v22 = vadd.f32 %v12803_v45, %v5892_v28  ;;  %v5831_v43 = vadd.f32 %v5830_v4, %v5829_v0  ;;  %v12806_v0 = vld [vmem:[#allocation186_spill] sm:$0xff]  ;;  %v12807_v28 = vld [vmem:[#allocation177_spill] sm:$0xff] }
 0x7ce   : >> { %v5874_v55 = vadd.f32 %v5873_v36, %v5872_v32  ;;  %v6073_v7 = vmul.f32 %v6072_v8, %v12763_v52  ;;  %v6120_v4 = vmul.f32 %v6119_v62, %v12763_v52  ;;  %v12829_v52 = vld [vmem:[#allocation75_spill] sm:$0xff] (%p4055_p11) }
 0x7cf   : >> { %v5895_v51 = vpop.permute.xlu1 %5894  ;;  %v5939_v41 = vmul.f32 %v8394_v42, %v5908_v22  ;;  %v5832_v58 = vrot.slane %v5831_v43, 1  ;;  %v7521_v13 = vmul.f32 (%p4055_p11), -1.442695, %v12829_v52 }
 0x7d0   : >> { %v5875_v63 = vrot.slane %v5874_v55, 4  ;;  %v5905_v33 = vmul.f32 %v12804_v60, %v5895_v51  ;;  %v6075_v40 = vmul.f32 1.442695, %v6073_v7  ;;  %v12808_v51 = vld [vmem:[#allocation179_spill] sm:$0xff]  ;;  %v8416_v7 = vld [vmem:[%s10763_s30 + $0xc0] sm:$0xff]  ;;  %s8564_s30 = scalar_lea.vmem (%p4055_p11), %s12165_s3, 256 }
 0x7d1   : >> { %v5833_v3 = vadd.f32 %v5832_v58, %v5831_v43  ;;  %p8565_p12 = scmp.ne.s32.totalorder (%p4055_p11), %s12165_s3, %s8564_s30 }
 0x7d2   : >> { %v5876_v38 = vadd.f32 %v5875_v63, %v5874_v55  ;;  %v5907_v27 = vadd.f32 %v5905_v33, %v5891_v59  ;;  %v6074_v59 = vmul.f32 %v6072_v8, %v12648_v39  ;;  %v6122_v33 = vmul.f32 1.442695, %v6120_v4 }
 0x7d3   : >> { %v5911_v44 = vpop.permute.xlu1 %5910  ;;  %v8404_v8 = vpop.eup %8403  ;;  %p8566_p13 = pnand (%p4055_p11), %p8565_p12, %p8836_p5 }
 0x7d4   : >> { %v5877_v30 = vrot.slane %v5876_v38, 2  ;;  %v5938_v6 = vmul.f32 %v8396_v54, %v5907_v27  ;;  %v5917_v2 = vmul.f32 %v5911_v44, %v5907_v27  ;;  %v6077_v25 = vmul.f32 1.442695, %v6074_v59 }
 0x7d5   : > { %p8567_p0 = pneg (%p4055_p11), %p8566_p13 }
 0x7d6   : >> { %v5878_v9 = vadd.f32 %v5877_v30, %v5876_v38  ;;  %v5954_v26 = vadd.f32 %v12805_v10, %v5938_v6  ;;  %v5919_v48 = vsel %vm938_vm3, %v5917_v2, 0.0  ;;  %8405 = vpow2.f32 %v6077_v25  ;;  %v12809_v30 = vld [vmem:[#allocation185_spill] sm:$0xff] }
 0x7d7   : >> { %v5915_v18 = vpop.permute.xlu1 %5914  ;;  %8407 = vpow2.f32 %v6075_v40  ;;  %v6121_v38 = vmul.f32 %v6119_v62, %v12648_v39  ;;  %v6092_v62 = vrot.slane %v8416_v7, %v12783_v50  ;;  %v12828_v39 = vld [vmem:[#allocation60_spill] sm:$0xff] (%p4055_p11) }
 0x7d8   : >> { %v5879_v14 = vrot.slane %v5878_v9, 1  ;;  %v5918_v24 = vmul.f32 %v5915_v18, %v5908_v22  ;;  %v5985_v56 = vmul.f32 %v8398_v37, %v5954_v26  ;;  %8409 = vpow2.f32 %v6122_v33 }
 0x7d9   : >> { %v6124_v34 = vmul.f32 1.442695, %v6121_v38  ;;  %v7518_v23 = vmul.f32 (%p4055_p11), -1.442695, %v12828_v39 }
 0x7da   : >> { %v5880_v21 = vadd.f32 %v5879_v14, %v5878_v9  ;;  %v5920_v17 = vsel %vm938_vm3, %v5918_v24, 0.0  ;;  %v11690_v20 = vadd.f32 %v12806_v0, %v5985_v56  ;;  %v12810_v56 = vld [vmem:[#allocation193_spill] sm:$0xff] }
 0x7db   : >> { %v5921_v53 = vadd.f32 %v5920_v17, %v5919_v48  ;;  %8411 = vpow2.f32 %v6124_v34 }
 0x7dc   : >> { %v6163_v11 = vsel %vm4583_vm14, %v5833_v3, %v5880_v21  ;;  %v5946_v42 = vpop.permute.xlu1 %5945  ;;  %v6032_v61 = vmul.f32 %v8400_v57, %v11690_v20 }
 0x7dd   : >> { %v5922_v5 = vrot.slane %v5921_v53, 4  ;;  %v5953_v16 = vmul.f32 %v12807_v28, %v5946_v42 }
 0x7df   : >> { %v5923_v32 = vadd.f32 %v5922_v5, %v5921_v53  ;;  %v5955_v36 = vadd.f32 %v5953_v16, %v5939_v41 }
 0x7e0   : >> { %v5958_v45 = vpop.permute.xlu1 %5957 }
 0x7e1   : >> { %v5924_v22 = vrot.slane %v5923_v32, 2  ;;  %v5964_v55 = vmul.f32 %v5958_v45, %v5954_v26  ;;  %v5965_v63 = vmul.f32 %v12808_v51, %v5955_v36  ;;  %v5986_v60 = vmul.f32 %v8402_v31, %v5955_v36  ;;  %v8406_v26 = vpop.eup %8405 }
 0x7e2   : >> { %v8408_v57 = vpop.eup %8407  ;;  %v6139_v36 = vrot.slane %v8416_v7, %v12786_v15  ;;  %v6146_v7 = vpop.permute.xlu0 %6145 }
 0x7e3   : >> { %v5925_v46 = vadd.f32 %v5924_v22, %v5923_v32  ;;  %v5966_v54 = vsel %vm938_vm3, %v5964_v55, 0.0  ;;  %v5967_v43 = vsel %vm938_vm3, %v5965_v63, 0.0  ;;  %v8410_v5 = vpop.eup %8409 }
 0x7e4   : >> { %v5968_v27 = vadd.f32 %v5967_v43, %v5966_v54 }
 0x7e5   : >> { %v5926_v44 = vrot.slane %v5925_v46, 1  ;;  %v5993_v37 = vpop.permute.xlu1 %5992  ;;  %v8412_v32 = vpop.eup %8411 }
 0x7e6   : >> { %v5969_v41 = vrot.slane %v5968_v27, 4  ;;  %v6000_v6 = vmul.f32 %v12809_v30, %v5993_v37  ;;  %v12813_v37 = vld [vmem:[#allocation195_spill] sm:$0xff] }
 0x7e7   : >> { %v5927_v58 = vadd.f32 %v5926_v44, %v5925_v46 }
 0x7e8   : >> { %v5970_v9 = vadd.f32 %v5969_v41, %v5968_v27  ;;  %v6002_v2 = vadd.f32 %v6000_v6, %v5986_v60  ;;  %v12812_v60 = vld [vmem:[#allocation187_spill] sm:$0xff] }
 0x7e9   : >> { %v6164_v10 = vsel %vm773_vm1, %v6163_v11, %v5927_v58  ;;  %v6011_v33 = vmul.f32 %v12812_v60, %v11690_v20  ;;  %vm7032_vm1 = vcmask (%p4055_p11), 97280  }
 0x7ea   : >> { %v5971_v18 = vrot.slane %v5970_v9, 2  ;;  %v6036_v14 = vpop.permute.xlu1 %6035  ;;  %v6033_v24 = vmul.f32 %v8404_v8, %v6002_v2 }
 0x7eb   : >> { %v6046_v59 = vmul.f32 %v12810_v56, %v6036_v14  ;;  %v6013_v43 = vsel %vm938_vm3, %v6011_v33, 0.0 }
 0x7ec   : >> { %v5972_v3 = vadd.f32 %v5971_v18, %v5970_v9  ;;  %v6049_v21 = vadd.f32 %v12811_v49, %v6033_v24 }
 0x7ed   : >> { %v6048_v48 = vadd.f32 %v6046_v59, %v6032_v61 }
 0x7ee   : >> { %v5973_v17 = vrot.slane %v5972_v3, 1  ;;  %v6080_v0 = vmul.f32 %v8406_v26, %v6049_v21  ;;  %v6059_v15 = vmul.f32 %v12813_v37, %v6049_v21 }
 0x7ef   : >> { %v6083_v53 = vpop.permute.xlu1 %6082  ;;  %v6079_v42 = vmul.f32 %v8408_v57, %v6048_v48 }
 0x7f0   : >> { %v5974_v11 = vadd.f32 %v5973_v17, %v5972_v3  ;;  %v6093_v25 = vmul.f32 %v6092_v62, %v6083_v53  ;;  %v6061_v34 = vsel %vm938_vm3, %v6059_v15, 0.0 }
 0x7f2   : >> { %v6095_v28 = vadd.f32 %v6093_v25, %v6079_v42  ;;  %v6165_v16 = vsel %vm4586_vm8, %v6164_v10, %v5974_v11 }
 0x7f3   : >> { %v6087_v31 = vpop.permute.xlu1 %6086 }
 0x7f4   : >> { %v6094_v40 = vmul.f32 %v6092_v62, %v6087_v31  ;;  %v6126_v4 = vmul.f32 %v8410_v5, %v6095_v28 }
 0x7f6   : >> { %v6096_v50 = vadd.f32 %v6094_v40, %v6080_v0 }
 0x7f8   : >> { %v6130_v45 = vpop.permute.xlu1 %6129  ;;  %v6127_v22 = vmul.f32 %v8412_v32, %v6096_v50 }
 0x7f9   : >> { %v6140_v61 = vmul.f32 %v6139_v36, %v6130_v45 }
 0x7fb   : >> { %v6142_v51 = vadd.f32 %v6140_v61, %v6126_v4  }
 0x7fc   : >> { %v6134_v55 = vpop.permute.xlu1 %6133 }
 0x7fd   : >> { %v6141_v63 = vmul.f32 %v6139_v36, %v6134_v55  ;;  %v6152_v0 = vmul.f32 %v6146_v7, %v6142_v51  ;;  %v12830_v51 = vld [vmem:[#allocation73_spill] sm:$0xff] (%p4055_p11) }
 0x7ff   : >> { %v6143_v44 = vadd.f32 %v6141_v63, %v6127_v22   ;;  %v6154_v31 = vsel %vm938_vm3, %v6152_v0, 0.0 }
 0x801   : >> { %v6009_v46 = vpop.permute.xlu1 %6008 }
 0x802   : >> { %v6012_v54 = vmul.f32 %v6009_v46, %v6002_v2 }
 0x804   : >> { %v6014_v38 = vsel %vm938_vm3, %v6012_v54, 0.0 }
 0x805   : >> { %v6015_v27 = vadd.f32 %v6014_v38, %v6013_v43  ;;  %v12816_v43 = vmov %v11525_v19  ;;  %v12820_v38 = vld [vmem:[#allocation52_spill] sm:$0xff] (%p4055_p11)  ;;  %v12824_v19 = vld [vmem:[#allocation58_spill] sm:$0xff] (%p4055_p11) }
 0x806   : >> { %v6052_v41 = vpop.permute.xlu1 %6051  ;;  %v12831_v43 = vld [vmem:[#allocation74_spill] sm:$0xff] (%p4055_p11) }
 0x807   : >> { %v6016_v30 = vrot.slane %v6015_v27, 4  ;;  %v6058_v6 = vmul.f32 %v6052_v41, %v6048_v48  ;;  %v12823_v41 = vmov (%p4055_p11), 0.0  }
 0x808   : > { %7779 = vmatprep.subr.bf16.mxu1 (%p4055_p11), %v12823_v41 }
 0x809   : >> { %v6017_v8 = vadd.f32 %v6016_v30, %v6015_v27  ;;  %v6060_v58 = vsel %vm938_vm3, %v6058_v6, 0.0  ;;  %v12817_v6 = vmov %v12768_v35  ;;  %v12821_v27 = vld [vmem:[#allocation53_spill] sm:$0xff] (%p4055_p11)  ;;  %v7513_v30 = vmul.f32 (%p4055_p11), -1.442695, %v12824_v19  ;;  %v12825_v35 = vld [vmem:[#allocation63_spill] sm:$0xff] (%p4055_p11) }
 0x80a   : >> { %v6062_v9 = vadd.f32 %v6061_v34, %v6060_v58  ;;  %v7512_v37 = vmul.f32 (%p4055_p11), -1.442695, %v12821_v27  ;;  %v7523_v6 = vmul.f32 (%p4055_p11), -1.442695, %v12831_v43 }
 0x80b   : >> { %v6018_v10 = vrot.slane %v6017_v8, 2  ;;  %v6099_v20 = vpop.permute.xlu1 %6098 }
 0x80c   : >> { %v6063_v26 = vrot.slane %v6062_v9, 4  ;;  %v6105_v14 = vmul.f32 %v6099_v20, %v6095_v28  ;;  %v12833_v20 = vld [vmem:[#allocation79_spill] sm:$0xff] (%p4055_p11) }
 0x80d   : >> { %v6019_v2 = vadd.f32 %v6018_v10, %v6017_v8  ;;  %v7517_v8 = vmul.f32 (%p4055_p11), -1.442695, %v12825_v35 }
 0x80e   : >> { %v6064_v18 = vadd.f32 %v6063_v26, %v6062_v9  ;;  %v6107_v49 = vsel %vm938_vm3, %v6105_v14, 0.0  ;;  %v12832_v9 = vld [vmem:[#allocation72_spill] sm:$0xff] (%p4055_p11)  ;;  %v7525_v26 = vmul.f32 (%p4055_p11), -1.442695, %v12833_v20 }
 0x80f   : >> { %v6020_v24 = vrot.slane %v6019_v2, 1  ;;  %v6103_v56 = vpop.permute.xlu1 %6102  ;;  %v7522_v10 = vmul.f32 (%p4055_p11), -1.442695, %v12832_v9 }
 0x810   : >> { %v6065_v59 = vrot.slane %v6064_v18, 2  ;;  %v6106_v57 = vmul.f32 %v6103_v56, %v6096_v50  ;;  %v12814_v56 = vmov %v11644_v29  ;;  %v7514_v29 = vmul.f32 (%p4055_p11), -1.442695, %v12820_v38 }
 0x811   : >> { %v6021_v3 = vadd.f32 %v6020_v24, %v6019_v2 }
 0x812   : >> { %v6066_v62 = vadd.f32 %v6065_v59, %v6064_v18  ;;  %v6108_v21 = vsel %vm938_vm3, %v6106_v57, 0.0  ;;  %8420 = vpow2.f32 (%p4055_p11), %v7514_v29 }
 0x813   : >> { %v6166_v48 = vsel %vm3012_vm5, %v6165_v16, %v6021_v3  ;;  %v6109_v17 = vadd.f32 %v6108_v21, %v6107_v49  ;;  %8422 = vpow2.f32 (%p4055_p11), %v7512_v37 }
 0x814   : >> { %v6067_v53 = vrot.slane %v6066_v62, 1  ;;  %v6150_v42 = vpop.permute.xlu1 %6149 }
 0x815   : >> { %v6110_v11 = vrot.slane %v6109_v17, 4  ;;  %v6153_v25 = vmul.f32 %v6150_v42, %v6143_v44  ;;  %v7520_v44 = vmul.f32 (%p4055_p11), -1.442695, %v12830_v51 }
 0x816   : >> { %v6068_v5 = vadd.f32 %v6067_v53, %v6066_v62 }
 0x817   : >> { %v6111_v28 = vadd.f32 %v6110_v11, %v6109_v17  ;;  %v6155_v40 = vsel %vm938_vm3, %v6153_v25, 0.0  ;;  %v12818_v11 = vmov %v11441_v12  ;;  %v12826_v12 = vld [vmem:[#allocation61_spill] sm:$0xff] (%p4055_p11) }
 0x818   : >> { %v6167_v4 = vsel %vm4589_vm9, %v6166_v48, %v6068_v5  ;;  %v6156_v32 = vadd.f32 %v6155_v40, %v6154_v31  ;;  %v7516_v58 = vmul.f32 (%p4055_p11), -1.442695, %v12826_v12  ;;  %v6674_v11 = vld [vmem:[%s12222_s10] sm:$0xf] (%p4055_p11) }
 0x819   : >> { %v6112_v36 = vrot.slane %v6111_v28, 2  ;;  %7793 = vmatprep.subr.msk.bf16.mxu0 (%p4055_p11), %vm3012_vm5, %v6674_v11 }
 0x81a   : >> { %v6157_v50 = vrot.slane %v6156_v32, 4 }
 0x81b   : >> { %v6113_v45 = vadd.f32 %v6112_v36, %v6111_v28  ;;  %v6757_v28 = vsel (%p4055_p11), %vm3012_vm5, %v6674_v11, 0 }
 0x81c   : >> { %v6158_v16 = vadd.f32 %v6157_v50, %v6156_v32  ;;  %v8421_v2 = vpop.eup (%p4055_p11), %8420  ;;  %7746 = vmatpush3.bf16.msra.mxu0 (%p4055_p11), %v6757_v28 }
 0x81d   : >> { %v6114_v22 = vrot.slane %v6113_v45, 1  ;;  %v8423_v18 = vpop.eup (%p4055_p11), %8422  ;;  %v6372_v14 = vadd.f32 (%p4055_p11), 1.0, %v8421_v2 }
 0x81e   : >> { %v6159_v61 = vrot.slane %v6158_v16, 2  ;;  %v6370_v56 = vadd.f32 (%p4055_p11), 1.0, %v8423_v18  ;;  %v12841_v18 = vld [vmem:[#allocation87_spill] sm:$0xff] (%p4055_p11) }
 0x81f   : >> { %v6115_v55 = vadd.f32 %v6114_v22, %v6113_v45  ;;  %v12834_v45 = vld [vmem:[#allocation77_spill] sm:$0xff] (%p4055_p11) }
 0x820   : >> { %v6160_v63 = vadd.f32 %v6159_v61, %v6158_v16  ;;  %v7524_v16 = vmul.f32 (%p4055_p11), -1.442695, %v12834_v45 }
 0x821   : >> { %v6168_v60 = vsel %vm4591_vm10, %v6167_v4, %v6115_v55  ;;  %v12819_v55 = vmov %v11214_v47  ;;  %4057 = sbr.rel (!%p4055_p11) target bundleno = 1152 (0x480), region = 134  ;;  %v12827_v47 = vld [vmem:[#allocation62_spill] sm:$0xff] (%p4055_p11) }
 0x822   : >> { %v6161_v33 = vrot.slane %v6160_v63, 1  ;;  %v7519_v34 = vmul.f32 (%p4055_p11), -1.442695, %v12827_v47  ;;  %v12835_v55 = vld [vmem:[#allocation78_spill] sm:$0xff] (%p4055_p11) }
 0x824   : >> { %v6162_v46 = vadd.f32 %v6161_v33, %v6160_v63  ;;  %v7527_v63 = vmul.f32 (%p4055_p11), -1.442695, %v12835_v55 }
 0x826   : >> { %v6169_v54 = vsel %vm4593_vm11, %v6168_v60, %v6162_v46  ;;  %v12815_v46 = vmov %v12796_v1  ;;  %v12822_v1 = vld [vmem:[#allocation57_spill] sm:$0xff] (%p4055_p11) }
 0x827   : >> { %7510 = vst.msk [vmem:[%s11488_s27 + $0xc0] sm:$0xff] %vm938_vm3, %v6169_v54  ;;  %v7515_v15 = vmul.f32 (%p4055_p11), -1.442695, %v12822_v1  ;;  %v12836_v46 = vld [vmem:[#allocation76_spill] sm:$0xff] (%p4055_p11)  ;;  %s7568_s27 = sshll.u32 (%p4055_p11), %s8819_s13, 8  ;;  %s12170_s13 = scalar_lea.sflag (%p4055_p11), [#allocation9], %s459_s22 }
 0x828   : > { %v7526_v54 = vmul.f32 -1.442695, %v12836_v46 }
 0x829   : > { %8424 = vpow2.f32 %v7515_v15  ;;  %v12837_v15 = vld [vmem:[#allocation83_spill] sm:$0xff] }
 0x82a   : > { %8426 = vpow2.f32 %v7513_v30  ;;  %v7529_v30 = vmul.f32 -1.442695, %v12837_v15 }
 0x82b   : > { %8428 = vpow2.f32 %v7517_v8 }
 0x82c   : > { %8430 = vpow2.f32 %v7516_v58 }
 0x82d   : > { %8432 = vpow2.f32 %v7519_v34  ;;  %v12838_v34 = vld [vmem:[#allocation81_spill] sm:$0xff] }
 0x82e   : > { %8434 = vpow2.f32 %v7518_v23  ;;  %v7528_v23 = vmul.f32 -1.442695, %v12838_v34 }
 0x82f   : > { %8436 = vpow2.f32 %v7521_v13 }
 0x830   : > { %8438 = vpow2.f32 %v7520_v44  ;;  %v12839_v44 = vld [vmem:[#allocation82_spill] sm:$0xff] }
 0x831   : > { %8440 = vpow2.f32 %v7523_v6  ;;  %v7531_v6 = vmul.f32 -1.442695, %v12839_v44 }
 0x832   : > { %8442 = vpow2.f32 %v7522_v10  ;;  %v12840_v10 = vld [vmem:[#allocation80_spill] sm:$0xff] }
 0x833   : > { %v8425_v24 = vpop.eup %8424  ;;  %8444 = vpow2.f32 %v7525_v26  ;;  %v7530_v26 = vmul.f32 -1.442695, %v12840_v10 }
 0x834   : > { %v8427_v59 = vpop.eup %8426  ;;  %8446 = vrcp.f32 %v6372_v14  ;;  %v6373_v57 = vadd.f32 1.0, %v8425_v24  ;;  %v7533_v14 = vmul.f32 -1.442695, %v12841_v18 }
 0x835   : > { %v8429_v3 = vpop.eup %8428  ;;  %8448 = vrcp.f32 %v6370_v56  ;;  %v6371_v7 = vadd.f32 1.0, %v8427_v59  ;;  %v12842_v56 = vld [vmem:[#allocation85_spill] sm:$0xff] }
 0x836   : > { %v8431_v62 = vpop.eup %8430  ;;  %8450 = vrcp.f32 %v6373_v57  ;;  %v6375_v49 = vadd.f32 1.0, %v8429_v3  ;;  %v7532_v59 = vmul.f32 -1.442695, %v12842_v56  ;;  %v12843_v3 = vld [vmem:[#allocation86_spill] sm:$0xff] }
 0x837   : > { %v8433_v21 = vpop.eup %8432  ;;  %8452 = vrcp.f32 %v6371_v7  ;;  %v6374_v48 = vadd.f32 1.0, %v8431_v62  ;;  %v7535_v7 = vmul.f32 -1.442695, %v12843_v3 }
 0x838   : > { %v8435_v17 = vpop.eup %8434  ;;  %8454 = vrcp.f32 %v6375_v49  ;;  %v6377_v0 = vadd.f32 1.0, %v8433_v21  ;;  %v12844_v49 = vld [vmem:[#allocation84_spill] sm:$0xff] }
 0x839   : > { %v8437_v53 = vpop.eup %8436  ;;  %8456 = vrcp.f32 %v6374_v48  ;;  %v6376_v42 = vadd.f32 1.0, %v8435_v17  ;;  %v7534_v21 = vmul.f32 -1.442695, %v12844_v49  ;;  %v12845_v17 = vld [vmem:[#allocation91_spill] sm:$0xff] }
 0x83a   : > { %v8439_v25 = vpop.eup %8438  ;;  %8458 = vrcp.f32 %v6377_v0  ;;  %v6379_v5 = vadd.f32 1.0, %v8437_v53  ;;  %v7537_v0 = vmul.f32 -1.442695, %v12845_v17 }
 0x83b   : > { %v8441_v31 = vpop.eup %8440  ;;  %8460 = vrcp.f32 %v6376_v42  ;;  %v6378_v40 = vadd.f32 1.0, %v8439_v25  ;;  %v12846_v42 = vld [vmem:[#allocation89_spill] sm:$0xff] }
 0x83c   : > { %v8443_v4 = vpop.eup %8442  ;;  %8462 = vrcp.f32 %v6379_v5  ;;  %v6381_v32 = vadd.f32 1.0, %v8441_v31  ;;  %v7536_v11 = vmul.f32 -1.442695, %v12846_v42 }
 0x83d   : > { %v8445_v36 = vpop.eup %8444  ;;  %8464 = vrcp.f32 %v6378_v40  ;;  %v6380_v50 = vadd.f32 1.0, %v8443_v4 }
 0x83e   : > { %v8447_v22 = vpop.eup %8446  ;;  %8466 = vrcp.f32 %v6381_v32  ;;  %v6383_v61 = vadd.f32 1.0, %v8445_v36 }
 0x83f   : > { %v8449_v60 = vpop.eup %8448  ;;  %v6468_v33 = vmul.f32 %v8447_v22, %v12820_v38  ;;  %8468 = vrcp.f32 %v6380_v50 }
 0x840   : > { %v8451_v29 = vpop.eup %8450  ;;  %v6466_v37 = vmul.f32 %v8449_v60, %v12821_v27  ;;  %8470 = vrcp.f32 %v6383_v61 }
 0x841   : > { %v8453_v8 = vpop.eup %8452  ;;  %6534 = vrot.lane.b32.xlu1 %v6468_v33, %s8701_s26  ;;  %v6469_v58 = vmul.f32 %v8451_v29, %v12822_v1  ;;  %8472 = vpow2.f32 %v7524_v16 }
 0x842   : > { %v8455_v13 = vpop.eup %8454  ;;  %6530 = vrot.lane.b32.xlu0 %v6466_v37, %s8701_s26  ;;  %v6467_v38 = vmul.f32 %v8453_v8, %v12824_v19  ;;  %8474 = vpow2.f32 %v7527_v63 }
 0x843   : > { %v8457_v27 = vpop.eup %8456  ;;  %8476 = vpow2.f32 %v7526_v54  ;;  %v6471_v24 = vmul.f32 %v8455_v13, %v12825_v35 }
 0x844   : > { %v8459_v2 = vpop.eup %8458  ;;  %8478 = vpow2.f32 %v7529_v30  ;;  %v6470_v57 = vmul.f32 %v8457_v27, %v12826_v12  ;;  %v12847_v27 = vld [vmem:[#allocation90_spill] sm:$0xff] }
 0x845   : > { %v8461_v1 = vpop.eup %8460  ;;  %6536 = vrot.lane.b32.xlu1 %v6469_v58, %s8701_s26  ;;  %8480 = vpow2.f32 %v7528_v23  ;;  %v6473_v53 = vmul.f32 %v8459_v2, %v12827_v47 }
 0x846   : > { %v8463_v19 = vpop.eup %8462  ;;  %6532 = vrot.lane.b32.xlu0 %v6467_v38, %s8701_s26  ;;  %8482 = vpow2.f32 %v7531_v6  ;;  %v6472_v25 = vmul.f32 %v8461_v1, %v12828_v39 }
 0x847   : > { %v8465_v62 = vpop.eup %8464  ;;  %8484 = vpow2.f32 %v7530_v26  ;;  %v6475_v4 = vmul.f32 %v8463_v19, %v12829_v52  ;;  %v7539_v26 = vmul.f32 -1.442695, %v12847_v27 }
 0x848   : > { %v8467_v48 = vpop.eup %8466  ;;  %8486 = vpow2.f32 %v7533_v14  ;;  %v6474_v36 = vmul.f32 %v8465_v62, %v12830_v51  ;;  %v12848_v14 = vld [vmem:[#allocation88_spill] sm:$0xff]  ;;  %v12850_v62 = vld [vmem:[#allocation93_spill] sm:$0xff] }
 0x849   : > { %v8469_v35 = vpop.eup %8468  ;;  %6540 = vrot.lane.b32.xlu1 %v6471_v24, %s8701_s26  ;;  %8488 = vpow2.f32 %v7532_v59  ;;  %v6477_v52 = vmul.f32 %v8467_v48, %v12831_v43  ;;  %v7538_v1 = vmul.f32 -1.442695, %v12848_v14  ;;  %v12849_v59 = vld [vmem:[#allocation95_spill] sm:$0xff] }
 0x84a   : > { %v8471_v12 = vpop.eup %8470  ;;  %6538 = vrot.lane.b32.xlu0 %v6470_v57, %s8701_s26  ;;  %8490 = vpow2.f32 %v7535_v7  ;;  %v6476_v51 = vmul.f32 %v8469_v35, %v12832_v9  ;;  %v7541_v19 = vmul.f32 -1.442695, %v12849_v59  ;;  %v12851_v35 = vld [vmem:[#allocation94_spill] sm:$0xff] }
 0x84b   : > { %v8473_v5 = vpop.eup %8472  ;;  %8492 = vpow2.f32 %v7534_v21  ;;  %v6479_v23 = vmul.f32 %v8471_v12, %v12833_v20  ;;  %v7540_v21 = vmul.f32 -1.442695, %v12850_v62 }
 0x84c   : > { %v8475_v28 = vpop.eup %8474  ;;  %v6382_v31 = vadd.f32 1.0, %v8473_v5  ;;  %8494 = vpow2.f32 %v7537_v0 }
 0x84d   : > { %v8477_v40 = vpop.eup %8476  ;;  %6544 = vrot.lane.b32.xlu1 %v6473_v53, %s8701_s26  ;;  %v6385_v47 = vadd.f32 1.0, %v8475_v28  ;;  %8496 = vpow2.f32 %v7536_v11  ;;  %v7543_v53 = vmul.f32 -1.442695, %v12851_v35 }
 0x84e   : > { %v8479_v32 = vpop.eup %8478  ;;  %6542 = vrot.lane.b32.xlu0 %v6472_v25, %s8701_s26  ;;  %8498 = vrcp.f32 %v6382_v31  ;;  %v6384_v39 = vadd.f32 1.0, %v8477_v40 }
 0x84f   : > { %v8481_v50 = vpop.eup %8480  ;;  %8500 = vrcp.f32 %v6385_v47  ;;  %v6387_v16 = vadd.f32 1.0, %v8479_v32 }
 0x850   : > { %v8483_v22 = vpop.eup %8482  ;;  %8502 = vrcp.f32 %v6384_v39  ;;  %v6386_v61 = vadd.f32 1.0, %v8481_v50 }
 0x851   : > { %v8485_v63 = vpop.eup %8484  ;;  %6548 = vrot.lane.b32.xlu1 %v6475_v4, %s8701_s26  ;;  %8504 = vrcp.f32 %v6387_v16  ;;  %v6389_v60 = vadd.f32 1.0, %v8483_v22 }
 0x852   : > { %v8487_v33 = vpop.eup %8486  ;;  %6546 = vrot.lane.b32.xlu0 %v6474_v36, %s8701_s26  ;;  %8506 = vrcp.f32 %v6386_v61  ;;  %v6388_v54 = vadd.f32 1.0, %v8485_v63 }
 0x853   : > { %v8489_v29 = vpop.eup %8488  ;;  %v6391_v37 = vadd.f32 1.0, %v8487_v33  ;;  %8508 = vrcp.f32 %v6389_v60 }
 0x854   : > { %v8491_v30 = vpop.eup %8490  ;;  %v6390_v8 = vadd.f32 1.0, %v8489_v29  ;;  %8510 = vrcp.f32 %v6388_v54 }
 0x855   : > { %v8493_v58 = vpop.eup %8492  ;;  %6552 = vrot.lane.b32.xlu1 %v6477_v52, %s8701_s26  ;;  %v6393_v43 = vadd.f32 1.0, %v8491_v30  ;;  %8512 = vrcp.f32 %v6391_v37 }
 0x856   : > { %v8495_v13 = vpop.eup %8494  ;;  %6550 = vrot.lane.b32.xlu0 %v6476_v51, %s8701_s26  ;;  %v6392_v38 = vadd.f32 1.0, %v8493_v58  ;;  %8514 = vrcp.f32 %v6390_v8 }
 0x857   : > { %v8497_v9 = vpop.eup %8496  ;;  %v6395_v6 = vadd.f32 1.0, %v8495_v13  ;;  %8516 = vrcp.f32 %v6393_v43 }
 0x858   : > { %v8499_v2 = vpop.eup %8498  ;;  %8518 = vrcp.f32 %v6392_v38  ;;  %v6394_v5 = vadd.f32 1.0, %v8497_v9 }
 0x859   : > { %v8501_v24 = vpop.eup %8500  ;;  %6556 = vrot.lane.b32.xlu1 %v6479_v23, %s8701_s26  ;;  %v6478_v20 = vmul.f32 %v8499_v2, %v12834_v45  ;;  %8520 = vrcp.f32 %v6395_v6  ;;  %v12852_v45 = vld [vmem:[#allocation92_spill] sm:$0xff] }
 0x85a   : > { %v8503_v57 = vpop.eup %8502  ;;  %v6481_v7 = vmul.f32 %v8501_v24, %v12835_v55  ;;  %8522 = vpow2.f32 %v7539_v26  ;;  %v7542_v12 = vmul.f32 -1.442695, %v12852_v45  ;;  %v12854_v26 = vld [vmem:[#allocation11_spill] sm:$0xff]  ;;  %v6174_v24 = vld [vmem:[#allocation6 + $0x10] sm:$0xff] }
 0x85b   : > { %v8505_v48 = vpop.eup %8504  ;;  %6554 = vrot.lane.b32.xlu0 %v6478_v20, %s8701_s26  ;;  %v6480_v0 = vmul.f32 %v8503_v57, %v12836_v46  ;;  %8524 = vpow2.f32 %v7538_v1  ;;  %v12856_v20 = vld [vmem:[#allocation64_spill] sm:$0xff]  ;;  %v12857_v57 = vld [vmem:[#allocation65_spill] sm:$0xff] }
 0x85c   : > { %v8507_v11 = vpop.eup %8506  ;;  %v6483_v25 = vmul.f32 %v8505_v48, %v12837_v15  ;;  %8526 = vpow2.f32 %v7541_v19  ;;  %v6175_v19 = vld [vmem:[#allocation6 + $0x18] sm:$0xff] }
 0x85d   : > { %6560 = vrot.lane.b32.xlu1 %v6481_v7, %s8701_s26  ;;  %v8509_v55 = vpop.eup %8508  ;;  %8528 = vpow2.f32 %v7540_v21  ;;  %v6482_v46 = vmul.f32 %v8507_v11, %v12838_v34  ;;  %v6211_v7 = vmul.f32 %v12854_v26, %v12857_v57  ;;  %v6173_v21 = vld [vmem:[#allocation6 + $0x8] sm:$0xff]  ;;  %v12866_v57 = vld [vmem:[#allocation98_spill] sm:$0xff] }
 0x85e   : > { %v8511_v28 = vpop.eup %8510  ;;  %8530 = vpow2.f32 %v7543_v53  ;;  %v6485_v4 = vmul.f32 %v8509_v55, %v12839_v44  ;;  %v12858_v11 = vld [vmem:[#allocation68_spill] sm:$0xff] }
 0x85f   : > { %6558 = vrot.lane.b32.xlu0 %v6480_v0, %s8701_s26  ;;  %v8513_v31 = vpop.eup %8512  ;;  %8532 = vpow2.f32 %v7542_v12  ;;  %v6484_v32 = vmul.f32 %v8511_v28, %v12840_v10  ;;  %v6177_v55 = vld [vmem:[#allocation6 + $0x28] sm:$0xff] }
 0x860   : > { %v8515_v40 = vpop.eup %8514  ;;  %8534 = vrcp.f32 %v6394_v5  ;;  %v6487_v34 = vmul.f32 %v8513_v31, %v12841_v18  ;;  %v12859_v5 = vld [vmem:[#allocation67_spill] sm:$0xff] }
 0x861   : > { %6564 = vrot.lane.b32.xlu1 %v6483_v25, %s8701_s26  ;;  %v8517_v47 = vpop.eup %8516  ;;  %v6486_v44 = vmul.f32 %v8515_v40, %v12842_v56  ;;  %v6243_v25 = vadd.f32 %v6211_v7, %v6173_v21  ;;  %v6214_v28 = vmul.f32 %v12854_v26, %v12859_v5  ;;  %v6223_v7 = vmul.f32 %v12854_v26, %v12866_v57  ;;  %v12868_v5 = vld [vmem:[#allocation102_spill] sm:$0xff] }
 0x862   : > { %v8519_v15 = vpop.eup %8518  ;;  %v6489_v10 = vmul.f32 %v8517_v47, %v12843_v3 }
 0x863   : > { %6562 = vrot.lane.b32.xlu0 %v6482_v46, %s8701_s26  ;;  %v8521_v36 = vpop.eup %8520  ;;  %v6488_v54 = vmul.f32 %v8519_v15, %v12844_v49  ;;  %v6176_v46 = vld [vmem:[#allocation6 + $0x20] sm:$0xff] }
 0x864   : > { %v8523_v39 = vpop.eup %8522  ;;  %v6491_v37 = vmul.f32 %v8521_v36, %v12845_v17 }
 0x865   : > { %6568 = vrot.lane.b32.xlu1 %v6485_v4, %s8701_s26  ;;  %v8525_v50 = vpop.eup %8524  ;;  %v6397_v16 = vadd.f32 1.0, %v8523_v39 }
 0x866   : > { %v8527_v22 = vpop.eup %8526  ;;  %v6396_v61 = vadd.f32 1.0, %v8525_v50  ;;  %v6246_v50 = vadd.f32 %v6214_v28, %v6176_v46  ;;  %v6225_v28 = vmul.f32 %v12854_v26, %v12868_v5 }
 0x867   : > { %6566 = vrot.lane.b32.xlu0 %v6484_v32, %s8701_s26  ;;  %v8529_v63 = vpop.eup %8528  ;;  %8536 = vrcp.f32 %v6397_v16  ;;  %v6399_v52 = vadd.f32 1.0, %v8527_v22  ;;  %v12860_v32 = vld [vmem:[#allocation71_spill] sm:$0xff]  ;;  %v6179_v16 = vld [vmem:[#allocation6 + $0x38] sm:$0xff] }
 0x868   : > { %v8531_v60 = vpop.eup %8530  ;;  %8538 = vrcp.f32 %v6396_v61  ;;  %v6398_v33 = vadd.f32 1.0, %v8529_v63  ;;  %v6217_v36 = vmul.f32 %v12854_v26, %v12860_v32  ;;  %v12861_v22 = vld [vmem:[#allocation70_spill] sm:$0xff]  ;;  %v6178_v63 = vld [vmem:[#allocation6 + $0x30] sm:$0xff] }
 0x869   : > { %6572 = vrot.lane.b32.xlu1 %v6487_v34, %s8701_s26  ;;  %v8533_v51 = vpop.eup %8532  ;;  %8540 = vrcp.f32 %v6399_v52  ;;  %v6401_v18 = vadd.f32 1.0, %v8531_v60 }
 0x86a   : > { %8542 = vrcp.f32 %v6398_v33  ;;  %v6400_v56 = vadd.f32 1.0, %v8533_v51  ;;  %v8535_v29 = vpop.eup %8534  ;;  %v6249_v51 = vadd.f32 %v6217_v36, %v6179_v16  ;;  %v6186_v36 = vld [vmem:[#allocation6 + $0x70] sm:$0xff] }
 0x86b   : > { %6570 = vrot.lane.b32.xlu0 %v6486_v44, %s8701_s26  ;;  %8544 = vrcp.f32 %v6401_v18  ;;  %v6490_v3 = vmul.f32 %v8535_v29, %v12846_v42  ;;  %v6216_v44 = vmul.f32 %v12854_v26, %v12861_v22  ;;  %v12862_v18 = vld [vmem:[#allocation97_spill] sm:$0xff] }
 0x86c   : > { %8546 = vrcp.f32 %v6400_v56 }
 0x86d   : > { %6576 = vrot.lane.b32.xlu1 %v6489_v10, %s8701_s26  ;;  %v6248_v29 = vadd.f32 %v6216_v44, %v6178_v63  ;;  %v6189_v44 = vld [vmem:[#allocation6 + $0x88] sm:$0xff] }
 0x86f   : > { %6574 = vrot.lane.b32.xlu0 %v6488_v54, %s8701_s26  ;;  %v6219_v54 = vmul.f32 %v12854_v26, %v12862_v18 }
 0x871   : > { %6580 = vrot.lane.b32.xlu1 %v6491_v37, %s8701_s26  ;;  %v8537_v30 = vpop.eup %8536  ;;  %v6181_v37 = vld [vmem:[#allocation6 + $0x48] sm:$0xff] }
 0x872   : > { %v8539_v8 = vpop.eup %8538  ;;  %v6493_v49 = vmul.f32 %v8537_v30, %v12847_v27  ;;  %v12853_v27 = vld [vmem:[#allocation69_spill] sm:$0xff] }
 0x873   : > { %6578 = vrot.lane.b32.xlu0 %v6490_v3, %s8701_s26  ;;  %v8541_v58 = vpop.eup %8540  ;;  %v6492_v23 = vmul.f32 %v8539_v8, %v12848_v14  ;;  %v6212_v2 = vmul.f32 %v12854_v26, %v12853_v27  ;;  %v12855_v14 = vld [vmem:[#allocation66_spill] sm:$0xff]  ;;  %v12863_v3 = vld [vmem:[#allocation96_spill] sm:$0xff]  ;;  %v6180_v8 = vld [vmem:[#allocation6 + $0x40] sm:$0xff] }
 0x874   : > { %v8543_v43 = vpop.eup %8542  ;;  %v6495_v17 = vmul.f32 %v8541_v58, %v12849_v59  ;;  %v6213_v1 = vmul.f32 %v12854_v26, %v12855_v14  ;;  %v6210_v59 = vmul.f32 %v12854_v26, %v12856_v20  ;;  %v6218_v30 = vmul.f32 %v12854_v26, %v12863_v3  ;;  %v12865_v27 = vld [vmem:[#allocation101_spill] sm:$0xff]  ;;  %v6191_v3 = vld [vmem:[#allocation6 + $0x98] sm:$0xff] }
 0x875   : > { %6584 = vrot.lane.b32.xlu1 %v6493_v49, %s8701_s26  ;;  %v8545_v13 = vpop.eup %8544  ;;  %v6494_v42 = vmul.f32 %v8543_v43, %v12850_v62  ;;  %v6172_v62 = vld [vmem:[#allocation6] sm:$0xff]  ;;  %v6244_v0 = vadd.f32 %v6212_v2, %v6174_v24  ;;  %v6220_v2 = vmul.f32 %v12854_v26, %v12865_v27  ;;  %v6182_v14 = vld [vmem:[#allocation6 + $0x50] sm:$0xff]  ;;  %v6193_v27 = vld [vmem:[#allocation6 + $0xa8] sm:$0xff] }
 0x876   : > { %v8547_v38 = vpop.eup %8546  ;;  %v6497_v9 = vmul.f32 %v8545_v13, %v12851_v35  ;;  %v6245_v53 = vadd.f32 %v6213_v1, %v6175_v19  ;;  %v6242_v12 = vadd.f32 %v6210_v59, %v6172_v62  ;;  %v12864_v13 = vld [vmem:[#allocation99_spill] sm:$0xff] }
 0x877   : > { %6582 = vrot.lane.b32.xlu0 %v6492_v23, %s8701_s26  ;;  %v6496_v6 = vmul.f32 %v8547_v38, %v12852_v45  ;;  %v6215_v45 = vmul.f32 %v12854_v26, %v12858_v11  ;;  %v6252_v21 = vadd.f32 %v6220_v2, %v6182_v14 }
 0x879   : > { %6588 = vrot.lane.b32.xlu1 %v6495_v17, %s8701_s26  ;;  %v6247_v15 = vadd.f32 %v6215_v45, %v6177_v55  ;;  %v6251_v17 = vadd.f32 %v6219_v54, %v6181_v37  ;;  %v6184_v45 = vld [vmem:[#allocation6 + $0x60] sm:$0xff] }
 0x87b   : > { %6586 = vrot.lane.b32.xlu0 %v6494_v42, %s8701_s26  ;;  %v6221_v42 = vmul.f32 %v12854_v26, %v12864_v13 }
 0x87d   : > { %6592 = vrot.lane.b32.xlu1 %v6497_v9, %s8701_s26  ;;  %v6250_v9 = vadd.f32 %v6218_v30, %v6180_v8 }
 0x87f   : > { %6590 = vrot.lane.b32.xlu0 %v6496_v6, %s8701_s26  ;;  %v6183_v6 = vld [vmem:[#allocation6 + $0x58] sm:$0xff]  ;;  %s8713_s26 = smov 4  }
 0x880   : > { %v6253_v19 = vadd.f32 %v6221_v42, %v6183_v6 }
 0x8b3   : > { %v6535_v48 = vpop.permute.xlu1 %6534 }
 0x8b4   : > { %v6531_v35 = vpop.permute.xlu0 %6530  ;;  %v6628_v40 = vmul.f32 %v6535_v48, %v6244_v0  ;;  %v6185_v48 = vld [vmem:[#allocation6 + $0x68] sm:$0xff] }
 0x8b5   : > { %v6626_v39 = vmul.f32 %v6531_v35, %v6242_v12  ;;  %v12867_v0 = vld [vmem:[#allocation100_spill] sm:$0xff]  ;;  %v6255_v55 = vadd.f32 %v6223_v7, %v6185_v48 }
 0x8b6   : > { %v6222_v35 = vmul.f32 %v12854_v26, %v12867_v0  ;;  %v6195_v0 = vld [vmem:[#allocation6 + $0xb8] sm:$0xff] }
 0x8b7   : > { %v6537_v31 = vpop.permute.xlu1 %6536 }
 0x8b8   : > { %v6629_v4 = vmul.f32 %v6537_v31, %v6245_v53  ;;  %v6533_v47 = vpop.permute.xlu0 %6532  ;;  %v6187_v31 = vld [vmem:[#allocation6 + $0x78] sm:$0xff] }
 0x8b9   : > { %v6627_v34 = vmul.f32 %v6533_v47, %v6243_v25 }
 0x8ba   : > { %v6659_v61 = vpack.c.bf16 %v6629_v4, %v6628_v40  ;;  %v6254_v40 = vadd.f32 %v6222_v35, %v6184_v45  ;;  %v12869_v4 = vld [vmem:[#allocation105_spill] sm:$0xff] }
 0x8bb   : > { %v6541_v52 = vpop.permute.xlu1 %6540  ;;  %v6658_v60 = vpack.c.bf16 %v6627_v34, %v6626_v39  ;;  %v6224_v47 = vmul.f32 %v12854_v26, %v12869_v4  ;;  %v6257_v34 = vadd.f32 %v6225_v28, %v6187_v31  ;;  %v6197_v4 = vld [vmem:[#allocation6 + $0xc8] sm:$0xff] }
 0x8bc   : > { %v6631_v10 = vmul.f32 %v6541_v52, %v6247_v15  ;;  %v6539_v33 = vpop.permute.xlu0 %6538  ;;  %v12871_v52 = vld [vmem:[#allocation103_spill] sm:$0xff] }
 0x8bd   : > { %v6630_v56 = vmul.f32 %v6539_v33, %v6246_v50  ;;  %7747 = vmatprep.mubr.msk.bf16.mxu0 %vm938_vm3, %v6658_v60  ;;  %v12870_v50 = vld [vmem:[#allocation104_spill] sm:$0xff]  ;;  %v6256_v63 = vadd.f32 %v6224_v47, %v6186_v36  ;;  %v6226_v60 = vmul.f32 %v12854_v26, %v12871_v52  ;;  %v6188_v33 = vld [vmem:[#allocation6 + $0x80] sm:$0xff]  ;;  %v6199_v52 = vld [vmem:[#allocation6 + $0xd8] sm:$0xff] }
 0x8be   : > { %7748 = vmatmul.mubr.msk.bf16.vlgmr.msra.gmra.mrb[0].mxu0 %vm938_vm3, %v6659_v61  ;;  %v6227_v16 = vmul.f32 %v12854_v26, %v12870_v50 }
 0x8bf   : > { %v6660_v49 = vpack.c.bf16 %v6631_v10, %v6630_v56  ;;  %v6545_v58 = vpop.permute.xlu1 %6544  ;;  %v12872_v56 = vld [vmem:[#allocation107_spill] sm:$0xff]  ;;  %v6258_v8 = vadd.f32 %v6226_v60, %v6188_v33  ;;  %v12881_v33 = vld [vmem:[#allocation114_spill] sm:$0xff] }
 0x8c0   : > { %v6633_v23 = vmul.f32 %v6545_v58, %v6249_v51  ;;  %v6543_v43 = vpop.permute.xlu0 %6542  ;;  %v6259_v54 = vadd.f32 %v6227_v16, %v6189_v44  ;;  %v12880_v44 = vld [vmem:[#allocation115_spill] sm:$0xff] }
 0x8c1   : > { %v6632_v38 = vmul.f32 %v6543_v43, %v6248_v29  ;;  %7751 = vmatprep.mubr.msk.bf16.mxu0 %vm938_vm3, %v6660_v49  ;;  %v6229_v29 = vmul.f32 %v12854_v26, %v12872_v56  ;;  %v12873_v49 = vld [vmem:[#allocation106_spill] sm:$0xff]  ;;  %v6190_v43 = vld [vmem:[#allocation6 + $0x90] sm:$0xff] }
 0x8c2   : > { %v6228_v58 = vmul.f32 %v12854_v26, %v12873_v49  ;;  %v6201_v49 = vld [vmem:[#allocation6 + $0xe8] sm:$0xff] }
 0x8c3   : > { %v6661_v1 = vpack.c.bf16 %v6633_v23, %v6632_v38  ;;  %v6549_v24 = vpop.permute.xlu1 %6548  ;;  %v6261_v42 = vadd.f32 %v6229_v29, %v6191_v3  ;;  %v12874_v38 = vld [vmem:[#allocation108_spill] sm:$0xff] }
 0x8c4   : > { %v6635_v20 = vmul.f32 %v6549_v24, %v6251_v17  ;;  %v6547_v59 = vpop.permute.xlu0 %6546  ;;  %v6260_v14 = vadd.f32 %v6228_v58, %v6190_v43  ;;  %v12882_v3 = vld [vmem:[#allocation116_spill] sm:$0xff]  ;;  %v12883_v43 = vld [vmem:[#allocation117_spill] sm:$0xff] }
 0x8c5   : > { %v6634_v62 = vmul.f32 %v6547_v59, %v6250_v9  ;;  %v6231_v9 = vmul.f32 %v12854_v26, %v12874_v38  ;;  %v6192_v59 = vld [vmem:[#allocation6 + $0xa0] sm:$0xff] }
 0x8c6   : > { %7752 = vmatmul.mubr.msk.bf16.gmra.mrb[4].mxu0 %vm938_vm3, %v6661_v1  ;;  %v12875_v1 = vld [vmem:[#allocation109_spill] sm:$0xff] }
 0x8c7   : > { %v6662_v53 = vpack.c.bf16 %v6635_v20, %v6634_v62  ;;  %v6553_v11 = vpop.permute.xlu1 %6552  ;;  %v6230_v24 = vmul.f32 %v12854_v26, %v12875_v1  ;;  %v6263_v7 = vadd.f32 %v6231_v9, %v6193_v27  ;;  %v12876_v62 = vld [vmem:[#allocation111_spill] sm:$0xff]  ;;  %v6203_v1 = vld [vmem:[#allocation6 + $0xf8] sm:$0xff] }
 0x8c8   : > { %v6637_v12 = vmul.f32 %v6553_v11, %v6253_v19  ;;  %v6551_v25 = vpop.permute.xlu0 %6550  ;;  %v12877_v11 = vld [vmem:[#allocation110_spill] sm:$0xff]  ;;  %v12884_v27 = vld [vmem:[#allocation119_spill] sm:$0xff] }
 0x8c9   : > { %v6636_v46 = vmul.f32 %v6551_v25, %v6252_v21  ;;  %7755 = vmatprep.mubr.msk.bf16.mxu0 %vm938_vm3, %v6662_v53  ;;  %v6233_v21 = vmul.f32 %v12854_v26, %v12876_v62  ;;  %v6262_v53 = vadd.f32 %v6230_v24, %v6192_v59  ;;  %v6232_v45 = vmul.f32 %v12854_v26, %v12877_v11  ;;  %v6194_v25 = vld [vmem:[#allocation6 + $0xb0] sm:$0xff]  ;;  %v12885_v59 = vld [vmem:[#allocation118_spill] sm:$0xff] }
 0x8cb   : > { %v6663_v15 = vpack.c.bf16 %v6637_v12, %v6636_v46  ;;  %v6557_v32 = vpop.permute.xlu1 %6556  ;;  %v6265_v28 = vadd.f32 %v6233_v21, %v6195_v0  ;;  %v12878_v46 = vld [vmem:[#allocation113_spill] sm:$0xff] }
 0x8cc   : > { %v6639_v39 = vmul.f32 %v6557_v32, %v6255_v55  ;;  %v6235_v31 = vmul.f32 %v12854_v26, %v12878_v46  ;;  %v12879_v32 = vld [vmem:[#allocation112_spill] sm:$0xff] }
 0x8cd   : > { %v6555_v22 = vpop.permute.xlu0 %6554  ;;  %v6234_v36 = vmul.f32 %v12854_v26, %v12879_v32  ;;  %v11949_v32 = vstv %s8930_s28  ;;  %s12455_s28 = smov 8  }
 0x8ce   : > { %v6638_v61 = vmul.f32 %v6555_v22, %v6254_v40  ;;  %7756 = vmatmul.mubr.msk.bf16.gmra.mrb[8].mxu0 %vm938_vm3, %v6663_v15  ;;  %v6264_v15 = vadd.f32 %v6232_v45, %v6194_v25  ;;  %v6267_v22 = vadd.f32 %v6235_v31, %v6197_v4 }
 0x8cf   : > { %v6561_v10 = vpop.permute.xlu1 %6560 }
 0x8d0   : > { %v6664_v51 = vpack.c.bf16 %v6639_v39, %v6638_v61  ;;  %v6641_v18 = vmul.f32 %v6561_v10, %v6257_v34  ;;  %v6196_v34 = vld [vmem:[#allocation6 + $0xc0] sm:$0xff]  ;;  %v6237_v61 = vmul.f32 %v12854_v26, %v12880_v44  ;;  %v12888_v44 = vld [vmem:[#allocation28_spill] sm:$0xff] }
 0x8d1   : > { %v6559_v37 = vpop.permute.xlu0 %6558  ;;  %v6266_v10 = vadd.f32 %v6234_v36, %v6196_v34  ;;  %v12886_v36 = vld [vmem:[#allocation30_spill] sm:$0xff]  ;;  %v12887_v34 = vld [vmem:[#allocation32_spill] sm:$0xff] }
 0x8d2   : > { %v6640_v30 = vmul.f32 %v6559_v37, %v6256_v63  ;;  %7759 = vmatprep.mubr.msk.bf16.mxu0 %vm938_vm3, %v6664_v51  ;;  %v6236_v51 = vmul.f32 %v12854_v26, %v12881_v33  ;;  %v6269_v37 = vadd.f32 %v6237_v61, %v6199_v52  ;;  %v6684_v61 = vmul.f32 %v11949_v32, %v12888_v44 }
 0x8d3   : > { %v6565_v23 = vpop.permute.xlu1 %6564 }
 0x8d4   : > { %v6665_v17 = vpack.c.bf16 %v6641_v18, %v6640_v30  ;;  %v6643_v13 = vmul.f32 %v6565_v23, %v6259_v54  ;;  %v6198_v54 = vld [vmem:[#allocation6 + $0xd0] sm:$0xff]  ;;  %v6239_v30 = vmul.f32 %v12854_v26, %v12882_v3 }
 0x8d5   : > { %v6563_v6 = vpop.permute.xlu0 %6562  ;;  %v6268_v23 = vadd.f32 %v6236_v51, %v6198_v54 }
 0x8d6   : > { %v6642_v2 = vmul.f32 %v6563_v6, %v6258_v8  ;;  %7760 = vmatmul.mubr.msk.bf16.gmra.mrb[12].mxu0 %vm938_vm3, %v6665_v17  ;;  %v6238_v17 = vmul.f32 %v12854_v26, %v12883_v43  ;;  %v6271_v6 = vadd.f32 %v6239_v30, %v6201_v49  ;;  %v12890_v30 = vld [vmem:[#allocation37_spill] sm:$0xff]  ;;  %v12891_v49 = vld [vmem:[#allocation40_spill] sm:$0xff] }
 0x8d7   : > { %v6569_v20 = vpop.permute.xlu1 %6568 }
 0x8d8   : > { %v6666_v19 = vpack.c.bf16 %v6643_v13, %v6642_v2  ;;  %v6645_v57 = vmul.f32 %v6569_v20, %v6261_v42  ;;  %v6200_v42 = vld [vmem:[#allocation6 + $0xe0] sm:$0xff]  ;;  %v6241_v2 = vmul.f32 %v12854_v26, %v12884_v27 }
 0x8d9   : > { %v6567_v48 = vpop.permute.xlu0 %6566  ;;  %v6270_v20 = vadd.f32 %v6238_v17, %v6200_v42  ;;  %v12892_v17 = vld [vmem:[#allocation35_spill] sm:$0xff] }
 0x8da   : > { %v6644_v35 = vmul.f32 %v6567_v48, %v6260_v14  ;;  %7763 = vmatprep.mubr.msk.bf16.mxu0 %vm938_vm3, %v6666_v19  ;;  %v6240_v19 = vmul.f32 %v12854_v26, %v12885_v59  ;;  %v6273_v48 = vadd.f32 %v6241_v2, %v6203_v1 }
 0x8db   : > { %v6573_v12 = vpop.permute.xlu1 %6572 }
 0x8dc   : > { %v6667_v55 = vpack.c.bf16 %v6645_v57, %v6644_v35  ;;  %v6647_v5 = vmul.f32 %v6573_v12, %v6263_v7  ;;  %v6202_v7 = vld [vmem:[#allocation6 + $0xf0] sm:$0xff] }
 0x8dd   : > { %v6571_v40 = vpop.permute.xlu0 %6570 }
 0x8de   : > { %v6646_v47 = vmul.f32 %v6571_v40, %v6262_v53  ;;  %7764 = vmatmul.mubr.msk.bf16.gmra.mrb[16].mxu0 %vm938_vm3, %v6667_v55  ;;  %v6272_v53 = vadd.f32 %v6240_v19, %v6202_v7 }
 0x8df   : > { %v6577_v39 = vpop.permute.xlu1 %6576 }
 0x8e0   : > { %v6668_v50 = vpack.c.bf16 %v6647_v5, %v6646_v47  ;;  %v6649_v16 = vmul.f32 %v6577_v39, %v6265_v28  ;;  %v6686_v39 = vmul.f32 %v11949_v32, %v12886_v36  ;;  %v12898_v36 = vld [vmem:[#allocation31_spill] sm:$0xff] }
 0x8e1   : > { %v6575_v63 = vpop.permute.xlu0 %6574 }
 0x8e2   : > { %v6648_v60 = vmul.f32 %v6575_v63, %v6264_v15  ;;  %7767 = vmatprep.mubr.msk.bf16.mxu0 %vm938_vm3, %v6668_v50  ;;  %v6687_v50 = vmul.f32 %v11949_v32, %v12887_v34 }
 0x8e3   : > { %v6581_v18 = vpop.permute.xlu1 %6580 }
 0x8e4   : > { %v6669_v56 = vpack.c.bf16 %v6649_v16, %v6648_v60  ;;  %v6651_v29 = vmul.f32 %v6581_v18, %v6267_v22 }
 0x8e5   : > { %v6579_v8 = vpop.permute.xlu0 %6578 }
 0x8e6   : > { %v6650_v58 = vmul.f32 %v6579_v8, %v6266_v10  ;;  %7768 = vmatmul.mubr.msk.bf16.gmra.mrb[20].mxu0 %vm938_vm3, %v6669_v56  ;;  %v12889_v10 = vld [vmem:[#allocation29_spill] sm:$0xff]  ;;  %v6694_v8 = vmul.f32 %v11949_v32, %v12890_v30 }
 0x8e7   : > { %v6585_v13 = vpop.permute.xlu1 %6584  ;;  %v6685_v33 = vmul.f32 %v11949_v32, %v12889_v10  ;;  %v12902_v30 = vld [vmem:[#allocation33_spill] sm:$0xff] }
 0x8e8   : > { %v6670_v38 = vpack.c.bf16 %v6651_v29, %v6650_v58  ;;  %v6653_v9 = vmul.f32 %v6585_v13, %v6269_v37  ;;  %v6695_v58 = vmul.f32 %v11949_v32, %v12891_v49  ;;  %v6692_v13 = vmul.f32 %v11949_v32, %v12892_v17 }
 0x8e9   : > { %v6583_v14 = vpop.permute.xlu0 %6582 }
 0x8ea   : > { %v6652_v24 = vmul.f32 %v6583_v14, %v6268_v23  ;;  %7771 = vmatprep.mubr.msk.bf16.mxu0 %vm938_vm3, %v6670_v38 }
 0x8eb   : > { %v6589_v57 = vpop.permute.xlu1 %6588 }
 0x8ec   : > { %v6671_v62 = vpack.c.bf16 %v6653_v9, %v6652_v24  ;;  %v6655_v21 = vmul.f32 %v6589_v57, %v6271_v6  ;;  %v12893_v6 = vld [vmem:[#allocation38_spill] sm:$0xff]  ;;  %v12894_v57 = vld [vmem:[#allocation45_spill] sm:$0xff] }
 0x8ed   : > { %v6587_v0 = vpop.permute.xlu0 %6586  ;;  %v6693_v27 = vmul.f32 %v11949_v32, %v12893_v6  ;;  %v6702_v7 = vmul.f32 %v11949_v32, %v12894_v57  ;;  %v12906_v6 = vld [vmem:[#allocation41_spill] sm:$0xff]  ;;  %v12909_v57 = vld [vmem:[#allocation51_spill] sm:$0xff] }
 0x8ee   : > { %7772 = vmatmul.mubr.msk.bf16.gmra.mrb[24].mxu0 %vm938_vm3, %v6671_v62  ;;  %v6654_v35 = vmul.f32 %v6587_v0, %v6270_v20  ;;  %v12895_v62 = vld [vmem:[#allocation47_spill] sm:$0xff] }
 0x8ef   : > { %v6593_v11 = vpop.permute.xlu1 %6592 }
 0x8f0   : > { %v6672_v45 = vpack.c.bf16 %v6655_v21, %v6654_v35  ;;  %v6657_v12 = vmul.f32 %v6593_v11, %v6273_v48  ;;  %v6703_v21 = vmul.f32 %v11949_v32, %v12895_v62  ;;  %v12896_v35 = vld [vmem:[#allocation43_spill] sm:$0xff] }
 0x8f1   : > { %v6591_v25 = vpop.permute.xlu0 %6590 }
 0x8f2   : > { %v6656_v55 = vmul.f32 %v6591_v25, %v6272_v53  ;;  %7775 = vmatprep.mubr.msk.bf16.mxu0 %vm938_vm3, %v6672_v45  ;;  %v6700_v53 = vmul.f32 %v11949_v32, %v12896_v35  ;;  %v12897_v25 = vld [vmem:[#allocation46_spill] sm:$0xff] }
 0x8f4   : > { %v6673_v5 = vpack.c.bf16 %v6657_v12, %v6656_v55  ;;  %v6701_v55 = vmul.f32 %v11949_v32, %v12897_v25 }
 0x8f6   : > { %7776 = vmatmul.mubr.msk.bf16.gmra.mrb[28].mxu0 %vm938_vm3, %v6673_v5 }
 0x991   : > { %v11932_v26 = vpop.f32.mrb[0].mxu0 }
 0x992   : > { %v11934_v28 = vpop.f32.mrb[1].mxu0 }
 0x993   : > { %v11936_v46 = vpop.f32.mrb[2].mxu0 }
 0x994   : > { %v11938_v31 = vpop.f32.mrb[3].mxu0 }
 0x999   : > { %v11940_v40 = vpop.f32.mrb[4].mxu0 }
 0x99a   : > { %v11942_v4 = vpop.f32.mrb[5].mxu0 }
 0x99b   : > { %v11944_v47 = vpop.f32.mrb[6].mxu0 }
 0x99c   : > { %v11946_v15 = vpop.f32.mrb[7].mxu0 }
 0x9a1   : > { %v7757_v16 = vpop.f32.mrb[8].mxu0 }
 0x9a2   : > { %v6834_v22 = vadd.f32 %v7757_v16, %v6686_v39  ;;  %v6825_v63 = vpop.f32.mrb[9].mxu0  ;;  %v6688_v39 = vmul.f32 %v11949_v32, %v12898_v36  ;;  %v12912_v36 = vld [vmem:[#allocation19_spill] sm:$0xff] }
 0x9a3   : > { %v7758_v52 = vpop.f32.mrb[10].mxu0  ;;  %v6826_v18 = vadd.f32 %v6825_v63, %v6684_v61  ;;  %v12900_v63 = vld [vmem:[#allocation39_spill] sm:$0xff] }
 0x9a4   : > { %v6837_v60 = vadd.f32 %v7758_v52, %v6687_v50  ;;  %6932 = vrot.lane.b32.xlu0 %v6834_v22, %s8713_s26  ;;  %v6828_v51 = vpop.f32.mrb[11].mxu0  ;;  %v12899_v50 = vld [vmem:[#allocation34_spill] sm:$0xff]  ;;  %v6696_v52 = vmul.f32 %v11949_v32, %v12900_v63 }
 0x9a5   : > { %v6829_v54 = vadd.f32 %v6828_v51, %v6685_v33  ;;  %v6689_v16 = vmul.f32 %v11949_v32, %v12899_v50  ;;  %v12901_v51 = vld [vmem:[#allocation42_spill] sm:$0xff] }
 0x9a6   : > { %6934 = vrot.lane.b32.xlu1 %v6837_v60, %s8713_s26 }
 0x9a8   : > { %6928 = vrot.lane.b32.xlu0 %v6826_v18, %s8713_s26  ;;  %v6697_v18 = vmul.f32 %v11949_v32, %v12901_v51 }
 0x9a9   : > { %v7761_v56 = vpop.f32.mrb[12].mxu0 }
 0x9aa   : > { %v6841_v29 = vpop.f32.mrb[13].mxu0  ;;  %6930 = vrot.lane.b32.xlu1 %v6829_v54, %s8713_s26 }
 0x9ab   : > { %v7762_v37 = vpop.f32.mrb[14].mxu0  ;;  %v6842_v61 = vadd.f32 %v6841_v29, %v6688_v39  ;;  %v12903_v29 = vld [vmem:[#allocation36_spill] sm:$0xff]  ;;  %v6677_v39 = vmul.f32 %v11949_v32, %v12912_v36 }
 0x9ac   : > { %v6844_v3 = vpop.f32.mrb[15].mxu0 }
 0x9ad   : > { %v6845_v33 = vadd.f32 %v6844_v3, %v6689_v16  ;;  %v6797_v63 = vadd.f32 %v11938_v31, %v6677_v39 }
 0x9b1   : > { %v7765_v23 = vpop.f32.mrb[16].mxu0 }
 0x9b2   : > { %v6866_v43 = vadd.f32 %v7765_v23, %v6694_v8  ;;  %v6857_v42 = vpop.f32.mrb[17].mxu0  ;;  %v6690_v8 = vmul.f32 %v11949_v32, %v12902_v30 }
 0x9b3   : > { %v7766_v38 = vpop.f32.mrb[18].mxu0  ;;  %v6858_v14 = vadd.f32 %v6857_v42, %v6692_v13 }
 0x9b4   : > { %v6869_v9 = vadd.f32 %v7766_v38, %v6695_v58  ;;  %v6860_v2 = vpop.f32.mrb[19].mxu0  ;;  %6964 = vrot.lane.b32.xlu0 %v6866_v43, %s12455_s28  ;;  %v6691_v58 = vmul.f32 %v11949_v32, %v12903_v29  ;;  %v12904_v43 = vld [vmem:[#allocation48_spill] sm:$0xff]  ;;  %v6850_v17 = vadd.f32 %v7761_v56, %v6690_v8  ;;  %v12905_v38 = vld [vmem:[#allocation49_spill] sm:$0xff] }
 0x9b5   : > { %v6861_v1 = vadd.f32 %v6860_v2, %v6693_v27  ;;  %v6704_v3 = vmul.f32 %v11949_v32, %v12904_v43  ;;  %v6698_v27 = vmul.f32 %v11949_v32, %v12906_v6  ;;  %v12907_v2 = vld [vmem:[#allocation44_spill] sm:$0xff] }
 0x9b6   : > { %6966 = vrot.lane.b32.xlu1 %v6869_v9, %s12455_s28  ;;  %v6853_v13 = vadd.f32 %v7762_v37, %v6691_v58  ;;  %v6705_v9 = vmul.f32 %v11949_v32, %v12905_v38 }
 0x9b8   : > { %6960 = vrot.lane.b32.xlu0 %v6858_v14, %s12455_s28  ;;  %v6699_v14 = vmul.f32 %v11949_v32, %v12907_v2 }
 0x9b9   : > { %v7769_v24 = vpop.f32.mrb[20].mxu0 }
 0x9ba   : > { %v6873_v20 = vpop.f32.mrb[21].mxu0  ;;  %6962 = vrot.lane.b32.xlu1 %v6861_v1, %s12455_s28  ;;  %v6882_v56 = vadd.f32 %v7769_v24, %v6698_v27  ;;  %v12915_v27 = vld [vmem:[#allocation23_spill] sm:$0xff] }
 0x9bb   : > { %v7770_v59 = vpop.f32.mrb[22].mxu0  ;;  %v6874_v49 = vadd.f32 %v6873_v20, %v6696_v52  ;;  %v12908_v20 = vld [vmem:[#allocation50_spill] sm:$0xff]  ;;  %v6681_v2 = vmul.f32 %v11949_v32, %v12915_v27 }
 0x9bc   : > { %v6876_v19 = vpop.f32.mrb[23].mxu0  ;;  %v6706_v37 = vmul.f32 %v11949_v32, %v12908_v20 }
 0x9bd   : > { %v6877_v23 = vadd.f32 %v6876_v19, %v6697_v18  ;;  %v6885_v19 = vadd.f32 %v7770_v59, %v6699_v14  ;;  %v6813_v20 = vadd.f32 %v11946_v15, %v6681_v2 }
 0x9c1   : > { %v7773_v48 = vpop.f32.mrb[24].mxu0 }
 0x9c2   : > { %v6898_v0 = vadd.f32 %v7773_v48, %v6702_v7  ;;  %v6889_v11 = vpop.f32.mrb[25].mxu0  ;;  %v6707_v7 = vmul.f32 %v11949_v32, %v12909_v57 }
 0x9c3   : > { %v7774_v45 = vpop.f32.mrb[26].mxu0  ;;  %v6890_v34 = vadd.f32 %v6889_v11, %v6700_v53 }
 0x9c4   : > { %v6901_v12 = vadd.f32 %v7774_v45, %v6703_v21  ;;  %v6892_v5 = vpop.f32.mrb[27].mxu0  ;;  %6996 = vrot.lane.b32.xlu0 %v6898_v0, %s8715_s29  ;;  %v12910_v45 = vld [vmem:[#allocation18_spill] sm:$0xff] }
 0x9c5   : > { %v6893_v22 = vadd.f32 %v6892_v5, %v6701_v55  ;;  %v12911_v55 = vld [vmem:[#allocation20_spill] sm:$0xff] }
 0x9c6   : > { %6998 = vrot.lane.b32.xlu1 %v6901_v12, %s8715_s29  ;;  %v6676_v12 = vmul.f32 %v11949_v32, %v12910_v45  ;;  %v6678_v5 = vmul.f32 %v11949_v32, %v12911_v55 }
 0x9c8   : > { %6992 = vrot.lane.b32.xlu0 %v6890_v34, %s8715_s29  ;;  %v6794_v50 = vadd.f32 %v11934_v28, %v6676_v12 }
 0x9c9   : > { %v7777_v44 = vpop.f32.mrb[28].mxu0 }
 0x9ca   : > { %6994 = vrot.lane.b32.xlu1 %v6893_v22, %s8715_s29  ;;  %v6905_v60 = vpop.f32.mrb[29].mxu0  ;;  %v6914_v62 = vadd.f32 %v7777_v44, %v6706_v37  ;;  %v6802_v22 = vadd.f32 %v11932_v26, %v6678_v5  ;;  %v12913_v44 = vld [vmem:[#allocation21_spill] sm:$0xff] }
 0x9cb   : > { %v7778_v10 = vpop.f32.mrb[30].mxu0  ;;  %v6906_v42 = vadd.f32 %v6905_v60, %v6704_v3 }
 0x9cc   : > { %6936 = vrot.lane.b32.xlu0 %v6842_v61, %s8713_s26  ;;  %v6908_v54 = vpop.f32.mrb[31].mxu0  ;;  %v6917_v21 = vadd.f32 %v7778_v10, %v6707_v7  ;;  %v6679_v61 = vmul.f32 %v11949_v32, %v12913_v44  ;;  %v12916_v7 = vld [vmem:[#allocation24_spill] sm:$0xff] }
 0x9cd   : > { %v6909_v1 = vadd.f32 %v6908_v54, %v6705_v9 }
 0x9ce   : > { %6938 = vrot.lane.b32.xlu1 %v6845_v33, %s8713_s26  ;;  %v6805_v31 = vadd.f32 %v11936_v46, %v6679_v61 }
 0x9d0   : > { %6968 = vrot.lane.b32.xlu0 %v6874_v49, %s12455_s28 }
 0x9d2   : > { %6970 = vrot.lane.b32.xlu1 %v6877_v23, %s12455_s28 }
 0x9d4   : > { %6940 = vrot.lane.b32.xlu0 %v6850_v17, %s8713_s26 }
 0x9d6   : > { %6942 = vrot.lane.b32.xlu1 %v6853_v13, %s8713_s26 }
 0x9d8   : > { %7000 = vrot.lane.b32.xlu0 %v6906_v42, %s8715_s29  ;;  %v12914_v42 = vld [vmem:[#allocation22_spill] sm:$0xff] }
 0x9d9   : > { %v6680_v38 = vmul.f32 %v11949_v32, %v12914_v42 }
 0x9da   : > { %7002 = vrot.lane.b32.xlu1 %v6909_v1, %s8715_s29 }
 0x9db   : > { %v6810_v1 = vadd.f32 %v11942_v4, %v6680_v38 }
 0x9dc   : > { %6972 = vrot.lane.b32.xlu0 %v6882_v56, %s12455_s28 }
 0x9de   : > { %6974 = vrot.lane.b32.xlu1 %v6885_v19, %s12455_s28 }
 0x9e0   : > { %7004 = vrot.lane.b32.xlu0 %v6914_v62, %s8715_s29  ;;  %v6682_v62 = vmul.f32 %v11949_v32, %v12916_v7 }
 0x9e2   : > { %7006 = vrot.lane.b32.xlu1 %v6917_v21, %s8715_s29  ;;  %v6818_v45 = vadd.f32 %v11940_v40, %v6682_v62  ;;  %s12162_s29 = scalar_lea.hbm %s12226_s14, %s7568_s27  ;;  %s8568_s27 = sshll.u32 %s8718_s21, 4  ;;  %s8569_s27 = int_to_ptr.vmem [resolvable:$false] %s8568_s27 }
 0x9e3   : > { %s8570_s19 = scalar_lea.vmem %s8569_s27, 512  ;;  %p8571_p1 = scmp.lt.s32.totalorder %s12165_s3, %s8569_s27 }
 0x9e4   : > { %p8572_p2 = scmp.lt.s32.totalorder %s8570_s19, %s8564_s30 }
 0x9e6   : > { %p8573_p3 = por %p8572_p2, %p8571_p1 }
 0x9e8   : > { %p8574_p4 = pnand %p8573_p3, %p8567_p0 }
 0xa16   : > { %v6933_v24 = vpop.permute.xlu0 %6932 }
 0xa17   : > { %v7018_v33 = vsel %vm724_vm2, %v6802_v22, %v6933_v24 }
 0xa18   : > { %v6935_v48 = vpop.permute.xlu1 %6934 }
 0xa19   : > { %v7019_v23 = vsel %vm724_vm2, %v6805_v31, %v6935_v48 }
 0xa1a   : > { %v6929_v0 = vpop.permute.xlu0 %6928 }
 0xa1b   : > { %v7016_v52 = vsel %vm724_vm2, %v6794_v50, %v6929_v0 }
 0xa1c   : > { %v6931_v35 = vpop.permute.xlu1 %6930 }
 0xa1d   : > { %v7017_v51 = vsel %vm724_vm2, %v6797_v63, %v6931_v35  ;;  %v12917_v35 = vld [vmem:[#allocation25_spill] sm:$0xff] }
 0xa1e   : > { %v6683_v15 = vmul.f32 %v11949_v32, %v12917_v35 }
 0xa26   : > { %v6965_v53 = vpop.permute.xlu0 %6964 }
 0xa27   : > { %v7026_v18 = vsel %vm938_vm3, %v7018_v33, %v6965_v53 }
 0xa28   : > { %v6967_v11 = vpop.permute.xlu1 %6966 }
 0xa29   : > { %v7027_v43 = vsel %vm938_vm3, %v7019_v23, %v6967_v11 }
 0xa2a   : > { %v6961_v59 = vpop.permute.xlu0 %6960 }
 0xa2b   : > { %v7024_v60 = vsel %vm938_vm3, %v7016_v52, %v6961_v59 }
 0xa2c   : > { %v6963_v25 = vpop.permute.xlu1 %6962 }
 0xa2d   : > { %v7025_v26 = vsel %vm938_vm3, %v7017_v51, %v6963_v25  ;;  %v6821_v25 = vadd.f32 %v11944_v47, %v6683_v15 }
 0xa36   : > { %v6997_v34 = vpop.permute.xlu0 %6996 }
 0xa37   : > { %v7035_v49 = vsel %vm7032_vm1, %v7026_v18, %v6997_v34 }
 0xa38   : > { %v6999_v16 = vpop.permute.xlu1 %6998  ;;  %v7047_v17 = vsel %vm493_vm0, %v7035_v49, 0.0 }
 0xa39   : > { %v7036_v13 = vsel %vm7032_vm1, %v7027_v43, %v6999_v16 }
 0xa3a   : > { %v6993_v10 = vpop.permute.xlu0 %6992  ;;  %v7050_v6 = vsel %vm493_vm0, %v7036_v13, 0.0 }
 0xa3b   : > { %v7033_v28 = vsel %vm7032_vm1, %v7024_v60, %v6993_v10 }
 0xa3c   : > { %v6995_v54 = vpop.permute.xlu1 %6994  ;;  %v7041_v30 = vsel %vm493_vm0, %v7033_v28, 0.0 }
 0xa3d   : > { %7042 = vadd.xlane.f32.xlu0 %v7041_v30  ;;  %v7034_v8 = vsel %vm7032_vm1, %v7025_v26, %v6995_v54 }
 0xa3e   : > { %v6937_v29 = vpop.permute.xlu0 %6936  ;;  %v7044_v58 = vsel %vm493_vm0, %v7034_v8, 0.0 }
 0xa3f   : > { %7045 = vadd.xlane.f32.xlu1 %v7044_v58  ;;  %v7020_v37 = vsel %vm724_vm2, %v6810_v1, %v6937_v29 }
 0xa40   : > { %v6939_v3 = vpop.permute.xlu1 %6938 }
 0xa41   : > { %7048 = vadd.xlane.f32.xlu0 %v7047_v17  ;;  %v7021_v21 = vsel %vm724_vm2, %v6813_v20, %v6939_v3 }
 0xa42   : > { %v6969_v46 = vpop.permute.xlu0 %6968 }
 0xa43   : > { %v7028_v19 = vsel %vm938_vm3, %v7020_v37, %v6969_v46 }
 0xa44   : > { %v6971_v9 = vpop.permute.xlu1 %6970 }
 0xa45   : > { %7051 = vadd.xlane.f32.xlu0 %v7050_v6  ;;  %v7029_v48 = vsel %vm938_vm3, %v7021_v21, %v6971_v9  ;;  %v8717_v21 = vmov 0  }
 0xa46   : > { %v6941_v14 = vpop.permute.xlu0 %6940  ;;  %8417 = vset.pattern.permute.xlu1 %v8717_v21  ;;  %8418 = vset.pattern.permute.xlu0 %v8717_v21 }
 0xa47   : > { %v7022_v55 = vsel %vm724_vm2, %v6818_v45, %v6941_v14 }
 0xa48   : > { %v6943_v56 = vpop.permute.xlu1 %6942 }
 0xa49   : > { %v7023_v39 = vsel %vm724_vm2, %v6821_v25, %v6943_v56  ;;  %vm8716_vm2 = vmmov 0  }
 0xa4a   : > { %v7001_v57 = vpop.permute.xlu0 %7000  ;;  %7787 = vmatprep.mubr.msk.bf16.mxu1 %vm8716_vm2, %v12823_v41 }
 0xa4b   : > { %v7037_v24 = vsel %vm7032_vm1, %v7028_v19, %v7001_v57 }
 0xa4c   : > { %v7003_v0 = vpop.permute.xlu1 %7002  ;;  %v7053_v4 = vsel %vm493_vm0, %v7037_v24, 0.0 }
 0xa4d   : > { %7054 = vadd.xlane.f32.xlu1 %v7053_v4  ;;  %v7038_v53 = vsel %vm7032_vm1, %v7029_v48, %v7003_v0  ;;  %v12919_v48 = vld [vmem:[#allocation13_spill] sm:$0xff] }
 0xa4e   : > { %v6973_v11 = vpop.permute.xlu0 %6972  ;;  %v7056_v59 = vsel %vm493_vm0, %v7038_v53, 0.0 }
 0xa4f   : > { %7057 = vadd.xlane.f32.xlu0 %v7056_v59  ;;  %v7030_v5 = vsel %vm938_vm3, %v7022_v55, %v6973_v11 }
 0xa50   : > { %v6975_v12 = vpop.permute.xlu1 %6974 }
 0xa51   : > { %v7031_v34 = vsel %vm938_vm3, %v7023_v39, %v6975_v12  ;;  %vm7238_vm3 = vcmask 523264  }
 0xa52   : > { %v7005_v36 = vpop.permute.xlu0 %7004 }
 0xa53   : > { %v7039_v32 = vsel %vm7032_vm1, %v7030_v5, %v7005_v36 }
 0xa54   : > { %v7007_v50 = vpop.permute.xlu1 %7006  ;;  %v7059_v16 = vsel %vm493_vm0, %v7039_v32, 0.0 }
 0xa55   : > { %7060 = vadd.xlane.f32.xlu1 %v7059_v16  ;;  %v7040_v40 = vsel %vm7032_vm1, %v7031_v34, %v7007_v50 }
 0xa56   : > { %v7062_v22 = vsel %vm493_vm0, %v7040_v40, 0.0 }
 0xa57   : > { %7063 = vadd.xlane.f32.xlu0 %v7062_v22  ;;  %v12920_v22 = vld [vmem:[#allocation16_spill] sm:$0xff] }
 0xaca   : > { %v7043_v47 = vpop.xlane.xlu0 %7042 }
 0xacb   : > { %v7065_v44 = vmul.f32 0.0625, %v7043_v47 }
 0xacc   : > { %v7046_v61 = vpop.xlane.xlu1 %7045 }
 0xacd   : > { %v12079_v63 = vsub.f32 %v7033_v28, %v7065_v44  ;;  %v7066_v52 = vmul.f32 0.0625, %v7046_v61 }
 0xace   : > { %v7049_v60 = vpop.xlane.xlu0 %7048 }
 0xacf   : > { %v12081_v10 = vsub.f32 %v7034_v8, %v7066_v52  ;;  %v7067_v33 = vmul.f32 0.0625, %v7049_v60  ;;  %v7081_v51 = vmul.f32 %v12079_v63, %v12079_v63 }
 0xad1   : > { %v12085_v18 = vsub.f32 %v7035_v49, %v7067_v33  ;;  %v7089_v26 = vsel %vm493_vm0, %v7081_v51, 0.0  ;;  %v7082_v54 = vmul.f32 %v12081_v10, %v12081_v10 }
 0xad2   : > { %7090 = vadd.xlane.f32.xlu1 %v7089_v26  ;;  %v7052_v30 = vpop.xlane.xlu0 %7051  ;;  %v12921_v26 = vld [vmem:[#allocation17_spill] sm:$0xff] }
 0xad3   : > { %v7068_v31 = vmul.f32 0.0625, %v7052_v30  ;;  %v7092_v28 = vsel %vm493_vm0, %v7082_v54, 0.0  ;;  %v7083_v8 = vmul.f32 %v12085_v18, %v12085_v18 }
 0xad4   : > { %7093 = vadd.xlane.f32.xlu0 %v7092_v28 }
 0xad5   : > { %v12093_v29 = vsub.f32 %v7036_v13, %v7068_v31  ;;  %v7095_v58 = vsel %vm493_vm0, %v7083_v8, 0.0 }
 0xad6   : > { %7096 = vadd.xlane.f32.xlu1 %v7095_v58 }
 0xad7   : > { %v7084_v49 = vmul.f32 %v12093_v29, %v12093_v29 }
 0xad9   : > { %v7098_v23 = vsel %vm493_vm0, %v7084_v49, 0.0 }
 0xada   : > { %v7055_v43 = vpop.xlane.xlu1 %7054  ;;  %7099 = vadd.xlane.f32.xlu0 %v7098_v23 }
 0xadb   : > { %v7069_v3 = vmul.f32 0.0625, %v7055_v43 }
 0xadc   : > { %v7058_v17 = vpop.xlane.xlu0 %7057 }
 0xadd   : > { %v12099_v46 = vsub.f32 %v7037_v24, %v7069_v3  ;;  %v7070_v42 = vmul.f32 0.0625, %v7058_v17  ;;  %v12918_v24 = vld [vmem:[#allocation12_spill] sm:$0xff] }
 0xadf   : > { %v12101_v38 = vsub.f32 %v7038_v53, %v7070_v42  ;;  %v7085_v13 = vmul.f32 %v12099_v46, %v12099_v46 }
 0xae1   : > { %v7101_v9 = vsel %vm493_vm0, %v7085_v13, 0.0  ;;  %v7086_v6 = vmul.f32 %v12101_v38, %v12101_v38 }
 0xae2   : > { %v7061_v27 = vpop.xlane.xlu1 %7060  ;;  %7102 = vadd.xlane.f32.xlu1 %v7101_v9 }
 0xae3   : > { %v7071_v2 = vmul.f32 0.0625, %v7061_v27  ;;  %v7104_v14 = vsel %vm493_vm0, %v7086_v6, 0.0 }
 0xae4   : > { %7105 = vadd.xlane.f32.xlu0 %v7104_v14  ;;  %v7064_v1 = vpop.xlane.xlu0 %7063 }
 0xae5   : > { %v12109_v56 = vsub.f32 %v7039_v32, %v7071_v2  ;;  %v7072_v20 = vmul.f32 0.0625, %v7064_v1 }
 0xae7   : > { %v12111_v37 = vsub.f32 %v7040_v40, %v7072_v20  ;;  %v7087_v19 = vmul.f32 %v12109_v56, %v12109_v56 }
 0xae9   : > { %v7107_v57 = vsel %vm493_vm0, %v7087_v19, 0.0  ;;  %v7088_v7 = vmul.f32 %v12111_v37, %v12111_v37 }
 0xaea   : > { %7108 = vadd.xlane.f32.xlu1 %v7107_v57 }
 0xaeb   : > { %v7110_v62 = vsel %vm493_vm0, %v7088_v7, 0.0 }
 0xaec   : > { %7111 = vadd.xlane.f32.xlu0 %v7110_v62 }
 0xafb   : > { %7169 = vperm.xlu1 %8417, %v12918_v24  }
 0xb02   : > { %7174 = vperm.xlu0 %8418, %v12919_v48  }
 0xb5f   : > { %v7091_v0 = vpop.xlane.xlu1 %7090 }
 0xb60   : > { %v7113_v4 = vmul.f32 0.0625, %v7091_v0 }
 0xb61   : > { %v7094_v35 = vpop.xlane.xlu0 %7093 }
 0xb62   : > { %v7121_v15 = vadd.f32 1e-05, %v7113_v4  ;;  %v7114_v53 = vmul.f32 0.0625, %v7094_v35 }
 0xb63   : > { %v7097_v11 = vpop.xlane.xlu1 %7096 }
 0xb64   : > { %8548 = vrsqrt.f32 %v7121_v15  ;;  %v7122_v59 = vadd.f32 1e-05, %v7114_v53  ;;  %v7115_v45 = vmul.f32 0.0625, %v7097_v11 }
 0xb66   : > { %8550 = vrsqrt.f32 %v7122_v59  ;;  %v7123_v12 = vadd.f32 1e-05, %v7115_v45 }
 0xb67   : > { %v7100_v25 = vpop.xlane.xlu0 %7099 }
 0xb68   : > { %8552 = vrsqrt.f32 %v7123_v12  ;;  %v7116_v55 = vmul.f32 0.0625, %v7100_v25 }
 0xb6a   : > { %v7124_v5 = vadd.f32 1e-05, %v7116_v55 }
 0xb6c   : > { %8554 = vrsqrt.f32 %v7124_v5 }
 0xb6e   : > { %v8549_v36 = vpop.eup %8548 }
 0xb6f   : > { %v7103_v39 = vpop.xlane.xlu1 %7102  ;;  %v7137_v32 = vmul.f32 %v8549_v36, %v12079_v63 }
 0xb70   : > { %v8551_v34 = vpop.eup %8550  ;;  %v7117_v50 = vmul.f32 0.0625, %v7103_v39 }
 0xb71   : > { %v7106_v16 = vpop.xlane.xlu0 %7105  ;;  %v7138_v40 = vmul.f32 %v8551_v34, %v12081_v10  ;;  %v7145_v47 = vmul.f32 %v12920_v22, %v7137_v32 }
 0xb72   : > { %v8553_v44 = vpop.eup %8552  ;;  %v7125_v61 = vadd.f32 1e-05, %v7117_v50  ;;  %v7118_v52 = vmul.f32 0.0625, %v7106_v16 }
 0xb73   : > { %v7146_v60 = vmul.f32 %v12920_v22, %v7138_v40  ;;  %v7139_v33 = vmul.f32 %v8553_v44, %v12085_v18  ;;  %v7153_v54 = vadd.f32 %v12921_v26, %v7145_v47 }
 0xb74   : > { %8556 = vrsqrt.f32 %v7125_v61  ;;  %v7126_v51 = vadd.f32 1e-05, %v7118_v52 }
 0xb75   : > { %v7154_v63 = vadd.f32 %v12921_v26, %v7146_v60  ;;  %v7147_v8 = vmul.f32 %v12920_v22, %v7139_v33 }
 0xb76   : > { %v8555_v30 = vpop.eup %8554  ;;  %8558 = vrsqrt.f32 %v7126_v51 }
 0xb77   : > { %v7109_v31 = vpop.xlane.xlu1 %7108  ;;  %v7163_v28 = vpack.c.bf16 %v7154_v63, %v7153_v54  ;;  %v7140_v10 = vmul.f32 %v8555_v30, %v12093_v29  ;;  %v7155_v17 = vadd.f32 %v12921_v26, %v7147_v8 }
 0xb78   : > { %v7119_v58 = vmul.f32 0.0625, %v7109_v31 }
 0xb79   : > { %v7112_v49 = vpop.xlane.xlu0 %7111  ;;  %v7186_v23 = vsel %vm493_vm0, %v7163_v28, 0  ;;  %v7148_v18 = vmul.f32 %v12920_v22, %v7140_v10 }
 0xb7a   : > { %v7127_v43 = vadd.f32 1e-05, %v7119_v58  ;;  %v7120_v3 = vmul.f32 0.0625, %v7112_v49  ;;  %7780 = vmatpush3.bf16.xpose.msra.mxu1 %v7186_v23 }
 0xb7b   : > { %7781 = vmatprep.subr.bf16.mxu1 %v12823_v41  ;;  %v7156_v42 = vadd.f32 %v12921_v26, %v7148_v18 }
 0xb7c   : > { %8560 = vrsqrt.f32 %v7127_v43  ;;  %v7128_v13 = vadd.f32 1e-05, %v7120_v3 }
 0xb7d   : > { %v7164_v29 = vpack.c.bf16 %v7156_v42, %v7155_v17 }
 0xb7e   : > { %v8557_v9 = vpop.eup %8556  ;;  %8562 = vrsqrt.f32 %v7128_v13 }
 0xb7f   : > { %v7141_v6 = vmul.f32 %v8557_v9, %v12099_v46  ;;  %v7189_v2 = vsel %vm493_vm0, %v7164_v29, 0 }
 0xb80   : > { %v8559_v27 = vpop.eup %8558 }
 0xb81   : > { %v7142_v14 = vmul.f32 %v8559_v27, %v12101_v38  ;;  %v7149_v1 = vmul.f32 %v12920_v22, %v7141_v6  ;;  %v7175_v11 = vpop.permute.xlu0 %7174 }
 0xb82   : > { %7782 = vmatpush3.bf16.xpose.msra.mxu1 %v7189_v2 }
 0xb83   : > { %7783 = vmatprep.subr.bf16.mxu1 %v12823_v41  ;;  %v7150_v20 = vmul.f32 %v12920_v22, %v7142_v14  ;;  %v7157_v19 = vadd.f32 %v12921_v26, %v7149_v1 }
 0xb85   : > { %v7158_v57 = vadd.f32 %v12921_v26, %v7150_v20 }
 0xb86   : > { %v8561_v7 = vpop.eup %8560 }
 0xb87   : > { %v7165_v62 = vpack.c.bf16 %v7158_v57, %v7157_v19  ;;  %v7143_v46 = vmul.f32 %v8561_v7, %v12109_v56 }
 0xb88   : > { %v8563_v21 = vpop.eup %8562 }
 0xb89   : > { %v7192_v24 = vsel %vm493_vm0, %v7165_v62, 0  ;;  %v7144_v38 = vmul.f32 %v8563_v21, %v12111_v37  ;;  %v7151_v48 = vmul.f32 %v12920_v22, %v7143_v46  ;;  %v8419_v37 = vld [vmem:[%s12223_s11] sm:$0xff]  }
 0xb8a   : > { %7784 = vmatpush3.bf16.xpose.msra.mxu1 %v7192_v24 }
 0xb8b   : > { %7785 = vmatprep.subr.bf16.mxu1 %v12823_v41  ;;  %v7152_v0 = vmul.f32 %v12920_v22, %v7144_v38  ;;  %v7159_v4 = vadd.f32 %v12921_v26, %v7151_v48  ;;  %v7170_v41 = vpop.permute.xlu1 %7169 }
 0xb8d   : > { %v7160_v35 = vadd.f32 %v12921_v26, %v7152_v0 }
 0xb8f   : > { %v7166_v56 = vpack.c.bf16 %v7160_v35, %v7159_v4 }
 0xb91   : > { %v7195_v15 = vsel %vm493_vm0, %v7166_v56, 0 }
 0xb92   : > { %7786 = vmatpush3.bf16.xpose.msra.mxu1 %v7195_v15 }
 0xb99   : > { %7788 = vmatmul.mubr.msk.bf16.vlgmr.msra.gmra.mrb[0].mxu1 %vm493_vm0, %v8419_v37 }
 0xc6c   : > { %v7231_v53 = vpop.f32.mrb[0].mxu1 }
 0xc6d   : > { %v7232_v59 = vadd.f32 %v7231_v53, %v7170_v41  ;;  %v7789_v45 = vpop.f32.mrb[1].mxu1 }
 0xc6e   : > { %v7234_v12 = vpop.f32.mrb[2].mxu1 }
 0xc6f   : > { %7239 = vst.msk [vmem:[%s10564_s0] sm:$0xff] %vm7238_vm3, %v7232_v59  ;;  %v7235_v25 = vadd.f32 %v7234_v12, %v7175_v11  ;;  %v7790_v55 = vpop.f32.mrb[3].mxu1 }
 0xc71   : > { %7240 = vst.msk [vmem:[%s10564_s0 + $0x8] sm:$0xff] %vm7238_vm3, %v7235_v25 }
 0xc72   : > { %8577 = shalt.err (!%p8574_p4)
}
 0xc73   : > { %s8578_s22 = scalar_lea.hbm %s12162_s29, 256  ;;  %s8582_s21 = scalar_lea.hbm %s12226_s14, 512 }
 0xc74   : > { %p8579_p7 = scmp.ne.s32.totalorder %s12162_s29, %s8578_s22  ;;  %p8583_p10 = scmp.lt.u32.totalorder %s12162_s29, %s12226_s14 }
 0xc75   : > { %p8584_p11 = scmp.lt.u32.totalorder %s8582_s21, %s8578_s22  ;;  %p8586_p13 = scmp.lt.u32.totalorder %s8578_s22, %s12162_s29 }
 0xc76   : > { %p8580_p8 = pnand %p8579_p7, %p8836_p5 }
 0xc77   : > { %p8585_p12 = por %p8584_p11, %p8583_p10 }
 0xc78   : > { %p8581_p9 = pneg %p8580_p8 }
 0xc79   : > { %p8587_p0 = por %p8586_p13, %p8585_p12 }
 0xc7b   : > { %p8588_p1 = pnand %p8587_p0, %p8581_p9 }
 0xc7d   : > { %8591 = shalt.err (!%p8588_p1)
}
 0xc7e   : > { %s8719_s30 = smov 128   ;;  %s12922_s19 = smov 8  }
 0xc7f   : > { %7794 = dma.vmem_to_hbm [thread:$0]  (%p8836_p5), %s12165_s3, 256, %s12162_s29, %s12170_s13, %s8719_s30, %s8719_s30, %s12922_s19  }
 0xc80 PF: > { %p7800_p2 = scmp.ge.s32.totalorder %s8662_s18, 2  ;;  %s7270_s28 = sand.u32 1, %s8650_s15  }
 0xc81   : > { %s7271_s22 = scalar_lea.sflag [#allocation9], %s7270_s28 }
 0xc82   : > { %p7797_p3 = pnand %p7800_p2, %p8840_p6 }
 0xc84   : > { %8645 = dma.done.wait (!%p7797_p3), %s7271_s22, 256  }
 0xc85   : > { %8647 = vsyncadd (!%p7797_p3), %s7271_s22, 4294967040  ;;  %p25_p4 = scmp.ge.s32.totalorder %s8823_s20, 4   ;;  %s12923_s15 = smov %s8654_s16 }
 0xc86   : > { %s12924_s16 = smov %s8658_s17  ;;  %s12925_s17 = smov %s8834_s23 }
 0xc87   : > { %s12926_s18 = smov %s8823_s20  ;;  %27 = sbr.rel (!%p25_p4) target bundleno = 7 (0x7), region = 145 }
 0xc8e   :  { %7276 = vsyncpa [#allocation9], 1 }
 0xc8f   :  { %7278 = vsyncpa [#allocation9 + $0x1], 1 }

</bundles_post_ra>
